<compile_context>
chip_gen: v6e
topology: v6e:2x2x1
jax: 0.10.0
libtpu: 0.0.40
codegen_flags: <defaults>
</compile_context>

<pallas_src>
import math
import functools

import jax
import jax.numpy as jnp
from jax.experimental import pallas as pl
from jax.experimental.pallas import tpu as pltpu

E = 320        # embed dim (hard-coded by the module: 320*2 time emb / reduce_dim)
T_DIM = 32     # sinusoidal time-embedding dim
EPS = 1e-5     # nn.LayerNorm default eps
NEG_INF = -1e30


# ----------------------------------------------------------------------------
# pure-value helpers used inside kernels (all f32 elementwise math)
# ----------------------------------------------------------------------------
def _gelu(x):
    # tanh-approximate GELU: transcendental goes to the EUP instead of a VALU polynomial.
    c = math.sqrt(2.0 / math.pi)
    return 0.5 * x * (1.0 + jnp.tanh(c * (x + 0.044715 * x * x * x)))


def _layernorm(x, g, b):
    mu = jnp.mean(x, axis=-1, keepdims=True)
    xc = x - mu
    var = jnp.mean(xc * xc, axis=-1, keepdims=True)
    return xc * jax.lax.rsqrt(var + EPS) * g + b


def _bf16(x):
    return x.astype(jnp.bfloat16)


# ----------------------------------------------------------------------------
# Pallas kernels
# ----------------------------------------------------------------------------
def _timemlp_kernel(te_ref, w1_ref, b1_ref, w2_ref, b2_ref, o_ref):
    # Linear(32,32) -> GELU -> Linear(32,640), fused.
    h = jnp.dot(_bf16(te_ref[...]), w1_ref[...],
                preferred_element_type=jnp.float32) + b1_ref[...]
    h = _gelu(h)
    o_ref[...] = jnp.dot(_bf16(h), w2_ref[...],
                         preferred_element_type=jnp.float32) + b2_ref[...]


def _prologue_kernel(xsc_ref, x_ref, w1_ref, b1_ref, w2_ref, b2_ref,
                     sc_ref, sh_ref, o_ref):
    # reduce_dim: [x_self_cond | rep] @ W1 (split to avoid HBM concat) -> GELU -> W2,
    # fused with FiLM: y * (scale + 1) + shift.
    e = x_ref.shape[-1]
    h = jnp.dot(_bf16(xsc_ref[...]), w1_ref[0:e, :],
                preferred_element_type=jnp.float32)
    h = h + jnp.dot(_bf16(x_ref[...]), w1_ref[e:2 * e, :],
                    preferred_element_type=jnp.float32)
    h = _gelu(h + b1_ref[...])
    y = jnp.dot(_bf16(h), w2_ref[...],
                preferred_element_type=jnp.float32) + b2_ref[...]
    o_ref[...] = y * (sc_ref[...] + 1.0) + sh_ref[...]


def _layer_kernel(*refs, scaling, n_heads, head_dim, final_ln):
    # One full pre-LN transformer layer (optionally + final emb_layer_norm_after),
    # activations resident in vregs/VMEM for the whole layer.
    if final_ln:
        (x_ref, bias_ref,
         ln1_g, ln1_b, wqkv_ref, bqkv_ref, wo_ref, bo_ref,
         ln2_g, ln2_b, fc1_w, fc1_b, fc2_w, fc2_b,
         lnf_g, lnf_b, o_ref) = refs
    else:
        (x_ref, bias_ref,
         ln1_g, ln1_b, wqkv_ref, bqkv_ref, wo_ref, bo_ref,
         ln2_g, ln2_b, fc1_w, fc1_b, fc2_w, fc2_b,
         o_ref) = refs
        lnf_g = lnf_b = None

    x = x_ref[...]                       # (M, E) f32
    bias = bias_ref[...]                 # (M, M) f32 additive attention bias
    e = n_heads * head_dim

    # ---- self-attention block (pre-LN) ----
    xn = _layernorm(x, ln1_g[...], ln1_b[...])
    qkv = jnp.dot(_bf16(xn), wqkv_ref[...],
                  preferred_element_type=jnp.float32) + bqkv_ref[...]   # (M, 3E)

    proj = None
    for h in range(n_heads):                     # static unroll (H small)
        lo = h * head_dim
        q_h = qkv[:, lo:lo + head_dim]                          # (M, Dh)
        k_h = qkv[:, e + lo:e + lo + head_dim]                  # (M, Dh)
        v_h = qkv[:, 2 * e + lo:2 * e + lo + head_dim]          # (M, Dh)

        # scores: q @ k^T via dot_general (contract dim 1 of both; no XLU transpose)
        s = jax.lax.dot_general(_bf16(q_h), _bf16(k_h),
                                (((1,), (1,)), ((), ())),
                                preferred_element_type=jnp.float32)
        s = s * scaling + bias                                  # (M, M)

        m = jnp.max(s, axis=-1, keepdims=True)
        p = jnp.exp(s - m)
        l = jnp.sum(p, axis=-1, keepdims=True)
        inv_l = pl.reciprocal(jnp.maximum(l, 1e-20), approx=True)   # EUP, guards l==0
        p = p * inv_l

        o_h = jnp.dot(_bf16(p), _bf16(v_h),
                      preferred_element_type=jnp.float32)       # (M, Dh)

        # fold the output projection per head: attn @ Wo == sum_h o_h @ Wo[h*Dh:(h+1)*Dh]
        w_o_h = wo_ref[lo:lo + head_dim, :]                     # (Dh, E) bf16
        contrib = jnp.dot(_bf16(o_h), w_o_h,
                          preferred_element_type=jnp.float32)   # (M, E)
        proj = contrib if proj is None else proj + contrib

    x = x + proj + bo_ref[...]                                  # residual

    # ---- feed-forward block (pre-LN) ----
    xn = _layernorm(x, ln2_g[...], ln2_b[...])
    hf = jnp.dot(_bf16(xn), fc1_w[...],
                 preferred_element_type=jnp.float32) + fc1_b[...]
    hf = _gelu(hf)
    x = x + jnp.dot(_bf16(hf), fc2_w[...],
                    preferred_element_type=jnp.float32) + fc2_b[...]

    if final_ln:
        x = _layernorm(x, lnf_g[...], lnf_b[...])

    o_ref[...] = x


# ----------------------------------------------------------------------------
# pallas_call wrappers (grid-less: whole problem fits in VMEM at these sizes)
# ----------------------------------------------------------------------------
def time_mlp(te, params):
    b = te.shape[0]
    return pl.pallas_call(
        _timemlp_kernel,
        out_shape=jax.ShapeDtypeStruct((b, 2 * E), jnp.float32),
    )(te, params["tm_w1"], params["tm_b1"], params["tm_w2"], params["tm_b2"])


def prologue(xsc, x, scale_f, shift_f, params):
    m = x.shape[0]
    return pl.pallas_call(
        _prologue_kernel,
        out_shape=jax.ShapeDtypeStruct((m, E), jnp.float32),
    )(xsc, x, params["rd_w1"], params["rd_b1"], params["rd_w2"], params["rd_b2"],
      scale_f, shift_f)


def fused_layer(x, bias, lp, params, scaling, n_heads, head_dim, final_ln):
    m, e = x.shape
    args = [x, bias,
            lp["ln1_g"], lp["ln1_b"], lp["wqkv"], lp["bqkv"], lp["wo"], lp["bo"],
            lp["ln2_g"], lp["ln2_b"], lp["fc1_w"], lp["fc1_b"], lp["fc2_w"], lp["fc2_b"]]
    if final_ln:
        args += [params["lnf_g"], params["lnf_b"]]
    kernel = functools.partial(_layer_kernel, scaling=scaling, n_heads=n_heads,
                               head_dim=head_dim, final_ln=final_ln)
    return pl.pallas_call(
        kernel,
        out_shape=jax.ShapeDtypeStruct((m, e), jnp.float32),
    )(*args)


# ----------------------------------------------------------------------------
# glue: sinusoidal time embedding + attention-bias construction (tiny, plain JAX)
# ----------------------------------------------------------------------------
def sinusoidal_pos_emb(t, dim):
    half = dim // 2
    scale = math.log(10000.0) / (half - 1)
    freqs = jnp.exp(jnp.arange(half, dtype=jnp.float32) * -scale)
    e = t.astype(jnp.float32)[:, None] * freqs[None, :]
    return jnp.concatenate([jnp.sin(e), jnp.cos(e)], axis=-1)   # (B, dim)


# ----------------------------------------------------------------------------
# full forward pass
# ----------------------------------------------------------------------------
def transformer_denoiser_forward(params, rep, t, x_self_cond, padding_mask):
    # rep, x_self_cond: (B, T, E); t: (B,); padding_mask: (B, T) bool (True = pad)
    B, T, _ = rep.shape
    H = params["n_heads"]
    Dh = E // H
    M = B * T

    x = rep.reshape(M, E)                                   # row m = b*T + t (no transposes)
    xsc = (x_self_cond.reshape(M, E)
           if x_self_cond is not None else jnp.zeros_like(x))

    # time_mlp: SinusoidalPosEmb(32) -> Linear(32,32) -> GELU -> Linear(32,640)
    te = sinusoidal_pos_emb(t, T_DIM)                       # (B, 32)
    time_emb = time_mlp(te, params)                         # (B, 640)
    scale, shift = time_emb[:, :E], time_emb[:, E:]
    scale_f = jnp.repeat(scale, T, axis=0)                  # (M, E) broadcast over T
    shift_f = jnp.repeat(shift, T, axis=0)

    # fused reduce_dim + FiLM
    x = prologue(xsc, x, scale_f, shift_f, params)          # (M, E)

    # additive attention bias: block-diagonal (rows of the same batch) + key padding
    row_b = jnp.arange(M, dtype=jnp.int32) // T
    key_pad = padding_mask.reshape(M)
    valid = (row_b[:, None] == row_b[None, :]) & jnp.logical_not(key_pad)[None, :]
    bias = jnp.where(valid, jnp.float32(0.0), jnp.float32(NEG_INF))   # (M, M)

    scaling = Dh ** -0.5
    n_layers = len(params["layers"])
    for li, lp in enumerate(params["layers"]):
        # emb_layer_norm_after fused into the last layer's kernel
        x = fused_layer(x, bias, lp, params, scaling, H, Dh,
                        final_ln=(li == n_layers - 1))

    return x.reshape(B, T, E)


# ----------------------------------------------------------------------------
# deterministic synthetic parameters (matmul weights stored bf16; LN/bias f32)
# ----------------------------------------------------------------------------
def init_params(key, n_layers=2, n_heads=4, ffn=640):
    assert E % n_heads == 0
    keys = iter(jax.random.split(key, 8 * n_layers + 16))

    def W(shape):
        return (0.02 * jax.random.normal(next(keys), shape, jnp.float32)).astype(jnp.bfloat16)

    def Zrow(n):
        return jnp.zeros((1, n), jnp.float32)

    def Orow(n):
        return jnp.ones((1, n), jnp.float32)

    params = {
        "n_heads": n_heads,
        "rd_w1": W((2 * E, E)), "rd_b1": Zrow(E),
        "rd_w2": W((E, E)),     "rd_b2": Zrow(E),
        "tm_w1": W((T_DIM, T_DIM)), "tm_b1": Zrow(T_DIM),
        "tm_w2": W((T_DIM, 2 * E)), "tm_b2": Zrow(2 * E),
        "lnf_g": Orow(E), "lnf_b": Zrow(E),
        "layers": [],
    }
    for _ in range(n_layers):
        params["layers"].append({
            "ln1_g": Orow(E), "ln1_b": Zrow(E),
            "wqkv": W((E, 3 * E)), "bqkv": Zrow(3 * E),   # fused Q|K|V projection
            "wo": W((E, E)),       "bo": Zrow(E),
            "ln2_g": Orow(E), "ln2_b": Zrow(E),
            "fc1_w": W((E, ffn)), "fc1_b": Zrow(ffn),
            "fc2_w": W((ffn, E)), "fc2_b": Zrow(E),
        })
    return params


# ----------------------------------------------------------------------------
if __name__ == "__main__":
    key = jax.random.PRNGKey(0)
    k_rep, k_sc, k_t, k_p = jax.random.split(key, 4)

    B, T = 2, 8
    rep = jax.random.normal(k_rep, (B, T, E), jnp.float32)
    x_self_cond = jax.random.normal(k_sc, (B, T, E), jnp.float32)
    t = jax.random.uniform(k_t, (B,), jnp.float32) * 1000.0
    # last two positions of each sequence are padding
    padding_mask = jnp.zeros((B, T), jnp.bool_).at[:, -2:].set(True)

    params = init_params(k_p, n_layers=2, n_heads=4, ffn=640)

    fwd = jax.jit(functools.partial(transformer_denoiser_forward, params))
    out = fwd(rep, t, x_self_cond, padding_mask)
    out = jax.block_until_ready(out)

    assert out.shape == (B, T, E) and out.dtype == jnp.float32
    assert bool(jnp.all(jnp.isfinite(out)))
    print("KERNEL_OK")
</pallas_src>

<mosaic_0001>
module attributes {stable_mosaic.version = 11 : i64} {
  func.func @_timemlp_kernel(%arg0: memref<2x32xf32, #tpu.memory_space<vmem>>, %arg1: memref<32x32xbf16, #tpu.memory_space<vmem>>, %arg2: memref<1x32xf32, #tpu.memory_space<vmem>>, %arg3: memref<32x640xbf16, #tpu.memory_space<vmem>>, %arg4: memref<1x640xf32, #tpu.memory_space<vmem>>, %arg5: memref<2x640xf32, #tpu.memory_space<vmem>>) attributes {dimension_semantics = [], scalar_prefetch = 0 : i64, scratch_operands = 0 : i64, tpu.core_type = #tpu.core_type<tc>} {
    %c0 = arith.constant 0 : index
    %c0_0 = arith.constant 0 : index
    %0 = vector.load %arg0[%c0, %c0_0] : memref<2x32xf32, #tpu.memory_space<vmem>>, vector<2x32xf32>
    %1 = arith.truncf %0 : vector<2x32xf32> to vector<2x32xbf16>
    %c0_1 = arith.constant 0 : index
    %c0_2 = arith.constant 0 : index
    %2 = vector.load %arg1[%c0_1, %c0_2] : memref<32x32xbf16, #tpu.memory_space<vmem>>, vector<32x32xbf16>
    %cst = arith.constant dense<0.000000e+00> : vector<2x32xf32>
    %3 = tpu.matmul %1, %2, %cst {dimension_numbers = #tpu.dot_dimension_numbers<[1], [0], [0], [1], [0, 0, 1, 1], [], []>} : vector<2x32xbf16>, vector<32x32xbf16>, vector<2x32xf32> -> vector<2x32xf32>
    %c0_3 = arith.constant 0 : index
    %c0_4 = arith.constant 0 : index
    %4 = vector.load %arg2[%c0_3, %c0_4] : memref<1x32xf32, #tpu.memory_space<vmem>>, vector<1x32xf32>
    %5 = vector.broadcast %4 : vector<1x32xf32> to vector<2x32xf32>
    %6 = arith.addf %3, %5 : vector<2x32xf32>
    %cst_5 = arith.constant 5.000000e-01 : f32
    %7 = vector.broadcast %cst_5 : f32 to vector<2x32xf32>
    %8 = arith.mulf %7, %6 : vector<2x32xf32>
    %cst_6 = arith.constant 4.471500e-02 : f32
    %9 = vector.broadcast %cst_6 : f32 to vector<2x32xf32>
    %10 = arith.mulf %9, %6 : vector<2x32xf32>
    %11 = arith.mulf %10, %6 : vector<2x32xf32>
    %12 = arith.mulf %11, %6 : vector<2x32xf32>
    %13 = arith.addf %6, %12 : vector<2x32xf32>
    %cst_7 = arith.constant 0.797884583 : f32
    %14 = vector.broadcast %cst_7 : f32 to vector<2x32xf32>
    %15 = arith.mulf %14, %13 : vector<2x32xf32>
    %16 = math.tanh %15 : vector<2x32xf32>
    %cst_8 = arith.constant 1.000000e+00 : f32
    %17 = vector.broadcast %cst_8 : f32 to vector<2x32xf32>
    %18 = arith.addf %17, %16 : vector<2x32xf32>
    %19 = arith.mulf %8, %18 : vector<2x32xf32>
    %20 = arith.truncf %19 : vector<2x32xf32> to vector<2x32xbf16>
    %c0_9 = arith.constant 0 : index
    %c0_10 = arith.constant 0 : index
    %21 = vector.load %arg3[%c0_9, %c0_10] : memref<32x640xbf16, #tpu.memory_space<vmem>>, vector<32x640xbf16>
    %cst_11 = arith.constant dense<0.000000e+00> : vector<2x640xf32>
    %22 = tpu.matmul %20, %21, %cst_11 {dimension_numbers = #tpu.dot_dimension_numbers<[1], [0], [0], [1], [0, 0, 1, 1], [], []>} : vector<2x32xbf16>, vector<32x640xbf16>, vector<2x640xf32> -> vector<2x640xf32>
    %c0_12 = arith.constant 0 : index
    %c0_13 = arith.constant 0 : index
    %23 = vector.load %arg4[%c0_12, %c0_13] : memref<1x640xf32, #tpu.memory_space<vmem>>, vector<1x640xf32>
    %24 = vector.broadcast %23 : vector<1x640xf32> to vector<2x640xf32>
    %25 = arith.addf %22, %24 : vector<2x640xf32>
    %c0_14 = arith.constant 0 : index
    %c0_15 = arith.constant 0 : index
    %26 = vector.load %arg5[%c0_14, %c0_15] : memref<2x640xf32, #tpu.memory_space<vmem>>, vector<2x640xf32>
    tpu.vector_store %arg5[%c0_14, %c0_15], %25 {strides = array<i32>} : memref<2x640xf32, #tpu.memory_space<vmem>>, vector<2x640xf32>,
    return
  }
}

module attributes {stable_mosaic.version = 11 : i64} {
  func.func @_prologue_kernel(%arg0: memref<16x320xf32, #tpu.memory_space<vmem>>, %arg1: memref<16x320xf32, #tpu.memory_space<vmem>>, %arg2: memref<640x320xbf16, #tpu.memory_space<vmem>>, %arg3: memref<1x320xf32, #tpu.memory_space<vmem>>, %arg4: memref<320x320xbf16, #tpu.memory_space<vmem>>, %arg5: memref<1x320xf32, #tpu.memory_space<vmem>>, %arg6: memref<16x320xf32, #tpu.memory_space<vmem>>, %arg7: memref<16x320xf32, #tpu.memory_space<vmem>>, %arg8: memref<16x320xf32, #tpu.memory_space<vmem>>) attributes {dimension_semantics = [], scalar_prefetch = 0 : i64, scratch_operands = 0 : i64, tpu.core_type = #tpu.core_type<tc>} {
    %c0 = arith.constant 0 : index
    %c0_0 = arith.constant 0 : index
    %0 = vector.load %arg0[%c0, %c0_0] : memref<16x320xf32, #tpu.memory_space<vmem>>, vector<16x320xf32>
    %1 = arith.truncf %0 : vector<16x320xf32> to vector<16x320xbf16>
    %c0_1 = arith.constant 0 : index
    %c0_2 = arith.constant 0 : index
    %2 = vector.load %arg2[%c0_1, %c0_2] : memref<640x320xbf16, #tpu.memory_space<vmem>>, vector<320x320xbf16>
    %cst = arith.constant dense<0.000000e+00> : vector<16x320xf32>
    %3 = tpu.matmul %1, %2, %cst {dimension_numbers = #tpu.dot_dimension_numbers<[1], [0], [0], [1], [0, 0, 1, 1], [], []>} : vector<16x320xbf16>, vector<320x320xbf16>, vector<16x320xf32> -> vector<16x320xf32>
    %c0_3 = arith.constant 0 : index
    %c0_4 = arith.constant 0 : index
    %4 = vector.load %arg1[%c0_3, %c0_4] : memref<16x320xf32, #tpu.memory_space<vmem>>, vector<16x320xf32>
    %5 = arith.truncf %4 : vector<16x320xf32> to vector<16x320xbf16>
    %c320 = arith.constant 320 : index
    %c0_5 = arith.constant 0 : index
    %6 = vector.load %arg2[%c320, %c0_5] : memref<640x320xbf16, #tpu.memory_space<vmem>>, vector<320x320xbf16>
    %cst_6 = arith.constant dense<0.000000e+00> : vector<16x320xf32>
    %7 = tpu.matmul %5, %6, %cst_6 {dimension_numbers = #tpu.dot_dimension_numbers<[1], [0], [0], [1], [0, 0, 1, 1], [], []>} : vector<16x320xbf16>, vector<320x320xbf16>, vector<16x320xf32> -> vector<16x320xf32>
    %8 = arith.addf %3, %7 : vector<16x320xf32>
    %c0_7 = arith.constant 0 : index
    %c0_8 = arith.constant 0 : index
    %9 = vector.load %arg3[%c0_7, %c0_8] : memref<1x320xf32, #tpu.memory_space<vmem>>, vector<1x320xf32>
    %10 = vector.broadcast %9 : vector<1x320xf32> to vector<16x320xf32>
    %11 = arith.addf %8, %10 : vector<16x320xf32>
    %cst_9 = arith.constant 5.000000e-01 : f32
    %12 = vector.broadcast %cst_9 : f32 to vector<16x320xf32>
    %13 = arith.mulf %12, %11 : vector<16x320xf32>
    %cst_10 = arith.constant 4.471500e-02 : f32
    %14 = vector.broadcast %cst_10 : f32 to vector<16x320xf32>
    %15 = arith.mulf %14, %11 : vector<16x320xf32>
    %16 = arith.mulf %15, %11 : vector<16x320xf32>
    %17 = arith.mulf %16, %11 : vector<16x320xf32>
    %18 = arith.addf %11, %17 : vector<16x320xf32>
    %cst_11 = arith.constant 0.797884583 : f32
    %19 = vector.broadcast %cst_11 : f32 to vector<16x320xf32>
    %20 = arith.mulf %19, %18 : vector<16x320xf32>
    %21 = math.tanh %20 : vector<16x320xf32>
    %cst_12 = arith.constant 1.000000e+00 : f32
    %22 = vector.broadcast %cst_12 : f32 to vector<16x320xf32>
    %23 = arith.addf %22, %21 : vector<16x320xf32>
    %24 = arith.mulf %13, %23 : vector<16x320xf32>
    %25 = arith.truncf %24 : vector<16x320xf32> to vector<16x320xbf16>
    %c0_13 = arith.constant 0 : index
    %c0_14 = arith.constant 0 : index
    %26 = vector.load %arg4[%c0_13, %c0_14] : memref<320x320xbf16, #tpu.memory_space<vmem>>, vector<320x320xbf16>
    %cst_15 = arith.constant dense<0.000000e+00> : vector<16x320xf32>
    %27 = tpu.matmul %25, %26, %cst_15 {dimension_numbers = #tpu.dot_dimension_numbers<[1], [0], [0], [1], [0, 0, 1, 1], [], []>} : vector<16x320xbf16>, vector<320x320xbf16>, vector<16x320xf32> -> vector<16x320xf32>
    %c0_16 = arith.constant 0 : index
    %c0_17 = arith.constant 0 : index
    %28 = vector.load %arg5[%c0_16, %c0_17] : memref<1x320xf32, #tpu.memory_space<vmem>>, vector<1x320xf32>
    %29 = vector.broadcast %28 : vector<1x320xf32> to vector<16x320xf32>
    %30 = arith.addf %27, %29 : vector<16x320xf32>
    %c0_18 = arith.constant 0 : index
    %c0_19 = arith.constant 0 : index
    %31 = vector.load %arg6[%c0_18, %c0_19] : memref<16x320xf32, #tpu.memory_space<vmem>>, vector<16x320xf32>
    %cst_20 = arith.constant 1.000000e+00 : f32
    %32 = vector.broadcast %cst_20 : f32 to vector<16x320xf32>
    %33 = arith.addf %31, %32 : vector<16x320xf32>
    %34 = arith.mulf %30, %33 : vector<16x320xf32>
    %c0_21 = arith.constant 0 : index
    %c0_22 = arith.constant 0 : index
    %35 = vector.load %arg7[%c0_21, %c0_22] : memref<16x320xf32, #tpu.memory_space<vmem>>, vector<16x320xf32>
    %36 = arith.addf %34, %35 : vector<16x320xf32>
    %c0_23 = arith.constant 0 : index
    %c0_24 = arith.constant 0 : index
    %37 = vector.load %arg8[%c0_23, %c0_24] : memref<16x320xf32, #tpu.memory_space<vmem>>, vector<16x320xf32>
    tpu.vector_store %arg8[%c0_23, %c0_24], %36 {strides = array<i32>} : memref<16x320xf32, #tpu.memory_space<vmem>>, vector<16x320xf32>,
    return
  }
}

module attributes {stable_mosaic.version = 11 : i64} {
  func.func @_layer_kernel(%arg0: memref<16x320xf32, #tpu.memory_space<vmem>>, %arg1: memref<16x16xf32, #tpu.memory_space<vmem>>, %arg2: memref<1x320xf32, #tpu.memory_space<vmem>>, %arg3: memref<1x320xf32, #tpu.memory_space<vmem>>, %arg4: memref<320x960xbf16, #tpu.memory_space<vmem>>, %arg5: memref<1x960xf32, #tpu.memory_space<vmem>>, %arg6: memref<320x320xbf16, #tpu.memory_space<vmem>>, %arg7: memref<1x320xf32, #tpu.memory_space<vmem>>, %arg8: memref<1x320xf32, #tpu.memory_space<vmem>>, %arg9: memref<1x320xf32, #tpu.memory_space<vmem>>, %arg10: memref<320x640xbf16, #tpu.memory_space<vmem>>, %arg11: memref<1x640xf32, #tpu.memory_space<vmem>>, %arg12: memref<640x320xbf16, #tpu.memory_space<vmem>>, %arg13: memref<1x320xf32, #tpu.memory_space<vmem>>, %arg14: memref<1x320xf32, #tpu.memory_space<vmem>>, %arg15: memref<1x320xf32, #tpu.memory_space<vmem>>, %arg16: memref<16x320xf32, #tpu.memory_space<vmem>>) attributes {dimension_semantics = [], scalar_prefetch = 0 : i64, scratch_operands = 0 : i64, tpu.core_type = #tpu.core_type<tc>} {
    %c0 = arith.constant 0 : index
    %c0_0 = arith.constant 0 : index
    %0 = vector.load %arg0[%c0, %c0_0] : memref<16x320xf32, #tpu.memory_space<vmem>>, vector<16x320xf32>
    %c0_1 = arith.constant 0 : index
    %c0_2 = arith.constant 0 : index
    %1 = vector.load %arg1[%c0_1, %c0_2] : memref<16x16xf32, #tpu.memory_space<vmem>>, vector<16x16xf32>
    %c0_3 = arith.constant 0 : index
    %c0_4 = arith.constant 0 : index
    %2 = vector.load %arg2[%c0_3, %c0_4] : memref<1x320xf32, #tpu.memory_space<vmem>>, vector<1x320xf32>
    %c0_5 = arith.constant 0 : index
    %c0_6 = arith.constant 0 : index
    %3 = vector.load %arg3[%c0_5, %c0_6] : memref<1x320xf32, #tpu.memory_space<vmem>>, vector<1x320xf32>
    %cst = arith.constant dense<0.000000e+00> : vector<16xf32>
    %4 = vector.multi_reduction <add>, %0, %cst [1] : vector<16x320xf32> to vector<16xf32>
    %5 = vector.shape_cast %4 : vector<16xf32> to vector<16x1xf32>
    %cst_7 = arith.constant 3.200000e+02 : f32
    %6 = vector.broadcast %cst_7 : f32 to vector<16x1xf32>
    %7 = arith.divf %5, %6 : vector<16x1xf32>
    %8 = vector.broadcast %7 : vector<16x1xf32> to vector<16x320xf32>
    %9 = arith.subf %0, %8 : vector<16x320xf32>
    %10 = arith.mulf %9, %9 : vector<16x320xf32>
    %cst_8 = arith.constant dense<0.000000e+00> : vector<16xf32>
    %11 = vector.multi_reduction <add>, %10, %cst_8 [1] : vector<16x320xf32> to vector<16xf32>
    %12 = vector.shape_cast %11 : vector<16xf32> to vector<16x1xf32>
    %cst_9 = arith.constant 3.200000e+02 : f32
    %13 = vector.broadcast %cst_9 : f32 to vector<16x1xf32>
    %14 = arith.divf %12, %13 : vector<16x1xf32>
    %cst_10 = arith.constant 9.99999974E-6 : f32
    %15 = vector.broadcast %cst_10 : f32 to vector<16x1xf32>
    %16 = arith.addf %14, %15 : vector<16x1xf32>
    %17 = math.rsqrt %16 : vector<16x1xf32>
    %18 = vector.broadcast %17 : vector<16x1xf32> to vector<16x320xf32>
    %19 = arith.mulf %9, %18 : vector<16x320xf32>
    %20 = vector.broadcast %2 : vector<1x320xf32> to vector<16x320xf32>
    %21 = arith.mulf %19, %20 : vector<16x320xf32>
    %22 = vector.broadcast %3 : vector<1x320xf32> to vector<16x320xf32>
    %23 = arith.addf %21, %22 : vector<16x320xf32>
    %24 = arith.truncf %23 : vector<16x320xf32> to vector<16x320xbf16>
    %c0_11 = arith.constant 0 : index
    %c0_12 = arith.constant 0 : index
    %25 = vector.load %arg4[%c0_11, %c0_12] : memref<320x960xbf16, #tpu.memory_space<vmem>>, vector<320x960xbf16>
    %cst_13 = arith.constant dense<0.000000e+00> : vector<16x960xf32>
    %26 = tpu.matmul %24, %25, %cst_13 {dimension_numbers = #tpu.dot_dimension_numbers<[1], [0], [0], [1], [0, 0, 1, 1], [], []>} : vector<16x320xbf16>, vector<320x960xbf16>, vector<16x960xf32> -> vector<16x960xf32>
    %c0_14 = arith.constant 0 : index
    %c0_15 = arith.constant 0 : index
    %27 = vector.load %arg5[%c0_14, %c0_15] : memref<1x960xf32, #tpu.memory_space<vmem>>, vector<1x960xf32>
    %28 = vector.broadcast %27 : vector<1x960xf32> to vector<16x960xf32>
    %29 = arith.addf %26, %28 : vector<16x960xf32>
    %30 = vector.extract_strided_slice %29 {offsets = [0, 0], sizes = [16, 80], strides = [1, 1]} : vector<16x960xf32> to vector<16x80xf32>
    %31 = vector.extract_strided_slice %29 {offsets = [0, 320], sizes = [16, 80], strides = [1, 1]} : vector<16x960xf32> to vector<16x80xf32>
    %32 = vector.extract_strided_slice %29 {offsets = [0, 640], sizes = [16, 80], strides = [1, 1]} : vector<16x960xf32> to vector<16x80xf32>
    %33 = arith.truncf %30 : vector<16x80xf32> to vector<16x80xbf16>
    %34 = arith.truncf %31 : vector<16x80xf32> to vector<16x80xbf16>
    %cst_16 = arith.constant dense<0.000000e+00> : vector<16x16xf32>
    %35 = tpu.matmul %33, %34, %cst_16 {dimension_numbers = #tpu.dot_dimension_numbers<[1], [1], [0], [0], [0, 0, 1, 0], [], []>} : vector<16x80xbf16>, vector<16x80xbf16>, vector<16x16xf32> -> vector<16x16xf32>
    %cst_17 = arith.constant 0.111803398 : f32
    %36 = vector.broadcast %cst_17 : f32 to vector<16x16xf32>
    %37 = arith.mulf %35, %36 : vector<16x16xf32>
    %38 = arith.addf %37, %1 : vector<16x16xf32>
    %cst_18 = arith.constant dense<0xFF800000> : vector<16xf32>
    %39 = vector.multi_reduction <maximumf>, %38, %cst_18 [1] : vector<16x16xf32> to vector<16xf32>
    %40 = vector.shape_cast %39 : vector<16xf32> to vector<16x1xf32>
    %41 = vector.broadcast %40 : vector<16x1xf32> to vector<16x16xf32>
    %42 = arith.subf %38, %41 : vector<16x16xf32>
    %43 = math.exp %42 : vector<16x16xf32>
    %cst_19 = arith.constant dense<0.000000e+00> : vector<16xf32>
    %44 = vector.multi_reduction <add>, %43, %cst_19 [1] : vector<16x16xf32> to vector<16xf32>
    %45 = vector.shape_cast %44 : vector<16xf32> to vector<16x1xf32>
    %cst_20 = arith.constant 9.99999968E-21 : f32
    %46 = vector.broadcast %cst_20 : f32 to vector<16x1xf32>
    %47 = arith.maximumf %45, %46 : vector<16x1xf32>
    %48 = tpu.reciprocal %47 {approx = true} : vector<16x1xf32> -> vector<16x1xf32>
    %49 = vector.broadcast %48 : vector<16x1xf32> to vector<16x16xf32>
    %50 = arith.mulf %43, %49 : vector<16x16xf32>
    %51 = arith.truncf %50 : vector<16x16xf32> to vector<16x16xbf16>
    %52 = arith.truncf %32 : vector<16x80xf32> to vector<16x80xbf16>
    %cst_21 = arith.constant dense<0.000000e+00> : vector<16x80xf32>
    %53 = tpu.matmul %51, %52, %cst_21 {dimension_numbers = #tpu.dot_dimension_numbers<[1], [0], [0], [1], [0, 0, 1, 1], [], []>} : vector<16x16xbf16>, vector<16x80xbf16>, vector<16x80xf32> -> vector<16x80xf32>
    %c0_22 = arith.constant 0 : index
    %c0_23 = arith.constant 0 : index
    %54 = vector.load %arg6[%c0_22, %c0_23] : memref<320x320xbf16, #tpu.memory_space<vmem>>, vector<80x320xbf16>
    %55 = arith.truncf %53 : vector<16x80xf32> to vector<16x80xbf16>
    %cst_24 = arith.constant dense<0.000000e+00> : vector<16x320xf32>
    %56 = tpu.matmul %55, %54, %cst_24 {dimension_numbers = #tpu.dot_dimension_numbers<[1], [0], [0], [1], [0, 0, 1, 1], [], []>} : vector<16x80xbf16>, vector<80x320xbf16>, vector<16x320xf32> -> vector<16x320xf32>
    %57 = vector.extract_strided_slice %29 {offsets = [0, 80], sizes = [16, 80], strides = [1, 1]} : vector<16x960xf32> to vector<16x80xf32>
    %58 = vector.extract_strided_slice %29 {offsets = [0, 400], sizes = [16, 80], strides = [1, 1]} : vector<16x960xf32> to vector<16x80xf32>
    %59 = vector.extract_strided_slice %29 {offsets = [0, 720], sizes = [16, 80], strides = [1, 1]} : vector<16x960xf32> to vector<16x80xf32>
    %60 = arith.truncf %57 : vector<16x80xf32> to vector<16x80xbf16>
    %61 = arith.truncf %58 : vector<16x80xf32> to vector<16x80xbf16>
    %cst_25 = arith.constant dense<0.000000e+00> : vector<16x16xf32>
    %62 = tpu.matmul %60, %61, %cst_25 {dimension_numbers = #tpu.dot_dimension_numbers<[1], [1], [0], [0], [0, 0, 1, 0], [], []>} : vector<16x80xbf16>, vector<16x80xbf16>, vector<16x16xf32> -> vector<16x16xf32>
    %cst_26 = arith.constant 0.111803398 : f32
    %63 = vector.broadcast %cst_26 : f32 to vector<16x16xf32>
    %64 = arith.mulf %62, %63 : vector<16x16xf32>
    %65 = arith.addf %64, %1 : vector<16x16xf32>
    %cst_27 = arith.constant dense<0xFF800000> : vector<16xf32>
    %66 = vector.multi_reduction <maximumf>, %65, %cst_27 [1] : vector<16x16xf32> to vector<16xf32>
    %67 = vector.shape_cast %66 : vector<16xf32> to vector<16x1xf32>
    %68 = vector.broadcast %67 : vector<16x1xf32> to vector<16x16xf32>
    %69 = arith.subf %65, %68 : vector<16x16xf32>
    %70 = math.exp %69 : vector<16x16xf32>
    %cst_28 = arith.constant dense<0.000000e+00> : vector<16xf32>
    %71 = vector.multi_reduction <add>, %70, %cst_28 [1] : vector<16x16xf32> to vector<16xf32>
    %72 = vector.shape_cast %71 : vector<16xf32> to vector<16x1xf32>
    %cst_29 = arith.constant 9.99999968E-21 : f32
    %73 = vector.broadcast %cst_29 : f32 to vector<16x1xf32>
    %74 = arith.maximumf %72, %73 : vector<16x1xf32>
    %75 = tpu.reciprocal %74 {approx = true} : vector<16x1xf32> -> vector<16x1xf32>
    %76 = vector.broadcast %75 : vector<16x1xf32> to vector<16x16xf32>
    %77 = arith.mulf %70, %76 : vector<16x16xf32>
    %78 = arith.truncf %77 : vector<16x16xf32> to vector<16x16xbf16>
    %79 = arith.truncf %59 : vector<16x80xf32> to vector<16x80xbf16>
    %cst_30 = arith.constant dense<0.000000e+00> : vector<16x80xf32>
    %80 = tpu.matmul %78, %79, %cst_30 {dimension_numbers = #tpu.dot_dimension_numbers<[1], [0], [0], [1], [0, 0, 1, 1], [], []>} : vector<16x16xbf16>, vector<16x80xbf16>, vector<16x80xf32> -> vector<16x80xf32>
    %c80 = arith.constant 80 : index
    %c0_31 = arith.constant 0 : index
    %81 = vector.load %arg6[%c80, %c0_31] : memref<320x320xbf16, #tpu.memory_space<vmem>>, vector<80x320xbf16>
    %82 = arith.truncf %80 : vector<16x80xf32> to vector<16x80xbf16>
    %cst_32 = arith.constant dense<0.000000e+00> : vector<16x320xf32>
    %83 = tpu.matmul %82, %81, %cst_32 {dimension_numbers = #tpu.dot_dimension_numbers<[1], [0], [0], [1], [0, 0, 1, 1], [], []>} : vector<16x80xbf16>, vector<80x320xbf16>, vector<16x320xf32> -> vector<16x320xf32>
    %84 = arith.addf %56, %83 : vector<16x320xf32>
    %85 = vector.extract_strided_slice %29 {offsets = [0, 160], sizes = [16, 80], strides = [1, 1]} : vector<16x960xf32> to vector<16x80xf32>
    %86 = vector.extract_strided_slice %29 {offsets = [0, 480], sizes = [16, 80], strides = [1, 1]} : vector<16x960xf32> to vector<16x80xf32>
    %87 = vector.extract_strided_slice %29 {offsets = [0, 800], sizes = [16, 80], strides = [1, 1]} : vector<16x960xf32> to vector<16x80xf32>
    %88 = arith.truncf %85 : vector<16x80xf32> to vector<16x80xbf16>
    %89 = arith.truncf %86 : vector<16x80xf32> to vector<16x80xbf16>
    %cst_33 = arith.constant dense<0.000000e+00> : vector<16x16xf32>
    %90 = tpu.matmul %88, %89, %cst_33 {dimension_numbers = #tpu.dot_dimension_numbers<[1], [1], [0], [0], [0, 0, 1, 0], [], []>} : vector<16x80xbf16>, vector<16x80xbf16>, vector<16x16xf32> -> vector<16x16xf32>
    %cst_34 = arith.constant 0.111803398 : f32
    %91 = vector.broadcast %cst_34 : f32 to vector<16x16xf32>
    %92 = arith.mulf %90, %91 : vector<16x16xf32>
    %93 = arith.addf %92, %1 : vector<16x16xf32>
    %cst_35 = arith.constant dense<0xFF800000> : vector<16xf32>
    %94 = vector.multi_reduction <maximumf>, %93, %cst_35 [1] : vector<16x16xf32> to vector<16xf32>
    %95 = vector.shape_cast %94 : vector<16xf32> to vector<16x1xf32>
    %96 = vector.broadcast %95 : vector<16x1xf32> to vector<16x16xf32>
    %97 = arith.subf %93, %96 : vector<16x16xf32>
    %98 = math.exp %97 : vector<16x16xf32>
    %cst_36 = arith.constant dense<0.000000e+00> : vector<16xf32>
    %99 = vector.multi_reduction <add>, %98, %cst_36 [1] : vector<16x16xf32> to vector<16xf32>
    %100 = vector.shape_cast %99 : vector<16xf32> to vector<16x1xf32>
    %cst_37 = arith.constant 9.99999968E-21 : f32
    %101 = vector.broadcast %cst_37 : f32 to vector<16x1xf32>
    %102 = arith.maximumf %100, %101 : vector<16x1xf32>
    %103 = tpu.reciprocal %102 {approx = true} : vector<16x1xf32> -> vector<16x1xf32>
    %104 = vector.broadcast %103 : vector<16x1xf32> to vector<16x16xf32>
    %105 = arith.mulf %98, %104 : vector<16x16xf32>
    %106 = arith.truncf %105 : vector<16x16xf32> to vector<16x16xbf16>
    %107 = arith.truncf %87 : vector<16x80xf32> to vector<16x80xbf16>
    %cst_38 = arith.constant dense<0.000000e+00> : vector<16x80xf32>
    %108 = tpu.matmul %106, %107, %cst_38 {dimension_numbers = #tpu.dot_dimension_numbers<[1], [0], [0], [1], [0, 0, 1, 1], [], []>} : vector<16x16xbf16>, vector<16x80xbf16>, vector<16x80xf32> -> vector<16x80xf32>
    %c160 = arith.constant 160 : index
    %c0_39 = arith.constant 0 : index
    %109 = vector.load %arg6[%c160, %c0_39] : memref<320x320xbf16, #tpu.memory_space<vmem>>, vector<80x320xbf16>
    %110 = arith.truncf %108 : vector<16x80xf32> to vector<16x80xbf16>
    %cst_40 = arith.constant dense<0.000000e+00> : vector<16x320xf32>
    %111 = tpu.matmul %110, %109, %cst_40 {dimension_numbers = #tpu.dot_dimension_numbers<[1], [0], [0], [1], [0, 0, 1, 1], [], []>} : vector<16x80xbf16>, vector<80x320xbf16>, vector<16x320xf32> -> vector<16x320xf32>
    %112 = arith.addf %84, %111 : vector<16x320xf32>
    %113 = vector.extract_strided_slice %29 {offsets = [0, 240], sizes = [16, 80], strides = [1, 1]} : vector<16x960xf32> to vector<16x80xf32>
    %114 = vector.extract_strided_slice %29 {offsets = [0, 560], sizes = [16, 80], strides = [1, 1]} : vector<16x960xf32> to vector<16x80xf32>
    %115 = vector.extract_strided_slice %29 {offsets = [0, 880], sizes = [16, 80], strides = [1, 1]} : vector<16x960xf32> to vector<16x80xf32>
    %116 = arith.truncf %113 : vector<16x80xf32> to vector<16x80xbf16>
    %117 = arith.truncf %114 : vector<16x80xf32> to vector<16x80xbf16>
    %cst_41 = arith.constant dense<0.000000e+00> : vector<16x16xf32>
    %118 = tpu.matmul %116, %117, %cst_41 {dimension_numbers = #tpu.dot_dimension_numbers<[1], [1], [0], [0], [0, 0, 1, 0], [], []>} : vector<16x80xbf16>, vector<16x80xbf16>, vector<16x16xf32> -> vector<16x16xf32>
    %cst_42 = arith.constant 0.111803398 : f32
    %119 = vector.broadcast %cst_42 : f32 to vector<16x16xf32>
    %120 = arith.mulf %118, %119 : vector<16x16xf32>
    %121 = arith.addf %120, %1 : vector<16x16xf32>
    %cst_43 = arith.constant dense<0xFF800000> : vector<16xf32>
    %122 = vector.multi_reduction <maximumf>, %121, %cst_43 [1] : vector<16x16xf32> to vector<16xf32>
    %123 = vector.shape_cast %122 : vector<16xf32> to vector<16x1xf32>
    %124 = vector.broadcast %123 : vector<16x1xf32> to vector<16x16xf32>
    %125 = arith.subf %121, %124 : vector<16x16xf32>
    %126 = math.exp %125 : vector<16x16xf32>
    %cst_44 = arith.constant dense<0.000000e+00> : vector<16xf32>
    %127 = vector.multi_reduction <add>, %126, %cst_44 [1] : vector<16x16xf32> to vector<16xf32>
    %128 = vector.shape_cast %127 : vector<16xf32> to vector<16x1xf32>
    %cst_45 = arith.constant 9.99999968E-21 : f32
    %129 = vector.broadcast %cst_45 : f32 to vector<16x1xf32>
    %130 = arith.maximumf %128, %129 : vector<16x1xf32>
    %131 = tpu.reciprocal %130 {approx = true} : vector<16x1xf32> -> vector<16x1xf32>
    %132 = vector.broadcast %131 : vector<16x1xf32> to vector<16x16xf32>
    %133 = arith.mulf %126, %132 : vector<16x16xf32>
    %134 = arith.truncf %133 : vector<16x16xf32> to vector<16x16xbf16>
    %135 = arith.truncf %115 : vector<16x80xf32> to vector<16x80xbf16>
    %cst_46 = arith.constant dense<0.000000e+00> : vector<16x80xf32>
    %136 = tpu.matmul %134, %135, %cst_46 {dimension_numbers = #tpu.dot_dimension_numbers<[1], [0], [0], [1], [0, 0, 1, 1], [], []>} : vector<16x16xbf16>, vector<16x80xbf16>, vector<16x80xf32> -> vector<16x80xf32>
    %c240 = arith.constant 240 : index
    %c0_47 = arith.constant 0 : index
    %137 = vector.load %arg6[%c240, %c0_47] : memref<320x320xbf16, #tpu.memory_space<vmem>>, vector<80x320xbf16>
    %138 = arith.truncf %136 : vector<16x80xf32> to vector<16x80xbf16>
    %cst_48 = arith.constant dense<0.000000e+00> : vector<16x320xf32>
    %139 = tpu.matmul %138, %137, %cst_48 {dimension_numbers = #tpu.dot_dimension_numbers<[1], [0], [0], [1], [0, 0, 1, 1], [], []>} : vector<16x80xbf16>, vector<80x320xbf16>, vector<16x320xf32> -> vector<16x320xf32>
    %140 = arith.addf %112, %139 : vector<16x320xf32>
    %141 = arith.addf %0, %140 : vector<16x320xf32>
    %c0_49 = arith.constant 0 : index
    %c0_50 = arith.constant 0 : index
    %142 = vector.load %arg7[%c0_49, %c0_50] : memref<1x320xf32, #tpu.memory_space<vmem>>, vector<1x320xf32>
    %143 = vector.broadcast %142 : vector<1x320xf32> to vector<16x320xf32>
    %144 = arith.addf %141, %143 : vector<16x320xf32>
    %c0_51 = arith.constant 0 : index
    %c0_52 = arith.constant 0 : index
    %145 = vector.load %arg8[%c0_51, %c0_52] : memref<1x320xf32, #tpu.memory_space<vmem>>, vector<1x320xf32>
    %c0_53 = arith.constant 0 : index
    %c0_54 = arith.constant 0 : index
    %146 = vector.load %arg9[%c0_53, %c0_54] : memref<1x320xf32, #tpu.memory_space<vmem>>, vector<1x320xf32>
    %cst_55 = arith.constant dense<0.000000e+00> : vector<16xf32>
    %147 = vector.multi_reduction <add>, %144, %cst_55 [1] : vector<16x320xf32> to vector<16xf32>
    %148 = vector.shape_cast %147 : vector<16xf32> to vector<16x1xf32>
    %cst_56 = arith.constant 3.200000e+02 : f32
    %149 = vector.broadcast %cst_56 : f32 to vector<16x1xf32>
    %150 = arith.divf %148, %149 : vector<16x1xf32>
    %151 = vector.broadcast %150 : vector<16x1xf32> to vector<16x320xf32>
    %152 = arith.subf %144, %151 : vector<16x320xf32>
    %153 = arith.mulf %152, %152 : vector<16x320xf32>
    %cst_57 = arith.constant dense<0.000000e+00> : vector<16xf32>
    %154 = vector.multi_reduction <add>, %153, %cst_57 [1] : vector<16x320xf32> to vector<16xf32>
    %155 = vector.shape_cast %154 : vector<16xf32> to vector<16x1xf32>
    %cst_58 = arith.constant 3.200000e+02 : f32
    %156 = vector.broadcast %cst_58 : f32 to vector<16x1xf32>
    %157 = arith.divf %155, %156 : vector<16x1xf32>
    %cst_59 = arith.constant 9.99999974E-6 : f32
    %158 = vector.broadcast %cst_59 : f32 to vector<16x1xf32>
    %159 = arith.addf %157, %158 : vector<16x1xf32>
    %160 = math.rsqrt %159 : vector<16x1xf32>
    %161 = vector.broadcast %160 : vector<16x1xf32> to vector<16x320xf32>
    %162 = arith.mulf %152, %161 : vector<16x320xf32>
    %163 = vector.broadcast %145 : vector<1x320xf32> to vector<16x320xf32>
    %164 = arith.mulf %162, %163 : vector<16x320xf32>
    %165 = vector.broadcast %146 : vector<1x320xf32> to vector<16x320xf32>
    %166 = arith.addf %164, %165 : vector<16x320xf32>
    %167 = arith.truncf %166 : vector<16x320xf32> to vector<16x320xbf16>
    %c0_60 = arith.constant 0 : index
    %c0_61 = arith.constant 0 : index
    %168 = vector.load %arg10[%c0_60, %c0_61] : memref<320x640xbf16, #tpu.memory_space<vmem>>, vector<320x640xbf16>
    %cst_62 = arith.constant dense<0.000000e+00> : vector<16x640xf32>
    %169 = tpu.matmul %167, %168, %cst_62 {dimension_numbers = #tpu.dot_dimension_numbers<[1], [0], [0], [1], [0, 0, 1, 1], [], []>} : vector<16x320xbf16>, vector<320x640xbf16>, vector<16x640xf32> -> vector<16x640xf32>
    %c0_63 = arith.constant 0 : index
    %c0_64 = arith.constant 0 : index
    %170 = vector.load %arg11[%c0_63, %c0_64] : memref<1x640xf32, #tpu.memory_space<vmem>>, vector<1x640xf32>
    %171 = vector.broadcast %170 : vector<1x640xf32> to vector<16x640xf32>
    %172 = arith.addf %169, %171 : vector<16x640xf32>
    %cst_65 = arith.constant 5.000000e-01 : f32
    %173 = vector.broadcast %cst_65 : f32 to vector<16x640xf32>
    %174 = arith.mulf %173, %172 : vector<16x640xf32>
    %cst_66 = arith.constant 4.471500e-02 : f32
    %175 = vector.broadcast %cst_66 : f32 to vector<16x640xf32>
    %176 = arith.mulf %175, %172 : vector<16x640xf32>
    %177 = arith.mulf %176, %172 : vector<16x640xf32>
    %178 = arith.mulf %177, %172 : vector<16x640xf32>
    %179 = arith.addf %172, %178 : vector<16x640xf32>
    %cst_67 = arith.constant 0.797884583 : f32
    %180 = vector.broadcast %cst_67 : f32 to vector<16x640xf32>
    %181 = arith.mulf %180, %179 : vector<16x640xf32>
    %182 = math.tanh %181 : vector<16x640xf32>
    %cst_68 = arith.constant 1.000000e+00 : f32
    %183 = vector.broadcast %cst_68 : f32 to vector<16x640xf32>
    %184 = arith.addf %183, %182 : vector<16x640xf32>
    %185 = arith.mulf %174, %184 : vector<16x640xf32>
    %186 = arith.truncf %185 : vector<16x640xf32> to vector<16x640xbf16>
    %c0_69 = arith.constant 0 : index
    %c0_70 = arith.constant 0 : index
    %187 = vector.load %arg12[%c0_69, %c0_70] : memref<640x320xbf16, #tpu.memory_space<vmem>>, vector<640x320xbf16>
    %cst_71 = arith.constant dense<0.000000e+00> : vector<16x320xf32>
    %188 = tpu.matmul %186, %187, %cst_71 {dimension_numbers = #tpu.dot_dimension_numbers<[1], [0], [0], [1], [0, 0, 1, 1], [], []>} : vector<16x640xbf16>, vector<640x320xbf16>, vector<16x320xf32> -> vector<16x320xf32>
    %189 = arith.addf %144, %188 : vector<16x320xf32>
    %c0_72 = arith.constant 0 : index
    %c0_73 = arith.constant 0 : index
    %190 = vector.load %arg13[%c0_72, %c0_73] : memref<1x320xf32, #tpu.memory_space<vmem>>, vector<1x320xf32>
    %191 = vector.broadcast %190 : vector<1x320xf32> to vector<16x320xf32>
    %192 = arith.addf %189, %191 : vector<16x320xf32>
    %c0_74 = arith.constant 0 : index
    %c0_75 = arith.constant 0 : index
    %193 = vector.load %arg14[%c0_74, %c0_75] : memref<1x320xf32, #tpu.memory_space<vmem>>, vector<1x320xf32>
    %c0_76 = arith.constant 0 : index
    %c0_77 = arith.constant 0 : index
    %194 = vector.load %arg15[%c0_76, %c0_77] : memref<1x320xf32, #tpu.memory_space<vmem>>, vector<1x320xf32>
    %cst_78 = arith.constant dense<0.000000e+00> : vector<16xf32>
    %195 = vector.multi_reduction <add>, %192, %cst_78 [1] : vector<16x320xf32> to vector<16xf32>
    %196 = vector.shape_cast %195 : vector<16xf32> to vector<16x1xf32>
    %cst_79 = arith.constant 3.200000e+02 : f32
    %197 = vector.broadcast %cst_79 : f32 to vector<16x1xf32>
    %198 = arith.divf %196, %197 : vector<16x1xf32>
    %199 = vector.broadcast %198 : vector<16x1xf32> to vector<16x320xf32>
    %200 = arith.subf %192, %199 : vector<16x320xf32>
    %201 = arith.mulf %200, %200 : vector<16x320xf32>
    %cst_80 = arith.constant dense<0.000000e+00> : vector<16xf32>
    %202 = vector.multi_reduction <add>, %201, %cst_80 [1] : vector<16x320xf32> to vector<16xf32>
    %203 = vector.shape_cast %202 : vector<16xf32> to vector<16x1xf32>
    %cst_81 = arith.constant 3.200000e+02 : f32
    %204 = vector.broadcast %cst_81 : f32 to vector<16x1xf32>
    %205 = arith.divf %203, %204 : vector<16x1xf32>
    %cst_82 = arith.constant 9.99999974E-6 : f32
    %206 = vector.broadcast %cst_82 : f32 to vector<16x1xf32>
    %207 = arith.addf %205, %206 : vector<16x1xf32>
    %208 = math.rsqrt %207 : vector<16x1xf32>
    %209 = vector.broadcast %208 : vector<16x1xf32> to vector<16x320xf32>
    %210 = arith.mulf %200, %209 : vector<16x320xf32>
    %211 = vector.broadcast %193 : vector<1x320xf32> to vector<16x320xf32>
    %212 = arith.mulf %210, %211 : vector<16x320xf32>
    %213 = vector.broadcast %194 : vector<1x320xf32> to vector<16x320xf32>
    %214 = arith.addf %212, %213 : vector<16x320xf32>
    %c0_83 = arith.constant 0 : index
    %c0_84 = arith.constant 0 : index
    %215 = vector.load %arg16[%c0_83, %c0_84] : memref<16x320xf32, #tpu.memory_space<vmem>>, vector<16x320xf32>
    tpu.vector_store %arg16[%c0_83, %c0_84], %214 {strides = array<i32>} : memref<16x320xf32, #tpu.memory_space<vmem>>, vector<16x320xf32>,
    return
  }
}

module attributes {stable_mosaic.version = 11 : i64} {
  func.func @_layer_kernel(%arg0: memref<16x320xf32, #tpu.memory_space<vmem>>, %arg1: memref<16x16xf32, #tpu.memory_space<vmem>>, %arg2: memref<1x320xf32, #tpu.memory_space<vmem>>, %arg3: memref<1x320xf32, #tpu.memory_space<vmem>>, %arg4: memref<320x960xbf16, #tpu.memory_space<vmem>>, %arg5: memref<1x960xf32, #tpu.memory_space<vmem>>, %arg6: memref<320x320xbf16, #tpu.memory_space<vmem>>, %arg7: memref<1x320xf32, #tpu.memory_space<vmem>>, %arg8: memref<1x320xf32, #tpu.memory_space<vmem>>, %arg9: memref<1x320xf32, #tpu.memory_space<vmem>>, %arg10: memref<320x640xbf16, #tpu.memory_space<vmem>>, %arg11: memref<1x640xf32, #tpu.memory_space<vmem>>, %arg12: memref<640x320xbf16, #tpu.memory_space<vmem>>, %arg13: memref<1x320xf32, #tpu.memory_space<vmem>>, %arg14: memref<16x320xf32, #tpu.memory_space<vmem>>) attributes {dimension_semantics = [], scalar_prefetch = 0 : i64, scratch_operands = 0 : i64, tpu.core_type = #tpu.core_type<tc>} {
    %c0 = arith.constant 0 : index
    %c0_0 = arith.constant 0 : index
    %0 = vector.load %arg0[%c0, %c0_0] : memref<16x320xf32, #tpu.memory_space<vmem>>, vector<16x320xf32>
    %c0_1 = arith.constant 0 : index
    %c0_2 = arith.constant 0 : index
    %1 = vector.load %arg1[%c0_1, %c0_2] : memref<16x16xf32, #tpu.memory_space<vmem>>, vector<16x16xf32>
    %c0_3 = arith.constant 0 : index
    %c0_4 = arith.constant 0 : index
    %2 = vector.load %arg2[%c0_3, %c0_4] : memref<1x320xf32, #tpu.memory_space<vmem>>, vector<1x320xf32>
    %c0_5 = arith.constant 0 : index
    %c0_6 = arith.constant 0 : index
    %3 = vector.load %arg3[%c0_5, %c0_6] : memref<1x320xf32, #tpu.memory_space<vmem>>, vector<1x320xf32>
    %cst = arith.constant dense<0.000000e+00> : vector<16xf32>
    %4 = vector.multi_reduction <add>, %0, %cst [1] : vector<16x320xf32> to vector<16xf32>
    %5 = vector.shape_cast %4 : vector<16xf32> to vector<16x1xf32>
    %cst_7 = arith.constant 3.200000e+02 : f32
    %6 = vector.broadcast %cst_7 : f32 to vector<16x1xf32>
    %7 = arith.divf %5, %6 : vector<16x1xf32>
    %8 = vector.broadcast %7 : vector<16x1xf32> to vector<16x320xf32>
    %9 = arith.subf %0, %8 : vector<16x320xf32>
    %10 = arith.mulf %9, %9 : vector<16x320xf32>
    %cst_8 = arith.constant dense<0.000000e+00> : vector<16xf32>
    %11 = vector.multi_reduction <add>, %10, %cst_8 [1] : vector<16x320xf32> to vector<16xf32>
    %12 = vector.shape_cast %11 : vector<16xf32> to vector<16x1xf32>
    %cst_9 = arith.constant 3.200000e+02 : f32
    %13 = vector.broadcast %cst_9 : f32 to vector<16x1xf32>
    %14 = arith.divf %12, %13 : vector<16x1xf32>
    %cst_10 = arith.constant 9.99999974E-6 : f32
    %15 = vector.broadcast %cst_10 : f32 to vector<16x1xf32>
    %16 = arith.addf %14, %15 : vector<16x1xf32>
    %17 = math.rsqrt %16 : vector<16x1xf32>
    %18 = vector.broadcast %17 : vector<16x1xf32> to vector<16x320xf32>
    %19 = arith.mulf %9, %18 : vector<16x320xf32>
    %20 = vector.broadcast %2 : vector<1x320xf32> to vector<16x320xf32>
    %21 = arith.mulf %19, %20 : vector<16x320xf32>
    %22 = vector.broadcast %3 : vector<1x320xf32> to vector<16x320xf32>
    %23 = arith.addf %21, %22 : vector<16x320xf32>
    %24 = arith.truncf %23 : vector<16x320xf32> to vector<16x320xbf16>
    %c0_11 = arith.constant 0 : index
    %c0_12 = arith.constant 0 : index
    %25 = vector.load %arg4[%c0_11, %c0_12] : memref<320x960xbf16, #tpu.memory_space<vmem>>, vector<320x960xbf16>
    %cst_13 = arith.constant dense<0.000000e+00> : vector<16x960xf32>
    %26 = tpu.matmul %24, %25, %cst_13 {dimension_numbers = #tpu.dot_dimension_numbers<[1], [0], [0], [1], [0, 0, 1, 1], [], []>} : vector<16x320xbf16>, vector<320x960xbf16>, vector<16x960xf32> -> vector<16x960xf32>
    %c0_14 = arith.constant 0 : index
    %c0_15 = arith.constant 0 : index
    %27 = vector.load %arg5[%c0_14, %c0_15] : memref<1x960xf32, #tpu.memory_space<vmem>>, vector<1x960xf32>
    %28 = vector.broadcast %27 : vector<1x960xf32> to vector<16x960xf32>
    %29 = arith.addf %26, %28 : vector<16x960xf32>
    %30 = vector.extract_strided_slice %29 {offsets = [0, 0], sizes = [16, 80], strides = [1, 1]} : vector<16x960xf32> to vector<16x80xf32>
    %31 = vector.extract_strided_slice %29 {offsets = [0, 320], sizes = [16, 80], strides = [1, 1]} : vector<16x960xf32> to vector<16x80xf32>
    %32 = vector.extract_strided_slice %29 {offsets = [0, 640], sizes = [16, 80], strides = [1, 1]} : vector<16x960xf32> to vector<16x80xf32>
    %33 = arith.truncf %30 : vector<16x80xf32> to vector<16x80xbf16>
    %34 = arith.truncf %31 : vector<16x80xf32> to vector<16x80xbf16>
    %cst_16 = arith.constant dense<0.000000e+00> : vector<16x16xf32>
    %35 = tpu.matmul %33, %34, %cst_16 {dimension_numbers = #tpu.dot_dimension_numbers<[1], [1], [0], [0], [0, 0, 1, 0], [], []>} : vector<16x80xbf16>, vector<16x80xbf16>, vector<16x16xf32> -> vector<16x16xf32>
    %cst_17 = arith.constant 0.111803398 : f32
    %36 = vector.broadcast %cst_17 : f32 to vector<16x16xf32>
    %37 = arith.mulf %35, %36 : vector<16x16xf32>
    %38 = arith.addf %37, %1 : vector<16x16xf32>
    %cst_18 = arith.constant dense<0xFF800000> : vector<16xf32>
    %39 = vector.multi_reduction <maximumf>, %38, %cst_18 [1] : vector<16x16xf32> to vector<16xf32>
    %40 = vector.shape_cast %39 : vector<16xf32> to vector<16x1xf32>
    %41 = vector.broadcast %40 : vector<16x1xf32> to vector<16x16xf32>
    %42 = arith.subf %38, %41 : vector<16x16xf32>
    %43 = math.exp %42 : vector<16x16xf32>
    %cst_19 = arith.constant dense<0.000000e+00> : vector<16xf32>
    %44 = vector.multi_reduction <add>, %43, %cst_19 [1] : vector<16x16xf32> to vector<16xf32>
    %45 = vector.shape_cast %44 : vector<16xf32> to vector<16x1xf32>
    %cst_20 = arith.constant 9.99999968E-21 : f32
    %46 = vector.broadcast %cst_20 : f32 to vector<16x1xf32>
    %47 = arith.maximumf %45, %46 : vector<16x1xf32>
    %48 = tpu.reciprocal %47 {approx = true} : vector<16x1xf32> -> vector<16x1xf32>
    %49 = vector.broadcast %48 : vector<16x1xf32> to vector<16x16xf32>
    %50 = arith.mulf %43, %49 : vector<16x16xf32>
    %51 = arith.truncf %50 : vector<16x16xf32> to vector<16x16xbf16>
    %52 = arith.truncf %32 : vector<16x80xf32> to vector<16x80xbf16>
    %cst_21 = arith.constant dense<0.000000e+00> : vector<16x80xf32>
    %53 = tpu.matmul %51, %52, %cst_21 {dimension_numbers = #tpu.dot_dimension_numbers<[1], [0], [0], [1], [0, 0, 1, 1], [], []>} : vector<16x16xbf16>, vector<16x80xbf16>, vector<16x80xf32> -> vector<16x80xf32>
    %c0_22 = arith.constant 0 : index
    %c0_23 = arith.constant 0 : index
    %54 = vector.load %arg6[%c0_22, %c0_23] : memref<320x320xbf16, #tpu.memory_space<vmem>>, vector<80x320xbf16>
    %55 = arith.truncf %53 : vector<16x80xf32> to vector<16x80xbf16>
    %cst_24 = arith.constant dense<0.000000e+00> : vector<16x320xf32>
    %56 = tpu.matmul %55, %54, %cst_24 {dimension_numbers = #tpu.dot_dimension_numbers<[1], [0], [0], [1], [0, 0, 1, 1], [], []>} : vector<16x80xbf16>, vector<80x320xbf16>, vector<16x320xf32> -> vector<16x320xf32>
    %57 = vector.extract_strided_slice %29 {offsets = [0, 80], sizes = [16, 80], strides = [1, 1]} : vector<16x960xf32> to vector<16x80xf32>
    %58 = vector.extract_strided_slice %29 {offsets = [0, 400], sizes = [16, 80], strides = [1, 1]} : vector<16x960xf32> to vector<16x80xf32>
    %59 = vector.extract_strided_slice %29 {offsets = [0, 720], sizes = [16, 80], strides = [1, 1]} : vector<16x960xf32> to vector<16x80xf32>
    %60 = arith.truncf %57 : vector<16x80xf32> to vector<16x80xbf16>
    %61 = arith.truncf %58 : vector<16x80xf32> to vector<16x80xbf16>
    %cst_25 = arith.constant dense<0.000000e+00> : vector<16x16xf32>
    %62 = tpu.matmul %60, %61, %cst_25 {dimension_numbers = #tpu.dot_dimension_numbers<[1], [1], [0], [0], [0, 0, 1, 0], [], []>} : vector<16x80xbf16>, vector<16x80xbf16>, vector<16x16xf32> -> vector<16x16xf32>
    %cst_26 = arith.constant 0.111803398 : f32
    %63 = vector.broadcast %cst_26 : f32 to vector<16x16xf32>
    %64 = arith.mulf %62, %63 : vector<16x16xf32>
    %65 = arith.addf %64, %1 : vector<16x16xf32>
    %cst_27 = arith.constant dense<0xFF800000> : vector<16xf32>
    %66 = vector.multi_reduction <maximumf>, %65, %cst_27 [1] : vector<16x16xf32> to vector<16xf32>
    %67 = vector.shape_cast %66 : vector<16xf32> to vector<16x1xf32>
    %68 = vector.broadcast %67 : vector<16x1xf32> to vector<16x16xf32>
    %69 = arith.subf %65, %68 : vector<16x16xf32>
    %70 = math.exp %69 : vector<16x16xf32>
    %cst_28 = arith.constant dense<0.000000e+00> : vector<16xf32>
    %71 = vector.multi_reduction <add>, %70, %cst_28 [1] : vector<16x16xf32> to vector<16xf32>
    %72 = vector.shape_cast %71 : vector<16xf32> to vector<16x1xf32>
    %cst_29 = arith.constant 9.99999968E-21 : f32
    %73 = vector.broadcast %cst_29 : f32 to vector<16x1xf32>
    %74 = arith.maximumf %72, %73 : vector<16x1xf32>
    %75 = tpu.reciprocal %74 {approx = true} : vector<16x1xf32> -> vector<16x1xf32>
    %76 = vector.broadcast %75 : vector<16x1xf32> to vector<16x16xf32>
    %77 = arith.mulf %70, %76 : vector<16x16xf32>
    %78 = arith.truncf %77 : vector<16x16xf32> to vector<16x16xbf16>
    %79 = arith.truncf %59 : vector<16x80xf32> to vector<16x80xbf16>
    %cst_30 = arith.constant dense<0.000000e+00> : vector<16x80xf32>
    %80 = tpu.matmul %78, %79, %cst_30 {dimension_numbers = #tpu.dot_dimension_numbers<[1], [0], [0], [1], [0, 0, 1, 1], [], []>} : vector<16x16xbf16>, vector<16x80xbf16>, vector<16x80xf32> -> vector<16x80xf32>
    %c80 = arith.constant 80 : index
    %c0_31 = arith.constant 0 : index
    %81 = vector.load %arg6[%c80, %c0_31] : memref<320x320xbf16, #tpu.memory_space<vmem>>, vector<80x320xbf16>
    %82 = arith.truncf %80 : vector<16x80xf32> to vector<16x80xbf16>
    %cst_32 = arith.constant dense<0.000000e+00> : vector<16x320xf32>
    %83 = tpu.matmul %82, %81, %cst_32 {dimension_numbers = #tpu.dot_dimension_numbers<[1], [0], [0], [1], [0, 0, 1, 1], [], []>} : vector<16x80xbf16>, vector<80x320xbf16>, vector<16x320xf32> -> vector<16x320xf32>
    %84 = arith.addf %56, %83 : vector<16x320xf32>
    %85 = vector.extract_strided_slice %29 {offsets = [0, 160], sizes = [16, 80], strides = [1, 1]} : vector<16x960xf32> to vector<16x80xf32>
    %86 = vector.extract_strided_slice %29 {offsets = [0, 480], sizes = [16, 80], strides = [1, 1]} : vector<16x960xf32> to vector<16x80xf32>
    %87 = vector.extract_strided_slice %29 {offsets = [0, 800], sizes = [16, 80], strides = [1, 1]} : vector<16x960xf32> to vector<16x80xf32>
    %88 = arith.truncf %85 : vector<16x80xf32> to vector<16x80xbf16>
    %89 = arith.truncf %86 : vector<16x80xf32> to vector<16x80xbf16>
    %cst_33 = arith.constant dense<0.000000e+00> : vector<16x16xf32>
    %90 = tpu.matmul %88, %89, %cst_33 {dimension_numbers = #tpu.dot_dimension_numbers<[1], [1], [0], [0], [0, 0, 1, 0], [], []>} : vector<16x80xbf16>, vector<16x80xbf16>, vector<16x16xf32> -> vector<16x16xf32>
    %cst_34 = arith.constant 0.111803398 : f32
    %91 = vector.broadcast %cst_34 : f32 to vector<16x16xf32>
    %92 = arith.mulf %90, %91 : vector<16x16xf32>
    %93 = arith.addf %92, %1 : vector<16x16xf32>
    %cst_35 = arith.constant dense<0xFF800000> : vector<16xf32>
    %94 = vector.multi_reduction <maximumf>, %93, %cst_35 [1] : vector<16x16xf32> to vector<16xf32>
    %95 = vector.shape_cast %94 : vector<16xf32> to vector<16x1xf32>
    %96 = vector.broadcast %95 : vector<16x1xf32> to vector<16x16xf32>
    %97 = arith.subf %93, %96 : vector<16x16xf32>
    %98 = math.exp %97 : vector<16x16xf32>
    %cst_36 = arith.constant dense<0.000000e+00> : vector<16xf32>
    %99 = vector.multi_reduction <add>, %98, %cst_36 [1] : vector<16x16xf32> to vector<16xf32>
    %100 = vector.shape_cast %99 : vector<16xf32> to vector<16x1xf32>
    %cst_37 = arith.constant 9.99999968E-21 : f32
    %101 = vector.broadcast %cst_37 : f32 to vector<16x1xf32>
    %102 = arith.maximumf %100, %101 : vector<16x1xf32>
    %103 = tpu.reciprocal %102 {approx = true} : vector<16x1xf32> -> vector<16x1xf32>
    %104 = vector.broadcast %103 : vector<16x1xf32> to vector<16x16xf32>
    %105 = arith.mulf %98, %104 : vector<16x16xf32>
    %106 = arith.truncf %105 : vector<16x16xf32> to vector<16x16xbf16>
    %107 = arith.truncf %87 : vector<16x80xf32> to vector<16x80xbf16>
    %cst_38 = arith.constant dense<0.000000e+00> : vector<16x80xf32>
    %108 = tpu.matmul %106, %107, %cst_38 {dimension_numbers = #tpu.dot_dimension_numbers<[1], [0], [0], [1], [0, 0, 1, 1], [], []>} : vector<16x16xbf16>, vector<16x80xbf16>, vector<16x80xf32> -> vector<16x80xf32>
    %c160 = arith.constant 160 : index
    %c0_39 = arith.constant 0 : index
    %109 = vector.load %arg6[%c160, %c0_39] : memref<320x320xbf16, #tpu.memory_space<vmem>>, vector<80x320xbf16>
    %110 = arith.truncf %108 : vector<16x80xf32> to vector<16x80xbf16>
    %cst_40 = arith.constant dense<0.000000e+00> : vector<16x320xf32>
    %111 = tpu.matmul %110, %109, %cst_40 {dimension_numbers = #tpu.dot_dimension_numbers<[1], [0], [0], [1], [0, 0, 1, 1], [], []>} : vector<16x80xbf16>, vector<80x320xbf16>, vector<16x320xf32> -> vector<16x320xf32>
    %112 = arith.addf %84, %111 : vector<16x320xf32>
    %113 = vector.extract_strided_slice %29 {offsets = [0, 240], sizes = [16, 80], strides = [1, 1]} : vector<16x960xf32> to vector<16x80xf32>
    %114 = vector.extract_strided_slice %29 {offsets = [0, 560], sizes = [16, 80], strides = [1, 1]} : vector<16x960xf32> to vector<16x80xf32>
    %115 = vector.extract_strided_slice %29 {offsets = [0, 880], sizes = [16, 80], strides = [1, 1]} : vector<16x960xf32> to vector<16x80xf32>
    %116 = arith.truncf %113 : vector<16x80xf32> to vector<16x80xbf16>
    %117 = arith.truncf %114 : vector<16x80xf32> to vector<16x80xbf16>
    %cst_41 = arith.constant dense<0.000000e+00> : vector<16x16xf32>
    %118 = tpu.matmul %116, %117, %cst_41 {dimension_numbers = #tpu.dot_dimension_numbers<[1], [1], [0], [0], [0, 0, 1, 0], [], []>} : vector<16x80xbf16>, vector<16x80xbf16>, vector<16x16xf32> -> vector<16x16xf32>
    %cst_42 = arith.constant 0.111803398 : f32
    %119 = vector.broadcast %cst_42 : f32 to vector<16x16xf32>
    %120 = arith.mulf %118, %119 : vector<16x16xf32>
    %121 = arith.addf %120, %1 : vector<16x16xf32>
    %cst_43 = arith.constant dense<0xFF800000> : vector<16xf32>
    %122 = vector.multi_reduction <maximumf>, %121, %cst_43 [1] : vector<16x16xf32> to vector<16xf32>
    %123 = vector.shape_cast %122 : vector<16xf32> to vector<16x1xf32>
    %124 = vector.broadcast %123 : vector<16x1xf32> to vector<16x16xf32>
    %125 = arith.subf %121, %124 : vector<16x16xf32>
    %126 = math.exp %125 : vector<16x16xf32>
    %cst_44 = arith.constant dense<0.000000e+00> : vector<16xf32>
    %127 = vector.multi_reduction <add>, %126, %cst_44 [1] : vector<16x16xf32> to vector<16xf32>
    %128 = vector.shape_cast %127 : vector<16xf32> to vector<16x1xf32>
    %cst_45 = arith.constant 9.99999968E-21 : f32
    %129 = vector.broadcast %cst_45 : f32 to vector<16x1xf32>
    %130 = arith.maximumf %128, %129 : vector<16x1xf32>
    %131 = tpu.reciprocal %130 {approx = true} : vector<16x1xf32> -> vector<16x1xf32>
    %132 = vector.broadcast %131 : vector<16x1xf32> to vector<16x16xf32>
    %133 = arith.mulf %126, %132 : vector<16x16xf32>
    %134 = arith.truncf %133 : vector<16x16xf32> to vector<16x16xbf16>
    %135 = arith.truncf %115 : vector<16x80xf32> to vector<16x80xbf16>
    %cst_46 = arith.constant dense<0.000000e+00> : vector<16x80xf32>
    %136 = tpu.matmul %134, %135, %cst_46 {dimension_numbers = #tpu.dot_dimension_numbers<[1], [0], [0], [1], [0, 0, 1, 1], [], []>} : vector<16x16xbf16>, vector<16x80xbf16>, vector<16x80xf32> -> vector<16x80xf32>
    %c240 = arith.constant 240 : index
    %c0_47 = arith.constant 0 : index
    %137 = vector.load %arg6[%c240, %c0_47] : memref<320x320xbf16, #tpu.memory_space<vmem>>, vector<80x320xbf16>
    %138 = arith.truncf %136 : vector<16x80xf32> to vector<16x80xbf16>
    %cst_48 = arith.constant dense<0.000000e+00> : vector<16x320xf32>
    %139 = tpu.matmul %138, %137, %cst_48 {dimension_numbers = #tpu.dot_dimension_numbers<[1], [0], [0], [1], [0, 0, 1, 1], [], []>} : vector<16x80xbf16>, vector<80x320xbf16>, vector<16x320xf32> -> vector<16x320xf32>
    %140 = arith.addf %112, %139 : vector<16x320xf32>
    %141 = arith.addf %0, %140 : vector<16x320xf32>
    %c0_49 = arith.constant 0 : index
    %c0_50 = arith.constant 0 : index
    %142 = vector.load %arg7[%c0_49, %c0_50] : memref<1x320xf32, #tpu.memory_space<vmem>>, vector<1x320xf32>
    %143 = vector.broadcast %142 : vector<1x320xf32> to vector<16x320xf32>
    %144 = arith.addf %141, %143 : vector<16x320xf32>
    %c0_51 = arith.constant 0 : index
    %c0_52 = arith.constant 0 : index
    %145 = vector.load %arg8[%c0_51, %c0_52] : memref<1x320xf32, #tpu.memory_space<vmem>>, vector<1x320xf32>
    %c0_53 = arith.constant 0 : index
    %c0_54 = arith.constant 0 : index
    %146 = vector.load %arg9[%c0_53, %c0_54] : memref<1x320xf32, #tpu.memory_space<vmem>>, vector<1x320xf32>
    %cst_55 = arith.constant dense<0.000000e+00> : vector<16xf32>
    %147 = vector.multi_reduction <add>, %144, %cst_55 [1] : vector<16x320xf32> to vector<16xf32>
    %148 = vector.shape_cast %147 : vector<16xf32> to vector<16x1xf32>
    %cst_56 = arith.constant 3.200000e+02 : f32
    %149 = vector.broadcast %cst_56 : f32 to vector<16x1xf32>
    %150 = arith.divf %148, %149 : vector<16x1xf32>
    %151 = vector.broadcast %150 : vector<16x1xf32> to vector<16x320xf32>
    %152 = arith.subf %144, %151 : vector<16x320xf32>
    %153 = arith.mulf %152, %152 : vector<16x320xf32>
    %cst_57 = arith.constant dense<0.000000e+00> : vector<16xf32>
    %154 = vector.multi_reduction <add>, %153, %cst_57 [1] : vector<16x320xf32> to vector<16xf32>
    %155 = vector.shape_cast %154 : vector<16xf32> to vector<16x1xf32>
    %cst_58 = arith.constant 3.200000e+02 : f32
    %156 = vector.broadcast %cst_58 : f32 to vector<16x1xf32>
    %157 = arith.divf %155, %156 : vector<16x1xf32>
    %cst_59 = arith.constant 9.99999974E-6 : f32
    %158 = vector.broadcast %cst_59 : f32 to vector<16x1xf32>
    %159 = arith.addf %157, %158 : vector<16x1xf32>
    %160 = math.rsqrt %159 : vector<16x1xf32>
    %161 = vector.broadcast %160 : vector<16x1xf32> to vector<16x320xf32>
    %162 = arith.mulf %152, %161 : vector<16x320xf32>
    %163 = vector.broadcast %145 : vector<1x320xf32> to vector<16x320xf32>
    %164 = arith.mulf %162, %163 : vector<16x320xf32>
    %165 = vector.broadcast %146 : vector<1x320xf32> to vector<16x320xf32>
    %166 = arith.addf %164, %165 : vector<16x320xf32>
    %167 = arith.truncf %166 : vector<16x320xf32> to vector<16x320xbf16>
    %c0_60 = arith.constant 0 : index
    %c0_61 = arith.constant 0 : index
    %168 = vector.load %arg10[%c0_60, %c0_61] : memref<320x640xbf16, #tpu.memory_space<vmem>>, vector<320x640xbf16>
    %cst_62 = arith.constant dense<0.000000e+00> : vector<16x640xf32>
    %169 = tpu.matmul %167, %168, %cst_62 {dimension_numbers = #tpu.dot_dimension_numbers<[1], [0], [0], [1], [0, 0, 1, 1], [], []>} : vector<16x320xbf16>, vector<320x640xbf16>, vector<16x640xf32> -> vector<16x640xf32>
    %c0_63 = arith.constant 0 : index
    %c0_64 = arith.constant 0 : index
    %170 = vector.load %arg11[%c0_63, %c0_64] : memref<1x640xf32, #tpu.memory_space<vmem>>, vector<1x640xf32>
    %171 = vector.broadcast %170 : vector<1x640xf32> to vector<16x640xf32>
    %172 = arith.addf %169, %171 : vector<16x640xf32>
    %cst_65 = arith.constant 5.000000e-01 : f32
    %173 = vector.broadcast %cst_65 : f32 to vector<16x640xf32>
    %174 = arith.mulf %173, %172 : vector<16x640xf32>
    %cst_66 = arith.constant 4.471500e-02 : f32
    %175 = vector.broadcast %cst_66 : f32 to vector<16x640xf32>
    %176 = arith.mulf %175, %172 : vector<16x640xf32>
    %177 = arith.mulf %176, %172 : vector<16x640xf32>
    %178 = arith.mulf %177, %172 : vector<16x640xf32>
    %179 = arith.addf %172, %178 : vector<16x640xf32>
    %cst_67 = arith.constant 0.797884583 : f32
    %180 = vector.broadcast %cst_67 : f32 to vector<16x640xf32>
    %181 = arith.mulf %180, %179 : vector<16x640xf32>
    %182 = math.tanh %181 : vector<16x640xf32>
    %cst_68 = arith.constant 1.000000e+00 : f32
    %183 = vector.broadcast %cst_68 : f32 to vector<16x640xf32>
    %184 = arith.addf %183, %182 : vector<16x640xf32>
    %185 = arith.mulf %174, %184 : vector<16x640xf32>
    %186 = arith.truncf %185 : vector<16x640xf32> to vector<16x640xbf16>
    %c0_69 = arith.constant 0 : index
    %c0_70 = arith.constant 0 : index
    %187 = vector.load %arg12[%c0_69, %c0_70] : memref<640x320xbf16, #tpu.memory_space<vmem>>, vector<640x320xbf16>
    %cst_71 = arith.constant dense<0.000000e+00> : vector<16x320xf32>
    %188 = tpu.matmul %186, %187, %cst_71 {dimension_numbers = #tpu.dot_dimension_numbers<[1], [0], [0], [1], [0, 0, 1, 1], [], []>} : vector<16x640xbf16>, vector<640x320xbf16>, vector<16x320xf32> -> vector<16x320xf32>
    %189 = arith.addf %144, %188 : vector<16x320xf32>
    %c0_72 = arith.constant 0 : index
    %c0_73 = arith.constant 0 : index
    %190 = vector.load %arg13[%c0_72, %c0_73] : memref<1x320xf32, #tpu.memory_space<vmem>>, vector<1x320xf32>
    %191 = vector.broadcast %190 : vector<1x320xf32> to vector<16x320xf32>
    %192 = arith.addf %189, %191 : vector<16x320xf32>
    %c0_74 = arith.constant 0 : index
    %c0_75 = arith.constant 0 : index
    %193 = vector.load %arg14[%c0_74, %c0_75] : memref<16x320xf32, #tpu.memory_space<vmem>>, vector<16x320xf32>
    tpu.vector_store %arg14[%c0_74, %c0_75], %192 {strides = array<i32>} : memref<16x320xf32, #tpu.memory_space<vmem>>, vector<16x320xf32>,
    return
  }
}

</mosaic_0001>

<bundles_post_ra>
// kernel: transformer_denoiser_forward.4
= control target key start
LH: loop header
LB: loop body
LE: loop exit
PB: predicated region body
PF: predicated region fallthrough
CT: control target
= control target key end

     0   :  { %10 = vsyncpa [#allocation3], 0  ;;  %s455_s18 = smov [#allocation2]   ;;  %s522_s0 = inlined_call_operand.vmem [shape: f32[2,32], index: 0, kind: input, shape index: {}]   ;;  %s523_s1 = inlined_call_operand.vmem [shape: bf16[32,32], index: 1, kind: input, shape index: {}]   ;;  %s524_s2 = inlined_call_operand.vmem [shape: f32[1,32], index: 2, kind: input, shape index: {}]   ;;  %s525_s3 = inlined_call_operand.hbm [shape: bf16[32,640], index: 3, kind: input, shape index: {}]   ;;  %s526_s4 = inlined_call_operand.vmem [shape: f32[1,640], index: 4, kind: input, shape index: {}]   ;;  %s527_s5 = inlined_call_operand.vmem [shape: f32[2,640], index: 5, kind: output, shape index: {}]  }
   0x1   :  { %s22_s19 = sshll.u32 %s455_s18, 4  ;;  %s23_s19 = int_to_ptr.vmem [resolvable:$true] %s22_s19 }
   0x2   :  { %s441_s20 = scalar_lea.vmem %s23_s19, 1280  ;;  %p446_p1 = scmp.lt.s32.totalorder %s23_s19, %s23_s19 }
   0x3   :  { %p442_p0 = scmp.ne.s32.totalorder %s23_s19, %s441_s20  ;;  %p447_p2 = scmp.lt.s32.totalorder %s441_s20, %s441_s20 }
   0x5   :  { %p448_p3 = por %p447_p2, %p446_p1 }
   0x7   :  { %p449_p4 = pnand %p448_p3, %p442_p0 }
   0x9   :  { %452 = shalt.err (!%p449_p4)
}
   0xa   :  { %s456_s21 = smov 320   ;;  %s457_s22 = smov 20  }
   0xb   :  { %28 = dma.hbm_to_vmem [thread:$0]  %s525_s3, 1280, %s23_s19, [#allocation3], %s456_s21, %s456_s21, %s457_s22  }
   0xc   :  { %453 = dma.done.wait [#allocation3], 1280  }
   0xd   :  { %454 = vsyncadd [#allocation3], 4294966016  ;;  %v458_v0 = vmov 0.0   ;;  %vm459_vm0 = vmmov 0   ;;  %v415_v1 = vld [vmem:[%s523_s1 + $0x8] sm:$0xff]   ;;  %v416_v2 = vld [vmem:[%s523_s1] sm:$0xff]   ;;  %v128_v32 = vlaneseq }
   0xe   :  { %392 = vmatprep.subr.bf16.mxu0 %v458_v0  ;;  %396 = vmatprep.mubr.msk.bf16.mxu0 %vm459_vm0, %v458_v0  ;;  %v35_v3 = vld [vmem:[%s522_s0] sm:$0x3]  ;;  %vm60_vm1 = vcmask 261120   ;;  %v419_v6 = vld [vmem:[#allocation2 + $0x28] ss:$20 sps:$4 sm:$0xff]   ;;  %v460_v13 = vmov 0  }
   0xf   :  { %393 = vmatpush3.bf16.msra.mxu0 %v415_v1  ;;  %v36_v4 = vpack.c.bf16 %v35_v3, %v35_v3  ;;  %v417_v5 = vld [vmem:[#allocation2 + $0x2c] ss:$20 sps:$4 sm:$0xff]   ;;  %v420_v7 = vld [vmem:[#allocation2 + $0x30] ss:$20 sps:$4 sm:$0xff]   ;;  %v422_v8 = vld [vmem:[#allocation2 + $0x34] ss:$20 sps:$4 sm:$0xff]   ;;  %240 = vmatprep.mubr.bf16.mxu1 %v460_v13 }
  0x10   :  { %394 = vmatprep.subr.bf16.mxu0 %v458_v0  ;;  %v423_v9 = vld [vmem:[#allocation2 + $0x4] ss:$20 sps:$4 sm:$0xff]   ;;  %220 = vmatprep.subr.bf16.mxu1 %v417_v5  ;;  %v428_v10 = vld [vmem:[#allocation2 + $0xc] ss:$20 sps:$4 sm:$0xff]   ;;  %v426_v12 = vld [vmem:[#allocation2 + $0x8] ss:$20 sps:$4 sm:$0xff]  }
  0x11   :  { %221 = vmatpush1.bf16.msra.mxu1 %v419_v6  ;;  %v425_v11 = vld [vmem:[#allocation2] ss:$20 sps:$4 sm:$0xff]   ;;  %v429_v29 = vld [vmem:[#allocation2 + $0x38] ss:$20 sps:$4 sm:$0xff]   ;;  %v430_v31 = vld [vmem:[#allocation2 + $0x10] ss:$20 sps:$4 sm:$0xff]  }
  0x12   :  { %222 = vmatprep.subr.bf16.mxu1 %v423_v9  ;;  %v368_v14 = vld [vmem:[%s524_s2] ss:$0 sm:$0xff]  ;;  %v129_v33 = vshrl.u32 %v128_v32, 7  ;;  %v461_v34 = vmov 1983009808  }
  0x13   :  { %395 = vmatpush3.bf16.msra.mxu0 %v416_v2  ;;  %v338_v35 = vunpack.c.l.s4 %v461_v34  ;;  %v126_v40 = vld [vmem:[%s526_s4] sm:$0x1f] }
  0x14   :  { %261 = vmatprep.subr.bf16.mxu0 %v422_v8  ;;  %v130_v36 = vsub.s32 0, %v129_v33  ;;  %v138_v37 = vsub.s32 2, %v129_v33  ;;  %v134_v38 = vsub.s32 1, %v129_v33  ;;  %v142_v39 = vsub.s32 3, %v129_v33 }
  0x15   :  { %223 = vmatpush1.bf16.msra.mxu1 %v425_v11  ;;  %v339_v41 = vunpack.c.0.s8 %v338_v35  ;;  %v146_v48 = vsub.s32 4, %v129_v33 }
  0x16   :  { %397 = vmatmul.mubr.msk.bf16.vlgmr.msra.gmra.mxu0 %vm60_vm1, %v36_v4  ;;  %400 = vmatprep.subr.bf16.mxu1 %v458_v0  ;;  %v131_v42 = vrot.slane %v126_v40, %v130_v36  ;;  %v139_v43 = vrot.slane %v126_v40, %v138_v37  ;;  %v135_v44 = vrot.slane %v126_v40, %v134_v38 }
  0x17   :  { %262 = vmatpush1.bf16.msra.mxu0 %v420_v7  ;;  %281 = vmatprep.mubr.bf16.mxu0 %v460_v13  ;;  %v143_v45 = vrot.slane %v126_v40, %v142_v39  ;;  %v342_v50 = vsub.s32 %v339_v41, %v129_v33  ;;  %v147_v60 = vrot.slane %v126_v40, %v146_v48 }
  0x18   :  { %263 = vmatprep.subr.bf16.mxu0 %v428_v10 }
  0x1b   :  { %264 = vmatpush1.bf16.msra.mxu0 %v426_v12 }
  0xd6   :  { %v98_v15 = vpop.f32.mrf.mxu0 }
  0xd7   :  { %v99_v16 = vadd.f32 %v368_v14, %v98_v15 }
  0xd8   :  { %v398_v17 = vpop.f32.mrf.mxu0 }
  0xd9   :  { %v105_v18 = vmul.f32 0.044715, %v99_v16  ;;  %v104_v26 = vmul.f32 0.5, %v99_v16 }
  0xda   :  { %v101_v19 = vpop.f32.mrf.mxu0 }
  0xdb   :  { %v106_v20 = vmul.f32 %v105_v18, %v99_v16 }
  0xdc   :  { %v399_v21 = vpop.f32.mrf.mxu0 }
  0xdd   :  { %v107_v22 = vmul.f32 %v106_v20, %v99_v16 }
  0xdf   :  { %v108_v23 = vadd.f32 %v107_v22, %v99_v16 }
  0xe1   :  { %v109_v24 = vmul.f32 0.7978846, %v108_v23 }
  0xe3   :  { %431 = vtanh.f32 %v109_v24 }
  0xf0   :  { %v432_v25 = vpop.eup %431 }
  0xf1   :  { %v111_v27 = vadd.f32 1.0, %v432_v25 }
  0xf3   :  { %v112_v28 = vmul.f32 %v111_v27, %v104_v26 }
  0xf5   :  { %v113_v30 = vpack.c.bf16 %v112_v28, %v112_v28 }
  0xf7   :  { %382 = vmatmul.mubr.msk.bf16.vlgmr.msra.gmra.mxu1 %vm60_vm1, %v113_v30  ;;  %383 = vmatmul.mubr.msk.bf16.vlgmr.msra.gmra.mxu0 %vm60_vm1, %v113_v30 }
  0xf8   :  { %401 = vmatpush3.bf16.msra.mxu1 %v429_v29  ;;  %404 = vmatprep.mubr.msk.bf16.mxu1 %vm459_vm0, %v458_v0 }
  0xf9   :  { %402 = vmatprep.subr.bf16.mxu1 %v458_v0 }
  0xfc   :  { %403 = vmatpush3.bf16.msra.mxu1 %v430_v31 }
  0xff   :  { %405 = vmatmul.mubr.msk.bf16.vlgmr.msra.gmra.mxu1 %vm60_vm1, %v113_v30 }
 0x1b7   :  { %v242_v46 = vpop.f32.mrf.mxu1  ;;  %v283_v47 = vpop.f32.mrf.mxu0 }
 0x1b8   :  { %v243_v52 = vadd.f32 %v242_v46, %v131_v42  ;;  %v284_v53 = vadd.f32 %v283_v47, %v139_v43 }
 0x1b9   :  { %v244_v49 = vpop.f32.mrf.mxu1  ;;  %v285_v51 = vpop.f32.mrf.mxu0 }
 0x1ba   :  { %v245_v54 = vadd.f32 %v244_v49, %v135_v44  ;;  %v286_v55 = vadd.f32 %v285_v51, %v143_v45 }
 0x1bb   :  { %v246_v56 = vpop.f32.mrf.mxu1  ;;  %v287_v57 = vpop.f32.mrf.mxu0 }
 0x1bc   :  { %v335_v58 = vcombine.low %v243_v52, %v245_v54  ;;  %v336_v59 = vcombine.low %v284_v53, %v286_v55 }
 0x1bd   :  { %v247_v61 = vpop.f32.mrf.mxu1  ;;  %v288_v62 = vpop.f32.mrf.mxu0 }
 0x1be   :  { %v343_v63 = vrot.slane %v335_v58, %v342_v50  ;;  %v350_v0 = vrot.slane %v336_v59, %v342_v50 }
 0x1bf   :  { %v324_v1 = vpop.f32.mrf.mxu1 }
 0x1c0   :  { %v351_v2 = vcombine.low %v343_v63, %v350_v0  ;;  %v325_v3 = vadd.f32 %v324_v1, %v147_v60 }
 0x1c1   :  { %v406_v4 = vpop.f32.mrf.mxu1 }
 0x1c2   :  { %361 = vst [vmem:[%s527_s5] sm:$0xff] %v351_v2  ;;  %385 = vst.sshfl [vmem:[%s527_s5 + $0x8] sm:$0x3 pattern:$0x76325410] %v325_v3 }
 0x1c3   :  { %v327_v5 = vpop.f32.mrf.mxu1 }
 0x1c5   :  { %v407_v6 = vpop.f32.mrf.mxu1 }
 0x1c6   :  { %367 = vsyncpa [#allocation3], 1 }

// kernel: transformer_denoiser_forward.5
= control target key start
LH: loop header
LB: loop body
LE: loop exit
PB: predicated region body
PF: predicated region fallthrough
CT: control target
= control target key end

     0   :  { %13 = vsyncpa [#allocation3], 0  ;;  %s2791_s0 = inlined_call_operand.hbm [shape: f32[16,320], index: 0, kind: input, shape index: {}]   ;;  %s2792_s1 = inlined_call_operand.hbm [shape: f32[16,320], index: 1, kind: input, shape index: {}]   ;;  %s2793_s2 = inlined_call_operand.hbm [shape: bf16[640,320], index: 2, kind: input, shape index: {}]   ;;  %s2794_s3 = inlined_call_operand.vmem [shape: f32[1,320], index: 3, kind: input, shape index: {}, may-alias: {3,5}]   ;;  %s2795_s4 = inlined_call_operand.hbm [shape: bf16[320,320], index: 4, kind: input, shape index: {}]   ;;  %s2796_s5 = inlined_call_operand.vmem [shape: f32[1,320], index: 5, kind: input, shape index: {}, may-alias: {3,5}]   ;;  %s2797_s6 = inlined_call_operand.vmem [shape: f32[16,320], index: 6, kind: input, shape index: {}]   ;;  %s2798_s7 = inlined_call_operand.vmem [shape: f32[16,320], index: 7, kind: input, shape index: {}]   ;;  %s2799_s8 = inlined_call_operand.vmem [shape: f32[16,320], index: 8, kind: output, shape index: {}]  }
   0x1   :  { %14 = vsyncpa [#allocation5], 0 }
   0x2   :  { %15 = vsyncpa [#allocation8], 0  ;;  %s2609_s27 = smov [#allocation4]   ;;  %s2610_s29 = smov [#allocation2]  }
   0x3   :  { %s33_s28 = sshll.u32 %s2609_s27, 4  ;;  %s21_s30 = sshll.u32 %s2610_s29, 4  ;;  %s34_s28 = int_to_ptr.vmem [resolvable:$true] %s33_s28  ;;  %s22_s30 = int_to_ptr.vmem [resolvable:$true] %s21_s30 }
   0x4   :  { %s2531_s9 = scalar_lea.vmem %s34_s28, 768  ;;  %p2536_p1 = scmp.lt.s32.totalorder %s34_s28, %s34_s28 }
   0x5   :  { %p2532_p0 = scmp.ne.s32.totalorder %s34_s28, %s2531_s9  ;;  %p2537_p2 = scmp.lt.s32.totalorder %s2531_s9, %s2531_s9 }
   0x7   :  { %p2538_p3 = por %p2537_p2, %p2536_p1 }
   0x9   :  { %p2539_p4 = pnand %p2538_p3, %p2532_p0 }
   0xb   :  { %2542 = shalt.err (!%p2539_p4)
}
   0xc   :  { %s2611_s10 = smov 384   ;;  %s2612_s11 = smov 24  }
   0xd   :  { %39 = dma.hbm_to_vmem [thread:$0]  %s2792_s1, 768, %s34_s28, [#allocation5], %s2611_s10, %s2611_s10, %s2612_s11  }
   0xe   :  { %s2551_s14 = scalar_lea.vmem %s22_s30, 768  ;;  %p2556_p6 = scmp.lt.s32.totalorder %s22_s30, %s22_s30 }
   0xf   :  { %p2552_p5 = scmp.ne.s32.totalorder %s22_s30, %s2551_s14  ;;  %p2557_p7 = scmp.lt.s32.totalorder %s2551_s14, %s2551_s14 }
  0x11   :  { %p2558_p8 = por %p2557_p7, %p2556_p6 }
  0x13   :  { %p2559_p9 = pnand %p2558_p8, %p2552_p5 }
  0x15   :  { %2562 = shalt.err (!%p2559_p9)
}
  0x16   :  { %27 = dma.hbm_to_vmem [thread:$0]  %s2791_s0, 768, %s22_s30, [#allocation3], %s2611_s10, %s2611_s10, %s2612_s11  }
  0x17   :  { %s2613_s17 = smov [#allocation6]  }
  0x18   :  { %s45_s18 = sshll.u32 %s2613_s17, 4  ;;  %s46_s18 = int_to_ptr.vmem [resolvable:$true] %s45_s18 }
  0x19   :  { %s2571_s19 = scalar_lea.vmem %s46_s18, 15360  ;;  %p2576_p11 = scmp.lt.s32.totalorder %s46_s18, %s46_s18 }
  0x1a   :  { %p2572_p10 = scmp.ne.s32.totalorder %s46_s18, %s2571_s19  ;;  %p2577_p12 = scmp.lt.s32.totalorder %s2571_s19, %s2571_s19 }
  0x1c   :  { %p2578_p13 = por %p2577_p12, %p2576_p11 }
  0x1e   :  { %p2579_p0 = pnand %p2578_p13, %p2572_p10 }
  0x20   :  { %2582 = shalt.err (!%p2579_p0)
}
  0x21   :  { %s2614_s1 = smov 192   ;;  %s2615_s20 = smov 12  }
  0x22   :  { %51 = dma.hbm_to_vmem [thread:$0]  %s2793_s2, 15360, %s46_s18, [#allocation5], %s2614_s1, %s2614_s1, %s2615_s20  }
  0x23   :  { %s2616_s23 = smov [#allocation7]  }
  0x24   :  { %s59_s24 = sshll.u32 %s2616_s23, 4  ;;  %s60_s24 = int_to_ptr.vmem [resolvable:$true] %s59_s24 }
  0x25   :  { %s2591_s0 = scalar_lea.vmem %s60_s24, 7680  ;;  %p2596_p2 = scmp.lt.s32.totalorder %s60_s24, %s60_s24 }
  0x26   :  { %p2592_p1 = scmp.ne.s32.totalorder %s60_s24, %s2591_s0  ;;  %p2597_p3 = scmp.lt.s32.totalorder %s2591_s0, %s2591_s0 }
  0x28   :  { %p2598_p4 = por %p2597_p3, %p2596_p2 }
  0x2a   :  { %p2599_p5 = pnand %p2598_p4, %p2592_p1 }
  0x2c   :  { %2602 = shalt.err (!%p2599_p5)
}
  0x2d   :  { %65 = dma.hbm_to_vmem [thread:$0]  %s2795_s4, 7680, %s60_s24, [#allocation8], %s2614_s1, %s2614_s1, %s2615_s20  }
  0x2e   :  { %2603 = dma.done.wait [#allocation3], 768  }
  0x2f   :  { %2604 = vsyncadd [#allocation3], 4294966528 }
  0x30   :  { %2605 = dma.done.wait [#allocation5], 16128  }
  0x31   :  { %2606 = vsyncadd [#allocation5], 4294951168 }
  0x32   :  { %2607 = dma.done.wait [#allocation8], 7680  }
  0x33   :  { %2608 = vsyncadd [#allocation8], 4294959616  ;;  %v2617_v0 = vmov 0   ;;  %v2271_v1 = vld [vmem:[#allocation6 + $0x28c] ss:$12 sps:$4 sm:$0xff]   ;;  %v176_v17 = vld [vmem:[#allocation4 + $0x10] sm:$0xff] }
  0x34   :  { %662 = vmatprep.mubr.bf16.mxu1 %v2617_v0  ;;  %v2273_v2 = vld [vmem:[#allocation6 + $0x3ac] ss:$12 sps:$4 sm:$0xff]   ;;  %587 = vmatprep.subr.bf16.mxu0 %v2271_v1  ;;  %v2275_v3 = vld [vmem:[#allocation6 + $0x288] ss:$12 sps:$4 sm:$0xff]   ;;  %v2281_v7 = vld [vmem:[#allocation6 + $0x270] ss:$12 sps:$4 sm:$0xff]  }
  0x35   :  { %v2276_v4 = vld [vmem:[#allocation6 + $0x3a8] ss:$12 sps:$4 sm:$0xff]   ;;  %638 = vmatprep.subr.bf16.mxu1 %v2273_v2  ;;  %588 = vmatpush1.bf16.msra.mxu0 %v2275_v3  ;;  %v2282_v8 = vld [vmem:[#allocation6 + $0x390] ss:$12 sps:$4 sm:$0xff]   ;;  %v2287_v11 = vld [vmem:[#allocation6 + $0x258] ss:$12 sps:$4 sm:$0xff]  }
  0x36   :  { %v2277_v5 = vld [vmem:[#allocation6 + $0x274] ss:$12 sps:$4 sm:$0xff]   ;;  %639 = vmatpush1.bf16.msra.mxu1 %v2276_v4  ;;  %v2283_v9 = vld [vmem:[#allocation6 + $0x25c] ss:$12 sps:$4 sm:$0xff]   ;;  %v2288_v12 = vld [vmem:[#allocation6 + $0x378] ss:$12 sps:$4 sm:$0xff]  }
  0x37   :  { %v2279_v6 = vld [vmem:[#allocation6 + $0x394] ss:$12 sps:$4 sm:$0xff]   ;;  %589 = vmatprep.subr.bf16.mxu0 %v2277_v5  ;;  %v2285_v10 = vld [vmem:[#allocation6 + $0x37c] ss:$12 sps:$4 sm:$0xff]   ;;  %v2289_v13 = vld [vmem:[#allocation6 + $0x244] ss:$12 sps:$4 sm:$0xff]  }
  0x38   :  { %640 = vmatprep.subr.bf16.mxu1 %v2279_v6  ;;  %v2291_v14 = vld [vmem:[#allocation6 + $0x364] ss:$12 sps:$4 sm:$0xff]   ;;  %v2293_v15 = vld [vmem:[#allocation6 + $0x240] ss:$12 sps:$4 sm:$0xff]   ;;  %v179_v18 = vld [vmem:[#allocation4 + $0x28] sm:$0xff]  ;;  %vm583_vm0 = vcmask 523264  }
  0x39   :  { %590 = vmatpush1.bf16.msra.mxu0 %v2281_v7  ;;  %v2294_v16 = vld [vmem:[#allocation6 + $0x360] ss:$12 sps:$4 sm:$0xff]   ;;  %v2297_v20 = vld [vmem:[#allocation6 + $0x350] ss:$12 sps:$4 sm:$0xff]   ;;  %v2678_v21 = vpack.c.bf16 %v179_v18, %v176_v17  ;;  %v2298_v22 = vld [vmem:[#allocation6 + $0x228] ss:$12 sps:$4 sm:$0xff]  }
  0x3a   :  { %641 = vmatpush1.bf16.msra.mxu1 %v2282_v8  ;;  %591 = vmatprep.subr.bf16.mxu0 %v2283_v9  ;;  %v2295_v19 = vld [vmem:[#allocation6 + $0x22c] ss:$12 sps:$4 sm:$0xff]   ;;  %v2299_v23 = vld [vmem:[#allocation6 + $0x290] ss:$12 sps:$4 sm:$0xff]   ;;  %v2300_v24 = vld [vmem:[#allocation6 + $0x214] ss:$12 sps:$4 sm:$0xff]  }
  0x3b   :  { %642 = vmatprep.subr.bf16.mxu1 %v2285_v10  ;;  %v2302_v25 = vld [vmem:[#allocation6 + $0x338] ss:$12 sps:$4 sm:$0xff]   ;;  %v2303_v26 = vld [vmem:[#allocation6 + $0x210] ss:$12 sps:$4 sm:$0xff]   ;;  %v2307_v29 = vld [vmem:[#allocation6 + $0x320] ss:$12 sps:$4 sm:$0xff]  }
  0x3c   :  { %v2304_v27 = vld [vmem:[#allocation6 + $0x278] ss:$12 sps:$4 sm:$0xff]   ;;  %v2305_v28 = vld [vmem:[#allocation6 + $0x1fc] ss:$12 sps:$4 sm:$0xff]   ;;  %v2309_v31 = vld [vmem:[#allocation6 + $0x260] ss:$12 sps:$4 sm:$0xff]  }
  0x3d   :  { %592 = vmatpush1.bf16.msra.mxu0 %v2287_v11  ;;  %v2308_v30 = vld [vmem:[#allocation6 + $0x1f8] ss:$12 sps:$4 sm:$0xff]   ;;  %v2312_v33 = vld [vmem:[#allocation6 + $0x308] ss:$12 sps:$4 sm:$0xff]   ;;  %v2313_v34 = vld [vmem:[#allocation6 + $0x1e0] ss:$12 sps:$4 sm:$0xff]  }
  0x3e   :  { %643 = vmatpush1.bf16.msra.mxu1 %v2288_v12  ;;  %593 = vmatprep.subr.bf16.mxu0 %v2289_v13  ;;  %v2310_v32 = vld [vmem:[#allocation6 + $0x1e4] ss:$12 sps:$4 sm:$0xff]   ;;  %v2314_v35 = vld [vmem:[#allocation6 + $0x248] ss:$12 sps:$4 sm:$0xff]   ;;  %v2315_v36 = vld [vmem:[#allocation6 + $0x34c] ss:$12 sps:$4 sm:$0xff]  }
  0x3f   :  { %644 = vmatprep.subr.bf16.mxu1 %v2291_v14  ;;  %v2317_v37 = vld [vmem:[#allocation6 + $0x2f0] ss:$12 sps:$4 sm:$0xff]   ;;  %v2318_v38 = vld [vmem:[#allocation6 + $0x348] ss:$12 sps:$4 sm:$0xff]   ;;  %v2322_v41 = vld [vmem:[#allocation6 + $0x2d8] ss:$12 sps:$4 sm:$0xff]  }
  0x40   :  { %v2319_v39 = vld [vmem:[#allocation6 + $0x230] ss:$12 sps:$4 sm:$0xff]   ;;  %v2320_v40 = vld [vmem:[#allocation6 + $0x334] ss:$12 sps:$4 sm:$0xff]   ;;  %v2324_v43 = vld [vmem:[#allocation6 + $0x218] ss:$12 sps:$4 sm:$0xff]  }
  0x41   :  { %594 = vmatpush1.bf16.msra.mxu0 %v2293_v15  ;;  %v2323_v42 = vld [vmem:[#allocation6 + $0x330] ss:$12 sps:$4 sm:$0xff]   ;;  %v2327_v45 = vld [vmem:[#allocation6 + $0x2c0] ss:$12 sps:$4 sm:$0xff]   ;;  %v2328_v48 = vld [vmem:[#allocation6 + $0x318] ss:$12 sps:$4 sm:$0xff]  }
  0x42   :  { %645 = vmatpush1.bf16.msra.mxu1 %v2294_v16  ;;  %595 = vmatprep.subr.bf16.mxu0 %v2295_v19  ;;  %v2325_v44 = vld [vmem:[#allocation6 + $0x31c] ss:$12 sps:$4 sm:$0xff]   ;;  %v178_v47 = vld [vmem:[#allocation4 + $0x20] sm:$0xff]  ;;  %v2329_v50 = vld [vmem:[#allocation6 + $0x200] ss:$12 sps:$4 sm:$0xff]   ;;  %v2618_v61 = vmov 0.0  }
  0x43   :  { %2143 = vmatprep.subr.bf16.mxu1 %v2297_v20  ;;  %v175_v46 = vld [vmem:[#allocation4 + $0x8] sm:$0xff]  ;;  %v2330_v51 = vld [vmem:[#allocation6 + $0x304] ss:$12 sps:$4 sm:$0xff]   ;;  %v2332_v52 = vld [vmem:[#allocation6 + $0x2a8] ss:$12 sps:$4 sm:$0xff]   ;;  %vm2619_vm1 = vmmov 0  }
  0x44   :  { %v181_v49 = vpack.c.bf16 %v178_v47, %v175_v46  ;;  %v2333_v53 = vld [vmem:[#allocation6 + $0x300] ss:$12 sps:$4 sm:$0xff]   ;;  %v2334_v54 = vld [vmem:[#allocation6 + $0x1e8] ss:$12 sps:$4 sm:$0xff]   ;;  %v2338_v60 = vld [vmem:[#allocation6 + $0x3b0] ss:$12 sps:$4 sm:$0xff]  }
  0x45   :  { %2017 = vmatmul.mubr.msk.bf16.vlgmr.msra.gmra.mxu1 %vm583_vm0, %v2678_v21  ;;  %596 = vmatpush1.bf16.msra.mxu0 %v2298_v22  ;;  %v174_v55 = vld [vmem:[#allocation4] sm:$0xff]  ;;  %v177_v56 = vld [vmem:[#allocation4 + $0x18] sm:$0xff]  ;;  %v2342_v1 = vld [vmem:[#allocation6 + $0x398] ss:$12 sps:$4 sm:$0xff]  }
  0x46   :  { %2144 = vmatpush3.bf16.msra.mxu1 %v2299_v23  ;;  %597 = vmatprep.subr.bf16.mxu0 %v2300_v24  ;;  %v2335_v57 = vld [vmem:[#allocation6 + $0x2ec] ss:$12 sps:$4 sm:$0xff]   ;;  %v180_v58 = vpack.c.bf16 %v177_v56, %v174_v55  ;;  %v2337_v59 = vld [vmem:[#allocation6 + $0x2e8] ss:$12 sps:$4 sm:$0xff]   ;;  %v2341_v63 = vld [vmem:[#allocation6 + $0x2d0] ss:$12 sps:$4 sm:$0xff]  }
  0x47   :  { %2145 = vmatprep.subr.bf16.mxu1 %v2302_v25  ;;  %705 = vmatprep.mubr.bf16.mxu1 %v181_v49  ;;  %v2339_v62 = vld [vmem:[#allocation6 + $0x2d4] ss:$12 sps:$4 sm:$0xff]   ;;  %v2343_v2 = vld [vmem:[#allocation6 + $0x2bc] ss:$12 sps:$4 sm:$0xff]   ;;  %v2345_v3 = vld [vmem:[#allocation6 + $0x2b8] ss:$12 sps:$4 sm:$0xff]  }
  0x48   :  { %619 = vmatprep.mubr.bf16.mxu0 %v181_v49  ;;  %v2346_v4 = vld [vmem:[#allocation6 + $0x380] ss:$12 sps:$4 sm:$0xff]   ;;  %v2347_v5 = vld [vmem:[#allocation6 + $0x2a4] ss:$12 sps:$4 sm:$0xff]   ;;  %v2350_v7 = vld [vmem:[#allocation6 + $0x368] ss:$12 sps:$4 sm:$0xff]  }
  0x49   :  { %598 = vmatpush1.bf16.msra.mxu0 %v2303_v26  ;;  %v2349_v6 = vld [vmem:[#allocation6 + $0x2a0] ss:$12 sps:$4 sm:$0xff]   ;;  %v2351_v10 = vld [vmem:[#allocation6 + $0xa8] ss:$12 sps:$4 sm:$0xff]   ;;  %v2357_v14 = vld [vmem:[#allocation6 + $0x90] ss:$12 sps:$4 sm:$0xff]  }
  0x4a   :  { %2146 = vmatpush3.bf16.msra.mxu1 %v2304_v27  ;;  %599 = vmatprep.subr.bf16.mxu0 %v2305_v28  ;;  %v2353_v8 = vld [vmem:[#allocation6 + $0xac] ss:$12 sps:$4 sm:$0xff]   ;;  %v2354_v11 = vld [vmem:[#allocation6 + $0x1c8] ss:$12 sps:$4 sm:$0xff]   ;;  %v2360_v15 = vld [vmem:[#allocation6 + $0x1b0] ss:$12 sps:$4 sm:$0xff]  }
  0x4b   :  { %2147 = vmatprep.subr.bf16.mxu1 %v2307_v29  ;;  %v2356_v9 = vld [vmem:[#allocation6 + $0x1cc] ss:$12 sps:$4 sm:$0xff]   ;;  %v2359_v12 = vld [vmem:[#allocation6 + $0x94] ss:$12 sps:$4 sm:$0xff]   ;;  %v2365_v16 = vld [vmem:[#allocation6 + $0x7c] ss:$12 sps:$4 sm:$0xff]  }
  0x4c   :  { %v2362_v13 = vld [vmem:[#allocation6 + $0x1b4] ss:$12 sps:$4 sm:$0xff]   ;;  %v2368_v17 = vld [vmem:[#allocation6 + $0x19c] ss:$12 sps:$4 sm:$0xff]   ;;  %v2363_v18 = vld [vmem:[#allocation6 + $0x78] ss:$12 sps:$4 sm:$0xff]  }
  0x4d   :  { %600 = vmatpush1.bf16.msra.mxu0 %v2308_v30  ;;  %v2366_v19 = vld [vmem:[#allocation6 + $0x198] ss:$12 sps:$4 sm:$0xff]   ;;  %v2369_v23 = vld [vmem:[#allocation6 + $0x60] ss:$12 sps:$4 sm:$0xff]   ;;  %v87_v24 = vld [vmem:[#allocation2 + $0x10] sm:$0xff] }
  0x4e   :  { %2148 = vmatpush3.bf16.msra.mxu1 %v2309_v31  ;;  %601 = vmatprep.subr.bf16.mxu0 %v2310_v32  ;;  %v2371_v20 = vld [vmem:[#allocation6 + $0x64] ss:$12 sps:$4 sm:$0xff]   ;;  %v90_v25 = vld [vmem:[#allocation2 + $0x28] sm:$0xff]  ;;  %v2382_v31 = vld [vmem:[#allocation6 + $0x34] ss:$12 sps:$4 sm:$0xff]  }
  0x4f   :  { %2149 = vmatprep.subr.bf16.mxu1 %v2312_v33  ;;  %v2374_v22 = vld [vmem:[#allocation6 + $0x184] ss:$12 sps:$4 sm:$0xff]   ;;  %v2377_v26 = vld [vmem:[#allocation6 + $0x4c] ss:$12 sps:$4 sm:$0xff]   ;;  %v2375_v28 = vld [vmem:[#allocation6 + $0x48] ss:$12 sps:$4 sm:$0xff]   ;;  %v2691_v29 = vpack.c.bf16 %v90_v25, %v87_v24 }
  0x50   :  { %v2378_v27 = vld [vmem:[#allocation6 + $0x170] ss:$12 sps:$4 sm:$0xff]   ;;  %v2383_v32 = vld [vmem:[#allocation6 + $0x158] ss:$12 sps:$4 sm:$0xff]   ;;  %v2408_v55 = vld [vmem:[#allocation6 + $0xe0] ss:$12 sps:$4 sm:$0xff]  }
  0x51   :  { %602 = vmatpush1.bf16.msra.mxu0 %v2313_v34  ;;  %v2379_v30 = vld [vmem:[#allocation6 + $0xb0] ss:$12 sps:$4 sm:$0xff]   ;;  %v2384_v34 = vld [vmem:[#allocation6 + $0x98] ss:$12 sps:$4 sm:$0xff]   ;;  %v2443_v24 = vld [vmem:[#allocation7 + $0x48] ss:$12 sps:$4 sm:$0xff]  }
  0x52   :  { %2150 = vmatpush3.bf16.msra.mxu1 %v2314_v35  ;;  %603 = vmatprep.subr.bf16.mxu0 %v2315_v36  ;;  %v2380_v33 = vld [vmem:[#allocation6 + $0x30] ss:$12 sps:$4 sm:$0xff]   ;;  %v2388_v36 = vld [vmem:[#allocation6 + $0x140] ss:$12 sps:$4 sm:$0xff]   ;;  %v2405_v56 = vld [vmem:[#allocation6 + $0x138] ss:$12 sps:$4 sm:$0xff]  }
  0x53   :  { %2151 = vmatprep.subr.bf16.mxu1 %v2317_v37  ;;  %v2387_v35 = vld [vmem:[#allocation6 + $0x1c] ss:$12 sps:$4 sm:$0xff]   ;;  %v2397_v46 = vld [vmem:[#allocation6 + $0x16c] ss:$12 sps:$4 sm:$0xff]  }
  0x54   :  { %v86_v37 = vld [vmem:[#allocation2 + $0x8] sm:$0xff]  ;;  %v2398_v47 = vld [vmem:[#allocation6 + $0x110] ss:$12 sps:$4 sm:$0xff]  }
  0x55   :  { %604 = vmatpush2.bf16.msra.mxu0 %v2318_v38  ;;  %v89_v38 = vld [vmem:[#allocation2 + $0x20] sm:$0xff]  ;;  %v2399_v49 = vld [vmem:[#allocation6 + $0x50] ss:$12 sps:$4 sm:$0xff]  }
  0x56   :  { %2152 = vmatpush3.bf16.msra.mxu1 %v2319_v39  ;;  %605 = vmatprep.subr.bf16.mxu0 %v2320_v40  ;;  %v2385_v39 = vld [vmem:[#allocation6 + $0x18] ss:$12 sps:$4 sm:$0xff]   ;;  %v2389_v40 = vld [vmem:[#allocation6 + $0x80] ss:$12 sps:$4 sm:$0xff]   ;;  %v2446_v25 = vld [vmem:[#allocation7 + $0x30] ss:$12 sps:$4 sm:$0xff]  }
  0x57   :  { %2153 = vmatprep.subr.bf16.mxu1 %v2322_v41  ;;  %v2392_v41 = vld [vmem:[#allocation6 + $0x4] ss:$12 sps:$4 sm:$0xff]  }
  0x59   :  { %606 = vmatpush2.bf16.msra.mxu0 %v2323_v42  ;;  %v92_v42 = vpack.c.bf16 %v89_v38, %v86_v37  ;;  %v2466_v37 = vld [vmem:[#allocation7 + $0x1cc] ss:$12 sps:$4 sm:$0xff]   ;;  %v2469_v38 = vld [vmem:[#allocation7 + $0x124] ss:$12 sps:$4 sm:$0xff]  }
  0x5a   :  { %2154 = vmatpush3.bf16.msra.mxu1 %v2324_v43  ;;  %607 = vmatprep.subr.bf16.mxu0 %v2325_v44  ;;  %v2393_v43 = vld [vmem:[#allocation6 + $0x128] ss:$12 sps:$4 sm:$0xff]   ;;  %v2390_v44 = vld [vmem:[#allocation6] ss:$12 sps:$4 sm:$0xff]  }
  0x5b   :  { %2155 = vmatprep.subr.bf16.mxu1 %v2327_v45  ;;  %v2394_v45 = vld [vmem:[#allocation6 + $0x68] ss:$12 sps:$4 sm:$0xff]  }
  0x5d   :  { %608 = vmatpush2.bf16.msra.mxu0 %v2328_v48  ;;  %v2395_v48 = vld [vmem:[#allocation6 + $0x168] ss:$12 sps:$4 sm:$0xff]  }
  0x5e   :  { %2156 = vmatpush3.bf16.msra.mxu1 %v2329_v50  ;;  %609 = vmatprep.subr.bf16.mxu0 %v2330_v51  ;;  %v2402_v50 = vld [vmem:[#allocation6 + $0x154] ss:$12 sps:$4 sm:$0xff]   ;;  %v2403_v51 = vld [vmem:[#allocation6 + $0xf8] ss:$12 sps:$4 sm:$0xff]  }
  0x5f   :  { %2157 = vmatprep.subr.bf16.mxu1 %v2332_v52  ;;  %v2400_v52 = vld [vmem:[#allocation6 + $0x150] ss:$12 sps:$4 sm:$0xff]  }
  0x61   :  { %610 = vmatpush2.bf16.msra.mxu0 %v2333_v53  ;;  %v2404_v53 = vld [vmem:[#allocation6 + $0x38] ss:$12 sps:$4 sm:$0xff]  }
  0x62   :  { %2158 = vmatpush3.bf16.msra.mxu1 %v2334_v54  ;;  %611 = vmatprep.subr.bf16.mxu0 %v2335_v57  ;;  %v2407_v54 = vld [vmem:[#allocation6 + $0x13c] ss:$12 sps:$4 sm:$0xff]   ;;  %v2409_v57 = vld [vmem:[#allocation6 + $0x20] ss:$12 sps:$4 sm:$0xff]  }
  0x63   :  { %2224 = vmatprep.subr.bf16.mxu1 %v2618_v61 }
  0x65   :  { %706 = vmatmul.mubr.bf16.vlgmr.msra.gmra.mxu1 %v180_v58  ;;  %612 = vmatpush2.bf16.msra.mxu0 %v2337_v59  ;;  %v2413_v59 = vld [vmem:[#allocation6 + $0xc8] ss:$12 sps:$4 sm:$0xff]  }
  0x66   :  { %2225 = vmatpush3.bf16.msra.mxu1 %v2338_v60  ;;  %613 = vmatprep.subr.bf16.mxu0 %v2339_v62  ;;  %v2410_v60 = vld [vmem:[#allocation6 + $0x120] ss:$12 sps:$4 sm:$0xff]   ;;  %v2414_v62 = vld [vmem:[#allocation6 + $0x8] ss:$12 sps:$4 sm:$0xff]  }
  0x67   :  { %2226 = vmatprep.subr.bf16.mxu1 %v2618_v61  ;;  %2232 = vmatprep.mubr.msk.bf16.mxu1 %vm2619_vm1, %v2618_v61 }
  0x69   :  { %614 = vmatpush2.bf16.msra.mxu0 %v2341_v63  ;;  %v85_v63 = vld [vmem:[#allocation2] sm:$0xff] }
  0x6a   :  { %2227 = vmatpush3.bf16.msra.mxu1 %v2342_v1  ;;  %615 = vmatprep.subr.bf16.mxu0 %v2343_v2  ;;  %v88_v1 = vld [vmem:[#allocation2 + $0x18] sm:$0xff] }
  0x6b   :  { %2228 = vmatprep.subr.bf16.mxu1 %v2618_v61  ;;  %v2417_v2 = vld [vmem:[#allocation6 + $0x10c] ss:$12 sps:$4 sm:$0xff]  }
  0x6d   :  { %616 = vmatpush2.bf16.msra.mxu0 %v2345_v3  ;;  %v2415_v3 = vld [vmem:[#allocation6 + $0x108] ss:$12 sps:$4 sm:$0xff]  }
  0x6e   :  { %2229 = vmatpush3.bf16.msra.mxu1 %v2346_v4  ;;  %617 = vmatprep.subr.bf16.mxu0 %v2347_v5  ;;  %v2418_v4 = vld [vmem:[#allocation6 + $0x1d0] ss:$12 sps:$4 sm:$0xff]   ;;  %v91_v5 = vpack.c.bf16 %v88_v1, %v85_v63 }
  0x6f   :  { %2230 = vmatprep.subr.bf16.mxu1 %v2618_v61 }
  0x71   :  { %618 = vmatpush2.bf16.msra.mxu0 %v2349_v6  ;;  %v2421_v6 = vld [vmem:[#allocation6 + $0xf4] ss:$12 sps:$4 sm:$0xff]  }
  0x72   :  { %2231 = vmatpush3.bf16.msra.mxu1 %v2350_v7  ;;  %1078 = vmatprep.subr.bf16.mxu0 %v2353_v8  ;;  %v2419_v7 = vld [vmem:[#allocation6 + $0xf0] ss:$12 sps:$4 sm:$0xff]   ;;  %v2422_v8 = vld [vmem:[#allocation6 + $0x1b8] ss:$12 sps:$4 sm:$0xff]  }
  0x73   :  { %1129 = vmatprep.subr.bf16.mxu1 %v2356_v9  ;;  %v2425_v9 = vld [vmem:[#allocation6 + $0xdc] ss:$12 sps:$4 sm:$0xff]  }
  0x74   :  { %620 = vmatmul.mubr.bf16.vlgmr.msra.gmra.mxu0 %v180_v58  ;;  %v2412_v58 = vld [vmem:[#allocation6 + $0x124] ss:$12 sps:$4 sm:$0xff]  }
  0x75   :  { %2233 = vmatmul.mubr.msk.bf16.vlgmr.msra.gmra.mxu1 %vm583_vm0, %v2678_v21  ;;  %1079 = vmatpush1.bf16.msra.mxu0 %v2351_v10  ;;  %v2372_v21 = vld [vmem:[#allocation6 + $0x180] ss:$12 sps:$4 sm:$0xff]   ;;  %v2423_v10 = vld [vmem:[#allocation6 + $0xd8] ss:$12 sps:$4 sm:$0xff]  }
  0x76   :  { %1130 = vmatpush1.bf16.msra.mxu1 %v2354_v11  ;;  %1080 = vmatprep.subr.bf16.mxu0 %v2359_v12  ;;  %v2426_v11 = vld [vmem:[#allocation6 + $0x1a0] ss:$12 sps:$4 sm:$0xff]   ;;  %v2429_v12 = vld [vmem:[#allocation6 + $0xc4] ss:$12 sps:$4 sm:$0xff]  }
  0x77   :  { %1131 = vmatprep.subr.bf16.mxu1 %v2362_v13  ;;  %1153 = vmatprep.mubr.bf16.mxu1 %v2617_v0  ;;  %v2427_v13 = vld [vmem:[#allocation6 + $0xc0] ss:$12 sps:$4 sm:$0xff]  }
  0x78   :  { %1110 = vmatprep.mubr.bf16.mxu0 %v92_v42 }
  0x79   :  { %1081 = vmatpush1.bf16.msra.mxu0 %v2357_v14  ;;  %v2430_v14 = vld [vmem:[#allocation6 + $0x188] ss:$12 sps:$4 sm:$0xff]  }
  0x7a   :  { %1132 = vmatpush1.bf16.msra.mxu1 %v2360_v15  ;;  %1082 = vmatprep.subr.bf16.mxu0 %v2365_v16  ;;  %v2431_v15 = vld [vmem:[#allocation7 + $0xa8] ss:$12 sps:$4 sm:$0xff]   ;;  %v2433_v16 = vld [vmem:[#allocation7 + $0xac] ss:$12 sps:$4 sm:$0xff]  }
  0x7b   :  { %1133 = vmatprep.subr.bf16.mxu1 %v2368_v17  ;;  %v2436_v17 = vld [vmem:[#allocation7 + $0x94] ss:$12 sps:$4 sm:$0xff]  }
  0x7d   :  { %1083 = vmatpush1.bf16.msra.mxu0 %v2363_v18  ;;  %v2434_v18 = vld [vmem:[#allocation7 + $0x90] ss:$12 sps:$4 sm:$0xff]  }
  0x7e   :  { %1134 = vmatpush1.bf16.msra.mxu1 %v2366_v19  ;;  %1084 = vmatprep.subr.bf16.mxu0 %v2371_v20  ;;  %v2439_v19 = vld [vmem:[#allocation7 + $0x7c] ss:$12 sps:$4 sm:$0xff]   ;;  %v2437_v20 = vld [vmem:[#allocation7 + $0x78] ss:$12 sps:$4 sm:$0xff]  }
  0x7f   :  { %1135 = vmatprep.subr.bf16.mxu1 %v2374_v22  ;;  %v2442_v22 = vld [vmem:[#allocation7 + $0x64] ss:$12 sps:$4 sm:$0xff]  }
  0x81   :  { %1085 = vmatpush1.bf16.msra.mxu0 %v2369_v23  ;;  %v2440_v23 = vld [vmem:[#allocation7 + $0x60] ss:$12 sps:$4 sm:$0xff]  }
  0x82   :  { %1136 = vmatpush1.bf16.msra.mxu1 %v2372_v21  ;;  %1086 = vmatprep.subr.bf16.mxu0 %v2377_v26  ;;  %v2445_v21 = vld [vmem:[#allocation7 + $0x4c] ss:$12 sps:$4 sm:$0xff]   ;;  %v2451_v26 = vld [vmem:[#allocation7 + $0x1c] ss:$12 sps:$4 sm:$0xff]  }
  0x83   :  { %2170 = vmatprep.subr.bf16.mxu1 %v2378_v27  ;;  %v2449_v27 = vld [vmem:[#allocation7 + $0x18] ss:$12 sps:$4 sm:$0xff]  }
  0x85   :  { %2079 = vmatmul.mubr.msk.bf16.vlgmr.msra.gmra.mxu1 %vm583_vm0, %v2691_v29  ;;  %1087 = vmatpush1.bf16.msra.mxu0 %v2375_v28  ;;  %v2454_v28 = vld [vmem:[#allocation7 + $0x4] ss:$12 sps:$4 sm:$0xff]  }
  0x86   :  { %2171 = vmatpush3.bf16.msra.mxu1 %v2379_v30  ;;  %1088 = vmatprep.subr.bf16.mxu0 %v2382_v31  ;;  %v2457_v30 = vld [vmem:[#allocation7 + $0x16c] ss:$12 sps:$4 sm:$0xff]   ;;  %v2455_v31 = vld [vmem:[#allocation7 + $0x168] ss:$12 sps:$4 sm:$0xff]  }
  0x87   :  { %2172 = vmatprep.subr.bf16.mxu1 %v2383_v32  ;;  %1196 = vmatprep.mubr.bf16.mxu1 %v92_v42  ;;  %v2460_v32 = vld [vmem:[#allocation7 + $0x154] ss:$12 sps:$4 sm:$0xff]   ;;  %v2475_v42 = vld [vmem:[#allocation7 + $0x10c] ss:$12 sps:$4 sm:$0xff]  }
  0x89   :  { %1089 = vmatpush1.bf16.msra.mxu0 %v2380_v33  ;;  %v2458_v33 = vld [vmem:[#allocation7 + $0x150] ss:$12 sps:$4 sm:$0xff]  }
  0x8a   :  { %2173 = vmatpush3.bf16.msra.mxu1 %v2384_v34  ;;  %1090 = vmatprep.subr.bf16.mxu0 %v2387_v35  ;;  %v2463_v34 = vld [vmem:[#allocation7 + $0x13c] ss:$12 sps:$4 sm:$0xff]   ;;  %v2461_v35 = vld [vmem:[#allocation7 + $0x138] ss:$12 sps:$4 sm:$0xff]  }
  0x8b   :  { %2174 = vmatprep.subr.bf16.mxu1 %v2388_v36  ;;  %v2464_v36 = vld [vmem:[#allocation7 + $0x1c8] ss:$12 sps:$4 sm:$0xff]  }
  0x8d   :  { %1091 = vmatpush1.bf16.msra.mxu0 %v2385_v39  ;;  %v2467_v39 = vld [vmem:[#allocation7 + $0x120] ss:$12 sps:$4 sm:$0xff]  }
  0x8e   :  { %2175 = vmatpush3.bf16.msra.mxu1 %v2389_v40  ;;  %1092 = vmatprep.subr.bf16.mxu0 %v2392_v41  ;;  %v2472_v40 = vld [vmem:[#allocation7 + $0x1b4] ss:$12 sps:$4 sm:$0xff]   ;;  %v2470_v41 = vld [vmem:[#allocation7 + $0x1b0] ss:$12 sps:$4 sm:$0xff]  }
  0x8f   :  { %2176 = vmatprep.subr.bf16.mxu1 %v2393_v43  ;;  %v2478_v43 = vld [vmem:[#allocation7 + $0x19c] ss:$12 sps:$4 sm:$0xff]  }
  0x91   :  { %1093 = vmatpush1.bf16.msra.mxu0 %v2390_v44  ;;  %v2473_v44 = vld [vmem:[#allocation7 + $0x108] ss:$12 sps:$4 sm:$0xff]  }
  0x92   :  { %2177 = vmatpush3.bf16.msra.mxu1 %v2394_v45  ;;  %1094 = vmatprep.subr.bf16.mxu0 %v2397_v46  ;;  %v2476_v45 = vld [vmem:[#allocation7 + $0x198] ss:$12 sps:$4 sm:$0xff]   ;;  %v2481_v46 = vld [vmem:[#allocation7 + $0xf4] ss:$12 sps:$4 sm:$0xff]  }
  0x93   :  { %2178 = vmatprep.subr.bf16.mxu1 %v2398_v47  ;;  %v2484_v47 = vld [vmem:[#allocation7 + $0x184] ss:$12 sps:$4 sm:$0xff]  }
  0x95   :  { %1095 = vmatpush2.bf16.msra.mxu0 %v2395_v48  ;;  %v2479_v48 = vld [vmem:[#allocation7 + $0xf0] ss:$12 sps:$4 sm:$0xff]  }
  0x96   :  { %2179 = vmatpush3.bf16.msra.mxu1 %v2399_v49  ;;  %1096 = vmatprep.subr.bf16.mxu0 %v2402_v50  ;;  %v2482_v49 = vld [vmem:[#allocation7 + $0x180] ss:$12 sps:$4 sm:$0xff]   ;;  %v2487_v50 = vld [vmem:[#allocation7 + $0xdc] ss:$12 sps:$4 sm:$0xff]  }
  0x97   :  { %2180 = vmatprep.subr.bf16.mxu1 %v2403_v51  ;;  %v2488_v51 = vld [vmem:[#allocation7 + $0x170] ss:$12 sps:$4 sm:$0xff]  }
  0x99   :  { %1097 = vmatpush2.bf16.msra.mxu0 %v2400_v52 }
  0x9a   :  { %2181 = vmatpush3.bf16.msra.mxu1 %v2404_v53  ;;  %1098 = vmatprep.subr.bf16.mxu0 %v2407_v54  ;;  %v2485_v53 = vld [vmem:[#allocation7 + $0xd8] ss:$12 sps:$4 sm:$0xff]  }
  0x9b   :  { %2182 = vmatprep.subr.bf16.mxu1 %v2408_v55  ;;  %v2492_v55 = vld [vmem:[#allocation7 + $0xc4] ss:$12 sps:$4 sm:$0xff]  }
  0x9d   :  { %1099 = vmatpush2.bf16.msra.mxu0 %v2405_v56  ;;  %v2490_v56 = vld [vmem:[#allocation7 + $0xc0] ss:$12 sps:$4 sm:$0xff]  }
  0x9e   :  { %2183 = vmatpush3.bf16.msra.mxu1 %v2409_v57  ;;  %1100 = vmatprep.subr.bf16.mxu0 %v2412_v58 }
  0x9f   :  { %2184 = vmatprep.subr.bf16.mxu1 %v2413_v59 }
  0xa1   :  { %1101 = vmatpush2.bf16.msra.mxu0 %v2410_v60 }
  0xa2   :  { %2185 = vmatpush3.bf16.msra.mxu1 %v2414_v62  ;;  %1102 = vmatprep.subr.bf16.mxu0 %v2417_v2 }
  0xa3   :  { %2236 = vmatprep.subr.bf16.mxu1 %v2618_v61 }
  0xa5   :  { %1197 = vmatmul.mubr.bf16.vlgmr.msra.gmra.mxu1 %v91_v5  ;;  %1103 = vmatpush2.bf16.msra.mxu0 %v2415_v3 }
  0xa6   :  { %2237 = vmatpush3.bf16.msra.mxu1 %v2418_v4  ;;  %1104 = vmatprep.subr.bf16.mxu0 %v2421_v6 }
  0xa7   :  { %2238 = vmatprep.subr.bf16.mxu1 %v2618_v61  ;;  %2244 = vmatprep.mubr.msk.bf16.mxu1 %vm2619_vm1, %v2618_v61 }
  0xa9   :  { %1105 = vmatpush2.bf16.msra.mxu0 %v2419_v7 }
  0xaa   :  { %2239 = vmatpush3.bf16.msra.mxu1 %v2422_v8  ;;  %1106 = vmatprep.subr.bf16.mxu0 %v2425_v9 }
  0xab   :  { %2240 = vmatprep.subr.bf16.mxu1 %v2618_v61 }
  0xad   :  { %1107 = vmatpush2.bf16.msra.mxu0 %v2423_v10 }
  0xae   :  { %2241 = vmatpush3.bf16.msra.mxu1 %v2426_v11  ;;  %1108 = vmatprep.subr.bf16.mxu0 %v2429_v12 }
  0xaf   :  { %2242 = vmatprep.subr.bf16.mxu1 %v2618_v61 }
  0xb1   :  { %1109 = vmatpush2.bf16.msra.mxu0 %v2427_v13 }
  0xb2   :  { %2243 = vmatpush3.bf16.msra.mxu1 %v2430_v14  ;;  %1746 = vmatprep.subr.bf16.mxu0 %v2433_v16  ;;  %v1248_v14 = vlaneseq }
  0xb3   :  { %1797 = vmatprep.subr.bf16.mxu1 %v2466_v37 }
  0xb4   :  { %1111 = vmatmul.mubr.bf16.vlgmr.msra.gmra.mxu0 %v91_v5 }
  0xb5   :  { %2245 = vmatmul.mubr.msk.bf16.vlgmr.msra.gmra.mxu1 %vm583_vm0, %v2691_v29  ;;  %1747 = vmatpush1.bf16.msra.mxu0 %v2431_v15  ;;  %v2452_v29 = vld [vmem:[#allocation7] ss:$12 sps:$4 sm:$0xff]  }
  0xb6   :  { %1821 = vmatprep.mubr.bf16.mxu1 %v2617_v0  ;;  %1748 = vmatprep.subr.bf16.mxu0 %v2436_v17  ;;  %v2448_v0 = vld [vmem:[#allocation7 + $0x34] ss:$12 sps:$4 sm:$0xff]   ;;  %v2704_v17 = vshrl.u32 %v1248_v14, 7 }
  0xb7   :  { %1798 = vmatpush1.bf16.msra.mxu1 %v2464_v36 }
  0xb8   :  { %1799 = vmatprep.subr.bf16.mxu1 %v2472_v40 }
  0xb9   :  { %1749 = vmatpush1.bf16.msra.mxu0 %v2434_v18 }
  0xba   :  { %1750 = vmatprep.subr.bf16.mxu0 %v2439_v19 }
  0xbb   :  { %1800 = vmatpush1.bf16.msra.mxu1 %v2470_v41 }
  0xbc   :  { %1801 = vmatprep.subr.bf16.mxu1 %v2478_v43 }
  0xbd   :  { %1751 = vmatpush1.bf16.msra.mxu0 %v2437_v20 }
  0xbe   :  { %1752 = vmatprep.subr.bf16.mxu0 %v2442_v22  ;;  %v1258_v22 = vsub.s32 2, %v2704_v17 }
  0xbf   :  { %1802 = vmatpush1.bf16.msra.mxu1 %v2476_v45 }
  0xc0   :  { %1803 = vmatprep.subr.bf16.mxu1 %v2484_v47 }
  0xc1   :  { %1753 = vmatpush1.bf16.msra.mxu0 %v2440_v23  ;;  %v1246_v23 = vld [vmem:[%s2794_s3] sm:$0x7] }
  0xc2   :  { %1754 = vmatprep.subr.bf16.mxu0 %v2445_v21 }
  0xc3   :  { %1804 = vmatpush1.bf16.msra.mxu1 %v2482_v49 }
  0xc4   :  { %2197 = vmatprep.subr.bf16.mxu1 %v2488_v51 }
  0xc5   :  { %1755 = vmatpush1.bf16.msra.mxu0 %v2443_v24  ;;  %v1250_v24 = vsub.s32 0, %v2704_v17 }
  0xc6   :  { %1756 = vmatprep.subr.bf16.mxu0 %v2448_v0 }
  0xc9   :  { %1757 = vmatpush1.bf16.msra.mxu0 %v2446_v25 }
  0xca   :  { %1758 = vmatprep.subr.bf16.mxu0 %v2451_v26 }
  0xcd   :  { %1759 = vmatpush1.bf16.msra.mxu0 %v2449_v27  ;;  %v1259_v27 = vrot.slane %v1246_v23, %v1258_v22 }
  0xce   :  { %1760 = vmatprep.subr.bf16.mxu0 %v2454_v28  ;;  %v1254_v28 = vsub.s32 1, %v2704_v17 }
  0xd1   :  { %1761 = vmatpush1.bf16.msra.mxu0 %v2452_v29 }
  0xd2   :  { %1762 = vmatprep.subr.bf16.mxu0 %v2457_v30 }
  0xd5   :  { %1763 = vmatpush2.bf16.msra.mxu0 %v2455_v31 }
  0xd6   :  { %1764 = vmatprep.subr.bf16.mxu0 %v2460_v32 }
  0xd9   :  { %1765 = vmatpush2.bf16.msra.mxu0 %v2458_v33 }
  0xda   :  { %1766 = vmatprep.subr.bf16.mxu0 %v2463_v34  ;;  %v1251_v34 = vrot.slane %v1246_v23, %v1250_v24 }
  0xdd   :  { %1767 = vmatpush2.bf16.msra.mxu0 %v2461_v35 }
  0xde   :  { %1768 = vmatprep.subr.bf16.mxu0 %v2469_v38 }
  0xe1   :  { %1769 = vmatpush2.bf16.msra.mxu0 %v2467_v39 }
  0xe2   :  { %1770 = vmatprep.subr.bf16.mxu0 %v2475_v42  ;;  %v1255_v42 = vrot.slane %v1246_v23, %v1254_v28 }
  0xe5   :  { %1771 = vmatpush2.bf16.msra.mxu0 %v2473_v44 }
  0xe6   :  { %1772 = vmatprep.subr.bf16.mxu0 %v2481_v46 }
  0xe9   :  { %1773 = vmatpush2.bf16.msra.mxu0 %v2479_v48 }
  0xea   :  { %1774 = vmatprep.subr.bf16.mxu0 %v2487_v50 }
  0xed   :  { %1775 = vmatpush2.bf16.msra.mxu0 %v2485_v53 }
  0xee   :  { %1776 = vmatprep.subr.bf16.mxu0 %v2492_v55 }
  0xf1   :  { %1777 = vmatpush2.bf16.msra.mxu0 %v2490_v56 }
 0x105   :  { %v664_v52 = vpop.f32.mrf.mxu1 }
 0x107   :  { %v666_v54 = vpop.f32.mrf.mxu1 }
 0x109   :  { %v668_v57 = vpop.f32.mrf.mxu1 }
 0x10b   :  { %v670_v58 = vpop.f32.mrf.mxu1 }
 0x125   :  { %v2159_v59 = vpop.f32.mrf.mxu1 }
 0x127   :  { %v2160_v60 = vpop.f32.mrf.mxu1 }
 0x128   :  { %v2161_v62 = vadd.f32 %v2160_v60, %v2159_v59 }
 0x129   :  { %v2162_v63 = vpop.f32.mrf.mxu1 }
 0x12b   :  { %v2163_v1 = vpop.f32.mrf.mxu1 }
 0x12c   :  { %v2164_v2 = vadd.f32 %v2163_v1, %v2162_v63 }
 0x134   :  { %v621_v13 = vpop.f32.mrf.mxu0 }
 0x135   :  { %v748_v3 = vpop.f32.mrf.mxu1  ;;  %v665_v25 = vadd.f32 %v664_v52, %v621_v13 }
 0x136   :  { %v749_v4 = vadd.f32 %v2161_v62, %v748_v3  ;;  %v623_v16 = vpop.f32.mrf.mxu0 }
 0x137   :  { %v2234_v5 = vpop.f32.mrf.mxu1  ;;  %v667_v32 = vadd.f32 %v666_v54, %v623_v16 }
 0x138   :  { %v625_v19 = vpop.f32.mrf.mxu0 }
 0x139   :  { %v751_v6 = vpop.f32.mrf.mxu1  ;;  %v669_v43 = vadd.f32 %v668_v57, %v625_v19 }
 0x13a   :  { %v627_v0 = vpop.f32.mrf.mxu0  ;;  %v752_v36 = vadd.f32 %v2164_v2, %v751_v6 }
 0x13b   :  { %v2235_v7 = vpop.f32.mrf.mxu1  ;;  %v671_v47 = vadd.f32 %v670_v58, %v627_v0 }
 0x145   :  { %v1155_v8 = vpop.f32.mrf.mxu1 }
 0x147   :  { %v1157_v9 = vpop.f32.mrf.mxu1 }
 0x149   :  { %v1159_v10 = vpop.f32.mrf.mxu1 }
 0x14b   :  { %v1161_v11 = vpop.f32.mrf.mxu1 }
 0x165   :  { %v2186_v12 = vpop.f32.mrf.mxu1 }
 0x167   :  { %v2187_v15 = vpop.f32.mrf.mxu1 }
 0x168   :  { %v2188_v20 = vadd.f32 %v2187_v15, %v2186_v12 }
 0x169   :  { %v2189_v18 = vpop.f32.mrf.mxu1 }
 0x16a   :  { %v1199_v26 = vadd.f32 %v2188_v20, %v749_v4 }
 0x16b   :  { %v2190_v21 = vpop.f32.mrf.mxu1 }
 0x16c   :  { %v2191_v29 = vadd.f32 %v2190_v21, %v2189_v18 }
 0x16e   :  { %v1202_v45 = vadd.f32 %v2191_v29, %v752_v36 }
 0x174   :  { %v1112_v30 = vpop.f32.mrf.mxu0 }
 0x175   :  { %v1239_v31 = vpop.f32.mrf.mxu1  ;;  %v1113_v33 = vadd.f32 %v1112_v30, %v665_v25 }
 0x176   :  { %v1240_v35 = vadd.f32 %v1239_v31, %v1199_v26  ;;  %v1114_v37 = vpop.f32.mrf.mxu0 }
 0x177   :  { %v2246_v38 = vpop.f32.mrf.mxu1  ;;  %v1156_v39 = vadd.f32 %v1155_v8, %v1113_v33  ;;  %v1115_v41 = vadd.f32 %v1114_v37, %v667_v32 }
 0x178   :  { %v1265_v40 = vadd.f32 %v1259_v27, %v1240_v35  ;;  %v1116_v44 = vpop.f32.mrf.mxu0 }
 0x179   :  { %v1242_v46 = vpop.f32.mrf.mxu1  ;;  %v1263_v48 = vadd.f32 %v1251_v34, %v1156_v39  ;;  %v1158_v50 = vadd.f32 %v1157_v9, %v1115_v41  ;;  %v1117_v51 = vadd.f32 %v1116_v44, %v669_v43 }
 0x17a   :  { %v1277_v49 = vmul.f32 0.044715, %v1265_v40  ;;  %v1243_v52 = vadd.f32 %v1242_v46, %v1202_v45  ;;  %v1118_v53 = vpop.f32.mrf.mxu0  ;;  %v1271_v37 = vmul.f32 0.5, %v1265_v40 }
 0x17b   :  { %v2247_v54 = vpop.f32.mrf.mxu1  ;;  %v1275_v55 = vmul.f32 0.044715, %v1263_v48  ;;  %v1264_v59 = vadd.f32 %v1255_v42, %v1158_v50  ;;  %v1119_v60 = vadd.f32 %v1118_v53, %v671_v47  ;;  %v1160_v62 = vadd.f32 %v1159_v10, %v1117_v51  ;;  %v2489_v51 = vld [vmem:[#allocation7 + $0xb0] ss:$12 sps:$4 sm:$0xff]  }
 0x17c   :  { %v1283_v56 = vmul.f32 %v1277_v49, %v1265_v40  ;;  %v1268_v63 = vadd.f32 %v1259_v27, %v1243_v52  ;;  %v1269_v44 = vmul.f32 0.5, %v1263_v48 }
 0x17d   :  { %v1281_v1 = vmul.f32 %v1275_v55, %v1263_v48  ;;  %v1276_v57 = vmul.f32 0.044715, %v1264_v59  ;;  %v1162_v3 = vadd.f32 %v1161_v11, %v1119_v60  ;;  %v1266_v4 = vadd.f32 %v1251_v34, %v1160_v62 }
 0x17e   :  { %v1289_v2 = vmul.f32 %v1283_v56, %v1265_v40  ;;  %v1280_v5 = vmul.f32 0.044715, %v1268_v63  ;;  %v1274_v38 = vmul.f32 0.5, %v1268_v63  ;;  %v1270_v52 = vmul.f32 0.5, %v1264_v59  ;;  %v2493_v56 = vld [vmem:[#allocation7 + $0x158] ss:$12 sps:$4 sm:$0xff]  }
 0x17f   :  { %v1287_v58 = vmul.f32 %v1281_v1, %v1263_v48  ;;  %v1267_v7 = vadd.f32 %v1255_v42, %v1162_v3  ;;  %v1282_v8 = vmul.f32 %v1276_v57, %v1264_v59  ;;  %v1278_v9 = vmul.f32 0.044715, %v1266_v4  ;;  %v2495_v57 = vld [vmem:[#allocation7 + $0x140] ss:$12 sps:$4 sm:$0xff]   ;;  %v2497_v3 = vld [vmem:[#allocation7 + $0x128] ss:$12 sps:$4 sm:$0xff]  }
 0x180   :  { %v1295_v6 = vadd.f32 %v1289_v2, %v1265_v40  ;;  %v1286_v12 = vmul.f32 %v1280_v5, %v1268_v63  ;;  %v1272_v49 = vmul.f32 0.5, %v1266_v4  ;;  %v2494_v2 = vld [vmem:[#allocation7 + $0x98] ss:$12 sps:$4 sm:$0xff]   ;;  %v2499_v5 = vld [vmem:[#allocation7 + $0x110] ss:$12 sps:$4 sm:$0xff]  }
 0x181   :  { %v1279_v14 = vmul.f32 0.044715, %v1267_v7  ;;  %v1288_v15 = vmul.f32 %v1282_v8, %v1264_v59  ;;  %v1284_v16 = vmul.f32 %v1278_v9, %v1266_v4  ;;  %v1293_v19 = vadd.f32 %v1287_v58, %v1263_v48  ;;  %v2500_v58 = vld [vmem:[#allocation7 + $0x50] ss:$12 sps:$4 sm:$0xff]   ;;  %v2503_v8 = vld [vmem:[#allocation7 + $0xe0] ss:$12 sps:$4 sm:$0xff]  }
 0x182   :  { %v1301_v13 = vmul.f32 0.7978846, %v1295_v6  ;;  %v1292_v18 = vmul.f32 %v1286_v12, %v1268_v63  ;;  %v1273_v53 = vmul.f32 0.5, %v1267_v7  ;;  %v2501_v6 = vld [vmem:[#allocation7 + $0xf8] ss:$12 sps:$4 sm:$0xff]  }
 0x183   :  { %v1285_v10 = vmul.f32 %v1279_v14, %v1267_v7  ;;  %v1294_v20 = vadd.f32 %v1288_v15, %v1264_v59  ;;  %v1290_v23 = vmul.f32 %v1284_v16, %v1266_v4  ;;  %v1299_v11 = vmul.f32 0.7978846, %v1293_v19  ;;  %v2496_v59 = vld [vmem:[#allocation7 + $0x80] ss:$12 sps:$4 sm:$0xff]   ;;  %v2505_v12 = vld [vmem:[#allocation7 + $0xc8] ss:$12 sps:$4 sm:$0xff]  }
 0x184   :  { %2511 = vtanh.f32 %v1301_v13  ;;  %v1298_v21 = vadd.f32 %v1292_v18, %v1268_v63  ;;  %v2504_v9 = vld [vmem:[#allocation7 + $0x20] ss:$12 sps:$4 sm:$0xff]   ;;  %v2506_v13 = vld [vmem:[#allocation7 + $0x8] ss:$12 sps:$4 sm:$0xff]   ;;  %v2507_v14 = vld [vmem:[#allocation7 + $0x1d0] ss:$12 sps:$4 sm:$0xff]  }
 0x185   :  { %v1291_v0 = vmul.f32 %v1285_v10, %v1267_v7  ;;  %v1300_v25 = vmul.f32 0.7978846, %v1294_v20  ;;  %v1296_v27 = vadd.f32 %v1290_v23, %v1266_v4  ;;  %2513 = vtanh.f32 %v1299_v11  ;;  %v2498_v4 = vld [vmem:[#allocation7 + $0x68] ss:$12 sps:$4 sm:$0xff]   ;;  %v2508_v15 = vld [vmem:[#allocation7 + $0x1b8] ss:$12 sps:$4 sm:$0xff]  }
 0x186   :  { %v1304_v26 = vmul.f32 0.7978846, %v1298_v21  ;;  %v2509_v16 = vld [vmem:[#allocation7 + $0x1a0] ss:$12 sps:$4 sm:$0xff]   ;;  %v2510_v18 = vld [vmem:[#allocation7 + $0x188] ss:$12 sps:$4 sm:$0xff]  }
 0x187   :  { %v1297_v29 = vadd.f32 %v1291_v0, %v1267_v7  ;;  %2515 = vtanh.f32 %v1300_v25  ;;  %v1302_v30 = vmul.f32 0.7978846, %v1296_v27  ;;  %v2502_v7 = vld [vmem:[#allocation7 + $0x38] ss:$12 sps:$4 sm:$0xff]   ;;  %v1406_v19 = vld [vmem:[%s2796_s5] sm:$0x7] }
 0x188   :  { %2517 = vtanh.f32 %v1304_v26  ;;  %v1411_v20 = vrot.slane %v1406_v19, %v1250_v24  ;;  %v1914_v23 = vld [vmem:[%s2797_s6] sm:$0xff]  ;;  %v1415_v21 = vrot.slane %v1406_v19, %v1254_v28  ;;  %v1915_v0 = vld [vmem:[%s2797_s6 + $0x8] sm:$0xff]  ;;  %v1917_v24 = vld [vmem:[%s2797_s6 + $0x18] sm:$0xff] }
 0x189   :  { %v1303_v31 = vmul.f32 0.7978846, %v1297_v29  ;;  %2519 = vtanh.f32 %v1302_v30  ;;  %v1920_v26 = vadd.f32 1.0, %v1914_v23  ;;  %v1918_v28 = vld [vmem:[%s2797_s6 + $0x20] sm:$0xff] }
 0x18b   :  { %2521 = vtanh.f32 %v1303_v31  ;;  %v1921_v31 = vadd.f32 1.0, %v1915_v0 }
 0x191   :  { %v2512_v32 = vpop.eup %2511 }
 0x192   :  { %v2514_v33 = vpop.eup %2513  ;;  %v1313_v35 = vadd.f32 1.0, %v2512_v32 }
 0x193   :  { %v1311_v41 = vadd.f32 1.0, %v2514_v33  ;;  %v1932_v33 = vld [vmem:[%s2798_s7] sm:$0xff] }
 0x194   :  { %v2516_v34 = vpop.eup %2515  ;;  %v1319_v46 = vmul.f32 %v1313_v35, %v1271_v37 }
 0x195   :  { %v2518_v36 = vpop.eup %2517  ;;  %v1312_v43 = vadd.f32 1.0, %v2516_v34  ;;  %v1317_v60 = vmul.f32 %v1311_v41, %v1269_v44 }
 0x196   :  { %v1316_v39 = vadd.f32 1.0, %v2518_v36  ;;  %v2520_v42 = vpop.eup %2519 }
 0x197   :  { %v1314_v50 = vadd.f32 1.0, %v2520_v42  ;;  %v1318_v40 = vmul.f32 %v1312_v43, %v1270_v52  ;;  %v1924_v42 = vadd.f32 1.0, %v1918_v28 }
 0x198   :  { %v2522_v45 = vpop.eup %2521  ;;  %v1322_v47 = vmul.f32 %v1316_v39, %v1274_v38  ;;  %v1923_v38 = vadd.f32 1.0, %v1917_v24  ;;  %v1933_v39 = vld [vmem:[%s2798_s7 + $0x8] sm:$0xff] }
 0x199   :  { %v1315_v54 = vadd.f32 1.0, %v2522_v45  ;;  %v1320_v62 = vmul.f32 %v1314_v50, %v1272_v49  ;;  %v1935_v49 = vld [vmem:[%s2798_s7 + $0x18] sm:$0xff] }
 0x19a   :  { %v1325_v55 = vpack.c.bf16 %v1322_v47, %v1319_v46 }
 0x19b   :  { %v1321_v63 = vmul.f32 %v1315_v54, %v1273_v53  ;;  %v1323_v1 = vpack.c.bf16 %v1320_v62, %v1317_v60  ;;  %v1936_v53 = vld [vmem:[%s2798_s7 + $0x20] sm:$0xff] }
 0x19c   :  { %2141 = vmatmul.mubr.msk.bf16.vlgmr.msra.gmra.mxu1 %vm583_vm0, %v1325_v55 }
 0x19d   :  { %2198 = vmatpush3.bf16.msra.mxu1 %v2489_v51  ;;  %v1324_v48 = vpack.c.bf16 %v1321_v63, %v1318_v40 }
 0x19e   :  { %2199 = vmatprep.subr.bf16.mxu1 %v2493_v56 }
 0x19f   :  { %1778 = vmatprep.mubr.bf16.mxu0 %v1324_v48  ;;  %1864 = vmatprep.mubr.bf16.mxu1 %v1324_v48 }
 0x1a0   :  { %1779 = vmatmul.mubr.bf16.vlgmr.msra.gmra.mxu0 %v1323_v1 }
 0x1a1   :  { %2200 = vmatpush3.bf16.msra.mxu1 %v2494_v2  ;;  %v1916_v2 = vld [vmem:[%s2797_s6 + $0x10] sm:$0xff] }
 0x1a2   :  { %2201 = vmatprep.subr.bf16.mxu1 %v2495_v57 }
 0x1a5   :  { %2202 = vmatpush3.bf16.msra.mxu1 %v2496_v59 }
 0x1a6   :  { %2203 = vmatprep.subr.bf16.mxu1 %v2497_v3  ;;  %v1922_v3 = vadd.f32 1.0, %v1916_v2 }
 0x1a9   :  { %2204 = vmatpush3.bf16.msra.mxu1 %v2498_v4 }
 0x1aa   :  { %2205 = vmatprep.subr.bf16.mxu1 %v2499_v5  ;;  %v1919_v5 = vld [vmem:[%s2797_s6 + $0x28] sm:$0xff] }
 0x1ad   :  { %2206 = vmatpush3.bf16.msra.mxu1 %v2500_v58 }
 0x1ae   :  { %2207 = vmatprep.subr.bf16.mxu1 %v2501_v6  ;;  %v1934_v6 = vld [vmem:[%s2798_s7 + $0x10] sm:$0xff] }
 0x1b1   :  { %2208 = vmatpush3.bf16.msra.mxu1 %v2502_v7 }
 0x1b2   :  { %2209 = vmatprep.subr.bf16.mxu1 %v2503_v8  ;;  %v1925_v8 = vadd.f32 1.0, %v1919_v5 }
 0x1b5   :  { %2210 = vmatpush3.bf16.msra.mxu1 %v2504_v9 }
 0x1b6   :  { %2211 = vmatprep.subr.bf16.mxu1 %v2505_v12 }
 0x1b9   :  { %2212 = vmatpush3.bf16.msra.mxu1 %v2506_v13 }
 0x1ba   :  { %2248 = vmatprep.subr.bf16.mxu1 %v2618_v61 }
 0x1bc   :  { %1865 = vmatmul.mubr.bf16.vlgmr.msra.gmra.mxu1 %v1323_v1  ;;  %v1419_v1 = vrot.slane %v1406_v19, %v1258_v22 }
 0x1bd   :  { %2249 = vmatpush3.bf16.msra.mxu1 %v2507_v14  ;;  %2256 = vmatprep.mubr.msk.bf16.mxu1 %vm2619_vm1, %v2618_v61  ;;  %v1937_v14 = vld [vmem:[%s2798_s7 + $0x28] sm:$0xff] }
 0x1be   :  { %2250 = vmatprep.subr.bf16.mxu1 %v2618_v61 }
 0x1c1   :  { %2251 = vmatpush3.bf16.msra.mxu1 %v2508_v15 }
 0x1c2   :  { %2252 = vmatprep.subr.bf16.mxu1 %v2618_v61 }
 0x1c5   :  { %2253 = vmatpush3.bf16.msra.mxu1 %v2509_v16 }
 0x1c6   :  { %2254 = vmatprep.subr.bf16.mxu1 %v2618_v61 }
 0x1c9   :  { %2255 = vmatpush3.bf16.msra.mxu1 %v2510_v18 }
 0x1cc   :  { %2257 = vmatmul.mubr.msk.bf16.vlgmr.msra.gmra.mxu1 %vm583_vm0, %v1325_v55 }
 0x25c   :  { %v1823_v10 = vpop.f32.mrf.mxu1 }
 0x25e   :  { %v1825_v11 = vpop.f32.mrf.mxu1 }
 0x260   :  { %v1780_v61 = vpop.f32.mrf.mxu0  ;;  %v1827_v32 = vpop.f32.mrf.mxu1 }
 0x261   :  { %v1781_v25 = vadd.f32 %v1780_v61, %v1411_v20 }
 0x262   :  { %v1782_v27 = vpop.f32.mrf.mxu0  ;;  %v1829_v47 = vpop.f32.mrf.mxu1 }
 0x263   :  { %v1824_v29 = vadd.f32 %v1823_v10, %v1781_v25  ;;  %v1783_v30 = vadd.f32 %v1782_v27, %v1415_v21 }
 0x264   :  { %v1784_v34 = vpop.f32.mrf.mxu0 }
 0x265   :  { %v1926_v35 = vmul.f32 %v1920_v26, %v1824_v29  ;;  %v1826_v36 = vadd.f32 %v1825_v11, %v1783_v30  ;;  %v1785_v37 = vadd.f32 %v1784_v34, %v1411_v20 }
 0x266   :  { %v1786_v41 = vpop.f32.mrf.mxu0 }
 0x267   :  { %v1938_v43 = vadd.f32 %v1932_v33, %v1926_v35  ;;  %v1927_v44 = vmul.f32 %v1921_v31, %v1826_v36  ;;  %v1828_v45 = vadd.f32 %v1827_v32, %v1785_v37  ;;  %v1787_v46 = vadd.f32 %v1786_v41, %v1415_v21 }
 0x269   :  { %1944 = vst [vmem:[%s2799_s8] sm:$0xff] %v1938_v43  ;;  %v1939_v50 = vadd.f32 %v1933_v39, %v1927_v44  ;;  %v1929_v51 = vmul.f32 %v1923_v38, %v1828_v45  ;;  %v1830_v52 = vadd.f32 %v1829_v47, %v1787_v46 }
 0x26b   :  { %1945 = vst [vmem:[%s2799_s8 + $0x8] sm:$0xff] %v1939_v50  ;;  %v1941_v54 = vadd.f32 %v1935_v49, %v1929_v51  ;;  %v1930_v55 = vmul.f32 %v1924_v42, %v1830_v52 }
 0x26d   :  { %1947 = vst [vmem:[%s2799_s8 + $0x18] sm:$0xff] %v1941_v54  ;;  %v1942_v56 = vadd.f32 %v1936_v53, %v1930_v55 }
 0x26f   :  { %1948 = vst [vmem:[%s2799_s8 + $0x20] sm:$0xff] %v1942_v56 }
 0x27c   :  { %v2213_v60 = vpop.f32.mrf.mxu1 }
 0x27e   :  { %v2214_v62 = vpop.f32.mrf.mxu1 }
 0x27f   :  { %v2215_v63 = vadd.f32 %v2214_v62, %v2213_v60 }
 0x280   :  { %v2216_v40 = vpop.f32.mrf.mxu1 }
 0x281   :  { %v1867_v59 = vadd.f32 %v2215_v63, %v1419_v1 }
 0x282   :  { %v2217_v48 = vpop.f32.mrf.mxu1 }
 0x283   :  { %v2218_v57 = vadd.f32 %v2217_v48, %v2216_v40 }
 0x285   :  { %v1870_v7 = vadd.f32 %v2218_v57, %v1419_v1 }
 0x28c   :  { %v1907_v4 = vpop.f32.mrf.mxu1 }
 0x28d   :  { %v1908_v58 = vadd.f32 %v1907_v4, %v1867_v59 }
 0x28e   :  { %v2258_v17 = vpop.f32.mrf.mxu1 }
 0x28f   :  { %v1928_v22 = vmul.f32 %v1922_v3, %v1908_v58 }
 0x290   :  { %v1910_v9 = vpop.f32.mrf.mxu1 }
 0x291   :  { %v1940_v12 = vadd.f32 %v1934_v6, %v1928_v22  ;;  %v1911_v13 = vadd.f32 %v1910_v9, %v1870_v7 }
 0x292   :  { %v2259_v15 = vpop.f32.mrf.mxu1 }
 0x293   :  { %1946 = vst.msk [vmem:[%s2799_s8 + $0x10] sm:$0xff] %vm583_vm0, %v1940_v12  ;;  %v1931_v16 = vmul.f32 %v1925_v8, %v1911_v13 }
 0x295   :  { %v1943_v18 = vadd.f32 %v1937_v14, %v1931_v16 }
 0x297   :  { %1949 = vst.msk [vmem:[%s2799_s8 + $0x28] sm:$0xff] %vm583_vm0, %v1943_v18 }
 0x298   :  { %1954 = vsyncpa [#allocation3], 1 }
 0x299   :  { %1955 = vsyncpa [#allocation5], 1 }
 0x29a   :  { %1956 = vsyncpa [#allocation8], 1 }

// kernel: transformer_denoiser_forward.6
= control target key start
LH: loop header
LB: loop body
LE: loop exit
PB: predicated region body
PF: predicated region fallthrough
CT: control target
= control target key end

     0   :  { %19 = vsyncpa [#allocation3], 0  ;;  %s7630_s0 = inlined_call_operand.vmem [shape: f32[16,320], index: 0, kind: input, shape index: {}]   ;;  %s7631_s1 = inlined_call_operand.vmem [shape: f32[16,16], index: 1, kind: input, shape index: {}]   ;;  %s7632_s2 = inlined_call_operand.vmem [shape: f32[1,320], index: 2, kind: input, shape index: {}, may-alias: {2,8}]   ;;  %s7633_s3 = inlined_call_operand.vmem [shape: f32[1,320], index: 3, kind: input, shape index: {}, may-alias: {3,7,9,13}]   ;;  %s7634_s4 = inlined_call_operand.vmem [shape: bf16[320,960], index: 4, kind: input, shape index: {}]   ;;  %s7635_s5 = inlined_call_operand.vmem [shape: f32[1,960], index: 5, kind: input, shape index: {}]   ;;  %s7636_s6 = inlined_call_operand.vmem [shape: bf16[320,320], index: 6, kind: input, shape index: {}]   ;;  %s7637_s7 = inlined_call_operand.vmem [shape: f32[1,320], index: 7, kind: input, shape index: {}, may-alias: {3,7,9,13}]   ;;  %s7638_s8 = inlined_call_operand.vmem [shape: f32[1,320], index: 8, kind: input, shape index: {}, may-alias: {2,8}]   ;;  %s7639_s9 = inlined_call_operand.vmem [shape: f32[1,320], index: 9, kind: input, shape index: {}, may-alias: {3,7,9,13}]   ;;  %s7640_s10 = inlined_call_operand.hbm [shape: bf16[320,640], index: 10, kind: input, shape index: {}]   ;;  %s7641_s11 = inlined_call_operand.vmem [shape: f32[1,640], index: 11, kind: input, shape index: {}]   ;;  %s7642_s12 = inlined_call_operand.hbm [shape: bf16[640,320], index: 12, kind: input, shape index: {}]   ;;  %s7643_s13 = inlined_call_operand.vmem [shape: f32[1,320], index: 13, kind: input, shape index: {}, may-alias: {3,7,9,13}]   ;;  %s7644_s14 = inlined_call_operand.vmem [shape: f32[16,320], index: 14, kind: output, shape index: {}]  }
   0x1   :  { %20 = vsyncpa [#allocation5], 0  ;;  %s6298_s29 = smov [#allocation2]  }
   0x2   :  { %s46_s30 = sshll.u32 %s6298_s29, 4  ;;  %s47_s30 = int_to_ptr.vmem [resolvable:$true] %s46_s30 }
   0x3   :  { %s6262_s15 = scalar_lea.vmem %s47_s30, 12800  ;;  %p6267_p1 = scmp.lt.s32.totalorder %s47_s30, %s47_s30 }
   0x4   :  { %p6263_p0 = scmp.ne.s32.totalorder %s47_s30, %s6262_s15  ;;  %p6268_p2 = scmp.lt.s32.totalorder %s6262_s15, %s6262_s15 }
   0x6   :  { %p6269_p3 = por %p6268_p2, %p6267_p1 }
   0x8   :  { %p6270_p4 = pnand %p6269_p3, %p6263_p0 }
   0xa   :  { %6273 = shalt.err (!%p6270_p4)
}
   0xb   :  { %s6299_s16 = smov 320   ;;  %s6300_s17 = smov 20  }
   0xc   :  { %52 = dma.hbm_to_vmem [thread:$0]  %s7640_s10, 12800, %s47_s30, [#allocation3], %s6299_s16, %s6299_s16, %s6300_s17  }
   0xd   :  { %s6301_s20 = smov [#allocation4]  }
   0xe   :  { %s60_s21 = sshll.u32 %s6301_s20, 4  ;;  %s61_s21 = int_to_ptr.vmem [resolvable:$true] %s60_s21 }
   0xf   :  { %s6282_s22 = scalar_lea.vmem %s61_s21, 15360  ;;  %p6287_p6 = scmp.lt.s32.totalorder %s61_s21, %s61_s21 }
  0x10   :  { %p6283_p5 = scmp.ne.s32.totalorder %s61_s21, %s6282_s22  ;;  %p6288_p7 = scmp.lt.s32.totalorder %s6282_s22, %s6282_s22 }
  0x12   :  { %p6289_p8 = por %p6288_p7, %p6287_p6 }
  0x14   :  { %p6290_p9 = pnand %p6289_p8, %p6283_p5 }
  0x16   :  { %6293 = shalt.err (!%p6290_p9)
}
  0x17   :  { %s6302_s23 = smov 192   ;;  %s6303_s24 = smov 12  }
  0x18   :  { %66 = dma.hbm_to_vmem [thread:$0]  %s7642_s12, 15360, %s61_s21, [#allocation5], %s6302_s23, %s6302_s23, %s6303_s24  }
  0x19   :  { %6294 = dma.done.wait [#allocation3], 12800  }
  0x1a   :  { %6295 = vsyncadd [#allocation3], 4294954496 }
  0x1b   :  { %6296 = dma.done.wait [#allocation5], 15360  }
  0x1c   :  { %6297 = vsyncadd [#allocation5], 4294951936  ;;  %vm87_vm0 = vcmask 523264   ;;  %v6398_v0 = vld [vmem:[%s7630_s0] sm:$0xff]  ;;  %v6403_v1 = vld [vmem:[%s7630_s0 + $0x8] sm:$0xff]  ;;  %vm6306_vm1 = vmmov 0  }
  0x1d   :  { %v6408_v2 = vld [vmem:[%s7630_s0 + $0x10] sm:$0xff]  ;;  %v86_v3 = vadd.f32 %v6403_v1, %v6398_v0  ;;  %v6417_v5 = vld [vmem:[%s7630_s0 + $0x18] sm:$0xff]  ;;  %v6422_v6 = vld [vmem:[%s7630_s0 + $0x20] sm:$0xff]  ;;  %s6308_s16 = smov 48   ;;  %s6309_s17 = smov 112   ;;  %vm1541_vm2 = vcmask 654336  }
  0x1e   :  { %v88_v4 = vsel %vm87_vm0, %v6408_v2, 0.0  ;;  %v6427_v7 = vld [vmem:[%s7630_s0 + $0x28] sm:$0xff]  ;;  %v92_v8 = vadd.f32 %v6422_v6, %v6417_v5  ;;  %v237_v12 = vld [vmem:[%s7634_s4 + $0x1c0] sm:$0xff]  ;;  %vm1692_vm3 = vcmask 392192   ;;  %vm1593_vm4 = vcmask 130048   ;;  %s6311_s22 = smov 96  }
  0x1f   :  { %v93_v9 = vsel %vm87_vm0, %v6427_v7, 0.0  ;;  %v89_v10 = vadd.f32 %v88_v4, %v86_v3  ;;  %v241_v13 = vld [vmem:[%s7634_s4 + $0x1e0] sm:$0xff]  ;;  %vm2188_vm5 = vcmask 261120   ;;  %s6313_s18 = smov 16  }
  0x20   :  { %v94_v11 = vadd.f32 %v93_v9, %v92_v8  ;;  %v229_v14 = vld [vmem:[%s7634_s4 + $0x180] sm:$0xff]  ;;  %v5130_v15 = vcombine.high %v237_v12, %v241_v13  ;;  %v5129_v16 = vcombine.low %v237_v12, %v241_v13 }
  0x21   :  { %90 = vadd.xlane.f32.xlu0 %v89_v10  ;;  %v233_v17 = vld [vmem:[%s7634_s4 + $0x1a0] sm:$0xff] }
  0x22   :  { %v5122_v18 = vcombine.high %v229_v14, %v233_v17  ;;  %v221_v19 = vld [vmem:[%s7634_s4 + $0x140] sm:$0xff]  ;;  %1186 = vmatprep.subr.bf16.mxu0 %v5130_v15  ;;  %v5121_v21 = vcombine.low %v229_v14, %v233_v17 }
  0x23   :  { %v225_v20 = vld [vmem:[%s7634_s4 + $0x160] sm:$0xff]  ;;  %1187 = vmatpush1.bf16.msra.mxu0 %v5129_v16 }
  0x24   :  { %1188 = vmatprep.subr.bf16.mxu0 %v5122_v18  ;;  %v5114_v22 = vcombine.high %v221_v19, %v225_v20  ;;  %v213_v23 = vld [vmem:[%s7634_s4 + $0x100] sm:$0xff]  ;;  %v5113_v25 = vcombine.low %v221_v19, %v225_v20 }
  0x25   :  { %95 = vadd.xlane.f32.xlu0 %v94_v11  ;;  %v217_v24 = vld [vmem:[%s7634_s4 + $0x120] sm:$0xff] }
  0x26   :  { %v205_v26 = vld [vmem:[%s7634_s4 + $0xc0] sm:$0xff]  ;;  %v5106_v28 = vcombine.high %v213_v23, %v217_v24  ;;  %v5105_v29 = vcombine.low %v213_v23, %v217_v24 }
  0x27   :  { %1189 = vmatpush1.bf16.msra.mxu0 %v5121_v21  ;;  %v209_v27 = vld [vmem:[%s7634_s4 + $0xe0] sm:$0xff] }
  0x28   :  { %1190 = vmatprep.subr.bf16.mxu0 %v5114_v22  ;;  %v197_v30 = vld [vmem:[%s7634_s4 + $0x80] sm:$0xff]  ;;  %v5098_v32 = vcombine.high %v205_v26, %v209_v27  ;;  %v5097_v33 = vcombine.low %v205_v26, %v209_v27  ;;  %v6304_v22 = vmov 0  }
  0x29   :  { %v201_v31 = vld [vmem:[%s7634_s4 + $0xa0] sm:$0xff]  ;;  %1261 = vmatprep.mubr.bf16.mxu1 %v6304_v22 }
  0x2a   :  { %v189_v34 = vld [vmem:[%s7634_s4 + $0x40] sm:$0xff]  ;;  %v5090_v36 = vcombine.high %v197_v30, %v201_v31  ;;  %v5089_v37 = vcombine.low %v197_v30, %v201_v31 }
  0x2b   :  { %1191 = vmatpush1.bf16.msra.mxu0 %v5113_v25  ;;  %v193_v35 = vld [vmem:[%s7634_s4 + $0x60] sm:$0xff] }
  0x2c   :  { %1192 = vmatprep.subr.bf16.mxu0 %v5106_v28  ;;  %v181_v38 = vld [vmem:[%s7634_s4] sm:$0xff]  ;;  %v5082_v40 = vcombine.high %v189_v34, %v193_v35  ;;  %v5081_v41 = vcombine.low %v189_v34, %v193_v35 }
  0x2d   :  { %v185_v39 = vld [vmem:[%s7634_s4 + $0x20] sm:$0xff] }
  0x2e   :  { %v301_v42 = vld [vmem:[%s7634_s4 + $0x3c0] sm:$0xff]  ;;  %v5074_v44 = vcombine.high %v181_v38, %v185_v39  ;;  %v5073_v45 = vcombine.low %v181_v38, %v185_v39  ;;  %v6577_v39 = vld [vmem:[%s7634_s4 + $0x1c8] sm:$0xff] }
  0x2f   :  { %1193 = vmatpush1.bf16.msra.mxu0 %v5105_v29  ;;  %v305_v43 = vld [vmem:[%s7634_s4 + $0x3e0] sm:$0xff] }
  0x30   :  { %1194 = vmatprep.subr.bf16.mxu0 %v5098_v32  ;;  %v5194_v46 = vcombine.high %v301_v42, %v305_v43  ;;  %v5193_v47 = vcombine.low %v301_v42, %v305_v43  ;;  %v285_v10 = vld [vmem:[%s7634_s4 + $0x340] sm:$0xff] }
  0x31   :  { %v289_v11 = vld [vmem:[%s7634_s4 + $0x360] sm:$0xff] }
  0x32   :  { %v5178_v12 = vcombine.high %v285_v10, %v289_v11  ;;  %v5177_v13 = vcombine.low %v285_v10, %v289_v11  ;;  %v277_v14 = vld [vmem:[%s7634_s4 + $0x300] sm:$0xff] }
  0x33   :  { %1195 = vmatpush1.bf16.msra.mxu0 %v5097_v33  ;;  %v281_v15 = vld [vmem:[%s7634_s4 + $0x320] sm:$0xff] }
  0x34   :  { %1196 = vmatprep.subr.bf16.mxu0 %v5090_v36  ;;  %v333_v16 = vld [vmem:[%s7634_s4 + $0x4c0] sm:$0xff]  ;;  %v5170_v17 = vcombine.high %v277_v14, %v281_v15  ;;  %v5169_v18 = vcombine.low %v277_v14, %v281_v15 }
  0x35   :  { %v337_v19 = vld [vmem:[%s7634_s4 + $0x4e0] sm:$0xff] }
  0x36   :  { %v269_v20 = vld [vmem:[%s7634_s4 + $0x2c0] sm:$0xff]  ;;  %v5226_v23 = vcombine.high %v333_v16, %v337_v19  ;;  %v5225_v25 = vcombine.low %v333_v16, %v337_v19 }
  0x37   :  { %1197 = vmatpush1.bf16.msra.mxu0 %v5089_v37  ;;  %v273_v21 = vld [vmem:[%s7634_s4 + $0x2e0] sm:$0xff] }
  0x38   :  { %1198 = vmatprep.subr.bf16.mxu0 %v5082_v40  ;;  %v5162_v24 = vcombine.high %v269_v20, %v273_v21  ;;  %v325_v26 = vld [vmem:[%s7634_s4 + $0x480] sm:$0xff]  ;;  %1237 = vmatprep.subr.bf16.mxu1 %v5226_v23  ;;  %v5161_v33 = vcombine.low %v269_v20, %v273_v21  ;;  %v6582_v40 = vld [vmem:[%s7634_s4 + $0x1e8] sm:$0xff] }
  0x39   :  { %v329_v27 = vld [vmem:[%s7634_s4 + $0x4a0] sm:$0xff]  ;;  %1238 = vmatpush1.bf16.msra.mxu1 %v5225_v25  ;;  %v5131_v43 = vcombine.low %v6577_v39, %v6582_v40 }
  0x3a   :  { %v261_v28 = vld [vmem:[%s7634_s4 + $0x280] sm:$0xff]  ;;  %v5218_v29 = vcombine.high %v325_v26, %v329_v27  ;;  %v5217_v35 = vcombine.low %v325_v26, %v329_v27 }
  0x3b   :  { %1199 = vmatpush1.bf16.msra.mxu0 %v5081_v41  ;;  %v265_v30 = vld [vmem:[%s7634_s4 + $0x2a0] sm:$0xff] }
  0x3c   :  { %1200 = vmatprep.subr.bf16.mxu0 %v5074_v44  ;;  %v317_v31 = vld [vmem:[%s7634_s4 + $0x440] sm:$0xff]  ;;  %v5154_v34 = vcombine.high %v261_v28, %v265_v30  ;;  %1239 = vmatprep.subr.bf16.mxu1 %v5218_v29  ;;  %v5153_v44 = vcombine.low %v261_v28, %v265_v30 }
  0x3d   :  { %v321_v32 = vld [vmem:[%s7634_s4 + $0x460] sm:$0xff]  ;;  %1240 = vmatpush1.bf16.msra.mxu1 %v5217_v35 }
  0x3e   :  { %v253_v36 = vld [vmem:[%s7634_s4 + $0x240] sm:$0xff]  ;;  %v5210_v37 = vcombine.high %v317_v31, %v321_v32 }
  0x3f   :  { %1201 = vmatpush1.bf16.msra.mxu0 %v5073_v45  ;;  %v257_v38 = vld [vmem:[%s7634_s4 + $0x260] sm:$0xff] }
  0x40   :  { %1202 = vmatprep.subr.bf16.mxu0 %v5194_v46  ;;  %v309_v41 = vld [vmem:[%s7634_s4 + $0x400] sm:$0xff]  ;;  %v5146_v45 = vcombine.high %v253_v36, %v257_v38  ;;  %v5209_v46 = vcombine.low %v317_v31, %v321_v32  ;;  %1241 = vmatprep.subr.bf16.mxu1 %v5210_v37  ;;  %v230_v32 = vld [vmem:[%s7634_s4 + $0x188] sm:$0xff] }
  0x41   :  { %v313_v42 = vld [vmem:[%s7634_s4 + $0x420] sm:$0xff] }
  0x42   :  { %1242 = vmatpush1.bf16.msra.mxu1 %v5209_v46  ;;  %v84_v11 = vld [vmem:[%s7632_s2] sm:$0x7] }
  0x43   :  { %1203 = vmatpush2.bf16.msra.mxu0 %v5193_v47  ;;  %v5202_v47 = vcombine.high %v309_v41, %v313_v42  ;;  %v85_v14 = vld [vmem:[%s7633_s3] sm:$0x7] }
  0x45   :  { %1243 = vmatprep.subr.bf16.mxu1 %v5202_v47  ;;  %v222_v47 = vld [vmem:[%s7634_s4 + $0x148] sm:$0xff] }
  0xaa   :  { %v91_v48 = vpop.xlane.xlu0 %90 }
  0xab   :  { %v98_v49 = vmul.f32 0.003125, %v91_v48  ;;  %v245_v48 = vld [vmem:[%s7634_s4 + $0x200] sm:$0xff] }
  0xad   :  { %v6488_v50 = vsub.f32 %v6398_v0, %v98_v49  ;;  %v6491_v51 = vsub.f32 %v6403_v1, %v98_v49  ;;  %v6494_v52 = vsub.f32 %v6408_v2, %v98_v49  ;;  %v249_v49 = vld [vmem:[%s7634_s4 + $0x220] sm:$0xff] }
  0xae   :  { %v96_v53 = vpop.xlane.xlu0 %95 }
  0xaf   :  { %v99_v54 = vmul.f32 0.003125, %v96_v53  ;;  %v106_v55 = vmul.f32 %v6488_v50, %v6488_v50  ;;  %v107_v56 = vmul.f32 %v6491_v51, %v6491_v51  ;;  %v108_v57 = vmul.f32 %v6494_v52, %v6494_v52 }
  0xb0   :  { %v5145_v53 = vcombine.low %v253_v36, %v257_v38  ;;  %v330_v36 = vld [vmem:[%s7634_s4 + $0x4a8] sm:$0xff] }
  0xb1   :  { %v6503_v58 = vsub.f32 %v6417_v5, %v99_v54  ;;  %v6506_v59 = vsub.f32 %v6422_v6, %v99_v54  ;;  %v6509_v60 = vsub.f32 %v6427_v7, %v99_v54  ;;  %v112_v61 = vadd.f32 %v107_v56, %v106_v55  ;;  %v293_v6 = vld [vmem:[%s7634_s4 + $0x380] sm:$0xff] }
  0xb2   :  { %v113_v62 = vsel %vm87_vm0, %v108_v57, 0.0  ;;  %v297_v7 = vld [vmem:[%s7634_s4 + $0x3a0] sm:$0xff]  ;;  %v5138_v54 = vcombine.high %v245_v48, %v249_v49  ;;  %v5201_v55 = vcombine.low %v309_v41, %v313_v42  ;;  %v5132_v56 = vcombine.high %v6577_v39, %v6582_v40  ;;  %v218_v39 = vld [vmem:[%s7634_s4 + $0x128] sm:$0xff] }
  0xb3   :  { %v114_v63 = vadd.f32 %v113_v62, %v112_v61  ;;  %v109_v0 = vmul.f32 %v6503_v58, %v6503_v58  ;;  %v110_v1 = vmul.f32 %v6506_v59, %v6506_v59  ;;  %v111_v2 = vmul.f32 %v6509_v60, %v6509_v60  ;;  %v6603_v61 = vld [vmem:[%s7634_s4 + $0x4c8] sm:$0xff] }
  0xb4   :  { %v5186_v8 = vcombine.high %v293_v6, %v297_v7  ;;  %v5185_v9 = vcombine.low %v293_v6, %v297_v7  ;;  %v5137_v57 = vcombine.low %v245_v48, %v249_v49  ;;  %1244 = vmatpush1.bf16.msra.mxu1 %v5201_v55  ;;  %v6608_v62 = vld [vmem:[%s7634_s4 + $0x4e8] sm:$0xff]  ;;  %v135_v7 = vlaneseq }
  0xb5   :  { %115 = vadd.xlane.f32.xlu1 %v114_v63  ;;  %v117_v3 = vadd.f32 %v110_v1, %v109_v0  ;;  %v118_v4 = vsel %vm87_vm0, %v111_v2, 0.0  ;;  %1272 = vmatprep.subr.bf16.mxu1 %v5132_v56  ;;  %v5228_v63 = vcombine.high %v6603_v61, %v6608_v62  ;;  %v5227_v0 = vcombine.low %v6603_v61, %v6608_v62  ;;  %v226_v48 = vld [vmem:[%s7634_s4 + $0x168] sm:$0xff] }
  0xb6   :  { %1204 = vmatprep.subr.bf16.mxu0 %v5186_v8  ;;  %v6614_v8 = vshrl.u32 %v135_v7, 7  ;;  %v318_v49 = vld [vmem:[%s7634_s4 + $0x448] sm:$0xff]  ;;  %v5116_v56 = vcombine.high %v222_v47, %v226_v48  ;;  %v5115_v62 = vcombine.low %v222_v47, %v226_v48 }
  0xb7   :  { %v119_v5 = vadd.f32 %v118_v4, %v117_v3  ;;  %1205 = vmatpush2.bf16.msra.mxu0 %v5185_v9  ;;  %v214_v61 = vld [vmem:[%s7634_s4 + $0x108] sm:$0xff] }
  0xb8   :  { %1206 = vmatprep.subr.bf16.mxu0 %v5178_v12  ;;  %v6617_v9 = vsub.s32 1, %v6614_v8  ;;  %v6620_v10 = vsub.s32 2, %v6614_v8  ;;  %v6626_v12 = vsub.s32 0, %v6614_v8  ;;  %v310_v40 = vld [vmem:[%s7634_s4 + $0x408] sm:$0xff] }
  0xb9   :  { %120 = vadd.xlane.f32.xlu1 %v119_v5  ;;  %v294_v47 = vld [vmem:[%s7634_s4 + $0x388] sm:$0xff] }
  0xba   :  { %v142_v16 = vrot.slane %v84_v11, %v6617_v9  ;;  %v138_v20 = vrot.slane %v84_v11, %v6626_v12  ;;  %v164_v23 = vrot.slane %v85_v14, %v6617_v9  ;;  %v160_v29 = vrot.slane %v85_v14, %v6626_v12  ;;  %v298_v48 = vld [vmem:[%s7634_s4 + $0x3a8] sm:$0xff] }
  0xbb   :  { %1207 = vmatpush2.bf16.msra.mxu0 %v5177_v13 }
  0xbc   :  { %1208 = vmatprep.subr.bf16.mxu0 %v5170_v17 }
  0xbf   :  { %1209 = vmatpush2.bf16.msra.mxu0 %v5169_v18  ;;  %v146_v18 = vrot.slane %v84_v11, %v6620_v10 }
  0xc0   :  { %1210 = vmatprep.subr.bf16.mxu0 %v5162_v24  ;;  %v168_v24 = vrot.slane %v85_v14, %v6620_v10  ;;  %v198_v14 = vld [vmem:[%s7634_s4 + $0x88] sm:$0xff] }
  0xc3   :  { %1211 = vmatpush2.bf16.msra.mxu0 %v5161_v33 }
  0xc4   :  { %1212 = vmatprep.subr.bf16.mxu0 %v5154_v34 }
  0xc7   :  { %1213 = vmatpush2.bf16.msra.mxu0 %v5153_v44 }
  0xc8   :  { %1214 = vmatprep.subr.bf16.mxu0 %v5146_v45 }
  0xcb   :  { %1215 = vmatpush2.bf16.msra.mxu0 %v5145_v53  ;;  %v322_v53 = vld [vmem:[%s7634_s4 + $0x468] sm:$0xff] }
  0xcc   :  { %1216 = vmatprep.subr.bf16.mxu0 %v5138_v54 }
  0xcf   :  { %1217 = vmatpush2.bf16.msra.mxu0 %v5137_v57  ;;  %v5212_v57 = vcombine.high %v318_v49, %v322_v53 }
  0xd0   :  { %1323 = vmatprep.subr.bf16.mxu0 %v5228_v63  ;;  %v5211_v63 = vcombine.low %v318_v49, %v322_v53  ;;  %v199_v49 = vld [vmem:[%s7634_s4 + $0x90] sm:$0xff] }
  0xd1   :  { %v203_v53 = vld [vmem:[%s7634_s4 + $0xb0] sm:$0xff] }
 0x13e   :  { %v116_v1 = vpop.xlane.xlu1 %115 }
 0x13f   :  { %v122_v2 = vmul.f32 0.003125, %v116_v1 }
 0x141   :  { %v124_v3 = vadd.f32 1e-05, %v122_v2  ;;  %v206_v2 = vld [vmem:[%s7634_s4 + $0xc8] sm:$0xff] }
 0x142   :  { %v121_v4 = vpop.xlane.xlu1 %120 }
 0x143   :  { %6188 = vrsqrt.f32 %v124_v3  ;;  %v123_v5 = vmul.f32 0.003125, %v121_v4  ;;  %v210_v3 = vld [vmem:[%s7634_s4 + $0xe8] sm:$0xff]  ;;  %v239_v4 = vld [vmem:[%s7634_s4 + $0x1d0] sm:$0xff] }
 0x144   :  { %v5100_v11 = vcombine.high %v206_v2, %v210_v3 }
 0x145   :  { %v125_v6 = vadd.f32 1e-05, %v123_v5  ;;  %v243_v5 = vld [vmem:[%s7634_s4 + $0x1f0] sm:$0xff] }
 0x147   :  { %6190 = vrsqrt.f32 %v125_v6  ;;  %v5107_v6 = vcombine.low %v214_v61, %v218_v39 }
 0x150   :  { %v6189_v13 = vpop.eup %6188 }
 0x151   :  { %v129_v15 = vmul.f32 %v6189_v13, %v6491_v51  ;;  %v130_v17 = vmul.f32 %v6189_v13, %v6494_v52  ;;  %v128_v19 = vmul.f32 %v6189_v13, %v6488_v50  ;;  %v5134_v13 = vcombine.high %v239_v4, %v243_v5 }
 0x153   :  { %v151_v26 = vmul.f32 %v142_v16, %v129_v15  ;;  %v152_v27 = vmul.f32 %v146_v18, %v130_v17  ;;  %v150_v52 = vmul.f32 %v138_v20, %v128_v19  ;;  %v202_v15 = vld [vmem:[%s7634_s4 + $0xa8] sm:$0xff]  ;;  %v235_v17 = vld [vmem:[%s7634_s4 + $0x1b0] sm:$0xff]  ;;  %v5133_v19 = vcombine.low %v239_v4, %v243_v5 }
 0x154   :  { %v6191_v21 = vpop.eup %6190  ;;  %v183_v4 = vld [vmem:[%s7634_s4 + $0x10] sm:$0xff] }
 0x155   :  { %v132_v25 = vmul.f32 %v6191_v21, %v6506_v59  ;;  %v133_v51 = vmul.f32 %v6191_v21, %v6509_v60  ;;  %v131_v28 = vmul.f32 %v6191_v21, %v6503_v58  ;;  %v173_v33 = vadd.f32 %v164_v23, %v151_v26  ;;  %v234_v60 = vld [vmem:[%s7634_s4 + $0x1a8] sm:$0xff]  ;;  %v227_v26 = vld [vmem:[%s7634_s4 + $0x170] sm:$0xff] }
 0x156   :  { %v174_v35 = vadd.f32 %v168_v24, %v152_v27  ;;  %v326_v58 = vld [vmem:[%s7634_s4 + $0x488] sm:$0xff]  ;;  %v172_v37 = vadd.f32 %v160_v29, %v150_v52  ;;  %v5124_v45 = vcombine.high %v230_v32, %v234_v60  ;;  %v5123_v54 = vcombine.low %v230_v32, %v234_v60  ;;  %v187_v5 = vld [vmem:[%s7634_s4 + $0x30] sm:$0xff] }
 0x157   :  { %v154_v30 = vmul.f32 %v142_v16, %v132_v25  ;;  %v155_v50 = vmul.f32 %v146_v18, %v133_v51  ;;  %v153_v31 = vmul.f32 %v138_v20, %v131_v28  ;;  %v5220_v46 = vcombine.high %v326_v58, %v330_v36  ;;  %v231_v16 = vld [vmem:[%s7634_s4 + $0x190] sm:$0xff]  ;;  %v306_v60 = vld [vmem:[%s7634_s4 + $0x3e8] sm:$0xff] }
 0x158   :  { %v5219_v55 = vcombine.low %v326_v58, %v330_v36  ;;  %v5099_v18 = vcombine.low %v206_v2, %v210_v3  ;;  %v5092_v20 = vcombine.high %v198_v14, %v202_v15  ;;  %v5126_v21 = vcombine.high %v231_v16, %v235_v17  ;;  %v223_v25 = vld [vmem:[%s7634_s4 + $0x150] sm:$0xff]  ;;  %v278_v2 = vld [vmem:[%s7634_s4 + $0x308] sm:$0xff] }
 0x159   :  { %v176_v34 = vadd.f32 %v164_v23, %v154_v30  ;;  %v177_v59 = vadd.f32 %v168_v24, %v155_v50  ;;  %v175_v38 = vadd.f32 %v160_v29, %v153_v31  ;;  %v190_v23 = vld [vmem:[%s7634_s4 + $0x48] sm:$0xff]  ;;  %v5091_v51 = vcombine.low %v198_v14, %v202_v15  ;;  %v215_v50 = vld [vmem:[%s7634_s4 + $0x110] sm:$0xff] }
 0x15a   :  { %v194_v24 = vld [vmem:[%s7634_s4 + $0x68] sm:$0xff]  ;;  %v5125_v27 = vcombine.low %v231_v16, %v235_v17  ;;  %v5118_v52 = vcombine.high %v223_v25, %v227_v26  ;;  %v219_v31 = vld [vmem:[%s7634_s4 + $0x130] sm:$0xff] }
 0x15b   :  { %v6655_v41 = vpack.c.bf16 %v176_v34, %v173_v33  ;;  %v6657_v42 = vpack.c.bf16 %v177_v59, %v174_v35  ;;  %v6659_v44 = vpack.c.bf16 %v175_v38, %v172_v37  ;;  %v5084_v28 = vcombine.high %v190_v23, %v194_v24  ;;  %v182_v29 = vld [vmem:[%s7634_s4 + $0x8] sm:$0xff]  ;;  %v207_v58 = vld [vmem:[%s7634_s4 + $0xd0] sm:$0xff] }
 0x15c   :  { %v186_v30 = vld [vmem:[%s7634_s4 + $0x28] sm:$0xff]  ;;  %v5083_v32 = vcombine.low %v190_v23, %v194_v24  ;;  %v5117_v33 = vcombine.low %v223_v25, %v227_v26  ;;  %v5110_v35 = vcombine.high %v215_v50, %v219_v31  ;;  %v211_v36 = vld [vmem:[%s7634_s4 + $0xf0] sm:$0xff]  ;;  %v5109_v38 = vcombine.low %v215_v50, %v219_v31 }
 0x15d   :  { %1218 = vmatprep.mubr.bf16.mxu0 %v6655_v41  ;;  %5233 = vmatmul.mubr.msk.bf16.vlgmr.msra.gmra.mxu1 %vm87_vm0, %v6657_v42  ;;  %v5076_v34 = vcombine.high %v182_v29, %v186_v30  ;;  %v302_v59 = vld [vmem:[%s7634_s4 + $0x3c8] sm:$0xff]  ;;  %v5075_v37 = vcombine.low %v182_v29, %v186_v30  ;;  %v303_v16 = vld [vmem:[%s7634_s4 + $0x3d0] sm:$0xff] }
 0x15e   :  { %1273 = vmatpush1.bf16.msra.mxu1 %v5131_v43  ;;  %1219 = vmatmul.mubr.bf16.vlgmr.msra.gmra.mxu0 %v6659_v44  ;;  %v314_v43 = vld [vmem:[%s7634_s4 + $0x428] sm:$0xff]  ;;  %v307_v17 = vld [vmem:[%s7634_s4 + $0x3f0] sm:$0xff] }
 0x15f   :  { %1304 = vmatprep.mubr.bf16.mxu1 %v6655_v41  ;;  %1324 = vmatpush1.bf16.msra.mxu0 %v5227_v0  ;;  %v5108_v0 = vcombine.high %v214_v61, %v218_v39  ;;  %v5204_v1 = vcombine.high %v310_v40, %v314_v43  ;;  %v5203_v7 = vcombine.low %v310_v40, %v314_v43  ;;  %v286_v61 = vld [vmem:[%s7634_s4 + $0x348] sm:$0xff]  ;;  %v191_v40 = vld [vmem:[%s7634_s4 + $0x50] sm:$0xff] }
 0x160   :  { %1274 = vmatprep.subr.bf16.mxu1 %v5124_v45  ;;  %1325 = vmatprep.subr.bf16.mxu0 %v5220_v46  ;;  %v5196_v45 = vcombine.high %v302_v59, %v306_v60  ;;  %v5102_v46 = vcombine.high %v207_v58, %v211_v36  ;;  %v290_v39 = vld [vmem:[%s7634_s4 + $0x368] sm:$0xff]  ;;  %v195_v43 = vld [vmem:[%s7634_s4 + $0x70] sm:$0xff] }
 0x161   :  { %1347 = vmatprep.mubr.bf16.mxu0 %v6304_v22  ;;  %v282_v3 = vld [vmem:[%s7634_s4 + $0x328] sm:$0xff]  ;;  %v295_v25 = vld [vmem:[%s7634_s4 + $0x390] sm:$0xff] }
 0x162   :  { %1275 = vmatpush1.bf16.msra.mxu1 %v5123_v54  ;;  %v5195_v54 = vcombine.low %v302_v59, %v306_v60  ;;  %v270_v14 = vld [vmem:[%s7634_s4 + $0x2c8] sm:$0xff]  ;;  %v299_v26 = vld [vmem:[%s7634_s4 + $0x3b0] sm:$0xff] }
 0x163   :  { %1326 = vmatpush1.bf16.msra.mxu0 %v5219_v55  ;;  %1276 = vmatprep.subr.bf16.mxu1 %v5116_v56  ;;  %v5101_v55 = vcombine.low %v207_v58, %v211_v36  ;;  %v5188_v56 = vcombine.high %v294_v47, %v298_v48  ;;  %v274_v15 = vld [vmem:[%s7634_s4 + $0x2e8] sm:$0xff]  ;;  %v287_v50 = vld [vmem:[%s7634_s4 + $0x350] sm:$0xff] }
 0x164   :  { %1327 = vmatprep.subr.bf16.mxu0 %v5212_v57  ;;  %v5094_v57 = vcombine.high %v199_v49, %v203_v53  ;;  %v262_v23 = vld [vmem:[%s7634_s4 + $0x288] sm:$0xff]  ;;  %v291_v31 = vld [vmem:[%s7634_s4 + $0x370] sm:$0xff] }
 0x165   :  { %v266_v24 = vld [vmem:[%s7634_s4 + $0x2a8] sm:$0xff]  ;;  %v279_v58 = vld [vmem:[%s7634_s4 + $0x310] sm:$0xff] }
 0x166   :  { %1277 = vmatpush1.bf16.msra.mxu1 %v5115_v62  ;;  %v5187_v62 = vcombine.low %v294_v47, %v298_v48  ;;  %v254_v29 = vld [vmem:[%s7634_s4 + $0x248] sm:$0xff]  ;;  %v283_v36 = vld [vmem:[%s7634_s4 + $0x330] sm:$0xff] }
 0x167   :  { %1328 = vmatpush1.bf16.msra.mxu0 %v5211_v63  ;;  %1278 = vmatprep.subr.bf16.mxu1 %v5108_v0  ;;  %v5093_v63 = vcombine.low %v199_v49, %v203_v53  ;;  %v5180_v0 = vcombine.high %v286_v61, %v290_v39  ;;  %v258_v30 = vld [vmem:[%s7634_s4 + $0x268] sm:$0xff]  ;;  %v335_v47 = vld [vmem:[%s7634_s4 + $0x4d0] sm:$0xff] }
 0x168   :  { %1329 = vmatprep.subr.bf16.mxu0 %v5204_v1  ;;  %v5086_v1 = vcombine.high %v191_v40, %v195_v43  ;;  %v246_v59 = vld [vmem:[%s7634_s4 + $0x208] sm:$0xff]  ;;  %v339_v48 = vld [vmem:[%s7634_s4 + $0x4f0] sm:$0xff] }
 0x169   :  { %v250_v60 = vld [vmem:[%s7634_s4 + $0x228] sm:$0xff]  ;;  %v271_v49 = vld [vmem:[%s7634_s4 + $0x2d0] sm:$0xff] }
 0x16a   :  { %1279 = vmatpush1.bf16.msra.mxu1 %v5107_v6  ;;  %v5179_v6 = vcombine.low %v286_v61, %v290_v39  ;;  %v275_v53 = vld [vmem:[%s7634_s4 + $0x2f0] sm:$0xff] }
 0x16b   :  { %1330 = vmatpush1.bf16.msra.mxu0 %v5203_v7  ;;  %1280 = vmatprep.subr.bf16.mxu1 %v5100_v11  ;;  %v5085_v7 = vcombine.low %v191_v40, %v195_v43  ;;  %v5172_v11 = vcombine.high %v278_v2, %v282_v3  ;;  %v327_v61 = vld [vmem:[%s7634_s4 + $0x490] sm:$0xff] }
 0x16c   :  { %1358 = vmatprep.subr.bf16.mxu0 %v5134_v13  ;;  %v5078_v13 = vcombine.high %v183_v4, %v187_v5  ;;  %v331_v39 = vld [vmem:[%s7634_s4 + $0x4b0] sm:$0xff] }
 0x16d   :  { %v263_v40 = vld [vmem:[%s7634_s4 + $0x290] sm:$0xff] }
 0x16e   :  { %1281 = vmatpush1.bf16.msra.mxu1 %v5099_v18  ;;  %5234 = vmatmul.mubr.msk.bf16.vlgmr.msra.gmra.mxu0 %vm87_vm0, %v6657_v42  ;;  %v5171_v18 = vcombine.low %v278_v2, %v282_v3  ;;  %v267_v43 = vld [vmem:[%s7634_s4 + $0x2b0] sm:$0xff] }
 0x16f   :  { %1359 = vmatpush1.bf16.msra.mxu0 %v5133_v19  ;;  %1390 = vmatprep.mubr.bf16.mxu0 %v6655_v41  ;;  %v5077_v19 = vcombine.low %v183_v4, %v187_v5  ;;  %v319_v2 = vld [vmem:[%s7634_s4 + $0x450] sm:$0xff] }
 0x170   :  { %1282 = vmatprep.subr.bf16.mxu1 %v5092_v20  ;;  %1360 = vmatprep.subr.bf16.mxu0 %v5126_v21  ;;  %v5164_v20 = vcombine.high %v270_v14, %v274_v15  ;;  %v5198_v21 = vcombine.high %v303_v16, %v307_v17  ;;  %v323_v3 = vld [vmem:[%s7634_s4 + $0x470] sm:$0xff] }
 0x171   :  { %v255_v4 = vld [vmem:[%s7634_s4 + $0x250] sm:$0xff] }
 0x172   :  { %1283 = vmatpush1.bf16.msra.mxu1 %v5091_v51  ;;  %v5163_v51 = vcombine.low %v270_v14, %v274_v15  ;;  %v259_v5 = vld [vmem:[%s7634_s4 + $0x270] sm:$0xff] }
 0x173   :  { %1361 = vmatpush1.bf16.msra.mxu0 %v5125_v27  ;;  %1284 = vmatprep.subr.bf16.mxu1 %v5084_v28  ;;  %v5197_v27 = vcombine.low %v303_v16, %v307_v17  ;;  %v5156_v28 = vcombine.high %v262_v23, %v266_v24  ;;  %v311_v14 = vld [vmem:[%s7634_s4 + $0x410] sm:$0xff] }
 0x174   :  { %1362 = vmatprep.subr.bf16.mxu0 %v5118_v52  ;;  %v5190_v52 = vcombine.high %v295_v25, %v299_v26  ;;  %v315_v15 = vld [vmem:[%s7634_s4 + $0x430] sm:$0xff] }
 0x175   :  { %v247_v16 = vld [vmem:[%s7634_s4 + $0x210] sm:$0xff] }
 0x176   :  { %1285 = vmatpush1.bf16.msra.mxu1 %v5083_v32  ;;  %v5155_v32 = vcombine.low %v262_v23, %v266_v24  ;;  %v251_v17 = vld [vmem:[%s7634_s4 + $0x230] sm:$0xff]  ;;  %v240_v23 = vld [vmem:[%s7634_s4 + $0x1d8] sm:$0xff] }
 0x177   :  { %1363 = vmatpush1.bf16.msra.mxu0 %v5117_v33  ;;  %1286 = vmatprep.subr.bf16.mxu1 %v5076_v34  ;;  %v5189_v33 = vcombine.low %v295_v25, %v299_v26  ;;  %v5148_v34 = vcombine.high %v254_v29, %v258_v30  ;;  %v244_v24 = vld [vmem:[%s7634_s4 + $0x1f8] sm:$0xff] }
 0x178   :  { %1364 = vmatprep.subr.bf16.mxu0 %v5110_v35  ;;  %v5182_v35 = vcombine.high %v287_v50, %v291_v31  ;;  %v336_v25 = vld [vmem:[%s7634_s4 + $0x4d8] sm:$0xff] }
 0x179   :  { %v340_v26 = vld [vmem:[%s7634_s4 + $0x4f8] sm:$0xff] }
 0x17a   :  { %1287 = vmatpush1.bf16.msra.mxu1 %v5075_v37  ;;  %v5147_v37 = vcombine.low %v254_v29, %v258_v30  ;;  %v232_v29 = vld [vmem:[%s7634_s4 + $0x198] sm:$0xff] }
 0x17b   :  { %1365 = vmatpush1.bf16.msra.mxu0 %v5109_v38  ;;  %1288 = vmatprep.subr.bf16.mxu1 %v5196_v45  ;;  %v5181_v38 = vcombine.low %v287_v50, %v291_v31  ;;  %v5140_v45 = vcombine.high %v246_v59, %v250_v60  ;;  %v236_v30 = vld [vmem:[%s7634_s4 + $0x1b8] sm:$0xff] }
 0x17c   :  { %1366 = vmatprep.subr.bf16.mxu0 %v5102_v46  ;;  %v5174_v46 = vcombine.high %v279_v58, %v283_v36  ;;  %v328_v50 = vld [vmem:[%s7634_s4 + $0x498] sm:$0xff] }
 0x17d   :  { %v332_v31 = vld [vmem:[%s7634_s4 + $0x4b8] sm:$0xff] }
 0x17e   :  { %1289 = vmatpush2.bf16.msra.mxu1 %v5195_v54  ;;  %v5139_v54 = vcombine.low %v246_v59, %v250_v60  ;;  %v224_v59 = vld [vmem:[%s7634_s4 + $0x158] sm:$0xff] }
 0x17f   :  { %1367 = vmatpush1.bf16.msra.mxu0 %v5101_v55  ;;  %1290 = vmatprep.subr.bf16.mxu1 %v5188_v56  ;;  %v5173_v55 = vcombine.low %v279_v58, %v283_v36  ;;  %v5230_v56 = vcombine.high %v335_v47, %v339_v48  ;;  %v228_v60 = vld [vmem:[%s7634_s4 + $0x178] sm:$0xff] }
 0x180   :  { %1368 = vmatprep.subr.bf16.mxu0 %v5094_v57  ;;  %v5166_v57 = vcombine.high %v271_v49, %v275_v53  ;;  %v320_v58 = vld [vmem:[%s7634_s4 + $0x458] sm:$0xff] }
 0x181   :  { %v324_v36 = vld [vmem:[%s7634_s4 + $0x478] sm:$0xff] }
 0x182   :  { %1291 = vmatpush2.bf16.msra.mxu1 %v5187_v62  ;;  %v5229_v62 = vcombine.low %v335_v47, %v339_v48  ;;  %v216_v47 = vld [vmem:[%s7634_s4 + $0x118] sm:$0xff] }
 0x183   :  { %1369 = vmatpush1.bf16.msra.mxu0 %v5093_v63  ;;  %1292 = vmatprep.subr.bf16.mxu1 %v5180_v0  ;;  %v5165_v63 = vcombine.low %v271_v49, %v275_v53  ;;  %v5222_v0 = vcombine.high %v327_v61, %v331_v39  ;;  %v220_v48 = vld [vmem:[%s7634_s4 + $0x138] sm:$0xff]  ;;  %v5119_v53 = vcombine.low %v224_v59, %v228_v60 }
 0x184   :  { %1370 = vmatprep.subr.bf16.mxu0 %v5086_v1  ;;  %v5158_v1 = vcombine.high %v263_v40, %v267_v43  ;;  %v312_v49 = vld [vmem:[%s7634_s4 + $0x418] sm:$0xff] }
 0x186   :  { %1293 = vmatpush2.bf16.msra.mxu1 %v5179_v6  ;;  %v5221_v6 = vcombine.low %v327_v61, %v331_v39  ;;  %v212_v61 = vld [vmem:[%s7634_s4 + $0xf8] sm:$0xff]  ;;  %v5111_v39 = vcombine.low %v216_v47, %v220_v48 }
 0x187   :  { %1371 = vmatpush1.bf16.msra.mxu0 %v5085_v7  ;;  %1294 = vmatprep.subr.bf16.mxu1 %v5172_v11  ;;  %v5157_v7 = vcombine.low %v263_v40, %v267_v43  ;;  %v5214_v11 = vcombine.high %v319_v2, %v323_v3 }
 0x188   :  { %1372 = vmatprep.subr.bf16.mxu0 %v5078_v13  ;;  %v5150_v13 = vcombine.high %v255_v4, %v259_v5 }
 0x18a   :  { %1295 = vmatpush2.bf16.msra.mxu1 %v5171_v18  ;;  %v5213_v18 = vcombine.low %v319_v2, %v323_v3  ;;  %v192_v2 = vld [vmem:[%s7634_s4 + $0x58] sm:$0xff] }
 0x18b   :  { %1373 = vmatpush1.bf16.msra.mxu0 %v5077_v19  ;;  %1296 = vmatprep.subr.bf16.mxu1 %v5164_v20  ;;  %v5149_v19 = vcombine.low %v255_v4, %v259_v5  ;;  %v5206_v20 = vcombine.high %v311_v14, %v315_v15  ;;  %v196_v3 = vld [vmem:[%s7634_s4 + $0x78] sm:$0xff] }
 0x18c   :  { %1374 = vmatprep.subr.bf16.mxu0 %v5198_v21  ;;  %v5142_v21 = vcombine.high %v247_v16, %v251_v17  ;;  %v5088_v5 = vcombine.high %v192_v2, %v196_v3 }
 0x18e   :  { %1297 = vmatpush2.bf16.msra.mxu1 %v5163_v51  ;;  %v5205_v51 = vcombine.low %v311_v14, %v315_v15  ;;  %v304_v14 = vld [vmem:[%s7634_s4 + $0x3d8] sm:$0xff] }
 0x18f   :  { %1375 = vmatpush2.bf16.msra.mxu0 %v5197_v27  ;;  %1298 = vmatprep.subr.bf16.mxu1 %v5156_v28  ;;  %v5141_v27 = vcombine.low %v247_v16, %v251_v17  ;;  %v5136_v28 = vcombine.high %v240_v23, %v244_v24  ;;  %v296_v17 = vld [vmem:[%s7634_s4 + $0x398] sm:$0xff] }
 0x190   :  { %1376 = vmatprep.subr.bf16.mxu0 %v5190_v52  ;;  %v5232_v52 = vcombine.high %v336_v25, %v340_v26 }
 0x192   :  { %1299 = vmatpush2.bf16.msra.mxu1 %v5155_v32  ;;  %v5135_v32 = vcombine.low %v240_v23, %v244_v24  ;;  %v292_v23 = vld [vmem:[%s7634_s4 + $0x378] sm:$0xff] }
 0x193   :  { %1377 = vmatpush2.bf16.msra.mxu0 %v5189_v33  ;;  %1300 = vmatprep.subr.bf16.mxu1 %v5148_v34  ;;  %v5231_v33 = vcombine.low %v336_v25, %v340_v26  ;;  %v5128_v34 = vcombine.high %v232_v29, %v236_v30  ;;  %v280_v26 = vld [vmem:[%s7634_s4 + $0x318] sm:$0xff] }
 0x194   :  { %1378 = vmatprep.subr.bf16.mxu0 %v5182_v35  ;;  %v5224_v35 = vcombine.high %v328_v50, %v332_v31 }
 0x196   :  { %1301 = vmatpush2.bf16.msra.mxu1 %v5147_v37  ;;  %v5127_v37 = vcombine.low %v232_v29, %v236_v30  ;;  %v276_v29 = vld [vmem:[%s7634_s4 + $0x2f8] sm:$0xff] }
 0x197   :  { %1379 = vmatpush2.bf16.msra.mxu0 %v5181_v38  ;;  %1302 = vmatprep.subr.bf16.mxu1 %v5140_v45  ;;  %v5223_v38 = vcombine.low %v328_v50, %v332_v31  ;;  %v5120_v45 = vcombine.high %v224_v59, %v228_v60  ;;  %v264_v31 = vld [vmem:[%s7634_s4 + $0x298] sm:$0xff] }
 0x198   :  { %1380 = vmatprep.subr.bf16.mxu0 %v5174_v46  ;;  %v5216_v46 = vcombine.high %v320_v58, %v324_v36  ;;  %v260_v59 = vld [vmem:[%s7634_s4 + $0x278] sm:$0xff] }
 0x19a   :  { %1303 = vmatpush2.bf16.msra.mxu1 %v5139_v54  ;;  %v5215_v54 = vcombine.low %v320_v58, %v324_v36  ;;  %v248_v36 = vld [vmem:[%s7634_s4 + $0x218] sm:$0xff] }
 0x19b   :  { %1381 = vmatpush2.bf16.msra.mxu0 %v5173_v55  ;;  %1409 = vmatprep.subr.bf16.mxu1 %v5230_v56  ;;  %v5112_v55 = vcombine.high %v216_v47, %v220_v48 }
 0x19c   :  { %1382 = vmatprep.subr.bf16.mxu0 %v5166_v57  ;;  %v208_v57 = vld [vmem:[%s7634_s4 + $0xd8] sm:$0xff] }
 0x19d   :  { %1305 = vmatmul.mubr.bf16.vlgmr.msra.gmra.mxu1 %v6659_v44  ;;  %v5104_v43 = vcombine.high %v208_v57, %v212_v61 }
 0x19e   :  { %1410 = vmatpush1.bf16.msra.mxu1 %v5229_v62  ;;  %1433 = vmatprep.mubr.bf16.mxu1 %v6304_v22  ;;  %v200_v62 = vld [vmem:[%s7634_s4 + $0x98] sm:$0xff] }
 0x19f   :  { %1383 = vmatpush2.bf16.msra.mxu0 %v5165_v63  ;;  %1411 = vmatprep.subr.bf16.mxu1 %v5222_v0  ;;  %v204_v63 = vld [vmem:[%s7634_s4 + $0xb8] sm:$0xff]  ;;  %v5103_v0 = vcombine.low %v208_v57, %v212_v61  ;;  %v357_v57 = vsub.s32 3, %v6614_v8  ;;  %v7023_v61 = vld [vmem:[%s7635_s5] sm:$0xff]  ;;  %s6307_s5 = smov 64  }
 0x1a0   :  { %1384 = vmatprep.subr.bf16.mxu0 %v5158_v1  ;;  %v5096_v1 = vcombine.high %v200_v62, %v204_v63  ;;  %v5095_v4 = vcombine.low %v200_v62, %v204_v63  ;;  %v350_v63 = vrot.slane %v7023_v61, %v6617_v9 }
 0x1a1   :  { %v358_v62 = vrot.slane %v7023_v61, %v357_v57 }
 0x1a2   :  { %1412 = vmatpush1.bf16.msra.mxu1 %v5221_v6  ;;  %v184_v6 = vld [vmem:[%s7634_s4 + $0x18] sm:$0xff] }
 0x1a3   :  { %1385 = vmatpush2.bf16.msra.mxu0 %v5157_v7  ;;  %1413 = vmatprep.subr.bf16.mxu1 %v5214_v11  ;;  %v188_v7 = vld [vmem:[%s7634_s4 + $0x38] sm:$0xff]  ;;  %v5087_v11 = vcombine.low %v192_v2, %v196_v3 }
 0x1a4   :  { %1386 = vmatprep.subr.bf16.mxu0 %v5150_v13  ;;  %v5080_v13 = vcombine.high %v184_v6, %v188_v7  ;;  %v5079_v15 = vcombine.low %v184_v6, %v188_v7 }
 0x1a6   :  { %1414 = vmatpush1.bf16.msra.mxu1 %v5213_v18  ;;  %v300_v18 = vld [vmem:[%s7634_s4 + $0x3b8] sm:$0xff] }
 0x1a7   :  { %1387 = vmatpush2.bf16.msra.mxu0 %v5149_v19  ;;  %1415 = vmatprep.subr.bf16.mxu1 %v5206_v20  ;;  %v5192_v20 = vcombine.high %v296_v17, %v300_v18  ;;  %v5191_v24 = vcombine.low %v296_v17, %v300_v18 }
 0x1a8   :  { %1388 = vmatprep.subr.bf16.mxu0 %v5142_v21  ;;  %v288_v21 = vld [vmem:[%s7634_s4 + $0x358] sm:$0xff] }
 0x1a9   :  { %v5184_v25 = vcombine.high %v288_v21, %v292_v23 }
 0x1aa   :  { %1416 = vmatpush1.bf16.msra.mxu1 %v5205_v51  ;;  %v284_v51 = vld [vmem:[%s7634_s4 + $0x338] sm:$0xff] }
 0x1ab   :  { %1389 = vmatpush2.bf16.msra.mxu0 %v5141_v27  ;;  %1444 = vmatprep.subr.bf16.mxu1 %v5136_v28  ;;  %v5183_v27 = vcombine.low %v288_v21, %v292_v23  ;;  %v5176_v28 = vcombine.high %v280_v26, %v284_v51  ;;  %v5175_v30 = vcombine.low %v280_v26, %v284_v51  ;;  %v361_v23 = vsub.s32 4, %v6614_v8 }
 0x1ac   :  { %1495 = vmatprep.subr.bf16.mxu0 %v5232_v52  ;;  %v272_v52 = vld [vmem:[%s7634_s4 + $0x2d8] sm:$0xff] }
 0x1ad   :  { %5235 = vmatmul.mubr.msk.bf16.vlgmr.msra.gmra.mxu1 %vm87_vm0, %v6657_v42  ;;  %v5168_v50 = vcombine.high %v272_v52, %v276_v29 }
 0x1ae   :  { %1391 = vmatmul.mubr.bf16.vlgmr.msra.gmra.mxu0 %v6659_v44  ;;  %1445 = vmatpush1.bf16.msra.mxu1 %v5135_v32  ;;  %v268_v32 = vld [vmem:[%s7634_s4 + $0x2b8] sm:$0xff] }
 0x1af   :  { %1476 = vmatprep.mubr.bf16.mxu1 %v6655_v41  ;;  %1496 = vmatpush1.bf16.msra.mxu0 %v5231_v33  ;;  %v316_v41 = vld [vmem:[%s7634_s4 + $0x438] sm:$0xff]  ;;  %v5167_v33 = vcombine.low %v272_v52, %v276_v29  ;;  %v5159_v60 = vcombine.low %v264_v31, %v268_v32 }
 0x1b0   :  { %1446 = vmatprep.subr.bf16.mxu1 %v5128_v34  ;;  %1497 = vmatprep.subr.bf16.mxu0 %v5224_v35  ;;  %v5208_v56 = vcombine.high %v312_v49, %v316_v41  ;;  %v5207_v40 = vcombine.low %v312_v49, %v316_v41  ;;  %v5160_v34 = vcombine.high %v264_v31, %v268_v32  ;;  %v256_v35 = vld [vmem:[%s7634_s4 + $0x258] sm:$0xff] }
 0x1b1   :  { %1519 = vmatprep.mubr.bf16.mxu0 %v6304_v22  ;;  %v5152_v58 = vcombine.high %v256_v35, %v260_v59 }
 0x1b2   :  { %1447 = vmatpush1.bf16.msra.mxu1 %v5127_v37  ;;  %v252_v37 = vld [vmem:[%s7634_s4 + $0x238] sm:$0xff] }
 0x1b3   :  { %1498 = vmatpush1.bf16.msra.mxu0 %v5223_v38  ;;  %1448 = vmatprep.subr.bf16.mxu1 %v5120_v45  ;;  %v5151_v38 = vcombine.low %v256_v35, %v260_v59  ;;  %v5144_v45 = vcombine.high %v248_v36, %v252_v37 }
 0x1b4   :  { %1499 = vmatprep.subr.bf16.mxu0 %v5216_v46  ;;  %v5143_v46 = vcombine.low %v248_v36, %v252_v37 }
 0x1b6   :  { %1449 = vmatpush1.bf16.msra.mxu1 %v5119_v53 }
 0x1b7   :  { %1500 = vmatpush1.bf16.msra.mxu0 %v5215_v54  ;;  %1450 = vmatprep.subr.bf16.mxu1 %v5112_v55 }
 0x1b8   :  { %1501 = vmatprep.subr.bf16.mxu0 %v5208_v56 }
 0x1ba   :  { %1451 = vmatpush1.bf16.msra.mxu1 %v5111_v39 }
 0x1bb   :  { %1502 = vmatpush1.bf16.msra.mxu0 %v5207_v40  ;;  %1452 = vmatprep.subr.bf16.mxu1 %v5104_v43  ;;  %v354_v40 = vrot.slane %v7023_v61, %v6620_v10 }
 0x1be   :  { %1453 = vmatpush1.bf16.msra.mxu1 %v5103_v0  ;;  %5236 = vmatmul.mubr.msk.bf16.vlgmr.msra.gmra.mxu0 %vm87_vm0, %v6657_v42  ;;  %v308_v42 = vld [vmem:[%s7634_s4 + $0x3f8] sm:$0xff] }
 0x1bf   :  { %1454 = vmatprep.subr.bf16.mxu1 %v5096_v1  ;;  %v5200_v16 = vcombine.high %v304_v14, %v308_v42  ;;  %v5199_v19 = vcombine.low %v304_v14, %v308_v42  ;;  %v6305_v1 = vmov 0.0  }
 0x1c0   :  { %5668 = vmatprep.subr.bf16.mxu0 %v6305_v1  ;;  %5670 = vmatprep.mubr.msk.bf16.mxu0 %vm6306_vm1, %v6305_v1 }
 0x1c2   :  { %1455 = vmatpush1.bf16.msra.mxu1 %v5095_v4 }
 0x1c3   :  { %1456 = vmatprep.subr.bf16.mxu1 %v5088_v5 }
 0x1c6   :  { %1457 = vmatpush1.bf16.msra.mxu1 %v5087_v11 }
 0x1c7   :  { %1458 = vmatprep.subr.bf16.mxu1 %v5080_v13 }
 0x1ca   :  { %1459 = vmatpush1.bf16.msra.mxu1 %v5079_v15 }
 0x1cb   :  { %1460 = vmatprep.subr.bf16.mxu1 %v5200_v16  ;;  %v346_v16 = vrot.slane %v7023_v61, %v6626_v12 }
 0x1ce   :  { %1461 = vmatpush2.bf16.msra.mxu1 %v5199_v19 }
 0x1cf   :  { %1462 = vmatprep.subr.bf16.mxu1 %v5192_v20 }
 0x1d2   :  { %1463 = vmatpush2.bf16.msra.mxu1 %v5191_v24 }
 0x1d3   :  { %1464 = vmatprep.subr.bf16.mxu1 %v5184_v25 }
 0x1d6   :  { %1465 = vmatpush2.bf16.msra.mxu1 %v5183_v27 }
 0x1d7   :  { %1466 = vmatprep.subr.bf16.mxu1 %v5176_v28  ;;  %v362_v28 = vrot.slane %v7023_v61, %v361_v23 }
 0x1da   :  { %1467 = vmatpush2.bf16.msra.mxu1 %v5175_v30 }
 0x1db   :  { %1468 = vmatprep.subr.bf16.mxu1 %v5168_v50 }
 0x1de   :  { %1469 = vmatpush2.bf16.msra.mxu1 %v5167_v33 }
 0x1df   :  { %1470 = vmatprep.subr.bf16.mxu1 %v5160_v34 }
 0x1e2   :  { %1471 = vmatpush2.bf16.msra.mxu1 %v5159_v60 }
 0x1e3   :  { %1472 = vmatprep.subr.bf16.mxu1 %v5152_v58 }
 0x1e6   :  { %1473 = vmatpush2.bf16.msra.mxu1 %v5151_v38  ;;  %v369_v38 = vsub.s32 6, %v6614_v8 }
 0x1e7   :  { %1474 = vmatprep.subr.bf16.mxu1 %v5144_v45  ;;  %v373_v45 = vsub.s32 7, %v6614_v8 }
 0x1ea   :  { %1475 = vmatpush2.bf16.msra.mxu1 %v5143_v46 }
 0x1eb   :  { %5656 = vmatprep.subr.bf16.mxu1 %v6305_v1 }
 0x1ed   :  { %1477 = vmatmul.mubr.bf16.vlgmr.msra.gmra.mxu1 %v6659_v44 }
 0x1ee   :  { %5658 = vmatprep.mubr.msk.bf16.mxu1 %vm6306_vm1, %v6305_v1 }
 0x21d   :  { %v1263_v48 = vpop.f32.mrf.mxu1 }
 0x21e   :  { %v1220_v47 = vpop.f32.mrf.mxu0 }
 0x21f   :  { %v1265_v41 = vpop.f32.mrf.mxu1  ;;  %v1221_v51 = vadd.f32 %v1220_v47, %v346_v16  ;;  %v370_v47 = vrot.slane %v7023_v61, %v369_v38 }
 0x220   :  { %v1222_v49 = vpop.f32.mrf.mxu0 }
 0x221   :  { %v1267_v54 = vpop.f32.mrf.mxu1  ;;  %v1223_v13 = vadd.f32 %v1222_v49, %v350_v63  ;;  %v1264_v30 = vadd.f32 %v1263_v48, %v1221_v51  ;;  %v7090_v51 = vld [vmem:[%s7631_s1] sm:$0xff] }
 0x222   :  { %v1224_v53 = vpop.f32.mrf.mxu0 }
 0x223   :  { %v1269_v39 = vpop.f32.mrf.mxu1  ;;  %v1266_v24 = vadd.f32 %v1265_v41, %v1223_v13  ;;  %v1225_v25 = vadd.f32 %v1224_v53, %v346_v16  ;;  %v7062_v41 = vrot.slane %v7023_v61, %v373_v45 }
 0x224   :  { %v1226_v55 = vpop.f32.mrf.mxu0 }
 0x225   :  { %v1227_v3 = vadd.f32 %v1226_v55, %v350_v63  ;;  %v1268_v52 = vadd.f32 %v1267_v54, %v1225_v25 }
 0x227   :  { %v1270_v17 = vadd.f32 %v1269_v39, %v1227_v3  ;;  %v1530_v34 = vpack.c.bf16 %v1268_v52, %v1264_v30  ;;  %v365_v3 = vsub.s32 5, %v6614_v8 }
 0x229   :  { %v7047_v27 = vpack.c.bf16 %v1270_v17, %v1266_v24 }
 0x22e   :  { %v1349_v56 = vpop.f32.mrf.mxu0 }
 0x230   :  { %v1351_v44 = vpop.f32.mrf.mxu0 }
 0x232   :  { %v1353_v4 = vpop.f32.mrf.mxu0 }
 0x234   :  { %v1355_v18 = vpop.f32.mrf.mxu0 }
 0x25d   :  { %v1306_v43 = vpop.f32.mrf.mxu1 }
 0x25e   :  { %v1307_v2 = vadd.f32 %v1306_v43, %v354_v40 }
 0x25f   :  { %v1308_v0 = vpop.f32.mrf.mxu1 }
 0x260   :  { %v1309_v6 = vadd.f32 %v1308_v0, %v358_v62  ;;  %v1350_v14 = vadd.f32 %v1349_v56, %v1307_v2 }
 0x261   :  { %v1310_v5 = vpop.f32.mrf.mxu1 }
 0x262   :  { %v1311_v7 = vadd.f32 %v1310_v5, %v354_v40  ;;  %v1352_v19 = vadd.f32 %v1351_v44, %v1309_v6 }
 0x263   :  { %v1312_v11 = vpop.f32.mrf.mxu1 }
 0x264   :  { %v1354_v42 = vadd.f32 %v1353_v4, %v1311_v7  ;;  %v1313_v15 = vadd.f32 %v1312_v11, %v358_v62  ;;  %v366_v4 = vrot.slane %v7023_v61, %v365_v3 }
 0x266   :  { %v1356_v20 = vadd.f32 %v1355_v18, %v1313_v15  ;;  %v7036_v21 = vpack.c.bf16 %v1354_v42, %v1350_v14 }
 0x268   :  { %1535 = vrot.lane.b32.xlu0 %v7036_v21, %s6307_s5  ;;  %v7044_v26 = vpack.c.bf16 %v1356_v20, %v1352_v19 }
 0x26a   :  { %1537 = vrot.lane.b32.xlu1 %v7044_v26, %s6307_s5 }
 0x26c   :  { %1690 = vrot.lane.b32.xlu0 %v7047_v27, %s6308_s16 }
 0x26d   :  { %v1435_v29 = vpop.f32.mrf.mxu1 }
 0x26e   :  { %v1392_v50 = vpop.f32.mrf.mxu0  ;;  %1694 = vrot.lane.b32.xlu1 %v7044_v26, %s6309_s17  ;;  %s6312_s17 = smov 80  }
 0x26f   :  { %v1393_v31 = vadd.f32 %v1392_v50, %v362_v28  ;;  %v1437_v32 = vpop.f32.mrf.mxu1 }
 0x270   :  { %v1394_v33 = vpop.f32.mrf.mxu0 }
 0x271   :  { %v1436_v35 = vadd.f32 %v1435_v29, %v1393_v31  ;;  %v1439_v58 = vpop.f32.mrf.mxu1  ;;  %v1395_v14 = vadd.f32 %v1394_v33, %v366_v4 }
 0x272   :  { %v1396_v59 = vpop.f32.mrf.mxu0  ;;  %1688 = vrot.lane.b32.xlu1 %v1530_v34, %s6308_s16 }
 0x273   :  { %v1397_v60 = vadd.f32 %v1396_v59, %v362_v28  ;;  %v1441_v48 = vpop.f32.mrf.mxu1  ;;  %v1438_v17 = vadd.f32 %v1437_v32, %v1395_v14  ;;  %v7098_v32 = vld [vmem:[%s7631_s1 + $0x8] sm:$0xff]  ;;  %s6310_s1 = smov 32  }
 0x274   :  { %v1398_v46 = vpop.f32.mrf.mxu0 }
 0x275   :  { %v1440_v36 = vadd.f32 %v1439_v58, %v1397_v60  ;;  %v1399_v7 = vadd.f32 %v1398_v46, %v366_v4 }
 0x277   :  { %v7056_v37 = vpack.c.bf16 %v1440_v36, %v1436_v35  ;;  %v1442_v15 = vadd.f32 %v1441_v48, %v1399_v7 }
 0x279   :  { %v7075_v18 = vpack.c.bf16 %v1442_v15, %v1438_v17  ;;  %v5808_v17 = vld [vmem:[%s7636_s6 + $0xd8] ss:$12 sps:$4 sm:$0xff]  }
 0x27e   :  { %v1521_v49 = vpop.f32.mrf.mxu0 }
 0x280   :  { %v1523_v55 = vpop.f32.mrf.mxu0 }
 0x282   :  { %v1525_v63 = vpop.f32.mrf.mxu0 }
 0x284   :  { %v7092_v28 = vpop.f32.mrf.mxu0 }
 0x2ad   :  { %v1478_v53 = vpop.f32.mrf.mxu1 }
 0x2ae   :  { %v1479_v54 = vadd.f32 %v1478_v53, %v370_v47 }
 0x2af   :  { %v1480_v56 = vpop.f32.mrf.mxu1 }
 0x2b0   :  { %v1522_v39 = vadd.f32 %v1521_v49, %v1479_v54  ;;  %v1481_v40 = vadd.f32 %v1480_v56, %v7062_v41 }
 0x2b1   :  { %v1482_v44 = vpop.f32.mrf.mxu1 }
 0x2b2   :  { %v7065_v43 = vadd.f32 %v1523_v55, %v1481_v40  ;;  %v1483_v62 = vadd.f32 %v1482_v44, %v370_v47 }
 0x2b3   :  { %v7085_v24 = vpop.f32.mrf.mxu1 }
 0x2b4   :  { %v1526_v0 = vadd.f32 %v1525_v63, %v1483_v62 }
 0x2b6   :  { %v7067_v2 = vpack.c.bf16 %v1526_v0, %v1522_v39 }
 0x2da   :  { %v1536_v5 = vpop.permute.xlu0 %1535 }
 0x2dc   :  { %v1538_v6 = vpop.permute.xlu1 %1537 }
 0x2dd   :  { %v1540_v11 = vsel %vm87_vm0, %v1536_v5, %v1538_v6 }
 0x2de   :  { %v1546_v13 = vsel %vm1541_vm2, %v1540_v11, 0  ;;  %v1691_v19 = vpop.permute.xlu0 %1690 }
 0x2df   :  { %5657 = vmatpush3.bf16.xpose.msra.mxu1 %v1546_v13 }
 0x2e0   :  { %v1695_v42 = vpop.permute.xlu1 %1694  ;;  %5662 = vmatprep.subr.bf16.mxu1 %v6305_v1 }
 0x2e1   :  { %v1700_v16 = vsel %vm1541_vm2, %v1695_v42, 0 }
 0x2e2   :  { %5669 = vmatpush3.bf16.xpose.msra.mxu0 %v1700_v16 }
 0x2e4   :  { %v1689_v61 = vpop.permute.xlu1 %1688 }
 0x2e5   :  { %v1693_v20 = vsel %vm1692_vm3, %v1689_v61, %v1691_v19  ;;  %v5812_v61 = vld [vmem:[%s7636_s6 + $0xc0] ss:$12 sps:$4 sm:$0xff]  }
 0x2e6   :  { %5659 = vmatmul.mubr.msk.bf16.vlgmr.msra.gmra.mxu1 %vm1541_vm2, %v1530_v34 }
 0x2e7   :  { %5663 = vmatpush3.bf16.msra.mxu1 %v7075_v18  ;;  %5664 = vmatprep.mubr.msk.bf16.mxu1 %vm6306_vm1, %v6305_v1 }
 0x2e8   :  { %5674 = vmatprep.subr.bf16.mxu1 %v6305_v1 }
 0x2e9   :  { %5671 = vmatmul.mubr.msk.bf16.vlgmr.msra.gmra.mxu0 %vm1541_vm2, %v1693_v20 }
 0x2ea   :  { %1961 = vmatprep.mubr.bf16.mxu0 %v6304_v22 }
 0x3a6   :  { %v1582_v25 = vpop.f32.mrf.mxu1 }
 0x3a7   :  { %v1589_v52 = vmul.f32 0.1118034, %v1582_v25 }
 0x3a8   :  { %v5660_v29 = vpop.f32.mrf.mxu1 }
 0x3a9   :  { %v1736_v30 = vpop.f32.mrf.mxu0  ;;  %v1591_v50 = vadd.f32 %v1589_v52, %v7090_v51 }
 0x3aa   :  { %v1585_v31 = vpop.f32.mrf.mxu1  ;;  %v1743_v33 = vmul.f32 0.1118034, %v1736_v30 }
 0x3ab   :  { %v1590_v34 = vmul.f32 0.1118034, %v1585_v31  ;;  %v5672_v35 = vpop.f32.mrf.mxu0  ;;  %v1594_v59 = vsel %vm1593_vm4, %v1591_v50, -inf }
 0x3ac   :  { %1595 = vmax.xlane.f32.xlu1 %v1594_v59  ;;  %v5661_v60 = vpop.f32.mrf.mxu1  ;;  %v1745_v47 = vadd.f32 %v1743_v33, %v7090_v51 }
 0x3ad   :  { %v1739_v58 = vpop.f32.mrf.mxu0  ;;  %v1592_v36 = vadd.f32 %v1590_v34, %v7098_v32 }
 0x3ae   :  { %v1744_v38 = vmul.f32 0.1118034, %v1739_v58  ;;  %v1747_v48 = vsel %vm1593_vm4, %v1745_v47, -inf }
 0x3af   :  { %v5673_v45 = vpop.f32.mrf.mxu0  ;;  %v1597_v46 = vsel %vm1593_vm4, %v1592_v36, -inf }
 0x3b0   :  { %1598 = vmax.xlane.f32.xlu0 %v1597_v46  ;;  %v1746_v49 = vadd.f32 %v1744_v38, %v7098_v32 }
 0x3b2   :  { %v1750_v53 = vsel %vm1593_vm4, %v1746_v49, -inf }
 0x3b4   :  { %1748 = vmax.xlane.f32.xlu0 %v1747_v48 }
 0x3b8   :  { %1751 = vmax.xlane.f32.xlu0 %v1750_v53 }
 0x435   :  { %v1596_v54 = vpop.xlane.xlu1 %1595 }
 0x436   :  { %v1600_v55 = vsub.f32 %v1591_v50, %v1596_v54  ;;  %v5815_v54 = vld [vmem:[%s7636_s6 + $0xc8] ss:$12 sps:$4 sm:$0xff]  }
 0x438   :  { %v1602_v56 = vmul.f32 1.442695, %v1600_v55  ;;  %v5818_v55 = vld [vmem:[%s7636_s6 + $0xac] ss:$12 sps:$4 sm:$0xff]  }
 0x439   :  { %v1599_v39 = vpop.xlane.xlu0 %1598 }
 0x43a   :  { %6192 = vpow2.f32 %v1602_v56  ;;  %v1601_v40 = vsub.f32 %v1592_v36, %v1599_v39  ;;  %v5816_v56 = vld [vmem:[%s7636_s6 + $0xa8] ss:$12 sps:$4 sm:$0xff]   ;;  %v5819_v39 = vld [vmem:[%s7636_s6 + $0xb0] ss:$12 sps:$4 sm:$0xff]  }
 0x43c   :  { %v1604_v44 = vmul.f32 1.442695, %v1601_v40  ;;  %v5822_v40 = vld [vmem:[%s7636_s6 + $0x94] ss:$12 sps:$4 sm:$0xff]  }
 0x43d   :  { %v1749_v62 = vpop.xlane.xlu0 %1748 }
 0x43e   :  { %6194 = vpow2.f32 %v1604_v44  ;;  %v1753_v63 = vsub.f32 %v1745_v47, %v1749_v62  ;;  %v5820_v44 = vld [vmem:[%s7636_s6 + $0x90] ss:$12 sps:$4 sm:$0xff]   ;;  %v5823_v62 = vld [vmem:[%s7636_s6 + $0x98] ss:$12 sps:$4 sm:$0xff]  }
 0x440   :  { %v1755_v0 = vmul.f32 1.442695, %v1753_v63  ;;  %v5826_v63 = vld [vmem:[%s7636_s6 + $0x7c] ss:$12 sps:$4 sm:$0xff]  }
 0x441   :  { %v1752_v3 = vpop.xlane.xlu0 %1751 }
 0x442   :  { %6196 = vpow2.f32 %v1755_v0  ;;  %v1754_v4 = vsub.f32 %v1746_v49, %v1752_v3  ;;  %v5811_v49 = vld [vmem:[%s7636_s6 + $0xe0] ss:$12 sps:$4 sm:$0xff]   ;;  %v5824_v0 = vld [vmem:[%s7636_s6 + $0x78] ss:$12 sps:$4 sm:$0xff]  }
 0x443   :  { %v5827_v3 = vld [vmem:[%s7636_s6 + $0x80] ss:$12 sps:$4 sm:$0xff]  }
 0x444   :  { %v1757_v5 = vmul.f32 1.442695, %v1754_v4  ;;  %v5830_v4 = vld [vmem:[%s7636_s6 + $0x64] ss:$12 sps:$4 sm:$0xff]  }
 0x446   :  { %6198 = vpow2.f32 %v1757_v5 }
 0x447   :  { %v6193_v6 = vpop.eup %6192 }
 0x448   :  { %v1606_v7 = vsel %vm1593_vm4, %v6193_v6, 0.0 }
 0x449   :  { %1607 = vadd.xlane.f32.xlu1 %v1606_v7 }
 0x44b   :  { %v6195_v11 = vpop.eup %6194 }
 0x44c   :  { %v1609_v13 = vsel %vm1593_vm4, %v6195_v11, 0.0 }
 0x44d   :  { %1610 = vadd.xlane.f32.xlu0 %v1609_v13 }
 0x44f   :  { %v6197_v14 = vpop.eup %6196 }
 0x450   :  { %v1759_v42 = vsel %vm1593_vm4, %v6197_v14, 0.0 }
 0x451   :  { %1760 = vadd.xlane.f32.xlu1 %v1759_v42 }
 0x453   :  { %v6199_v15 = vpop.eup %6198 }
 0x454   :  { %v1762_v16 = vsel %vm1593_vm4, %v6199_v15, 0.0 }
 0x455   :  { %1763 = vadd.xlane.f32.xlu0 %v1762_v16  ;;  %v5831_v16 = vld [vmem:[%s7636_s6 + $0x68] ss:$12 sps:$4 sm:$0xff]  }
 0x462   :  { %1775 = vrot.lane.b32.xlu1 %v7075_v18, %s6308_s16  ;;  %v5810_v18 = vld [vmem:[%s7636_s6 + $0xdc] ss:$12 sps:$4 sm:$0xff]  }
 0x463   :  { %1935 = vmatprep.subr.bf16.mxu0 %v5810_v18  ;;  %v5834_v18 = vld [vmem:[%s7636_s6 + $0x4c] ss:$12 sps:$4 sm:$0xff]  }
 0x464   :  { %1936 = vmatpush1.bf16.msra.mxu0 %v5808_v17 }
 0x466   :  { %2184 = vrot.lane.b32.xlu1 %v7044_v26, %s6310_s1  ;;  %v5814_v26 = vld [vmem:[%s7636_s6 + $0xc4] ss:$12 sps:$4 sm:$0xff]  }
 0x467   :  { %1937 = vmatprep.subr.bf16.mxu0 %v5814_v26 }
 0x468   :  { %1938 = vmatpush1.bf16.msra.mxu0 %v5812_v61  ;;  %v5832_v61 = vld [vmem:[%s7636_s6 + $0x48] ss:$12 sps:$4 sm:$0xff]  }
 0x469   :  { %1939 = vmatprep.subr.bf16.mxu0 %v5818_v55 }
 0x46a   :  { %2186 = vrot.lane.b32.xlu1 %v7056_v37, %s6310_s1 }
 0x46b   :  { %1777 = vrot.lane.b32.xlu0 %v7067_v2, %s6308_s16 }
 0x46c   :  { %1940 = vmatpush1.bf16.msra.mxu0 %v5816_v56 }
 0x46d   :  { %1941 = vmatprep.subr.bf16.mxu0 %v5822_v40 }
 0x46e   :  { %2181 = vrot.lane.b32.xlu1 %v7047_v27, %s6311_s22 }
 0x470   :  { %1942 = vmatpush1.bf16.msra.mxu0 %v5820_v44 }
 0x471   :  { %1943 = vmatprep.subr.bf16.mxu0 %v5826_v63 }
 0x474   :  { %1944 = vmatpush1.bf16.msra.mxu0 %v5824_v0 }
 0x475   :  { %2102 = vmatprep.subr.bf16.mxu0 %v5830_v4 }
 0x4d2   :  { %v1608_v19 = vpop.xlane.xlu1 %1607 }
 0x4d3   :  { %v1612_v20 = vmax.f32 %v1608_v19, 1e-20  ;;  %v5835_v19 = vld [vmem:[%s7636_s6 + $0x50] ss:$12 sps:$4 sm:$0xff]  }
 0x4d5   :  { %6200 = vrcp.f32 %v1612_v20  ;;  %v5838_v20 = vld [vmem:[%s7636_s6 + $0x34] ss:$12 sps:$4 sm:$0xff]  }
 0x4d6   :  { %v1611_v25 = vpop.xlane.xlu0 %1610 }
 0x4d7   :  { %v1613_v52 = vmax.f32 %v1611_v25, 1e-20  ;;  %v5836_v25 = vld [vmem:[%s7636_s6 + $0x30] ss:$12 sps:$4 sm:$0xff]  }
 0x4d9   :  { %6202 = vrcp.f32 %v1613_v52  ;;  %v5839_v52 = vld [vmem:[%s7636_s6 + $0x38] ss:$12 sps:$4 sm:$0xff]  }
 0x4da   :  { %v1761_v29 = vpop.xlane.xlu1 %1760 }
 0x4db   :  { %v1765_v30 = vmax.f32 %v1761_v29, 1e-20  ;;  %v5842_v29 = vld [vmem:[%s7636_s6 + $0x1c] ss:$12 sps:$4 sm:$0xff]  }
 0x4dd   :  { %6204 = vrcp.f32 %v1765_v30 }
 0x4de   :  { %v1764_v50 = vpop.xlane.xlu0 %1763  ;;  %v1776_v36 = vpop.permute.xlu1 %1775 }
 0x4df   :  { %v1766_v31 = vmax.f32 %v1764_v50, 1e-20  ;;  %v5840_v50 = vld [vmem:[%s7636_s6 + $0x18] ss:$12 sps:$4 sm:$0xff]  }
 0x4e1   :  { %6206 = vrcp.f32 %v1766_v31  ;;  %v5843_v31 = vld [vmem:[%s7636_s6 + $0x20] ss:$12 sps:$4 sm:$0xff]  }
 0x4e2   :  { %v6201_v33 = vpop.eup %6200  ;;  %v1778_v60 = vpop.permute.xlu0 %1777 }
 0x4e3   :  { %v1616_v35 = vmul.f32 %v6201_v33, %v6193_v6  ;;  %v1779_v38 = vsel %vm1692_vm3, %v1776_v36, %v1778_v60  ;;  %v2185_v30 = vpop.permute.xlu1 %2184  ;;  %v5846_v33 = vld [vmem:[%s7636_s6 + $0x4] ss:$12 sps:$4 sm:$0xff]  }
 0x4e6   :  { %v6203_v34 = vpop.eup %6202 }
 0x4e7   :  { %v1617_v59 = vmul.f32 %v6203_v34, %v6195_v11  ;;  %v5844_v34 = vld [vmem:[%s7636_s6] ss:$12 sps:$4 sm:$0xff]  }
 0x4e9   :  { %v1618_v58 = vpack.c.bf16 %v1617_v59, %v1616_v35  ;;  %v5847_v35 = vld [vmem:[%s7636_s6 + $0x8] ss:$12 sps:$4 sm:$0xff]   ;;  %v2187_v59 = vpop.permute.xlu1 %2186 }
 0x4ea   :  { %v6205_v45 = vpop.eup %6204  ;;  %v2189_v60 = vsel %vm2188_vm5, %v2185_v30, %v2187_v59  ;;  %v5854_v59 = vld [vmem:[%s7636_s6 + $0x13c] ss:$12 sps:$4 sm:$0xff]  }
 0x4eb   :  { %5665 = vmatmul.mubr.msk.bf16.vlgmr.msra.gmra.mxu1 %vm1593_vm4, %v1618_v58  ;;  %v1769_v47 = vmul.f32 %v6205_v45, %v6197_v14  ;;  %v2194_v36 = vsel %vm1541_vm2, %v2189_v60, 0  ;;  %v5852_v60 = vld [vmem:[%s7636_s6 + $0x138] ss:$12 sps:$4 sm:$0xff]  }
 0x4ec   :  { %5675 = vmatpush3.bf16.msra.mxu1 %v1779_v38  ;;  %5676 = vmatprep.mubr.msk.bf16.mxu1 %vm6306_vm1, %v6305_v1 }
 0x4ed   :  { %5680 = vmatprep.subr.bf16.mxu1 %v6305_v1  ;;  %v2182_v38 = vpop.permute.xlu1 %2181 }
 0x4ee   :  { %v6207_v46 = vpop.eup %6206 }
 0x4ef   :  { %v1770_v48 = vmul.f32 %v6207_v46, %v6199_v15  ;;  %v5828_v15 = vld [vmem:[%s7636_s6 + $0x60] ss:$12 sps:$4 sm:$0xff]  }
 0x4f1   :  { %v1771_v53 = vpack.c.bf16 %v1770_v48, %v1769_v47 }
 0x4f3   :  { %5677 = vmatmul.mubr.msk.bf16.vlgmr.msra.gmra.mxu1 %vm1593_vm4, %v1771_v53 }
 0x4f4   :  { %5681 = vmatpush3.bf16.msra.mxu1 %v5811_v49  ;;  %5690 = vmatprep.mubr.msk.bf16.mxu1 %vm6306_vm1, %v6305_v1 }
 0x4f5   :  { %5682 = vmatprep.subr.bf16.mxu1 %v6305_v1 }
 0x4f8   :  { %5683 = vmatpush3.bf16.msra.mxu1 %v5815_v54 }
 0x4f9   :  { %5684 = vmatprep.subr.bf16.mxu1 %v6305_v1 }
 0x4fc   :  { %5685 = vmatpush3.bf16.msra.mxu1 %v5819_v39 }
 0x4fd   :  { %5686 = vmatprep.subr.bf16.mxu1 %v6305_v1 }
 0x500   :  { %5687 = vmatpush3.bf16.msra.mxu1 %v5823_v62 }
 0x501   :  { %5688 = vmatprep.subr.bf16.mxu1 %v6305_v1 }
 0x504   :  { %5689 = vmatpush3.bf16.msra.mxu1 %v5827_v3 }
 0x505   :  { %5694 = vmatprep.subr.bf16.mxu1 %v6305_v1 }
 0x5ab   :  { %v1657_v5 = vpop.f32.mrf.mxu1 }
 0x5ad   :  { %v5666_v6 = vpop.f32.mrf.mxu1 }
 0x5af   :  { %v1660_v7 = vpop.f32.mrf.mxu1 }
 0x5b0   :  { %v1684_v58 = vpack.c.bf16 %v1660_v7, %v1657_v5 }
 0x5b1   :  { %v5667_v11 = vpop.f32.mrf.mxu1 }
 0x5b3   :  { %v1818_v13 = vpop.f32.mrf.mxu1 }
 0x5b5   :  { %v5678_v14 = vpop.f32.mrf.mxu1 }
 0x5b7   :  { %v1821_v42 = vpop.f32.mrf.mxu1 }
 0x5b8   :  { %v1845_v17 = vpack.c.bf16 %v1821_v42, %v1818_v13 }
 0x5b9   :  { %v5679_v26 = vpop.f32.mrf.mxu1 }
 0x5ba   :  { %5256 = vmatmul.mubr.msk.bf16.vlgmr.msra.gmra.mxu0 %vm1541_vm2, %v1845_v17  ;;  %5691 = vmatmul.mubr.msk.bf16.vlgmr.msra.gmra.mxu1 %vm1541_vm2, %v1845_v17 }
 0x5bb   :  { %2103 = vmatpush1.bf16.msra.mxu0 %v5828_v15  ;;  %5695 = vmatpush3.bf16.msra.mxu1 %v5831_v16 }
 0x5bc   :  { %2104 = vmatprep.subr.bf16.mxu0 %v5834_v18  ;;  %5696 = vmatprep.subr.bf16.mxu1 %v6305_v1 }
 0x5bd   :  { %2128 = vmatprep.mubr.bf16.mxu0 %v6304_v22  ;;  %5704 = vmatprep.mubr.msk.bf16.mxu1 %vm6306_vm1, %v6305_v1 }
 0x5bf   :  { %2105 = vmatpush1.bf16.msra.mxu0 %v5832_v61  ;;  %5697 = vmatpush3.bf16.msra.mxu1 %v5835_v19 }
 0x5c0   :  { %2106 = vmatprep.subr.bf16.mxu0 %v5838_v20  ;;  %5698 = vmatprep.subr.bf16.mxu1 %v6305_v1 }
 0x5c3   :  { %2107 = vmatpush1.bf16.msra.mxu0 %v5836_v25  ;;  %5699 = vmatpush3.bf16.msra.mxu1 %v5839_v52 }
 0x5c4   :  { %2108 = vmatprep.subr.bf16.mxu0 %v5842_v29  ;;  %5700 = vmatprep.subr.bf16.mxu1 %v6305_v1 }
 0x5c7   :  { %2109 = vmatpush1.bf16.msra.mxu0 %v5840_v50  ;;  %5701 = vmatpush3.bf16.msra.mxu1 %v5843_v31 }
 0x5c8   :  { %2110 = vmatprep.subr.bf16.mxu0 %v5846_v33  ;;  %5702 = vmatprep.subr.bf16.mxu1 %v6305_v1 }
 0x5cb   :  { %2111 = vmatpush1.bf16.msra.mxu0 %v5844_v34  ;;  %5703 = vmatpush3.bf16.msra.mxu1 %v5847_v35 }
 0x5cc   :  { %5708 = vmatprep.subr.bf16.mxu0 %v6305_v1  ;;  %5714 = vmatprep.subr.bf16.mxu1 %v6305_v1 }
 0x5ce   :  { %5273 = vmatmul.mubr.msk.bf16.vlgmr.msra.gmra.mxu0 %vm1541_vm2, %v1684_v58  ;;  %5705 = vmatmul.mubr.msk.bf16.vlgmr.msra.gmra.mxu1 %vm1541_vm2, %v1684_v58  ;;  %v5858_v58 = vld [vmem:[%s7636_s6 + $0x124] ss:$12 sps:$4 sm:$0xff]  }
 0x5cf   :  { %5709 = vmatpush3.bf16.xpose.msra.mxu0 %v2194_v36  ;;  %5710 = vmatprep.mubr.msk.bf16.mxu0 %vm6306_vm1, %v6305_v1  ;;  %v5856_v36 = vld [vmem:[%s7636_s6 + $0x120] ss:$12 sps:$4 sm:$0xff]  }
 0x5d0   :  { %5716 = vmatprep.mubr.msk.bf16.mxu1 %vm6306_vm1, %v6305_v1 }
 0x5d6   :  { %5711 = vmatmul.mubr.msk.bf16.vlgmr.msra.gmra.mxu0 %vm1541_vm2, %v2182_v38  ;;  %v5862_v38 = vld [vmem:[%s7636_s6 + $0x10c] ss:$12 sps:$4 sm:$0xff]  }
 0x5d7   :  { %2449 = vmatprep.mubr.bf16.mxu0 %v6304_v22 }
 0x67a   :  { %v2006_v45 = vpop.f32.mrf.mxu1  ;;  %v1963_v48 = vpop.f32.mrf.mxu0 }
 0x67c   :  { %v5692_v46 = vpop.f32.mrf.mxu1  ;;  %v1965_v53 = vpop.f32.mrf.mxu0 }
 0x67e   :  { %v2009_v47 = vpop.f32.mrf.mxu1  ;;  %v1967_v54 = vpop.f32.mrf.mxu0 }
 0x680   :  { %v5693_v49 = vpop.f32.mrf.mxu1  ;;  %v1969_v55 = vpop.f32.mrf.mxu0 }
 0x68e   :  { %v2130_v56 = vpop.f32.mrf.mxu0  ;;  %v2173_v39 = vpop.f32.mrf.mxu1 }
 0x68f   :  { %v7242_v40 = vadd.f32 %v2130_v56, %v1963_v48  ;;  %v7244_v44 = vadd.f32 %v2173_v39, %v2006_v45  ;;  %v5860_v45 = vld [vmem:[%s7636_s6 + $0x108] ss:$12 sps:$4 sm:$0xff]  }
 0x690   :  { %v2132_v62 = vpop.f32.mrf.mxu0  ;;  %v5706_v63 = vpop.f32.mrf.mxu1 }
 0x691   :  { %v7246_v0 = vadd.f32 %v2132_v62, %v1965_v53  ;;  %v5851_v62 = vld [vmem:[%s7636_s6 + $0x158] ss:$12 sps:$4 sm:$0xff]  }
 0x692   :  { %v2134_v3 = vpop.f32.mrf.mxu0  ;;  %v2176_v4 = vpop.f32.mrf.mxu1 }
 0x693   :  { %v7248_v5 = vadd.f32 %v2134_v3, %v1967_v54  ;;  %v7250_v6 = vadd.f32 %v2176_v4, %v2009_v47  ;;  %v5855_v3 = vld [vmem:[%s7636_s6 + $0x140] ss:$12 sps:$4 sm:$0xff]   ;;  %v5859_v4 = vld [vmem:[%s7636_s6 + $0x128] ss:$12 sps:$4 sm:$0xff]  }
 0x694   :  { %v2136_v7 = vpop.f32.mrf.mxu0  ;;  %v5707_v11 = vpop.f32.mrf.mxu1 }
 0x695   :  { %v7252_v13 = vadd.f32 %v2136_v7, %v1969_v55  ;;  %v5863_v7 = vld [vmem:[%s7636_s6 + $0x110] ss:$12 sps:$4 sm:$0xff]   ;;  %v5866_v11 = vld [vmem:[%s7636_s6 + $0xf4] ss:$12 sps:$4 sm:$0xff]  }
 0x696   :  { %v2230_v14 = vpop.f32.mrf.mxu0 }
 0x697   :  { %v2237_v42 = vmul.f32 0.1118034, %v2230_v14  ;;  %v5864_v14 = vld [vmem:[%s7636_s6 + $0xf0] ss:$12 sps:$4 sm:$0xff]  }
 0x698   :  { %v5712_v15 = vpop.f32.mrf.mxu0 }
 0x699   :  { %v2239_v16 = vadd.f32 %v2237_v42, %v7090_v51  ;;  %v5867_v42 = vld [vmem:[%s7636_s6 + $0xf8] ss:$12 sps:$4 sm:$0xff]  }
 0x69a   :  { %v2233_v17 = vpop.f32.mrf.mxu0 }
 0x69b   :  { %v2238_v18 = vmul.f32 0.1118034, %v2233_v17  ;;  %v2241_v26 = vsel %vm1593_vm4, %v2239_v16, -inf }
 0x69c   :  { %2242 = vmax.xlane.f32.xlu0 %v2241_v26  ;;  %v5713_v61 = vpop.f32.mrf.mxu0 }
 0x69d   :  { %v2240_v19 = vadd.f32 %v2238_v18, %v7098_v32 }
 0x69f   :  { %v2244_v20 = vsel %vm1593_vm4, %v2240_v19, -inf }
 0x6a0   :  { %2245 = vmax.xlane.f32.xlu1 %v2244_v20 }
 0x6b1   :  { %2513 = vrot.lane.b32.xlu1 %v7056_v37, %s6312_s17 }
 0x6b5   :  { %2507 = vrot.lane.b32.xlu1 %v7047_v27, %s6313_s18  ;;  %v5850_v27 = vld [vmem:[%s7636_s6 + $0x154] ss:$12 sps:$4 sm:$0xff]  }
 0x6b6   :  { %2423 = vmatprep.subr.bf16.mxu0 %v5850_v27 }
 0x6b9   :  { %2509 = vrot.lane.b32.xlu1 %v7036_v21, %s6313_s18  ;;  %v5848_v21 = vld [vmem:[%s7636_s6 + $0x150] ss:$12 sps:$4 sm:$0xff]  }
 0x6ba   :  { %2424 = vmatpush1.bf16.msra.mxu0 %v5848_v21 }
 0x6bb   :  { %2425 = vmatprep.subr.bf16.mxu0 %v5854_v59 }
 0x6be   :  { %2426 = vmatpush1.bf16.msra.mxu0 %v5852_v60 }
 0x6bf   :  { %2427 = vmatprep.subr.bf16.mxu0 %v5858_v58 }
 0x6c2   :  { %2428 = vmatpush1.bf16.msra.mxu0 %v5856_v36 }
 0x6c3   :  { %2429 = vmatprep.subr.bf16.mxu0 %v5862_v38 }
 0x6c6   :  { %2430 = vmatpush1.bf16.msra.mxu0 %v5860_v45 }
 0x6c7   :  { %2431 = vmatprep.subr.bf16.mxu0 %v5866_v11  ;;  %v5882_v11 = vld [vmem:[%s7636_s6 + $0x184] ss:$12 sps:$4 sm:$0xff]  }
 0x6ca   :  { %2432 = vmatpush1.bf16.msra.mxu0 %v5864_v14  ;;  %v5880_v14 = vld [vmem:[%s7636_s6 + $0x180] ss:$12 sps:$4 sm:$0xff]  }
 0x6cb   :  { %5734 = vmatprep.subr.bf16.mxu0 %v6305_v1 }
 0x725   :  { %v2243_v25 = vpop.xlane.xlu0 %2242 }
 0x726   :  { %v2247_v52 = vsub.f32 %v2239_v16, %v2243_v25 }
 0x728   :  { %v2249_v29 = vmul.f32 1.442695, %v2247_v52 }
 0x729   :  { %v2246_v30 = vpop.xlane.xlu1 %2245 }
 0x72a   :  { %6208 = vpow2.f32 %v2249_v29  ;;  %v2248_v50 = vsub.f32 %v2240_v19, %v2246_v30 }
 0x72c   :  { %v2251_v31 = vmul.f32 1.442695, %v2248_v50 }
 0x72d   :  { %v2514_v15 = vpop.permute.xlu1 %2513 }
 0x72e   :  { %6210 = vpow2.f32 %v2251_v31  ;;  %v2519_v20 = vsel %vm1541_vm2, %v2514_v15, 0 }
 0x731   :  { %v2508_v26 = vpop.permute.xlu1 %2507 }
 0x735   :  { %v2510_v25 = vpop.permute.xlu1 %2509 }
 0x736   :  { %v2512_v52 = vsel %vm1593_vm4, %v2508_v26, %v2510_v25 }
 0x737   :  { %v6209_v33 = vpop.eup %6208 }
 0x738   :  { %v2253_v34 = vsel %vm1593_vm4, %v6209_v33, 0.0 }
 0x739   :  { %2254 = vadd.xlane.f32.xlu0 %v2253_v34 }
 0x73b   :  { %v6211_v37 = vpop.eup %6210 }
 0x73c   :  { %v2256_v35 = vsel %vm1593_vm4, %v6211_v37, 0.0 }
 0x73d   :  { %2257 = vadd.xlane.f32.xlu0 %v2256_v35 }
 0x753   :  { %2266 = vrot.lane.b32.xlu0 %v7067_v2, %s6311_s22 }
 0x7c2   :  { %v2255_v46 = vpop.xlane.xlu0 %2254 }
 0x7c3   :  { %v2259_v47 = vmax.f32 %v2255_v46, 1e-20 }
 0x7c5   :  { %6212 = vrcp.f32 %v2259_v47 }
 0x7c6   :  { %v2258_v48 = vpop.xlane.xlu0 %2257 }
 0x7c7   :  { %v2260_v49 = vmax.f32 %v2258_v48, 1e-20 }
 0x7c9   :  { %6214 = vrcp.f32 %v2260_v49 }
 0x7ca   :  { %v2267_v53 = vpop.permute.xlu0 %2266 }
 0x7cb   :  { %5715 = vmatpush3.bf16.msra.mxu1 %v2267_v53 }
 0x7cc   :  { %5720 = vmatprep.subr.bf16.mxu1 %v6305_v1 }
 0x7d2   :  { %v6213_v54 = vpop.eup %6212 }
 0x7d3   :  { %v2263_v56 = vmul.f32 %v6213_v54, %v6209_v33 }
 0x7d6   :  { %v6215_v55 = vpop.eup %6214 }
 0x7d7   :  { %v2264_v39 = vmul.f32 %v6215_v55, %v6211_v37 }
 0x7d9   :  { %v2265_v63 = vpack.c.bf16 %v2264_v39, %v2263_v56 }
 0x7db   :  { %5717 = vmatmul.mubr.msk.bf16.vlgmr.msra.gmra.mxu1 %vm1593_vm4, %v2265_v63 }
 0x7dc   :  { %5721 = vmatpush3.bf16.msra.mxu1 %v5851_v62  ;;  %5730 = vmatprep.mubr.msk.bf16.mxu1 %vm6306_vm1, %v6305_v1 }
 0x7dd   :  { %5722 = vmatprep.subr.bf16.mxu1 %v6305_v1 }
 0x7e0   :  { %5723 = vmatpush3.bf16.msra.mxu1 %v5855_v3 }
 0x7e1   :  { %5724 = vmatprep.subr.bf16.mxu1 %v6305_v1 }
 0x7e4   :  { %5725 = vmatpush3.bf16.msra.mxu1 %v5859_v4  ;;  %v5872_v4 = vld [vmem:[%s7636_s6 + $0x1b0] ss:$12 sps:$4 sm:$0xff]  }
 0x7e5   :  { %5726 = vmatprep.subr.bf16.mxu1 %v6305_v1 }
 0x7e8   :  { %5727 = vmatpush3.bf16.msra.mxu1 %v5863_v7  ;;  %v5876_v7 = vld [vmem:[%s7636_s6 + $0x198] ss:$12 sps:$4 sm:$0xff]  }
 0x7e9   :  { %5728 = vmatprep.subr.bf16.mxu1 %v6305_v1 }
 0x7ec   :  { %5729 = vmatpush3.bf16.msra.mxu1 %v5867_v42 }
 0x7ed   :  { %5740 = vmatprep.subr.bf16.mxu1 %v6305_v1 }
 0x89b   :  { %v2306_v16 = vpop.f32.mrf.mxu1 }
 0x89d   :  { %v5718_v17 = vpop.f32.mrf.mxu1 }
 0x89f   :  { %v2309_v18 = vpop.f32.mrf.mxu1 }
 0x8a0   :  { %v2333_v61 = vpack.c.bf16 %v2309_v18, %v2306_v16 }
 0x8a1   :  { %v5719_v19 = vpop.f32.mrf.mxu1 }
 0x8a2   :  { %5292 = vmatmul.mubr.msk.bf16.vlgmr.msra.gmra.mxu0 %vm1541_vm2, %v2333_v61  ;;  %5731 = vmatmul.mubr.msk.bf16.vlgmr.msra.gmra.mxu1 %vm1541_vm2, %v2333_v61 }
 0x8a3   :  { %5735 = vmatpush3.bf16.xpose.msra.mxu0 %v2519_v20  ;;  %5736 = vmatprep.mubr.msk.bf16.mxu0 %vm6306_vm1, %v6305_v1 }
 0x8a4   :  { %5742 = vmatprep.mubr.msk.bf16.mxu1 %vm6306_vm1, %v6305_v1 }
 0x8aa   :  { %5737 = vmatmul.mubr.msk.bf16.vlgmr.msra.gmra.mxu0 %vm1541_vm2, %v2512_v52 }
 0x8ab   :  { %2779 = vmatprep.mubr.bf16.mxu0 %v6304_v22 }
 0x962   :  { %v2451_v29 = vpop.f32.mrf.mxu0  ;;  %v2494_v30 = vpop.f32.mrf.mxu1 }
 0x963   :  { %v7333_v50 = vadd.f32 %v2451_v29, %v7242_v40  ;;  %v7336_v31 = vadd.f32 %v2494_v30, %v7244_v44  ;;  %v5871_v29 = vld [vmem:[%s7636_s6 + $0x1d0] ss:$12 sps:$4 sm:$0xff]  }
 0x964   :  { %v2453_v33 = vpop.f32.mrf.mxu0  ;;  %v5732_v34 = vpop.f32.mrf.mxu1 }
 0x965   :  { %v7339_v37 = vadd.f32 %v2453_v33, %v7246_v0  ;;  %v5875_v33 = vld [vmem:[%s7636_s6 + $0x1b8] ss:$12 sps:$4 sm:$0xff]   ;;  %v5879_v34 = vld [vmem:[%s7636_s6 + $0x1a0] ss:$12 sps:$4 sm:$0xff]  }
 0x966   :  { %v2455_v35 = vpop.f32.mrf.mxu0  ;;  %v2497_v21 = vpop.f32.mrf.mxu1 }
 0x967   :  { %v7342_v27 = vadd.f32 %v2455_v35, %v7248_v5  ;;  %v7345_v59 = vadd.f32 %v2497_v21, %v7250_v6  ;;  %v5883_v35 = vld [vmem:[%s7636_s6 + $0x188] ss:$12 sps:$4 sm:$0xff]  }
 0x968   :  { %v2457_v60 = vpop.f32.mrf.mxu0  ;;  %v5733_v58 = vpop.f32.mrf.mxu1  ;;  %v5884_v21 = vld [vmem:[%s7636_s6 + $0x168] ss:$12 sps:$4 sm:$0xff]  }
 0x969   :  { %v7348_v40 = vadd.f32 %v2457_v60, %v7252_v13  ;;  %v1485_v13 = vadd.f32 %v7085_v24, %v7062_v41  ;;  %v5870_v24 = vld [vmem:[%s7636_s6 + $0x1cc] ss:$12 sps:$4 sm:$0xff]   ;;  %v5887_v58 = vld [vmem:[%s7636_s6 + $0x170] ss:$12 sps:$4 sm:$0xff]  }
 0x96a   :  { %v2555_v44 = vpop.f32.mrf.mxu0  ;;  %2753 = vmatprep.subr.bf16.mxu0 %v5870_v24  ;;  %v5886_v60 = vld [vmem:[%s7636_s6 + $0x16c] ss:$12 sps:$4 sm:$0xff]  }
 0x96b   :  { %v2562_v36 = vmul.f32 0.1118034, %v2555_v44  ;;  %v1528_v49 = vadd.f32 %v7092_v28, %v1485_v13  ;;  %v5874_v28 = vld [vmem:[%s7636_s6 + $0x1b4] ss:$12 sps:$4 sm:$0xff]  }
 0x96c   :  { %v5738_v38 = vpop.f32.mrf.mxu0 }
 0x96d   :  { %v2564_v45 = vadd.f32 %v2562_v36, %v7090_v51  ;;  %v2591_v53 = vpack.c.bf16 %v1528_v49, %v7065_v43  ;;  %v5868_v43 = vld [vmem:[%s7636_s6 + $0x1c8] ss:$12 sps:$4 sm:$0xff]  }
 0x96e   :  { %v2558_v0 = vpop.f32.mrf.mxu0  ;;  %2754 = vmatpush1.bf16.msra.mxu0 %v5868_v43 }
 0x96f   :  { %v2563_v46 = vmul.f32 0.1118034, %v2558_v0  ;;  %v2566_v47 = vsel %vm1593_vm4, %v2564_v45, -inf  ;;  %2755 = vmatprep.subr.bf16.mxu0 %v5874_v28 }
 0x970   :  { %2567 = vmax.xlane.f32.xlu0 %v2566_v47  ;;  %v5739_v5 = vpop.f32.mrf.mxu0 }
 0x971   :  { %v2565_v48 = vadd.f32 %v2563_v46, %v7098_v32  ;;  %v2843_v46 = vld [vmem:[%s7637_s7] sm:$0x7] }
 0x972   :  { %2756 = vmatpush1.bf16.msra.mxu0 %v5872_v4  ;;  %v2848_v13 = vrot.slane %v2843_v46, %v6626_v12  ;;  %v2856_v49 = vrot.slane %v2843_v46, %v6620_v10 }
 0x973   :  { %v2569_v6 = vsel %vm1593_vm4, %v2565_v48, -inf }
 0x974   :  { %2570 = vmax.xlane.f32.xlu1 %v2569_v6 }
 0x985   :  { %2595 = vrot.lane.b32.xlu1 %v2591_v53, %s6313_s18 }
 0x9f9   :  { %v2568_v51 = vpop.xlane.xlu0 %2567 }
 0x9fa   :  { %v2572_v54 = vsub.f32 %v2564_v45, %v2568_v51 }
 0x9fc   :  { %v2574_v55 = vmul.f32 1.442695, %v2572_v54  ;;  %v6248_v54 = vld [vmem:[%s7630_s0] sm:$0xff] }
 0x9fd   :  { %v2571_v56 = vpop.xlane.xlu1 %2570 }
 0x9fe   :  { %6216 = vpow2.f32 %v2574_v55  ;;  %v2573_v39 = vsub.f32 %v2565_v48, %v2571_v56  ;;  %v6249_v56 = vld [vmem:[%s7630_s0 + $0x10] sm:$0xff] }
 0xa00   :  { %v2576_v62 = vmul.f32 1.442695, %v2573_v39 }
 0xa01   :  { %v2596_v18 = vpop.permute.xlu1 %2595 }
 0xa02   :  { %6218 = vpow2.f32 %v2576_v62 }
 0xa0b   :  { %v6217_v32 = vpop.eup %6216 }
 0xa0c   :  { %v2578_v63 = vsel %vm1593_vm4, %v6217_v32, 0.0 }
 0xa0d   :  { %2579 = vadd.xlane.f32.xlu0 %v2578_v63  ;;  %v6250_v63 = vld [vmem:[%s7630_s0 + $0x8] sm:$0xff] }
 0xa0f   :  { %v6219_v3 = vpop.eup %6218 }
 0xa10   :  { %v2581_v41 = vsel %vm1593_vm4, %v6219_v3, 0.0 }
 0xa11   :  { %2582 = vadd.xlane.f32.xlu0 %v2581_v41 }
 0xa27   :  { %2593 = vrot.lane.b32.xlu0 %v7067_v2, %s6313_s18  ;;  %v5878_v2 = vld [vmem:[%s7636_s6 + $0x19c] ss:$12 sps:$4 sm:$0xff]  }
 0xa28   :  { %2757 = vmatprep.subr.bf16.mxu0 %v5878_v2 }
 0xa29   :  { %2758 = vmatpush1.bf16.msra.mxu0 %v5876_v7  ;;  %v6251_v7 = vld [vmem:[%s7630_s0 + $0x18] sm:$0xff] }
 0xa2a   :  { %2759 = vmatprep.subr.bf16.mxu0 %v5882_v11 }
 0xa2d   :  { %2760 = vmatpush1.bf16.msra.mxu0 %v5880_v14 }
 0xa2e   :  { %2761 = vmatprep.subr.bf16.mxu0 %v5886_v60  ;;  %v5897_v60 = vld [vmem:[#allocation2 + $0xa0] ss:$20 sps:$4 sm:$0xff]  }
 0xa31   :  { %2762 = vmatpush1.bf16.msra.mxu0 %v5884_v21  ;;  %v5899_v21 = vld [vmem:[#allocation2 + $0xa4] ss:$20 sps:$4 sm:$0xff]  }
 0xa96   :  { %v2580_v42 = vpop.xlane.xlu0 %2579 }
 0xa97   :  { %v2584_v15 = vmax.f32 %v2580_v42, 1e-20 }
 0xa99   :  { %6220 = vrcp.f32 %v2584_v15 }
 0xa9a   :  { %v2583_v16 = vpop.xlane.xlu0 %2582 }
 0xa9b   :  { %v2585_v17 = vmax.f32 %v2583_v16, 1e-20 }
 0xa9d   :  { %6222 = vrcp.f32 %v2585_v17 }
 0xa9e   :  { %v2594_v26 = vpop.permute.xlu0 %2593 }
 0xa9f   :  { %v2597_v61 = vsel %vm1593_vm4, %v2594_v26, %v2596_v18 }
 0xaa0   :  { %5741 = vmatpush3.bf16.msra.mxu1 %v2597_v61 }
 0xaa1   :  { %5746 = vmatprep.subr.bf16.mxu1 %v6305_v1 }
 0xaa6   :  { %v6221_v19 = vpop.eup %6220 }
 0xaa7   :  { %v2588_v25 = vmul.f32 %v6221_v19, %v6217_v32 }
 0xaaa   :  { %v6223_v20 = vpop.eup %6222 }
 0xaab   :  { %v2589_v52 = vmul.f32 %v6223_v20, %v6219_v3 }
 0xaad   :  { %v2590_v30 = vpack.c.bf16 %v2589_v52, %v2588_v25  ;;  %v5888_v52 = vld [vmem:[#allocation2 + $0x118] ss:$20 sps:$4 sm:$0xff]  }
 0xaaf   :  { %5743 = vmatmul.mubr.msk.bf16.vlgmr.msra.gmra.mxu1 %vm1593_vm4, %v2590_v30  ;;  %v5893_v30 = vld [vmem:[#allocation2 + $0xf4] ss:$20 sps:$4 sm:$0xff]  }
 0xab0   :  { %5747 = vmatpush3.bf16.msra.mxu1 %v5871_v29  ;;  %5756 = vmatprep.mubr.msk.bf16.mxu1 %vm6306_vm1, %v6305_v1  ;;  %v5890_v29 = vld [vmem:[#allocation2 + $0x11c] ss:$20 sps:$4 sm:$0xff]  }
 0xab1   :  { %5748 = vmatprep.subr.bf16.mxu1 %v6305_v1  ;;  %3631 = vmatprep.subr.bf16.mxu0 %v5890_v29  ;;  %v5930_v29 = vld [vmem:[#allocation2 + $0x2d0] ss:$20 sps:$4 sm:$0xff]  }
 0xab4   :  { %5749 = vmatpush3.bf16.msra.mxu1 %v5875_v33  ;;  %v5891_v33 = vld [vmem:[#allocation2 + $0xf0] ss:$20 sps:$4 sm:$0xff]  }
 0xab5   :  { %5750 = vmatprep.subr.bf16.mxu1 %v6305_v1 }
 0xab8   :  { %5751 = vmatpush3.bf16.msra.mxu1 %v5879_v34  ;;  %v5896_v34 = vld [vmem:[#allocation2 + $0xcc] ss:$20 sps:$4 sm:$0xff]  }
 0xab9   :  { %5752 = vmatprep.subr.bf16.mxu1 %v6305_v1 }
 0xabc   :  { %5753 = vmatpush3.bf16.msra.mxu1 %v5883_v35  ;;  %v5894_v35 = vld [vmem:[#allocation2 + $0xc8] ss:$20 sps:$4 sm:$0xff]  }
 0xabd   :  { %5754 = vmatprep.subr.bf16.mxu1 %v6305_v1 }
 0xac0   :  { %5755 = vmatpush3.bf16.msra.mxu1 %v5887_v58  ;;  %v5902_v58 = vld [vmem:[#allocation2 + $0x7c] ss:$20 sps:$4 sm:$0xff]  }
 0xb6f   :  { %v2636_v44 = vpop.f32.mrf.mxu1 }
 0xb71   :  { %v5744_v36 = vpop.f32.mrf.mxu1 }
 0xb72   :  { %v5905_v36 = vld [vmem:[#allocation2 + $0x54] ss:$20 sps:$4 sm:$0xff]  }
 0xb73   :  { %v2639_v38 = vpop.f32.mrf.mxu1 }
 0xb74   :  { %v2663_v45 = vpack.c.bf16 %v2639_v38, %v2636_v44  ;;  %v5900_v44 = vld [vmem:[#allocation2 + $0x78] ss:$20 sps:$4 sm:$0xff]   ;;  %v5903_v38 = vld [vmem:[#allocation2 + $0x50] ss:$20 sps:$4 sm:$0xff]  }
 0xb75   :  { %v5745_v0 = vpop.f32.mrf.mxu1 }
 0xb76   :  { %5311 = vmatmul.mubr.msk.bf16.vlgmr.msra.gmra.mxu0 %vm1541_vm2, %v2663_v45  ;;  %5757 = vmatmul.mubr.msk.bf16.vlgmr.msra.gmra.mxu1 %vm1541_vm2, %v2663_v45  ;;  %v5908_v45 = vld [vmem:[#allocation2 + $0x2c] ss:$20 sps:$4 sm:$0xff]   ;;  %v5906_v0 = vld [vmem:[#allocation2 + $0x28] ss:$20 sps:$4 sm:$0xff]  }
 0xb77   :  { %3706 = vmatprep.mubr.bf16.mxu1 %v6304_v22  ;;  %3632 = vmatpush1.bf16.msra.mxu0 %v5888_v52  ;;  %v5927_v52 = vld [vmem:[#allocation2 + $0x1b8] ss:$20 sps:$4 sm:$0xff]  }
 0xb78   :  { %3633 = vmatprep.subr.bf16.mxu0 %v5893_v30  ;;  %v5935_v30 = vld [vmem:[#allocation2 + $0x194] ss:$20 sps:$4 sm:$0xff]  }
 0xb7b   :  { %3634 = vmatpush1.bf16.msra.mxu0 %v5891_v33  ;;  %v5938_v33 = vld [vmem:[#allocation2 + $0x2ac] ss:$20 sps:$4 sm:$0xff]  }
 0xb7c   :  { %3635 = vmatprep.subr.bf16.mxu0 %v5896_v34  ;;  %v5933_v34 = vld [vmem:[#allocation2 + $0x190] ss:$20 sps:$4 sm:$0xff]  }
 0xb7f   :  { %3636 = vmatpush1.bf16.msra.mxu0 %v5894_v35  ;;  %v5936_v35 = vld [vmem:[#allocation2 + $0x2a8] ss:$20 sps:$4 sm:$0xff]  }
 0xb80   :  { %3637 = vmatprep.subr.bf16.mxu0 %v5899_v21  ;;  %v5941_v21 = vld [vmem:[#allocation2 + $0x16c] ss:$20 sps:$4 sm:$0xff]  }
 0xb83   :  { %3638 = vmatpush1.bf16.msra.mxu0 %v5897_v60  ;;  %v5944_v60 = vld [vmem:[#allocation2 + $0x284] ss:$20 sps:$4 sm:$0xff]  }
 0xb84   :  { %3639 = vmatprep.subr.bf16.mxu0 %v5902_v58  ;;  %v5939_v58 = vld [vmem:[#allocation2 + $0x168] ss:$20 sps:$4 sm:$0xff]  }
 0xb87   :  { %3640 = vmatpush1.bf16.msra.mxu0 %v5900_v44  ;;  %v5942_v44 = vld [vmem:[#allocation2 + $0x280] ss:$20 sps:$4 sm:$0xff]  }
 0xb88   :  { %3641 = vmatprep.subr.bf16.mxu0 %v5905_v36  ;;  %v5947_v36 = vld [vmem:[#allocation2 + $0x144] ss:$20 sps:$4 sm:$0xff]  }
 0xb8b   :  { %3642 = vmatpush1.bf16.msra.mxu0 %v5903_v38  ;;  %v5950_v38 = vld [vmem:[#allocation2 + $0x124] ss:$20 sps:$4 sm:$0xff]  }
 0xb8c   :  { %3643 = vmatprep.subr.bf16.mxu0 %v5908_v45  ;;  %v5945_v45 = vld [vmem:[#allocation2 + $0x140] ss:$20 sps:$4 sm:$0xff]  }
 0xb8f   :  { %3644 = vmatpush1.bf16.msra.mxu0 %v5906_v0  ;;  %v5953_v0 = vld [vmem:[#allocation2 + $0x304] ss:$20 sps:$4 sm:$0xff]  }
 0xc36   :  { %v2781_v47 = vpop.f32.mrf.mxu0  ;;  %v2824_v5 = vpop.f32.mrf.mxu1 }
 0xc37   :  { %v2831_v48 = vadd.f32 %v2781_v47, %v7333_v50  ;;  %v2833_v6 = vadd.f32 %v2824_v5, %v7336_v31  ;;  %v2852_v31 = vrot.slane %v2843_v46, %v6617_v9  ;;  %v5911_v46 = vld [vmem:[#allocation2 + $0x4] ss:$20 sps:$4 sm:$0xff]   ;;  %v5909_v47 = vld [vmem:[#allocation2] ss:$20 sps:$4 sm:$0xff]   ;;  %v5914_v5 = vld [vmem:[#allocation2 + $0x25c] ss:$20 sps:$4 sm:$0xff]  }
 0xc38   :  { %v2783_v53 = vpop.f32.mrf.mxu0  ;;  %v5758_v51 = vpop.f32.mrf.mxu1  ;;  %3645 = vmatprep.subr.bf16.mxu0 %v5911_v46 }
 0xc39   :  { %v2837_v55 = vadd.f32 %v6248_v54, %v2831_v48  ;;  %v2839_v39 = vadd.f32 %v6249_v56, %v2833_v6  ;;  %v2832_v50 = vadd.f32 %v2783_v53, %v7339_v37  ;;  %3646 = vmatpush1.bf16.msra.mxu0 %v5909_v47  ;;  %v5912_v48 = vld [vmem:[#allocation2 + $0x258] ss:$20 sps:$4 sm:$0xff]  }
 0xc3a   :  { %v2785_v62 = vpop.f32.mrf.mxu0  ;;  %v2827_v32 = vpop.f32.mrf.mxu1  ;;  %3647 = vmatprep.subr.bf16.mxu0 %v5914_v5 }
 0xc3b   :  { %v2838_v3 = vadd.f32 %v6250_v63, %v2832_v50  ;;  %v2834_v41 = vadd.f32 %v2785_v62, %v7342_v27  ;;  %v7439_v43 = vadd.f32 %v2856_v49, %v2839_v39  ;;  %v2836_v24 = vadd.f32 %v2827_v32, %v7345_v59  ;;  %v6252_v27 = vld [vmem:[%s7630_s0 + $0x28] sm:$0xff]  ;;  %v6253_v59 = vld [vmem:[%s7630_s0 + $0x20] sm:$0xff] }
 0xc3c   :  { %v2787_v28 = vpop.f32.mrf.mxu0  ;;  %v5759_v4 = vpop.f32.mrf.mxu1  ;;  %v7442_v2 = vadd.f32 %v2848_v13, %v2837_v55 }
 0xc3d   :  { %v7444_v37 = vadd.f32 %v2852_v31, %v2838_v3  ;;  %v2840_v11 = vadd.f32 %v6251_v7, %v2834_v41  ;;  %v2835_v14 = vadd.f32 %v2787_v28, %v7348_v40  ;;  %v2842_v42 = vadd.f32 %v6252_v27, %v2836_v24  ;;  %3648 = vmatpush2.bf16.msra.mxu0 %v5912_v48  ;;  %v5917_v27 = vld [vmem:[#allocation2 + $0x234] ss:$20 sps:$4 sm:$0xff]  }
 0xc3e   :  { %v2869_v18 = vsel %vm87_vm0, %v7439_v43, 0.0  ;;  %3649 = vmatprep.subr.bf16.mxu0 %v5917_v27 }
 0xc3f   :  { %v2841_v15 = vadd.f32 %v6253_v59, %v2835_v14  ;;  %v2868_v16 = vadd.f32 %v7444_v37, %v7442_v2  ;;  %v7458_v17 = vadd.f32 %v2856_v49, %v2842_v42  ;;  %v7462_v26 = vadd.f32 %v2848_v13, %v2840_v11  ;;  %v5915_v42 = vld [vmem:[#allocation2 + $0x230] ss:$20 sps:$4 sm:$0xff]   ;;  %v5920_v59 = vld [vmem:[#allocation2 + $0x20c] ss:$20 sps:$4 sm:$0xff]  }
 0xc41   :  { %v7464_v40 = vadd.f32 %v2852_v31, %v2841_v15  ;;  %v2870_v61 = vadd.f32 %v2869_v18, %v2868_v16  ;;  %v2874_v20 = vsel %vm87_vm0, %v7458_v17, 0.0  ;;  %3650 = vmatpush2.bf16.msra.mxu0 %v5915_v42  ;;  %v5918_v15 = vld [vmem:[#allocation2 + $0x208] ss:$20 sps:$4 sm:$0xff]   ;;  %v5921_v16 = vld [vmem:[#allocation2 + $0x1e0] ss:$20 sps:$4 sm:$0xff]  }
 0xc42   :  { %3651 = vmatprep.subr.bf16.mxu0 %v5920_v59  ;;  %v5923_v18 = vld [vmem:[#allocation2 + $0x1e4] ss:$20 sps:$4 sm:$0xff]  }
 0xc43   :  { %2871 = vadd.xlane.f32.xlu1 %v2870_v61  ;;  %v2873_v19 = vadd.f32 %v7464_v40, %v7462_v26  ;;  %v5924_v61 = vld [vmem:[#allocation2 + $0x2f8] ss:$20 sps:$4 sm:$0xff]  }
 0xc45   :  { %v2875_v25 = vadd.f32 %v2874_v20, %v2873_v19  ;;  %3652 = vmatpush2.bf16.msra.mxu0 %v5918_v15  ;;  %v5926_v19 = vld [vmem:[#allocation2 + $0x2fc] ss:$20 sps:$4 sm:$0xff]  }
 0xc46   :  { %v5929_v20 = vld [vmem:[#allocation2 + $0x1bc] ss:$20 sps:$4 sm:$0xff]   ;;  %3653 = vmatprep.subr.bf16.mxu0 %v5923_v18  ;;  %3682 = vmatprep.subr.bf16.mxu1 %v5926_v19 }
 0xc47   :  { %2876 = vadd.xlane.f32.xlu0 %v2875_v25  ;;  %v5932_v25 = vld [vmem:[#allocation2 + $0x2d4] ss:$20 sps:$4 sm:$0xff]   ;;  %3683 = vmatpush1.bf16.msra.mxu1 %v5924_v61 }
 0xc48   :  { %3684 = vmatprep.subr.bf16.mxu1 %v5932_v25  ;;  %v5948_v25 = vld [vmem:[#allocation2 + $0x120] ss:$20 sps:$4 sm:$0xff]  }
 0xc49   :  { %3654 = vmatpush2.bf16.msra.mxu0 %v5921_v16 }
 0xc4a   :  { %3655 = vmatprep.subr.bf16.mxu0 %v5929_v20 }
 0xc4b   :  { %3685 = vmatpush1.bf16.msra.mxu1 %v5930_v29 }
 0xc4c   :  { %3686 = vmatprep.subr.bf16.mxu1 %v5938_v33 }
 0xc4d   :  { %3656 = vmatpush2.bf16.msra.mxu0 %v5927_v52 }
 0xc4e   :  { %3657 = vmatprep.subr.bf16.mxu0 %v5935_v30 }
 0xc4f   :  { %3687 = vmatpush1.bf16.msra.mxu1 %v5936_v35  ;;  %v5954_v35 = vld [vmem:[#allocation2 + $0xf8] ss:$20 sps:$4 sm:$0xff]  }
 0xc50   :  { %3688 = vmatprep.subr.bf16.mxu1 %v5944_v60  ;;  %v5962_v60 = vld [vmem:[#allocation2 + $0xd4] ss:$20 sps:$4 sm:$0xff]  }
 0xc51   :  { %3658 = vmatpush2.bf16.msra.mxu0 %v5933_v34  ;;  %v5959_v34 = vld [vmem:[#allocation2 + $0x2dc] ss:$20 sps:$4 sm:$0xff]  }
 0xc52   :  { %3659 = vmatprep.subr.bf16.mxu0 %v5941_v21  ;;  %v5957_v21 = vld [vmem:[#allocation2 + $0x2d8] ss:$20 sps:$4 sm:$0xff]  }
 0xc53   :  { %3689 = vmatpush1.bf16.msra.mxu1 %v5942_v44  ;;  %v5960_v44 = vld [vmem:[#allocation2 + $0xd0] ss:$20 sps:$4 sm:$0xff]  }
 0xc54   :  { %3717 = vmatprep.subr.bf16.mxu1 %v5950_v38  ;;  %v5968_v38 = vld [vmem:[#allocation2 + $0xac] ss:$20 sps:$4 sm:$0xff]  }
 0xc55   :  { %3660 = vmatpush2.bf16.msra.mxu0 %v5939_v58  ;;  %v5965_v58 = vld [vmem:[#allocation2 + $0x2b4] ss:$20 sps:$4 sm:$0xff]  }
 0xc56   :  { %3661 = vmatprep.subr.bf16.mxu0 %v5947_v36  ;;  %v5963_v36 = vld [vmem:[#allocation2 + $0x2b0] ss:$20 sps:$4 sm:$0xff]  }
 0xc59   :  { %3662 = vmatpush2.bf16.msra.mxu0 %v5945_v45  ;;  %v5971_v45 = vld [vmem:[#allocation2 + $0x28c] ss:$20 sps:$4 sm:$0xff]  }
 0xc5a   :  { %3768 = vmatprep.subr.bf16.mxu0 %v5953_v0  ;;  %v5966_v0 = vld [vmem:[#allocation2 + $0xa8] ss:$20 sps:$4 sm:$0xff]  }
 0xccc   :  { %v2872_v6 = vpop.xlane.xlu1 %2871 }
 0xccd   :  { %v2878_v13 = vmul.f32 0.003125, %v2872_v6 }
 0xccf   :  { %v7471_v49 = vsub.f32 %v7442_v2, %v2878_v13  ;;  %v7474_v53 = vsub.f32 %v7444_v37, %v2878_v13  ;;  %v7477_v51 = vsub.f32 %v7439_v43, %v2878_v13 }
 0xcd0   :  { %v2877_v54 = vpop.xlane.xlu0 %2876 }
 0xcd1   :  { %v2879_v55 = vmul.f32 0.003125, %v2877_v54  ;;  %v2886_v56 = vmul.f32 %v7471_v49, %v7471_v49  ;;  %v2887_v39 = vmul.f32 %v7474_v53, %v7474_v53  ;;  %v2888_v50 = vmul.f32 %v7477_v51, %v7477_v51  ;;  %v2866_v54 = vld [vmem:[%s7638_s8] sm:$0x7] }
 0xcd3   :  { %v7486_v31 = vsub.f32 %v7462_v26, %v2879_v55  ;;  %v7489_v62 = vsub.f32 %v7464_v40, %v2879_v55  ;;  %v7492_v32 = vsub.f32 %v7458_v17, %v2879_v55  ;;  %v2892_v63 = vadd.f32 %v2887_v39, %v2886_v56  ;;  %v2867_v56 = vld [vmem:[%s7639_s9] sm:$0x7] }
 0xcd4   :  { %v2893_v3 = vsel %vm87_vm0, %v2888_v50, 0.0  ;;  %v2922_v50 = vrot.slane %v2866_v54, %v6617_v9 }
 0xcd5   :  { %v2894_v41 = vadd.f32 %v2893_v3, %v2892_v63  ;;  %v2889_v24 = vmul.f32 %v7486_v31, %v7486_v31  ;;  %v2890_v28 = vmul.f32 %v7489_v62, %v7489_v62  ;;  %v2891_v4 = vmul.f32 %v7492_v32, %v7492_v32 }
 0xcd6   :  { %v2926_v63 = vrot.slane %v2866_v54, %v6620_v10 }
 0xcd7   :  { %2895 = vadd.xlane.f32.xlu0 %v2894_v41  ;;  %v2897_v7 = vadd.f32 %v2890_v28, %v2889_v24  ;;  %v2898_v11 = vsel %vm87_vm0, %v2891_v4, 0.0  ;;  %v2918_v24 = vrot.slane %v2866_v54, %v6626_v12  ;;  %v2944_v4 = vrot.slane %v2867_v56, %v6617_v9  ;;  %v5980_v54 = vld [vmem:[#allocation2 + $0x240] ss:$20 sps:$4 sm:$0xff]  }
 0xcd9   :  { %v2899_v14 = vadd.f32 %v2898_v11, %v2897_v7  ;;  %v2948_v7 = vrot.slane %v2867_v56, %v6620_v10 }
 0xcdb   :  { %2900 = vadd.xlane.f32.xlu1 %v2899_v14 }
 0xd60   :  { %v2896_v46 = vpop.xlane.xlu0 %2895 }
 0xd61   :  { %v2902_v47 = vmul.f32 0.003125, %v2896_v46  ;;  %v5969_v46 = vld [vmem:[#allocation2 + $0x288] ss:$20 sps:$4 sm:$0xff]  }
 0xd63   :  { %v2904_v5 = vadd.f32 1e-05, %v2902_v47  ;;  %v5974_v47 = vld [vmem:[#allocation2 + $0x84] ss:$20 sps:$4 sm:$0xff]  }
 0xd64   :  { %v2901_v48 = vpop.xlane.xlu1 %2900 }
 0xd65   :  { %6224 = vrsqrt.f32 %v2904_v5  ;;  %v2903_v6 = vmul.f32 0.003125, %v2901_v48  ;;  %v5975_v5 = vld [vmem:[#allocation2 + $0x268] ss:$20 sps:$4 sm:$0xff]   ;;  %v5972_v48 = vld [vmem:[#allocation2 + $0x80] ss:$20 sps:$4 sm:$0xff]  }
 0xd67   :  { %v2905_v13 = vadd.f32 1e-05, %v2903_v6  ;;  %v5976_v6 = vld [vmem:[#allocation2 + $0x128] ss:$20 sps:$4 sm:$0xff]  }
 0xd69   :  { %6226 = vrsqrt.f32 %v2905_v13  ;;  %v5979_v13 = vld [vmem:[#allocation2 + $0x5c] ss:$20 sps:$4 sm:$0xff]  }
 0xd72   :  { %v6225_v55 = vpop.eup %6224 }
 0xd73   :  { %v2909_v39 = vmul.f32 %v6225_v55, %v7474_v53  ;;  %v2910_v3 = vmul.f32 %v6225_v55, %v7477_v51  ;;  %v2908_v41 = vmul.f32 %v6225_v55, %v7471_v49  ;;  %v2940_v51 = vrot.slane %v2867_v56, %v6626_v12  ;;  %v5977_v55 = vld [vmem:[#allocation2 + $0x58] ss:$20 sps:$4 sm:$0xff]   ;;  %v5981_v56 = vld [vmem:[#allocation2 + $0x100] ss:$20 sps:$4 sm:$0xff]  }
 0xd75   :  { %v2931_v14 = vmul.f32 %v2922_v50, %v2909_v39  ;;  %v2932_v27 = vmul.f32 %v2926_v63, %v2910_v3  ;;  %v2930_v59 = vmul.f32 %v2918_v24, %v2908_v41  ;;  %v5984_v39 = vld [vmem:[#allocation2 + $0x34] ss:$20 sps:$4 sm:$0xff]   ;;  %v5986_v3 = vld [vmem:[#allocation2 + $0xd8] ss:$20 sps:$4 sm:$0xff]  }
 0xd76   :  { %v6227_v28 = vpop.eup %6226  ;;  %v5989_v41 = vld [vmem:[#allocation2 + $0xc] ss:$20 sps:$4 sm:$0xff]  }
 0xd77   :  { %v2912_v11 = vmul.f32 %v6227_v28, %v7489_v62  ;;  %v2913_v53 = vmul.f32 %v6227_v28, %v7492_v32  ;;  %v2911_v42 = vmul.f32 %v6227_v28, %v7486_v31  ;;  %v2953_v18 = vadd.f32 %v2944_v4, %v2931_v14  ;;  %v5951_v32 = vld [vmem:[#allocation2 + $0x300] ss:$20 sps:$4 sm:$0xff]   ;;  %v5956_v31 = vld [vmem:[#allocation2 + $0xfc] ss:$20 sps:$4 sm:$0xff]  }
 0xd78   :  { %v2954_v19 = vadd.f32 %v2948_v7, %v2932_v27  ;;  %v2952_v52 = vadd.f32 %v2940_v51, %v2930_v59  ;;  %v5987_v28 = vld [vmem:[#allocation2 + $0x8] ss:$20 sps:$4 sm:$0xff]   ;;  %v5992_v14 = vld [vmem:[#allocation2 + $0x260] ss:$20 sps:$4 sm:$0xff]   ;;  %v5997_v59 = vld [vmem:[#allocation2 + $0x238] ss:$20 sps:$4 sm:$0xff]  }
 0xd79   :  { %v2934_v15 = vmul.f32 %v2922_v50, %v2912_v11  ;;  %v2935_v49 = vmul.f32 %v2926_v63, %v2913_v53  ;;  %v2933_v16 = vmul.f32 %v2918_v24, %v2911_v42  ;;  %v5985_v50 = vld [vmem:[#allocation2 + $0x218] ss:$20 sps:$4 sm:$0xff]   ;;  %v5982_v63 = vld [vmem:[#allocation2 + $0x30] ss:$20 sps:$4 sm:$0xff]   ;;  %v5995_v11 = vld [vmem:[#allocation2 + $0x1c8] ss:$20 sps:$4 sm:$0xff]  }
 0xd7a   :  { %v5990_v24 = vld [vmem:[#allocation2 + $0x1f0] ss:$20 sps:$4 sm:$0xff]   ;;  %v5996_v53 = vld [vmem:[#allocation2 + $0x88] ss:$20 sps:$4 sm:$0xff]   ;;  %v6000_v42 = vld [vmem:[#allocation2 + $0x1a0] ss:$20 sps:$4 sm:$0xff]  }
 0xd7b   :  { %v2956_v61 = vadd.f32 %v2944_v4, %v2934_v15  ;;  %v2957_v20 = vadd.f32 %v2948_v7, %v2935_v49  ;;  %v2955_v29 = vadd.f32 %v2940_v51, %v2933_v16  ;;  %v5991_v4 = vld [vmem:[#allocation2 + $0xb0] ss:$20 sps:$4 sm:$0xff]   ;;  %v6001_v51 = vld [vmem:[#allocation2 + $0x60] ss:$20 sps:$4 sm:$0xff]   ;;  %v6005_v49 = vld [vmem:[#allocation2 + $0x178] ss:$20 sps:$4 sm:$0xff]  }
 0xd7c   :  { %v5994_v7 = vld [vmem:[#allocation2 + $0x264] ss:$20 sps:$4 sm:$0xff]   ;;  %v5999_v27 = vld [vmem:[#allocation2 + $0x23c] ss:$20 sps:$4 sm:$0xff]   ;;  %v6004_v15 = vld [vmem:[#allocation2 + $0x214] ss:$20 sps:$4 sm:$0xff]  }
 0xd7d   :  { %v2959_v62 = vpack.c.bf16 %v2956_v61, %v2953_v18  ;;  %v7520_v30 = vpack.c.bf16 %v2957_v20, %v2954_v19  ;;  %v7522_v33 = vpack.c.bf16 %v2955_v29, %v2952_v52  ;;  %v6002_v16 = vld [vmem:[#allocation2 + $0x210] ss:$20 sps:$4 sm:$0xff]   ;;  %v6006_v18 = vld [vmem:[#allocation2 + $0x38] ss:$20 sps:$4 sm:$0xff]   ;;  %v6007_v20 = vld [vmem:[#allocation2 + $0x1e8] ss:$20 sps:$4 sm:$0xff]  }
 0xd7e   :  { %v6009_v61 = vld [vmem:[#allocation2 + $0x1ec] ss:$20 sps:$4 sm:$0xff]   ;;  %v6010_v19 = vld [vmem:[#allocation2 + $0x150] ss:$20 sps:$4 sm:$0xff]  }
 0xd7f   :  { %3663 = vmatprep.mubr.bf16.mxu0 %v2959_v62  ;;  %5413 = vmatmul.mubr.msk.bf16.vlgmr.msra.gmra.mxu1 %vm87_vm0, %v7520_v30  ;;  %v6014_v52 = vld [vmem:[#allocation2 + $0x1c4] ss:$20 sps:$4 sm:$0xff]   ;;  %v6012_v29 = vld [vmem:[#allocation2 + $0x1c0] ss:$20 sps:$4 sm:$0xff]  }
 0xd80   :  { %3718 = vmatpush1.bf16.msra.mxu1 %v5948_v25  ;;  %3664 = vmatmul.mubr.bf16.vlgmr.msra.gmra.mxu0 %v7522_v33  ;;  %v6011_v25 = vld [vmem:[#allocation2 + $0x10] ss:$20 sps:$4 sm:$0xff]  }
 0xd81   :  { %3749 = vmatprep.mubr.bf16.mxu1 %v2959_v62  ;;  %3769 = vmatpush1.bf16.msra.mxu0 %v5951_v32  ;;  %v6015_v32 = vld [vmem:[#allocation2 + $0x198] ss:$20 sps:$4 sm:$0xff]  }
 0xd82   :  { %3719 = vmatprep.subr.bf16.mxu1 %v5956_v31  ;;  %3770 = vmatprep.subr.bf16.mxu0 %v5959_v34  ;;  %v6020_v31 = vld [vmem:[#allocation2 + $0x174] ss:$20 sps:$4 sm:$0xff]   ;;  %v6018_v34 = vld [vmem:[#allocation2 + $0x170] ss:$20 sps:$4 sm:$0xff]  }
 0xd83   :  { %3792 = vmatprep.mubr.bf16.mxu0 %v6304_v22 }
 0xd84   :  { %3720 = vmatpush1.bf16.msra.mxu1 %v5954_v35  ;;  %v6023_v35 = vld [vmem:[#allocation2 + $0x14c] ss:$20 sps:$4 sm:$0xff]  }
 0xd85   :  { %3771 = vmatpush1.bf16.msra.mxu0 %v5957_v21  ;;  %3721 = vmatprep.subr.bf16.mxu1 %v5962_v60  ;;  %v6021_v21 = vld [vmem:[#allocation2 + $0x148] ss:$20 sps:$4 sm:$0xff]  }
 0xd86   :  { %3772 = vmatprep.subr.bf16.mxu0 %v5965_v58  ;;  %v6024_v60 = vld [vmem:[#allocation2 + $0x308] ss:$20 sps:$4 sm:$0xff]   ;;  %v6025_v58 = vld [vmem:[#allocation2 + $0x2e0] ss:$20 sps:$4 sm:$0xff]  }
 0xd88   :  { %3722 = vmatpush1.bf16.msra.mxu1 %v5960_v44  ;;  %v6026_v44 = vld [vmem:[#allocation2 + $0x2b8] ss:$20 sps:$4 sm:$0xff]  }
 0xd89   :  { %3773 = vmatpush1.bf16.msra.mxu0 %v5963_v36  ;;  %3723 = vmatprep.subr.bf16.mxu1 %v5968_v38  ;;  %v6027_v36 = vld [vmem:[#allocation2 + $0x290] ss:$20 sps:$4 sm:$0xff]   ;;  %v6030_v38 = vld [vmem:[#allocation4 + $0xac] ss:$12 sps:$4 sm:$0xff]  }
 0xd8a   :  { %3774 = vmatprep.subr.bf16.mxu0 %v5971_v45  ;;  %v6028_v45 = vld [vmem:[#allocation4 + $0xa8] ss:$12 sps:$4 sm:$0xff]  }
 0xd8c   :  { %3724 = vmatpush1.bf16.msra.mxu1 %v5966_v0  ;;  %v6031_v0 = vld [vmem:[#allocation4 + $0x90] ss:$12 sps:$4 sm:$0xff]  }
 0xd8d   :  { %3775 = vmatpush1.bf16.msra.mxu0 %v5969_v46  ;;  %3725 = vmatprep.subr.bf16.mxu1 %v5974_v47  ;;  %v6036_v46 = vld [vmem:[#allocation4 + $0x7c] ss:$12 sps:$4 sm:$0xff]   ;;  %v6034_v47 = vld [vmem:[#allocation4 + $0x78] ss:$12 sps:$4 sm:$0xff]  }
 0xd8e   :  { %5576 = vmatprep.subr.bf16.mxu0 %v5975_v5  ;;  %v6039_v5 = vld [vmem:[#allocation4 + $0x64] ss:$12 sps:$4 sm:$0xff]  }
 0xd90   :  { %3726 = vmatpush1.bf16.msra.mxu1 %v5972_v48  ;;  %5414 = vmatmul.mubr.msk.bf16.vlgmr.msra.gmra.mxu0 %vm87_vm0, %v7520_v30  ;;  %v6037_v48 = vld [vmem:[#allocation4 + $0x60] ss:$12 sps:$4 sm:$0xff]  }
 0xd91   :  { %5577 = vmatpush3.bf16.msra.mxu0 %v5976_v6  ;;  %3835 = vmatprep.mubr.bf16.mxu0 %v2959_v62  ;;  %v6017_v62 = vld [vmem:[#allocation2 + $0x19c] ss:$20 sps:$4 sm:$0xff]   ;;  %v6042_v6 = vld [vmem:[#allocation4 + $0x4c] ss:$12 sps:$4 sm:$0xff]  }
 0xd92   :  { %3727 = vmatprep.subr.bf16.mxu1 %v5979_v13  ;;  %5578 = vmatprep.subr.bf16.mxu0 %v5980_v54  ;;  %v6076_v13 = vld [vmem:[#allocation4 + $0x228] ss:$12 sps:$4 sm:$0xff]   ;;  %v6078_v54 = vld [vmem:[#allocation4 + $0x22c] ss:$12 sps:$4 sm:$0xff]  }
 0xd94   :  { %3728 = vmatpush1.bf16.msra.mxu1 %v5977_v55  ;;  %v6040_v55 = vld [vmem:[#allocation4 + $0x48] ss:$12 sps:$4 sm:$0xff]  }
 0xd95   :  { %5579 = vmatpush3.bf16.msra.mxu0 %v5981_v56  ;;  %3729 = vmatprep.subr.bf16.mxu1 %v5984_v39  ;;  %v6043_v56 = vld [vmem:[#allocation4 + $0x30] ss:$12 sps:$4 sm:$0xff]  }
 0xd96   :  { %5580 = vmatprep.subr.bf16.mxu0 %v5985_v50  ;;  %v6048_v39 = vld [vmem:[#allocation4 + $0x1c] ss:$12 sps:$4 sm:$0xff]   ;;  %v6046_v50 = vld [vmem:[#allocation4 + $0x18] ss:$12 sps:$4 sm:$0xff]  }
 0xd98   :  { %3730 = vmatpush1.bf16.msra.mxu1 %v5982_v63  ;;  %v6051_v63 = vld [vmem:[#allocation4 + $0x4] ss:$12 sps:$4 sm:$0xff]  }
 0xd99   :  { %5581 = vmatpush3.bf16.msra.mxu0 %v5986_v3  ;;  %3731 = vmatprep.subr.bf16.mxu1 %v5989_v41  ;;  %v6049_v3 = vld [vmem:[#allocation4] ss:$12 sps:$4 sm:$0xff]  }
 0xd9a   :  { %5582 = vmatprep.subr.bf16.mxu0 %v5990_v24  ;;  %v6054_v41 = vld [vmem:[#allocation4 + $0x16c] ss:$12 sps:$4 sm:$0xff]   ;;  %v6079_v24 = vld [vmem:[#allocation4 + $0x210] ss:$12 sps:$4 sm:$0xff]  }
 0xd9c   :  { %3732 = vmatpush1.bf16.msra.mxu1 %v5987_v28  ;;  %v6081_v28 = vld [vmem:[#allocation4 + $0x214] ss:$12 sps:$4 sm:$0xff]  }
 0xd9d   :  { %5583 = vmatpush3.bf16.msra.mxu0 %v5991_v4  ;;  %3733 = vmatprep.subr.bf16.mxu1 %v5994_v7  ;;  %v6052_v4 = vld [vmem:[#allocation4 + $0x168] ss:$12 sps:$4 sm:$0xff]  }
 0xd9e   :  { %5584 = vmatprep.subr.bf16.mxu0 %v5995_v11  ;;  %v6057_v7 = vld [vmem:[#allocation4 + $0x154] ss:$12 sps:$4 sm:$0xff]   ;;  %v6084_v11 = vld [vmem:[#allocation4 + $0x1fc] ss:$12 sps:$4 sm:$0xff]  }
 0xda0   :  { %3734 = vmatpush2.bf16.msra.mxu1 %v5992_v14  ;;  %v6082_v14 = vld [vmem:[#allocation4 + $0x1f8] ss:$12 sps:$4 sm:$0xff]  }
 0xda1   :  { %5585 = vmatpush3.bf16.msra.mxu0 %v5996_v53  ;;  %3735 = vmatprep.subr.bf16.mxu1 %v5999_v27  ;;  %v6055_v53 = vld [vmem:[#allocation4 + $0x150] ss:$12 sps:$4 sm:$0xff]  }
 0xda2   :  { %5586 = vmatprep.subr.bf16.mxu0 %v6000_v42  ;;  %v6060_v27 = vld [vmem:[#allocation4 + $0x13c] ss:$12 sps:$4 sm:$0xff]   ;;  %v6087_v42 = vld [vmem:[#allocation4 + $0x1e4] ss:$12 sps:$4 sm:$0xff]  }
 0xda4   :  { %3736 = vmatpush2.bf16.msra.mxu1 %v5997_v59  ;;  %v6085_v59 = vld [vmem:[#allocation4 + $0x1e0] ss:$12 sps:$4 sm:$0xff]  }
 0xda5   :  { %5587 = vmatpush3.bf16.msra.mxu0 %v6001_v51  ;;  %3737 = vmatprep.subr.bf16.mxu1 %v6004_v15  ;;  %v6058_v51 = vld [vmem:[#allocation4 + $0x138] ss:$12 sps:$4 sm:$0xff]  }
 0xda6   :  { %5588 = vmatprep.subr.bf16.mxu0 %v6005_v49  ;;  %v6063_v15 = vld [vmem:[#allocation4 + $0x124] ss:$12 sps:$4 sm:$0xff]   ;;  %v6090_v49 = vld [vmem:[#allocation4 + $0x1cc] ss:$12 sps:$4 sm:$0xff]  }
 0xda8   :  { %3738 = vmatpush2.bf16.msra.mxu1 %v6002_v16  ;;  %v6088_v16 = vld [vmem:[#allocation4 + $0x1c8] ss:$12 sps:$4 sm:$0xff]  }
 0xda9   :  { %5589 = vmatpush3.bf16.msra.mxu0 %v6006_v18  ;;  %3739 = vmatprep.subr.bf16.mxu1 %v6009_v61  ;;  %v6093_v18 = vld [vmem:[#allocation4 + $0x1b4] ss:$12 sps:$4 sm:$0xff]  }
 0xdaa   :  { %5590 = vmatprep.subr.bf16.mxu0 %v6010_v19  ;;  %v6061_v61 = vld [vmem:[#allocation4 + $0x120] ss:$12 sps:$4 sm:$0xff]  }
 0xdab   :  { %v6066_v19 = vld [vmem:[#allocation4 + $0x10c] ss:$12 sps:$4 sm:$0xff]  }
 0xdac   :  { %3740 = vmatpush2.bf16.msra.mxu1 %v6007_v20  ;;  %v6091_v20 = vld [vmem:[#allocation4 + $0x1b0] ss:$12 sps:$4 sm:$0xff]  }
 0xdad   :  { %5591 = vmatpush3.bf16.msra.mxu0 %v6011_v25  ;;  %3741 = vmatprep.subr.bf16.mxu1 %v6014_v52  ;;  %v6064_v25 = vld [vmem:[#allocation4 + $0x108] ss:$12 sps:$4 sm:$0xff]  }
 0xdae   :  { %4823 = vmatprep.subr.bf16.mxu0 %v6078_v54  ;;  %v6069_v52 = vld [vmem:[#allocation4 + $0xf4] ss:$12 sps:$4 sm:$0xff]   ;;  %v6124_v54 = vld [vmem:[#allocation4 + $0x270] ss:$12 sps:$4 sm:$0xff]  }
 0xdb0   :  { %3742 = vmatpush2.bf16.msra.mxu1 %v6012_v29  ;;  %3836 = vmatmul.mubr.bf16.vlgmr.msra.gmra.mxu0 %v7522_v33  ;;  %v6096_v29 = vld [vmem:[#allocation4 + $0x19c] ss:$12 sps:$4 sm:$0xff]  }
 0xdb1   :  { %3743 = vmatprep.subr.bf16.mxu1 %v6017_v62  ;;  %4824 = vmatpush1.bf16.msra.mxu0 %v6076_v13  ;;  %v6094_v62 = vld [vmem:[#allocation4 + $0x198] ss:$12 sps:$4 sm:$0xff]   ;;  %v6126_v13 = vld [vmem:[#allocation4 + $0x274] ss:$12 sps:$4 sm:$0xff]  }
 0xdb2   :  { %4825 = vmatprep.subr.bf16.mxu0 %v6081_v28 }
 0xdb4   :  { %3744 = vmatpush2.bf16.msra.mxu1 %v6015_v32  ;;  %v6067_v32 = vld [vmem:[#allocation4 + $0xf0] ss:$12 sps:$4 sm:$0xff]  }
 0xdb5   :  { %3745 = vmatprep.subr.bf16.mxu1 %v6020_v31  ;;  %4826 = vmatpush1.bf16.msra.mxu0 %v6079_v24  ;;  %v6072_v31 = vld [vmem:[#allocation4 + $0xdc] ss:$12 sps:$4 sm:$0xff]  }
 0xdb6   :  { %4827 = vmatprep.subr.bf16.mxu0 %v6084_v11 }
 0xdb8   :  { %3746 = vmatpush2.bf16.msra.mxu1 %v6018_v34  ;;  %v6099_v34 = vld [vmem:[#allocation4 + $0x184] ss:$12 sps:$4 sm:$0xff]  }
 0xdb9   :  { %3747 = vmatprep.subr.bf16.mxu1 %v6023_v35  ;;  %4828 = vmatpush1.bf16.msra.mxu0 %v6082_v14  ;;  %v6097_v35 = vld [vmem:[#allocation4 + $0x180] ss:$12 sps:$4 sm:$0xff]  }
 0xdba   :  { %4829 = vmatprep.subr.bf16.mxu0 %v6087_v42 }
 0xdbc   :  { %3748 = vmatpush2.bf16.msra.mxu1 %v6021_v21  ;;  %v6070_v21 = vld [vmem:[#allocation4 + $0xd8] ss:$12 sps:$4 sm:$0xff]  }
 0xdbd   :  { %5760 = vmatprep.subr.bf16.mxu1 %v6305_v1  ;;  %4830 = vmatpush1.bf16.msra.mxu0 %v6085_v59 }
 0xdbe   :  { %4831 = vmatprep.subr.bf16.mxu0 %v6090_v49 }
 0xdbf   :  { %3750 = vmatmul.mubr.bf16.vlgmr.msra.gmra.mxu1 %v7522_v33  ;;  %v6033_v33 = vld [vmem:[#allocation4 + $0x94] ss:$12 sps:$4 sm:$0xff]  }
 0xdc0   :  { %5761 = vmatpush3.bf16.msra.mxu1 %v6024_v60  ;;  %5768 = vmatprep.mubr.msk.bf16.mxu1 %vm6306_vm1, %v6305_v1  ;;  %v6075_v60 = vld [vmem:[#allocation4 + $0xc4] ss:$12 sps:$4 sm:$0xff]  }
 0xdc1   :  { %5762 = vmatprep.subr.bf16.mxu1 %v6305_v1  ;;  %4832 = vmatpush1.bf16.msra.mxu0 %v6088_v16 }
 0xdc2   :  { %4833 = vmatprep.subr.bf16.mxu0 %v6093_v18 }
 0xdc4   :  { %5763 = vmatpush3.bf16.msra.mxu1 %v6025_v58  ;;  %v6102_v58 = vld [vmem:[#allocation4 + $0x2ec] ss:$12 sps:$4 sm:$0xff]  }
 0xdc5   :  { %5764 = vmatprep.subr.bf16.mxu1 %v6305_v1  ;;  %4834 = vmatpush1.bf16.msra.mxu0 %v6091_v20 }
 0xdc6   :  { %4835 = vmatprep.subr.bf16.mxu0 %v6096_v29 }
 0xdc8   :  { %5765 = vmatpush3.bf16.msra.mxu1 %v6026_v44  ;;  %v6100_v44 = vld [vmem:[#allocation4 + $0x2e8] ss:$12 sps:$4 sm:$0xff]  }
 0xdc9   :  { %5766 = vmatprep.subr.bf16.mxu1 %v6305_v1  ;;  %4836 = vmatpush1.bf16.msra.mxu0 %v6094_v62 }
 0xdca   :  { %4837 = vmatprep.subr.bf16.mxu0 %v6099_v34 }
 0xdcc   :  { %5767 = vmatpush3.bf16.msra.mxu1 %v6027_v36  ;;  %v6073_v36 = vld [vmem:[#allocation4 + $0xc0] ss:$12 sps:$4 sm:$0xff]  }
 0xdcd   :  { %4780 = vmatprep.subr.bf16.mxu1 %v6030_v38  ;;  %4838 = vmatpush1.bf16.msra.mxu0 %v6097_v35  ;;  %v6105_v38 = vld [vmem:[#allocation4 + $0x2d4] ss:$12 sps:$4 sm:$0xff]  }
 0xdce   :  { %4839 = vmatprep.subr.bf16.mxu0 %v6102_v58 }
 0xdcf   :  { %5769 = vmatmul.mubr.msk.bf16.vlgmr.msra.gmra.mxu1 %vm87_vm0, %v7520_v30  ;;  %v6045_v30 = vld [vmem:[#allocation4 + $0x34] ss:$12 sps:$4 sm:$0xff]  }
 0xdd0   :  { %4781 = vmatpush1.bf16.msra.mxu1 %v6028_v45  ;;  %v6103_v45 = vld [vmem:[#allocation4 + $0x2d0] ss:$12 sps:$4 sm:$0xff]  }
 0xdd1   :  { %4782 = vmatprep.subr.bf16.mxu1 %v6033_v33  ;;  %4840 = vmatpush2.bf16.msra.mxu0 %v6100_v44  ;;  %v6108_v33 = vld [vmem:[#allocation4 + $0x2bc] ss:$12 sps:$4 sm:$0xff]  }
 0xdd2   :  { %4841 = vmatprep.subr.bf16.mxu0 %v6105_v38 }
 0xdd4   :  { %4783 = vmatpush1.bf16.msra.mxu1 %v6031_v0  ;;  %v6106_v0 = vld [vmem:[#allocation4 + $0x2b8] ss:$12 sps:$4 sm:$0xff]  }
 0xdd5   :  { %4784 = vmatprep.subr.bf16.mxu1 %v6036_v46  ;;  %4842 = vmatpush2.bf16.msra.mxu0 %v6103_v45  ;;  %v6111_v46 = vld [vmem:[#allocation4 + $0x3ac] ss:$12 sps:$4 sm:$0xff]  }
 0xdd6   :  { %4843 = vmatprep.subr.bf16.mxu0 %v6108_v33 }
 0xdd8   :  { %4785 = vmatpush1.bf16.msra.mxu1 %v6034_v47  ;;  %v6114_v47 = vld [vmem:[#allocation4 + $0x2a4] ss:$12 sps:$4 sm:$0xff]  }
 0xdd9   :  { %4786 = vmatprep.subr.bf16.mxu1 %v6039_v5  ;;  %4844 = vmatpush2.bf16.msra.mxu0 %v6106_v0  ;;  %v6112_v5 = vld [vmem:[#allocation4 + $0x2a0] ss:$12 sps:$4 sm:$0xff]  }
 0xdda   :  { %4845 = vmatprep.subr.bf16.mxu0 %v6114_v47 }
 0xddc   :  { %4787 = vmatpush1.bf16.msra.mxu1 %v6037_v48  ;;  %v6120_v48 = vld [vmem:[#allocation4 + $0x28c] ss:$12 sps:$4 sm:$0xff]  }
 0xddd   :  { %4788 = vmatprep.subr.bf16.mxu1 %v6042_v6  ;;  %4846 = vmatpush2.bf16.msra.mxu0 %v6112_v5  ;;  %v6118_v6 = vld [vmem:[#allocation4 + $0x288] ss:$12 sps:$4 sm:$0xff]  }
 0xdde   :  { %4847 = vmatprep.subr.bf16.mxu0 %v6120_v48 }
 0xde0   :  { %4789 = vmatpush1.bf16.msra.mxu1 %v6040_v55  ;;  %v6132_v55 = vld [vmem:[#allocation4 + $0x25c] ss:$12 sps:$4 sm:$0xff]  }
 0xde1   :  { %4790 = vmatprep.subr.bf16.mxu1 %v6045_v30  ;;  %4848 = vmatpush2.bf16.msra.mxu0 %v6118_v6  ;;  %v6130_v30 = vld [vmem:[#allocation4 + $0x258] ss:$12 sps:$4 sm:$0xff]  }
 0xde2   :  { %4849 = vmatprep.subr.bf16.mxu0 %v6126_v13 }
 0xde4   :  { %4791 = vmatpush1.bf16.msra.mxu1 %v6043_v56  ;;  %v6136_v56 = vld [vmem:[#allocation4 + $0x240] ss:$12 sps:$4 sm:$0xff]  }
 0xde5   :  { %4792 = vmatprep.subr.bf16.mxu1 %v6048_v39  ;;  %4850 = vmatpush2.bf16.msra.mxu0 %v6124_v54  ;;  %v6138_v39 = vld [vmem:[#allocation4 + $0x244] ss:$12 sps:$4 sm:$0xff]  }
 0xde6   :  { %4851 = vmatprep.subr.bf16.mxu0 %v6132_v55 }
 0xde8   :  { %4793 = vmatpush1.bf16.msra.mxu1 %v6046_v50  ;;  %v6142_v50 = vld [vmem:[#allocation4 + $0x170] ss:$12 sps:$4 sm:$0xff]  }
 0xde9   :  { %4794 = vmatprep.subr.bf16.mxu1 %v6051_v63  ;;  %4852 = vmatpush2.bf16.msra.mxu0 %v6130_v30  ;;  %v7543_v63 = vld [vmem:[%s7641_s11] sm:$0x1f] }
 0xdea   :  { %4853 = vmatprep.subr.bf16.mxu0 %v6138_v39  ;;  %v3090_v24 = vrot.slane %v7543_v63, %v6617_v9 }
 0xdec   :  { %4795 = vmatpush1.bf16.msra.mxu1 %v6049_v3  ;;  %v3086_v3 = vrot.slane %v7543_v63, %v6626_v12 }
 0xded   :  { %4796 = vmatprep.subr.bf16.mxu1 %v6054_v41  ;;  %4854 = vmatpush2.bf16.msra.mxu0 %v6136_v56 }
 0xdee   :  { %5603 = vmatprep.subr.bf16.mxu0 %v6142_v50 }
 0xdf0   :  { %4797 = vmatpush2.bf16.msra.mxu1 %v6052_v4 }
 0xdf1   :  { %4798 = vmatprep.subr.bf16.mxu1 %v6057_v7 }
 0xdf4   :  { %4799 = vmatpush2.bf16.msra.mxu1 %v6055_v53 }
 0xdf5   :  { %4800 = vmatprep.subr.bf16.mxu1 %v6060_v27 }
 0xdf8   :  { %4801 = vmatpush2.bf16.msra.mxu1 %v6058_v51 }
 0xdf9   :  { %4802 = vmatprep.subr.bf16.mxu1 %v6063_v15 }
 0xdfc   :  { %4803 = vmatpush2.bf16.msra.mxu1 %v6061_v61 }
 0xdfd   :  { %4804 = vmatprep.subr.bf16.mxu1 %v6066_v19 }
 0xe00   :  { %4805 = vmatpush2.bf16.msra.mxu1 %v6064_v25 }
 0xe01   :  { %4806 = vmatprep.subr.bf16.mxu1 %v6069_v52 }
 0xe04   :  { %4807 = vmatpush2.bf16.msra.mxu1 %v6067_v32 }
 0xe05   :  { %4808 = vmatprep.subr.bf16.mxu1 %v6072_v31 }
 0xe08   :  { %4809 = vmatpush2.bf16.msra.mxu1 %v6070_v21 }
 0xe09   :  { %4810 = vmatprep.subr.bf16.mxu1 %v6075_v60 }
 0xe0c   :  { %4811 = vmatpush2.bf16.msra.mxu1 %v6073_v36 }
 0xe0d   :  { %4866 = vmatprep.subr.bf16.mxu1 %v6111_v46 }
 0xe3f   :  { %v3708_v41 = vpop.f32.mrf.mxu1 }
 0xe40   :  { %v3665_v28 = vpop.f32.mrf.mxu0 }
 0xe41   :  { %v3666_v4 = vadd.f32 %v3665_v28, %v3086_v3  ;;  %v3710_v7 = vpop.f32.mrf.mxu1 }
 0xe42   :  { %v3667_v11 = vpop.f32.mrf.mxu0 }
 0xe43   :  { %v3709_v14 = vadd.f32 %v3708_v41, %v3666_v4  ;;  %v3668_v53 = vadd.f32 %v3667_v11, %v3090_v24  ;;  %v3712_v27 = vpop.f32.mrf.mxu1  ;;  %v6109_v11 = vld [vmem:[#allocation4 + $0x3a8] ss:$12 sps:$4 sm:$0xff]  }
 0xe44   :  { %v3669_v42 = vpop.f32.mrf.mxu0 }
 0xe45   :  { %v3895_v59 = vmul.f32 0.044715, %v3709_v14  ;;  %v3711_v51 = vadd.f32 %v3710_v7, %v3668_v53  ;;  %v3670_v15 = vadd.f32 %v3669_v42, %v3086_v3  ;;  %v3714_v20 = vpop.f32.mrf.mxu1  ;;  %v3885_v3 = vmul.f32 0.5, %v3709_v14  ;;  %v6115_v42 = vld [vmem:[#allocation4 + $0x390] ss:$12 sps:$4 sm:$0xff]  }
 0xe46   :  { %v3671_v49 = vpop.f32.mrf.mxu0 }
 0xe47   :  { %v3905_v16 = vmul.f32 %v3895_v59, %v3709_v14  ;;  %v3896_v18 = vmul.f32 0.044715, %v3711_v51  ;;  %v3713_v61 = vadd.f32 %v3712_v27, %v3670_v15  ;;  %v3672_v19 = vadd.f32 %v3671_v49, %v3090_v24  ;;  %v6117_v27 = vld [vmem:[#allocation4 + $0x394] ss:$12 sps:$4 sm:$0xff]   ;;  %v6121_v59 = vld [vmem:[#allocation4 + $0x378] ss:$12 sps:$4 sm:$0xff]  }
 0xe48   :  { %v3886_v56 = vmul.f32 0.5, %v3711_v51  ;;  %v6127_v49 = vld [vmem:[#allocation4 + $0x360] ss:$12 sps:$4 sm:$0xff]  }
 0xe49   :  { %v3915_v25 = vmul.f32 %v3905_v16, %v3709_v14  ;;  %v3906_v52 = vmul.f32 %v3896_v18, %v3711_v51  ;;  %v3900_v29 = vmul.f32 0.044715, %v3713_v61  ;;  %v3715_v62 = vadd.f32 %v3714_v20, %v3672_v19  ;;  %v6135_v16 = vld [vmem:[#allocation4 + $0x34c] ss:$12 sps:$4 sm:$0xff]   ;;  %v6141_v19 = vld [vmem:[#allocation4 + $0x334] ss:$12 sps:$4 sm:$0xff]  }
 0xe4a   :  { %v3890_v55 = vmul.f32 0.5, %v3713_v61 }
 0xe4b   :  { %v3925_v32 = vadd.f32 %v3915_v25, %v3709_v14  ;;  %v3910_v31 = vmul.f32 %v3900_v29, %v3713_v61  ;;  %v3901_v34 = vmul.f32 0.044715, %v3715_v62  ;;  %v3916_v35 = vmul.f32 %v3906_v52, %v3711_v51  ;;  %v6123_v14 = vld [vmem:[#allocation4 + $0x37c] ss:$12 sps:$4 sm:$0xff]  }
 0xe4c   :  { %v3891_v39 = vmul.f32 0.5, %v3715_v62  ;;  %v6139_v25 = vld [vmem:[#allocation4 + $0x330] ss:$12 sps:$4 sm:$0xff]  }
 0xe4d   :  { %v3920_v21 = vmul.f32 %v3910_v31, %v3713_v61  ;;  %v3911_v60 = vmul.f32 %v3901_v34, %v3715_v62  ;;  %v3935_v58 = vmul.f32 0.7978846, %v3925_v32  ;;  %v3926_v44 = vadd.f32 %v3916_v35, %v3711_v51  ;;  %v6129_v51 = vld [vmem:[#allocation4 + $0x364] ss:$12 sps:$4 sm:$0xff]   ;;  %v6146_v52 = vld [vmem:[#allocation4 + $0x31c] ss:$12 sps:$4 sm:$0xff]  }
 0xe4e   :  { %v6144_v34 = vld [vmem:[#allocation4 + $0x318] ss:$12 sps:$4 sm:$0xff]  }
 0xe4f   :  { %v3930_v36 = vadd.f32 %v3920_v21, %v3713_v61  ;;  %v3921_v38 = vmul.f32 %v3911_v60, %v3715_v62  ;;  %v3936_v45 = vmul.f32 0.7978846, %v3926_v44  ;;  %6228 = vtanh.f32 %v3935_v58  ;;  %v6133_v61 = vld [vmem:[#allocation4 + $0x348] ss:$12 sps:$4 sm:$0xff]   ;;  %v6151_v21 = vld [vmem:[#allocation4 + $0x304] ss:$12 sps:$4 sm:$0xff]  }
 0xe50   :  { %v3794_v15 = vpop.f32.mrf.mxu0 }
 0xe51   :  { %v3931_v33 = vadd.f32 %v3921_v38, %v3715_v62  ;;  %v3940_v0 = vmul.f32 0.7978846, %v3930_v36  ;;  %6230 = vtanh.f32 %v3936_v45  ;;  %v3098_v62 = vrot.slane %v7543_v63, %v357_v57  ;;  %v6149_v45 = vld [vmem:[#allocation4 + $0x300] ss:$12 sps:$4 sm:$0xff]  }
 0xe52   :  { %v3796_v18 = vpop.f32.mrf.mxu0 }
 0xe53   :  { %v3941_v46 = vmul.f32 0.7978846, %v3931_v33  ;;  %6232 = vtanh.f32 %v3940_v0 }
 0xe54   :  { %v3798_v20 = vpop.f32.mrf.mxu0 }
 0xe55   :  { %6234 = vtanh.f32 %v3941_v46  ;;  %v6154_v46 = vld [vmem:[#allocation4 + $0x2f0] ss:$12 sps:$4 sm:$0xff]  }
 0xe56   :  { %v3800_v29 = vpop.f32.mrf.mxu0 }
 0xe5c   :  { %v6229_v47 = vpop.eup %6228 }
 0xe5d   :  { %v3955_v30 = vadd.f32 1.0, %v6229_v47 }
 0xe5e   :  { %v6231_v5 = vpop.eup %6230 }
 0xe5f   :  { %v3956_v6 = vadd.f32 1.0, %v6231_v5  ;;  %v3965_v4 = vmul.f32 %v3955_v30, %v3885_v3 }
 0xe60   :  { %v6233_v48 = vpop.eup %6232 }
 0xe61   :  { %v3960_v13 = vadd.f32 1.0, %v6233_v48  ;;  %v3966_v24 = vmul.f32 %v3956_v6, %v3886_v56 }
 0xe62   :  { %v6235_v54 = vpop.eup %6234 }
 0xe63   :  { %v3961_v50 = vadd.f32 1.0, %v6235_v54  ;;  %v3970_v41 = vmul.f32 %v3960_v13, %v3890_v55 }
 0xe65   :  { %v3971_v28 = vmul.f32 %v3961_v50, %v3891_v39  ;;  %v7551_v53 = vpack.c.bf16 %v3970_v41, %v3965_v4  ;;  %v3102_v50 = vrot.slane %v7543_v63, %v361_v23 }
 0xe67   :  { %v7549_v7 = vpack.c.bf16 %v3971_v28, %v3966_v24 }
 0xe69   :  { %4812 = vmatprep.mubr.bf16.mxu1 %v7549_v7 }
 0xe6a   :  { %4813 = vmatmul.mubr.bf16.vlgmr.msra.gmra.mxu1 %v7551_v53 }
 0xe6b   :  { %4867 = vmatpush1.bf16.msra.mxu1 %v6109_v11  ;;  %4898 = vmatprep.mubr.bf16.mxu1 %v6304_v22  ;;  %v3094_v22 = vrot.slane %v7543_v63, %v6620_v10 }
 0xe6c   :  { %4868 = vmatprep.subr.bf16.mxu1 %v6117_v27 }
 0xe6f   :  { %4869 = vmatpush1.bf16.msra.mxu1 %v6115_v42 }
 0xe70   :  { %4870 = vmatprep.subr.bf16.mxu1 %v6123_v14  ;;  %v5592_v32 = vpop.f32.mrf.mxu0 }
 0xe72   :  { %v5593_v36 = vpop.f32.mrf.mxu0 }
 0xe73   :  { %4871 = vmatpush1.bf16.msra.mxu1 %v6121_v59  ;;  %v5594_v3 = vadd.f32 %v5593_v36, %v5592_v32 }
 0xe74   :  { %4872 = vmatprep.subr.bf16.mxu1 %v6129_v51  ;;  %v5595_v54 = vpop.f32.mrf.mxu0 }
 0xe76   :  { %v5596_v4 = vpop.f32.mrf.mxu0 }
 0xe77   :  { %4873 = vmatpush1.bf16.msra.mxu1 %v6127_v49  ;;  %v5597_v51 = vadd.f32 %v5596_v4, %v5595_v54  ;;  %v3838_v49 = vadd.f32 %v5594_v3, %v3102_v50  ;;  %v6143_v4 = vld [vmem:[#allocation4 + $0xb0] ss:$12 sps:$4 sm:$0xff]  }
 0xe78   :  { %4874 = vmatprep.subr.bf16.mxu1 %v6135_v16 }
 0xe7b   :  { %4875 = vmatpush1.bf16.msra.mxu1 %v6133_v61 }
 0xe7c   :  { %4876 = vmatprep.subr.bf16.mxu1 %v6141_v19 }
 0xe7f   :  { %v3751_v31 = vpop.f32.mrf.mxu1  ;;  %4877 = vmatpush1.bf16.msra.mxu1 %v6139_v25  ;;  %v3841_v25 = vadd.f32 %v5597_v51, %v3102_v50 }
 0xe80   :  { %v3752_v35 = vadd.f32 %v3751_v31, %v3094_v22  ;;  %4878 = vmatprep.subr.bf16.mxu1 %v6146_v52 }
 0xe81   :  { %v3753_v60 = vpop.f32.mrf.mxu1 }
 0xe82   :  { %v7561_v58 = vadd.f32 %v3794_v15, %v3752_v35  ;;  %v3754_v44 = vadd.f32 %v3753_v60, %v3098_v62 }
 0xe83   :  { %v3755_v38 = vpop.f32.mrf.mxu1  ;;  %4879 = vmatpush1.bf16.msra.mxu1 %v6144_v34 }
 0xe84   :  { %v3897_v33 = vmul.f32 0.044715, %v7561_v58  ;;  %v7564_v0 = vadd.f32 %v3796_v18, %v3754_v44  ;;  %v3756_v57 = vadd.f32 %v3755_v38, %v3094_v22  ;;  %4880 = vmatprep.subr.bf16.mxu1 %v6151_v21 }
 0xe85   :  { %v3757_v47 = vpop.f32.mrf.mxu1 }
 0xe86   :  { %v3907_v5 = vmul.f32 %v3897_v33, %v7561_v58  ;;  %v3898_v48 = vmul.f32 0.044715, %v7564_v0  ;;  %v3799_v6 = vadd.f32 %v3798_v20, %v3756_v57  ;;  %v3758_v13 = vadd.f32 %v3757_v47, %v3098_v62 }
 0xe87   :  { %4881 = vmatpush1.bf16.msra.mxu1 %v6149_v45  ;;  %v3888_v54 = vmul.f32 0.5, %v7564_v0 }
 0xe88   :  { %v3917_v55 = vmul.f32 %v3907_v5, %v7561_v58  ;;  %v3908_v30 = vmul.f32 %v3898_v48, %v7564_v0  ;;  %v3902_v56 = vmul.f32 0.044715, %v3799_v6  ;;  %v3801_v39 = vadd.f32 %v3800_v29, %v3758_v13  ;;  %5625 = vmatprep.subr.bf16.mxu1 %v6154_v46 }
 0xe89   :  { %v3892_v48 = vmul.f32 0.5, %v3799_v6 }
 0xe8a   :  { %v3927_v41 = vadd.f32 %v3917_v55, %v7561_v58  ;;  %v3912_v24 = vmul.f32 %v3902_v56, %v3799_v6  ;;  %v3903_v28 = vmul.f32 0.044715, %v3801_v39  ;;  %v3918_v11 = vmul.f32 %v3908_v30, %v7564_v0 }
 0xe8b   :  { %v3893_v55 = vmul.f32 0.5, %v3801_v39  ;;  %v3887_v56 = vmul.f32 0.5, %v7561_v58 }
 0xe8c   :  { %v3922_v27 = vmul.f32 %v3912_v24, %v3799_v6  ;;  %v3913_v42 = vmul.f32 %v3903_v28, %v3801_v39  ;;  %v3937_v14 = vmul.f32 0.7978846, %v3927_v41  ;;  %v3928_v59 = vadd.f32 %v3918_v11, %v7564_v0  ;;  %v6148_v0 = vld [vmem:[#allocation4 + $0x98] ss:$12 sps:$4 sm:$0xff]  }
 0xe8e   :  { %v3932_v15 = vadd.f32 %v3922_v27, %v3799_v6  ;;  %v3923_v16 = vmul.f32 %v3913_v42, %v3801_v39  ;;  %v3938_v18 = vmul.f32 0.7978846, %v3928_v59  ;;  %6236 = vtanh.f32 %v3937_v14  ;;  %v6147_v27 = vld [vmem:[#allocation4 + $0x158] ss:$12 sps:$4 sm:$0xff]   ;;  %v6152_v6 = vld [vmem:[#allocation4 + $0x140] ss:$12 sps:$4 sm:$0xff]  }
 0xe8f   :  { %v3878_v8 = vpop.f32.mrf.mxu1  ;;  %v6153_v14 = vld [vmem:[#allocation4 + $0x80] ss:$12 sps:$4 sm:$0xff]  }
 0xe90   :  { %v3879_v23 = vadd.f32 %v3878_v8, %v3838_v49  ;;  %v3933_v63 = vadd.f32 %v3923_v16, %v3801_v39  ;;  %v3942_v61 = vmul.f32 0.7978846, %v3932_v15  ;;  %6238 = vtanh.f32 %v3938_v18  ;;  %v6155_v49 = vld [vmem:[#allocation4 + $0x128] ss:$12 sps:$4 sm:$0xff]   ;;  %v6156_v18 = vld [vmem:[#allocation4 + $0x230] ss:$12 sps:$4 sm:$0xff]  }
 0xe91   :  { %v5770_v19 = vpop.f32.mrf.mxu1 }
 0xe92   :  { %v3899_v20 = vmul.f32 0.044715, %v3879_v23  ;;  %v3943_v22 = vmul.f32 0.7978846, %v3933_v63  ;;  %6240 = vtanh.f32 %v3942_v61  ;;  %v3889_v59 = vmul.f32 0.5, %v3879_v23 }
 0xe93   :  { %v3881_v52 = vpop.f32.mrf.mxu1  ;;  %v6157_v61 = vld [vmem:[#allocation4 + $0x68] ss:$12 sps:$4 sm:$0xff]   ;;  %v6159_v19 = vld [vmem:[#allocation4 + $0x110] ss:$12 sps:$4 sm:$0xff]  }
 0xe94   :  { %v3909_v29 = vmul.f32 %v3899_v20, %v3879_v23  ;;  %v3882_v62 = vadd.f32 %v3881_v52, %v3841_v25  ;;  %6242 = vtanh.f32 %v3943_v22  ;;  %v6160_v20 = vld [vmem:[#allocation4 + $0x218] ss:$12 sps:$4 sm:$0xff]   ;;  %v6162_v25 = vld [vmem:[#allocation4 + $0x2c0] ss:$12 sps:$4 sm:$0xff]  }
 0xe95   :  { %v5771_v32 = vpop.f32.mrf.mxu1  ;;  %v6163_v22 = vld [vmem:[#allocation4 + $0xf8] ss:$12 sps:$4 sm:$0xff]   ;;  %v6164_v52 = vld [vmem:[#allocation4 + $0x200] ss:$12 sps:$4 sm:$0xff]  }
 0xe96   :  { %v3919_v31 = vmul.f32 %v3909_v29, %v3879_v23  ;;  %v3904_v34 = vmul.f32 0.044715, %v3882_v62  ;;  %v3894_v51 = vmul.f32 0.5, %v3882_v62  ;;  %v6165_v29 = vld [vmem:[#allocation4 + $0x38] ss:$12 sps:$4 sm:$0xff]  }
 0xe97   :  { %v6167_v32 = vld [vmem:[#allocation4 + $0xe0] ss:$12 sps:$4 sm:$0xff]  }
 0xe98   :  { %v3929_v35 = vadd.f32 %v3919_v31, %v3879_v23  ;;  %v3914_v21 = vmul.f32 %v3904_v34, %v3882_v62  ;;  %v6161_v23 = vld [vmem:[#allocation4 + $0x50] ss:$12 sps:$4 sm:$0xff]   ;;  %v6168_v31 = vld [vmem:[#allocation4 + $0x1e8] ss:$12 sps:$4 sm:$0xff]   ;;  %v6169_v34 = vld [vmem:[#allocation4 + $0x20] ss:$12 sps:$4 sm:$0xff]  }
 0xe9a   :  { %v3939_v60 = vmul.f32 0.7978846, %v3929_v35  ;;  %v3924_v44 = vmul.f32 %v3914_v21, %v3882_v62  ;;  %v6170_v35 = vld [vmem:[#allocation4 + $0x290] ss:$12 sps:$4 sm:$0xff]   ;;  %v6171_v21 = vld [vmem:[#allocation4 + $0xc8] ss:$12 sps:$4 sm:$0xff]  }
 0xe9b   :  { %v6237_v38 = vpop.eup %6236 }
 0xe9c   :  { %6244 = vtanh.f32 %v3939_v60  ;;  %v3934_v36 = vadd.f32 %v3924_v44, %v3882_v62  ;;  %v3957_v13 = vadd.f32 1.0, %v6237_v38  ;;  %v6166_v62 = vld [vmem:[#allocation4 + $0x2a8] ss:$12 sps:$4 sm:$0xff]   ;;  %v6172_v60 = vld [vmem:[#allocation4 + $0x1d0] ss:$12 sps:$4 sm:$0xff]  }
 0xe9d   :  { %v6239_v45 = vpop.eup %6238  ;;  %v6173_v44 = vld [vmem:[#allocation4 + $0x8] ss:$12 sps:$4 sm:$0xff]   ;;  %v6175_v38 = vld [vmem:[#allocation4 + $0x1b8] ss:$12 sps:$4 sm:$0xff]  }
 0xe9e   :  { %v3944_v33 = vmul.f32 0.7978846, %v3934_v36  ;;  %v3958_v46 = vadd.f32 1.0, %v6239_v45  ;;  %v3967_v24 = vmul.f32 %v3957_v13, %v3887_v56  ;;  %v6174_v36 = vld [vmem:[#allocation4 + $0x278] ss:$12 sps:$4 sm:$0xff]  }
 0xe9f   :  { %v6241_v57 = vpop.eup %6240  ;;  %v6176_v45 = vld [vmem:[#allocation4 + $0x3b0] ss:$12 sps:$4 sm:$0xff]  }
 0xea0   :  { %6246 = vtanh.f32 %v3944_v33  ;;  %v3962_v47 = vadd.f32 1.0, %v6241_v57  ;;  %v3968_v3 = vmul.f32 %v3958_v46, %v3888_v54  ;;  %v6177_v33 = vld [vmem:[#allocation4 + $0x260] ss:$12 sps:$4 sm:$0xff]   ;;  %v6179_v46 = vld [vmem:[#allocation4 + $0x398] ss:$12 sps:$4 sm:$0xff]  }
 0xea1   :  { %v6243_v5 = vpop.eup %6242  ;;  %v6178_v57 = vld [vmem:[#allocation4 + $0x1a0] ss:$12 sps:$4 sm:$0xff]   ;;  %v6184_v13 = vld [vmem:[#allocation4 + $0x350] ss:$12 sps:$4 sm:$0xff]   ;;  %v6185_v54 = vld [vmem:[#allocation4 + $0x338] ss:$12 sps:$4 sm:$0xff]  }
 0xea2   :  { %v3963_v30 = vadd.f32 1.0, %v6243_v5  ;;  %v3972_v50 = vmul.f32 %v3962_v47, %v3892_v48  ;;  %v6180_v47 = vld [vmem:[#allocation4 + $0x248] ss:$12 sps:$4 sm:$0xff]   ;;  %v6182_v48 = vld [vmem:[#allocation4 + $0x380] ss:$12 sps:$4 sm:$0xff]  }
 0xea3   :  { %v6181_v5 = vld [vmem:[#allocation4 + $0x188] ss:$12 sps:$4 sm:$0xff]  }
 0xea4   :  { %v3973_v41 = vmul.f32 %v3963_v30, %v3893_v55  ;;  %v7578_v11 = vpack.c.bf16 %v3972_v50, %v3967_v24  ;;  %v6186_v55 = vld [vmem:[#allocation4 + $0x320] ss:$12 sps:$4 sm:$0xff]   ;;  %v6187_v30 = vld [vmem:[#allocation4 + $0x308] ss:$12 sps:$4 sm:$0xff]  }
 0xea6   :  { %v3978_v28 = vpack.c.bf16 %v3973_v41, %v3968_v3 }
 0xea8   :  { %4855 = vmatprep.mubr.bf16.mxu0 %v3978_v28 }
 0xea9   :  { %v6245_v42 = vpop.eup %6244  ;;  %4856 = vmatmul.mubr.bf16.vlgmr.msra.gmra.mxu0 %v7578_v11 }
 0xeaa   :  { %5604 = vmatpush3.bf16.msra.mxu0 %v6143_v4  ;;  %4941 = vmatprep.mubr.bf16.mxu0 %v7549_v7  ;;  %v3959_v58 = vadd.f32 1.0, %v6245_v42  ;;  %v6158_v7 = vld [vmem:[#allocation4 + $0x2d8] ss:$12 sps:$4 sm:$0xff]  }
 0xeab   :  { %5605 = vmatprep.subr.bf16.mxu0 %v6147_v27 }
 0xeac   :  { %v3969_v16 = vmul.f32 %v3959_v58, %v3889_v59 }
 0xead   :  { %v6247_v39 = vpop.eup %6246 }
 0xeae   :  { %5606 = vmatpush3.bf16.msra.mxu0 %v6148_v0  ;;  %v3964_v15 = vadd.f32 1.0, %v6247_v39 }
 0xeaf   :  { %5607 = vmatprep.subr.bf16.mxu0 %v6152_v6 }
 0xeb0   :  { %v3974_v8 = vmul.f32 %v3964_v15, %v3894_v51 }
 0xeb2   :  { %5608 = vmatpush3.bf16.msra.mxu0 %v6153_v14  ;;  %v7582_v63 = vpack.c.bf16 %v3974_v8, %v3969_v16 }
 0xeb3   :  { %5609 = vmatprep.subr.bf16.mxu0 %v6155_v49 }
 0xeb4   :  { %4899 = vmatmul.mubr.bf16.vlgmr.msra.gmra.mxu1 %v7582_v63 }
 0xeb5   :  { %5626 = vmatpush3.bf16.msra.mxu1 %v6156_v18  ;;  %4982 = vmatprep.mubr.bf16.mxu1 %v3978_v28 }
 0xeb6   :  { %5610 = vmatpush3.bf16.msra.mxu0 %v6157_v61  ;;  %5627 = vmatprep.subr.bf16.mxu1 %v6158_v7 }
 0xeb7   :  { %5611 = vmatprep.subr.bf16.mxu0 %v6159_v19 }
 0xeb9   :  { %5628 = vmatpush3.bf16.msra.mxu1 %v6160_v20 }
 0xeba   :  { %5612 = vmatpush3.bf16.msra.mxu0 %v6161_v23  ;;  %5629 = vmatprep.subr.bf16.mxu1 %v6162_v25 }
 0xebb   :  { %5613 = vmatprep.subr.bf16.mxu0 %v6163_v22 }
 0xebd   :  { %5630 = vmatpush3.bf16.msra.mxu1 %v6164_v52 }
 0xebe   :  { %5614 = vmatpush3.bf16.msra.mxu0 %v6165_v29  ;;  %5631 = vmatprep.subr.bf16.mxu1 %v6166_v62 }
 0xebf   :  { %5615 = vmatprep.subr.bf16.mxu0 %v6167_v32 }
 0xec1   :  { %5632 = vmatpush3.bf16.msra.mxu1 %v6168_v31 }
 0xec2   :  { %5616 = vmatpush3.bf16.msra.mxu0 %v6169_v34  ;;  %5633 = vmatprep.subr.bf16.mxu1 %v6170_v35 }
 0xec3   :  { %5617 = vmatprep.subr.bf16.mxu0 %v6171_v21 }
 0xec5   :  { %5634 = vmatpush3.bf16.msra.mxu1 %v6172_v60 }
 0xec6   :  { %5618 = vmatpush3.bf16.msra.mxu0 %v6173_v44  ;;  %5635 = vmatprep.subr.bf16.mxu1 %v6174_v36 }
 0xec7   :  { %5772 = vmatprep.subr.bf16.mxu0 %v6305_v1 }
 0xec9   :  { %4942 = vmatmul.mubr.bf16.vlgmr.msra.gmra.mxu0 %v7551_v53  ;;  %5636 = vmatpush3.bf16.msra.mxu1 %v6175_v38  ;;  %v6183_v53 = vld [vmem:[#allocation4 + $0x368] ss:$12 sps:$4 sm:$0xff]  }
 0xeca   :  { %5773 = vmatpush3.bf16.msra.mxu0 %v6176_v45  ;;  %5637 = vmatprep.subr.bf16.mxu1 %v6177_v33 }
 0xecb   :  { %5774 = vmatprep.subr.bf16.mxu0 %v6305_v1  ;;  %5788 = vmatprep.mubr.msk.bf16.mxu0 %vm6306_vm1, %v6305_v1 }
 0xecd   :  { %5638 = vmatpush3.bf16.msra.mxu1 %v6178_v57 }
 0xece   :  { %5775 = vmatpush3.bf16.msra.mxu0 %v6179_v46  ;;  %5639 = vmatprep.subr.bf16.mxu1 %v6180_v47 }
 0xecf   :  { %5776 = vmatprep.subr.bf16.mxu0 %v6305_v1 }
 0xed1   :  { %5640 = vmatpush3.bf16.msra.mxu1 %v6181_v5 }
 0xed2   :  { %5777 = vmatpush3.bf16.msra.mxu0 %v6182_v48 }
 0xed3   :  { %5778 = vmatprep.subr.bf16.mxu0 %v6305_v1 }
 0xed4   :  { %4983 = vmatmul.mubr.bf16.vlgmr.msra.gmra.mxu1 %v7578_v11  ;;  %v5038_v11 = vld [vmem:[%s7643_s13] sm:$0x7] }
 0xed5   :  { %v5047_v15 = vrot.slane %v5038_v11, %v6617_v9  ;;  %v5051_v44 = vrot.slane %v5038_v11, %v6620_v10 }
 0xed6   :  { %5779 = vmatpush3.bf16.msra.mxu0 %v6183_v53 }
 0xed7   :  { %5780 = vmatprep.subr.bf16.mxu0 %v6305_v1 }
 0xeda   :  { %5781 = vmatpush3.bf16.msra.mxu0 %v6184_v13 }
 0xedb   :  { %5782 = vmatprep.subr.bf16.mxu0 %v6305_v1 }
 0xede   :  { %5783 = vmatpush3.bf16.msra.mxu0 %v6185_v54 }
 0xedf   :  { %5784 = vmatprep.subr.bf16.mxu0 %v6305_v1 }
 0xee2   :  { %5785 = vmatpush3.bf16.msra.mxu0 %v6186_v55 }
 0xee3   :  { %5786 = vmatprep.subr.bf16.mxu0 %v6305_v1  ;;  %v5043_v1 = vrot.slane %v5038_v11, %v6626_v12 }
 0xee6   :  { %5787 = vmatpush3.bf16.msra.mxu0 %v6187_v30 }
 0xee9   :  { %5789 = vmatmul.mubr.bf16.vlgmr.msra.gmra.mxu0 %v7582_v63 }
 0xf2a   :  { %v4814_v56 = vpop.f32.mrf.mxu1 }
 0xf2c   :  { %v4816_v50 = vpop.f32.mrf.mxu1 }
 0xf2e   :  { %v4818_v41 = vpop.f32.mrf.mxu1 }
 0xf30   :  { %v4820_v28 = vpop.f32.mrf.mxu1 }
 0xf69   :  { %v4857_v3 = vpop.f32.mrf.mxu0 }
 0xf6a   :  { %v4858_v27 = vadd.f32 %v4857_v3, %v4814_v56 }
 0xf6b   :  { %v4859_v24 = vpop.f32.mrf.mxu0 }
 0xf6c   :  { %v4860_v0 = vadd.f32 %v4859_v24, %v4816_v50 }
 0xf6d   :  { %v4861_v4 = vpop.f32.mrf.mxu0 }
 0xf6e   :  { %v4862_v14 = vadd.f32 %v4861_v4, %v4818_v41 }
 0xf6f   :  { %v4863_v58 = vpop.f32.mrf.mxu0 }
 0xf70   :  { %v4864_v16 = vadd.f32 %v4863_v58, %v4820_v28 }
 0xf74   :  { %v4900_v42 = vpop.f32.mrf.mxu1 }
 0xf75   :  { %v4901_v6 = vadd.f32 %v4900_v42, %v4858_v27 }
 0xf76   :  { %v4902_v39 = vpop.f32.mrf.mxu1 }
 0xf77   :  { %v5032_v59 = vadd.f32 %v4901_v6, %v7442_v2  ;;  %v4903_v51 = vadd.f32 %v4902_v39, %v4860_v0 }
 0xf78   :  { %v4904_v49 = vpop.f32.mrf.mxu1 }
 0xf79   :  { %v5055_v8 = vadd.f32 %v5043_v1, %v5032_v59  ;;  %v5033_v18 = vadd.f32 %v4903_v51, %v7444_v37  ;;  %v4905_v63 = vadd.f32 %v4904_v49, %v4862_v14 }
 0xf7a   :  { %v4906_v61 = vpop.f32.mrf.mxu1 }
 0xf7b   :  { %5061 = vst [vmem:[%s7644_s14] sm:$0xff] %v5055_v8  ;;  %v5056_v12 = vadd.f32 %v5047_v15, %v5033_v18  ;;  %v5035_v7 = vadd.f32 %v4905_v63, %v7462_v26  ;;  %v4907_v19 = vadd.f32 %v4906_v61, %v4864_v16 }
 0xf7d   :  { %5062 = vst [vmem:[%s7644_s14 + $0x8] sm:$0xff] %v5056_v12  ;;  %v5058_v9 = vadd.f32 %v5043_v1, %v5035_v7  ;;  %v5036_v2 = vadd.f32 %v4907_v19, %v7464_v40 }
 0xf7f   :  { %5064 = vst [vmem:[%s7644_s14 + $0x18] sm:$0xff] %v5058_v9  ;;  %v5059_v37 = vadd.f32 %v5047_v15, %v5036_v2 }
 0xf81   :  { %5065 = vst [vmem:[%s7644_s14 + $0x20] sm:$0xff] %v5059_v37 }
 0xf89   :  { %v5619_v23 = vpop.f32.mrf.mxu0 }
 0xf8b   :  { %v5620_v25 = vpop.f32.mrf.mxu0 }
 0xf8c   :  { %v5621_v32 = vadd.f32 %v5620_v25, %v5619_v23 }
 0xf8d   :  { %v5622_v52 = vpop.f32.mrf.mxu0 }
 0xf8f   :  { %v5623_v31 = vpop.f32.mrf.mxu0 }
 0xf90   :  { %v5624_v21 = vadd.f32 %v5623_v31, %v5622_v52 }
 0xf94   :  { %v5641_v20 = vpop.f32.mrf.mxu1 }
 0xf96   :  { %v5642_v26 = vpop.f32.mrf.mxu1 }
 0xf97   :  { %v5643_v29 = vadd.f32 %v5642_v26, %v5641_v20 }
 0xf98   :  { %v5644_v22 = vpop.f32.mrf.mxu1 }
 0xf99   :  { %v4985_v34 = vadd.f32 %v5643_v29, %v5621_v32 }
 0xf9a   :  { %v5645_v62 = vpop.f32.mrf.mxu1 }
 0xf9b   :  { %v5646_v40 = vadd.f32 %v5645_v62, %v5644_v22 }
 0xf9d   :  { %v4988_v45 = vadd.f32 %v5646_v40, %v5624_v21 }
 0xfa9   :  { %v5025_v35 = vpop.f32.mrf.mxu0 }
 0xfaa   :  { %v5026_v60 = vadd.f32 %v5025_v35, %v4985_v34 }
 0xfab   :  { %v5790_v36 = vpop.f32.mrf.mxu0 }
 0xfac   :  { %v5034_v38 = vadd.f32 %v5026_v60, %v7439_v43 }
 0xfad   :  { %v5028_v33 = vpop.f32.mrf.mxu0 }
 0xfae   :  { %v5057_v57 = vadd.f32 %v5051_v44, %v5034_v38  ;;  %v5029_v46 = vadd.f32 %v5028_v33, %v4988_v45 }
 0xfaf   :  { %v5791_v47 = vpop.f32.mrf.mxu0 }
 0xfb0   :  { %5063 = vst.msk [vmem:[%s7644_s14 + $0x10] sm:$0xff] %vm87_vm0, %v5057_v57  ;;  %v5037_v5 = vadd.f32 %v5029_v46, %v7458_v17 }
 0xfb2   :  { %v5060_v48 = vadd.f32 %v5051_v44, %v5037_v5 }
 0xfb4   :  { %5066 = vst.msk [vmem:[%s7644_s14 + $0x28] sm:$0xff] %vm87_vm0, %v5060_v48 }
 0xfb5   :  { %5071 = vsyncpa [#allocation3], 1 }
 0xfb6   :  { %5072 = vsyncpa [#allocation5], 1 }

// kernel: transformer_denoiser_forward.7
= control target key start
LH: loop header
LB: loop body
LE: loop exit
PB: predicated region body
PF: predicated region fallthrough
CT: control target
= control target key end

     0   :  { %s8352_s0 = inlined_call_operand.vmem [shape: f32[16,320], index: 0, kind: input, shape index: {}]   ;;  %s8353_s1 = inlined_call_operand.vmem [shape: f32[16,16], index: 1, kind: input, shape index: {}]   ;;  %s8354_s2 = inlined_call_operand.vmem [shape: f32[1,320], index: 2, kind: input, shape index: {}, may-alias: {2,8,14}]   ;;  %s8355_s3 = inlined_call_operand.vmem [shape: f32[1,320], index: 3, kind: input, shape index: {}, may-alias: {3,7,9,13,15}]   ;;  %s8356_s4 = inlined_call_operand.vmem [shape: bf16[320,960], index: 4, kind: input, shape index: {}]   ;;  %s8357_s5 = inlined_call_operand.vmem [shape: f32[1,960], index: 5, kind: input, shape index: {}]   ;;  %s8358_s6 = inlined_call_operand.vmem [shape: bf16[320,320], index: 6, kind: input, shape index: {}]   ;;  %s8359_s7 = inlined_call_operand.vmem [shape: f32[1,320], index: 7, kind: input, shape index: {}, may-alias: {3,7,9,13,15}]   ;;  %s8360_s8 = inlined_call_operand.vmem [shape: f32[1,320], index: 8, kind: input, shape index: {}, may-alias: {2,8,14}]   ;;  %s8361_s9 = inlined_call_operand.vmem [shape: f32[1,320], index: 9, kind: input, shape index: {}, may-alias: {3,7,9,13,15}]   ;;  %s8362_s10 = inlined_call_operand.vmem [shape: bf16[320,640], index: 10, kind: input, shape index: {}]   ;;  %s8363_s11 = inlined_call_operand.vmem [shape: f32[1,640], index: 11, kind: input, shape index: {}]   ;;  %s8364_s12 = inlined_call_operand.vmem [shape: bf16[640,320], index: 12, kind: input, shape index: {}]   ;;  %s8365_s13 = inlined_call_operand.vmem [shape: f32[1,320], index: 13, kind: input, shape index: {}, may-alias: {3,7,9,13,15}]   ;;  %s8366_s14 = inlined_call_operand.vmem [shape: f32[1,320], index: 14, kind: input, shape index: {}, may-alias: {2,8,14}]   ;;  %s8367_s15 = inlined_call_operand.vmem [shape: f32[1,320], index: 15, kind: input, shape index: {}, may-alias: {3,7,9,13,15}]   ;;  %s8368_s16 = inlined_call_operand.hbm [shape: f32[16,320], index: 16, kind: output, shape index: {}]  }
   0x1   :  { %8370 = sst [smem:[#allocation5_spill]] %s8352_s0 }
   0x2   :  { %s8371_s23 = sld [smem:[#allocation5_spill]]  ;;  %vm66_vm0 = vcmask 523264   ;;  %v216_v12 = vld [vmem:[%s8356_s4 + $0x1c0] sm:$0xff] }
   0x3   :  { %v220_v13 = vld [vmem:[%s8356_s4 + $0x1e0] sm:$0xff] }
   0x4   :  { %v208_v14 = vld [vmem:[%s8356_s4 + $0x180] sm:$0xff]  ;;  %v5211_v15 = vcombine.high %v216_v12, %v220_v13  ;;  %v5210_v16 = vcombine.low %v216_v12, %v220_v13 }
   0x5   :  { %v212_v17 = vld [vmem:[%s8356_s4 + $0x1a0] sm:$0xff] }
   0x6   :  { %v5203_v18 = vcombine.high %v208_v14, %v212_v17  ;;  %v200_v19 = vld [vmem:[%s8356_s4 + $0x140] sm:$0xff]  ;;  %1165 = vmatprep.subr.bf16.mxu0 %v5211_v15  ;;  %v5202_v21 = vcombine.low %v208_v14, %v212_v17 }
   0x7   :  { %v204_v20 = vld [vmem:[%s8356_s4 + $0x160] sm:$0xff]  ;;  %1166 = vmatpush1.bf16.msra.mxu0 %v5210_v16 }
   0x8   :  { %v6459_v0 = vld [vmem:[%s8371_s23] sm:$0xff]  ;;  %v6464_v1 = vld [vmem:[%s8371_s23 + $0x8] sm:$0xff]  ;;  %v6469_v2 = vld [vmem:[%s8371_s23 + $0x10] sm:$0xff]  ;;  %1167 = vmatprep.subr.bf16.mxu0 %v5203_v18  ;;  %v5195_v22 = vcombine.high %v200_v19, %v204_v20  ;;  %v5194_v25 = vcombine.low %v200_v19, %v204_v20 }
   0x9   :  { %v65_v3 = vadd.f32 %v6464_v1, %v6459_v0  ;;  %v67_v4 = vsel %vm66_vm0, %v6469_v2, 0.0  ;;  %v6478_v5 = vld [vmem:[%s8371_s23 + $0x18] sm:$0xff]  ;;  %v6483_v6 = vld [vmem:[%s8371_s23 + $0x20] sm:$0xff]  ;;  %v6488_v7 = vld [vmem:[%s8371_s23 + $0x28] sm:$0xff] }
   0xa   :  { %v71_v8 = vadd.f32 %v6483_v6, %v6478_v5  ;;  %v72_v9 = vsel %vm66_vm0, %v6488_v7, 0.0  ;;  %v192_v23 = vld [vmem:[%s8356_s4 + $0x100] sm:$0xff] }
   0xb   :  { %v68_v10 = vadd.f32 %v67_v4, %v65_v3  ;;  %v196_v24 = vld [vmem:[%s8356_s4 + $0x120] sm:$0xff]  ;;  %1168 = vmatpush1.bf16.msra.mxu0 %v5202_v21 }
   0xc   :  { %v73_v11 = vadd.f32 %v72_v9, %v71_v8  ;;  %v184_v26 = vld [vmem:[%s8356_s4 + $0xc0] sm:$0xff]  ;;  %1169 = vmatprep.subr.bf16.mxu0 %v5195_v22  ;;  %v5187_v28 = vcombine.high %v192_v23, %v196_v24  ;;  %v5186_v29 = vcombine.low %v192_v23, %v196_v24 }
   0xd   :  { %69 = vadd.xlane.f32.xlu0 %v68_v10  ;;  %v188_v27 = vld [vmem:[%s8356_s4 + $0xe0] sm:$0xff] }
   0xe   :  { %v176_v30 = vld [vmem:[%s8356_s4 + $0x80] sm:$0xff]  ;;  %v5179_v32 = vcombine.high %v184_v26, %v188_v27  ;;  %v5178_v33 = vcombine.low %v184_v26, %v188_v27 }
   0xf   :  { %1170 = vmatpush1.bf16.msra.mxu0 %v5194_v25  ;;  %v180_v31 = vld [vmem:[%s8356_s4 + $0xa0] sm:$0xff] }
  0x10   :  { %1171 = vmatprep.subr.bf16.mxu0 %v5187_v28  ;;  %v168_v34 = vld [vmem:[%s8356_s4 + $0x40] sm:$0xff]  ;;  %v5171_v36 = vcombine.high %v176_v30, %v180_v31  ;;  %v5170_v37 = vcombine.low %v176_v30, %v180_v31 }
  0x11   :  { %74 = vadd.xlane.f32.xlu0 %v73_v11  ;;  %v172_v35 = vld [vmem:[%s8356_s4 + $0x60] sm:$0xff] }
  0x12   :  { %v160_v38 = vld [vmem:[%s8356_s4] sm:$0xff]  ;;  %v5163_v40 = vcombine.high %v168_v34, %v172_v35  ;;  %v5162_v41 = vcombine.low %v168_v34, %v172_v35 }
  0x13   :  { %1172 = vmatpush1.bf16.msra.mxu0 %v5186_v29  ;;  %v164_v39 = vld [vmem:[%s8356_s4 + $0x20] sm:$0xff] }
  0x14   :  { %1173 = vmatprep.subr.bf16.mxu0 %v5179_v32  ;;  %v280_v42 = vld [vmem:[%s8356_s4 + $0x3c0] sm:$0xff]  ;;  %v5155_v44 = vcombine.high %v160_v38, %v164_v39  ;;  %v5154_v45 = vcombine.low %v160_v38, %v164_v39 }
  0x15   :  { %v284_v43 = vld [vmem:[%s8356_s4 + $0x3e0] sm:$0xff] }
  0x16   :  { %v5275_v46 = vcombine.high %v280_v42, %v284_v43  ;;  %v5274_v47 = vcombine.low %v280_v42, %v284_v43 }
  0x17   :  { %1174 = vmatpush1.bf16.msra.mxu0 %v5178_v33 }
  0x18   :  { %1175 = vmatprep.subr.bf16.mxu0 %v5171_v36 }
  0x1b   :  { %1176 = vmatpush1.bf16.msra.mxu0 %v5170_v37 }
  0x1c   :  { %1177 = vmatprep.subr.bf16.mxu0 %v5163_v40 }
  0x1f   :  { %1178 = vmatpush1.bf16.msra.mxu0 %v5162_v41 }
  0x20   :  { %1179 = vmatprep.subr.bf16.mxu0 %v5155_v44 }
  0x23   :  { %1180 = vmatpush1.bf16.msra.mxu0 %v5154_v45 }
  0x24   :  { %1181 = vmatprep.subr.bf16.mxu0 %v5275_v46 }
  0x27   :  { %1182 = vmatpush2.bf16.msra.mxu0 %v5274_v47 }
  0x28   :  { %21 = vsyncpa [#allocation3], 0  ;;  %v264_v10 = vld [vmem:[%s8356_s4 + $0x340] sm:$0xff]  ;;  %v6358_v22 = vmov 0   ;;  %v6638_v39 = vld [vmem:[%s8356_s4 + $0x1c8] sm:$0xff]  ;;  %vm6360_vm1 = vmmov 0  }
  0x29   :  { %v268_v11 = vld [vmem:[%s8356_s4 + $0x360] sm:$0xff]  ;;  %1240 = vmatprep.mubr.bf16.mxu1 %v6358_v22  ;;  %v6643_v40 = vld [vmem:[%s8356_s4 + $0x1e8] sm:$0xff]  ;;  %s6362_s20 = smov 48   ;;  %s6363_s21 = smov 112   ;;  %vm1520_vm2 = vcmask 654336   ;;  %vm1671_vm3 = vcmask 392192  }
  0x2a   :  { %v5259_v12 = vcombine.high %v264_v10, %v268_v11  ;;  %v5258_v13 = vcombine.low %v264_v10, %v268_v11  ;;  %v256_v14 = vld [vmem:[%s8356_s4 + $0x300] sm:$0xff]  ;;  %v5212_v43 = vcombine.low %v6638_v39, %v6643_v40  ;;  %vm1572_vm4 = vcmask 130048   ;;  %s6365_s27 = smov 96   ;;  %s6366_s17 = smov 80  }
  0x2b   :  { %v260_v15 = vld [vmem:[%s8356_s4 + $0x320] sm:$0xff]  ;;  %vm2167_vm5 = vcmask 261120   ;;  %s6367_s18 = smov 16  }
  0x2c   :  { %v312_v16 = vld [vmem:[%s8356_s4 + $0x4c0] sm:$0xff]  ;;  %v5251_v17 = vcombine.high %v256_v14, %v260_v15  ;;  %v5250_v18 = vcombine.low %v256_v14, %v260_v15 }
  0x2d   :  { %v316_v19 = vld [vmem:[%s8356_s4 + $0x4e0] sm:$0xff] }
  0x2e   :  { %v248_v20 = vld [vmem:[%s8356_s4 + $0x2c0] sm:$0xff]  ;;  %v5307_v23 = vcombine.high %v312_v16, %v316_v19  ;;  %v5306_v25 = vcombine.low %v312_v16, %v316_v19 }
  0x2f   :  { %v252_v21 = vld [vmem:[%s8356_s4 + $0x2e0] sm:$0xff] }
  0x30   :  { %v5243_v24 = vcombine.high %v248_v20, %v252_v21  ;;  %v304_v26 = vld [vmem:[%s8356_s4 + $0x480] sm:$0xff]  ;;  %1216 = vmatprep.subr.bf16.mxu1 %v5307_v23  ;;  %v5242_v33 = vcombine.low %v248_v20, %v252_v21 }
  0x31   :  { %v308_v27 = vld [vmem:[%s8356_s4 + $0x4a0] sm:$0xff]  ;;  %1217 = vmatpush1.bf16.msra.mxu1 %v5306_v25 }
  0x32   :  { %v240_v28 = vld [vmem:[%s8356_s4 + $0x280] sm:$0xff]  ;;  %v5299_v29 = vcombine.high %v304_v26, %v308_v27  ;;  %v5298_v35 = vcombine.low %v304_v26, %v308_v27 }
  0x33   :  { %v244_v30 = vld [vmem:[%s8356_s4 + $0x2a0] sm:$0xff] }
  0x34   :  { %v296_v31 = vld [vmem:[%s8356_s4 + $0x440] sm:$0xff]  ;;  %v5235_v34 = vcombine.high %v240_v28, %v244_v30  ;;  %1218 = vmatprep.subr.bf16.mxu1 %v5299_v29  ;;  %v5234_v44 = vcombine.low %v240_v28, %v244_v30 }
  0x35   :  { %v300_v32 = vld [vmem:[%s8356_s4 + $0x460] sm:$0xff]  ;;  %1219 = vmatpush1.bf16.msra.mxu1 %v5298_v35 }
  0x36   :  { %v232_v36 = vld [vmem:[%s8356_s4 + $0x240] sm:$0xff]  ;;  %v5291_v37 = vcombine.high %v296_v31, %v300_v32  ;;  %v5290_v46 = vcombine.low %v296_v31, %v300_v32  ;;  %v209_v32 = vld [vmem:[%s8356_s4 + $0x188] sm:$0xff] }
  0x37   :  { %v236_v38 = vld [vmem:[%s8356_s4 + $0x260] sm:$0xff] }
  0x38   :  { %v288_v41 = vld [vmem:[%s8356_s4 + $0x400] sm:$0xff]  ;;  %v5227_v45 = vcombine.high %v232_v36, %v236_v38  ;;  %1220 = vmatprep.subr.bf16.mxu1 %v5291_v37 }
  0x39   :  { %v292_v42 = vld [vmem:[%s8356_s4 + $0x420] sm:$0xff]  ;;  %1221 = vmatpush1.bf16.msra.mxu1 %v5290_v46 }
  0x3a   :  { %v5283_v47 = vcombine.high %v288_v41, %v292_v42  ;;  %v63_v11 = vld [vmem:[%s8354_s2] sm:$0x7] }
  0x3b   :  { %v64_v14 = vld [vmem:[%s8355_s3] sm:$0x7] }
  0x3c   :  { %1222 = vmatprep.subr.bf16.mxu1 %v5283_v47  ;;  %v201_v47 = vld [vmem:[%s8356_s4 + $0x148] sm:$0xff] }
  0x96   :  { %v70_v48 = vpop.xlane.xlu0 %69 }
  0x97   :  { %v77_v49 = vmul.f32 0.003125, %v70_v48  ;;  %v224_v48 = vld [vmem:[%s8356_s4 + $0x200] sm:$0xff] }
  0x99   :  { %v6549_v50 = vsub.f32 %v6459_v0, %v77_v49  ;;  %v6552_v51 = vsub.f32 %v6464_v1, %v77_v49  ;;  %v6555_v52 = vsub.f32 %v6469_v2, %v77_v49  ;;  %v228_v49 = vld [vmem:[%s8356_s4 + $0x220] sm:$0xff] }
  0x9a   :  { %v75_v53 = vpop.xlane.xlu0 %74 }
  0x9b   :  { %v78_v54 = vmul.f32 0.003125, %v75_v53  ;;  %v85_v55 = vmul.f32 %v6549_v50, %v6549_v50  ;;  %v86_v56 = vmul.f32 %v6552_v51, %v6552_v51  ;;  %v87_v57 = vmul.f32 %v6555_v52, %v6555_v52 }
  0x9c   :  { %v5226_v53 = vcombine.low %v232_v36, %v236_v38  ;;  %v309_v36 = vld [vmem:[%s8356_s4 + $0x4a8] sm:$0xff] }
  0x9d   :  { %v6564_v58 = vsub.f32 %v6478_v5, %v78_v54  ;;  %v6567_v59 = vsub.f32 %v6483_v6, %v78_v54  ;;  %v6570_v60 = vsub.f32 %v6488_v7, %v78_v54  ;;  %v91_v61 = vadd.f32 %v86_v56, %v85_v55  ;;  %v272_v6 = vld [vmem:[%s8356_s4 + $0x380] sm:$0xff] }
  0x9e   :  { %v92_v62 = vsel %vm66_vm0, %v87_v57, 0.0  ;;  %v276_v7 = vld [vmem:[%s8356_s4 + $0x3a0] sm:$0xff]  ;;  %v5219_v54 = vcombine.high %v224_v48, %v228_v49  ;;  %v5282_v55 = vcombine.low %v288_v41, %v292_v42  ;;  %v5213_v56 = vcombine.high %v6638_v39, %v6643_v40  ;;  %v197_v39 = vld [vmem:[%s8356_s4 + $0x128] sm:$0xff] }
  0x9f   :  { %v93_v63 = vadd.f32 %v92_v62, %v91_v61  ;;  %v88_v0 = vmul.f32 %v6564_v58, %v6564_v58  ;;  %v89_v1 = vmul.f32 %v6567_v59, %v6567_v59  ;;  %v90_v2 = vmul.f32 %v6570_v60, %v6570_v60  ;;  %v6664_v61 = vld [vmem:[%s8356_s4 + $0x4c8] sm:$0xff] }
  0xa0   :  { %v5267_v8 = vcombine.high %v272_v6, %v276_v7  ;;  %v5266_v9 = vcombine.low %v272_v6, %v276_v7  ;;  %v5218_v57 = vcombine.low %v224_v48, %v228_v49  ;;  %1223 = vmatpush1.bf16.msra.mxu1 %v5282_v55  ;;  %v6669_v62 = vld [vmem:[%s8356_s4 + $0x4e8] sm:$0xff]  ;;  %v114_v7 = vlaneseq }
  0xa1   :  { %94 = vadd.xlane.f32.xlu1 %v93_v63  ;;  %v96_v3 = vadd.f32 %v89_v1, %v88_v0  ;;  %v97_v4 = vsel %vm66_vm0, %v90_v2, 0.0  ;;  %1251 = vmatprep.subr.bf16.mxu1 %v5213_v56  ;;  %v5309_v63 = vcombine.high %v6664_v61, %v6669_v62  ;;  %v5308_v0 = vcombine.low %v6664_v61, %v6669_v62  ;;  %v205_v48 = vld [vmem:[%s8356_s4 + $0x168] sm:$0xff] }
  0xa2   :  { %1183 = vmatprep.subr.bf16.mxu0 %v5267_v8  ;;  %v6675_v8 = vshrl.u32 %v114_v7, 7  ;;  %v297_v49 = vld [vmem:[%s8356_s4 + $0x448] sm:$0xff]  ;;  %v5197_v56 = vcombine.high %v201_v47, %v205_v48  ;;  %v5196_v62 = vcombine.low %v201_v47, %v205_v48 }
  0xa3   :  { %v98_v5 = vadd.f32 %v97_v4, %v96_v3  ;;  %1184 = vmatpush2.bf16.msra.mxu0 %v5266_v9  ;;  %v193_v61 = vld [vmem:[%s8356_s4 + $0x108] sm:$0xff] }
  0xa4   :  { %1185 = vmatprep.subr.bf16.mxu0 %v5259_v12  ;;  %v6678_v9 = vsub.s32 1, %v6675_v8  ;;  %v6681_v10 = vsub.s32 2, %v6675_v8  ;;  %v6687_v12 = vsub.s32 0, %v6675_v8  ;;  %v289_v40 = vld [vmem:[%s8356_s4 + $0x408] sm:$0xff] }
  0xa5   :  { %99 = vadd.xlane.f32.xlu1 %v98_v5  ;;  %v273_v47 = vld [vmem:[%s8356_s4 + $0x388] sm:$0xff] }
  0xa6   :  { %v121_v16 = vrot.slane %v63_v11, %v6678_v9  ;;  %v117_v20 = vrot.slane %v63_v11, %v6687_v12  ;;  %v143_v23 = vrot.slane %v64_v14, %v6678_v9  ;;  %v139_v29 = vrot.slane %v64_v14, %v6687_v12  ;;  %v277_v48 = vld [vmem:[%s8356_s4 + $0x3a8] sm:$0xff] }
  0xa7   :  { %1186 = vmatpush2.bf16.msra.mxu0 %v5258_v13 }
  0xa8   :  { %1187 = vmatprep.subr.bf16.mxu0 %v5251_v17 }
  0xab   :  { %1188 = vmatpush2.bf16.msra.mxu0 %v5250_v18  ;;  %v125_v18 = vrot.slane %v63_v11, %v6681_v10 }
  0xac   :  { %1189 = vmatprep.subr.bf16.mxu0 %v5243_v24  ;;  %v147_v24 = vrot.slane %v64_v14, %v6681_v10  ;;  %v177_v14 = vld [vmem:[%s8356_s4 + $0x88] sm:$0xff] }
  0xaf   :  { %1190 = vmatpush2.bf16.msra.mxu0 %v5242_v33 }
  0xb0   :  { %1191 = vmatprep.subr.bf16.mxu0 %v5235_v34 }
  0xb3   :  { %1192 = vmatpush2.bf16.msra.mxu0 %v5234_v44 }
  0xb4   :  { %1193 = vmatprep.subr.bf16.mxu0 %v5227_v45 }
  0xb7   :  { %1194 = vmatpush2.bf16.msra.mxu0 %v5226_v53  ;;  %v301_v53 = vld [vmem:[%s8356_s4 + $0x468] sm:$0xff] }
  0xb8   :  { %1195 = vmatprep.subr.bf16.mxu0 %v5219_v54 }
  0xbb   :  { %1196 = vmatpush2.bf16.msra.mxu0 %v5218_v57  ;;  %v5293_v57 = vcombine.high %v297_v49, %v301_v53 }
  0xbc   :  { %1302 = vmatprep.subr.bf16.mxu0 %v5309_v63  ;;  %v5292_v63 = vcombine.low %v297_v49, %v301_v53  ;;  %v178_v49 = vld [vmem:[%s8356_s4 + $0x90] sm:$0xff] }
  0xbd   :  { %v182_v53 = vld [vmem:[%s8356_s4 + $0xb0] sm:$0xff] }
 0x12a   :  { %v95_v1 = vpop.xlane.xlu1 %94 }
 0x12b   :  { %v101_v2 = vmul.f32 0.003125, %v95_v1 }
 0x12d   :  { %v103_v3 = vadd.f32 1e-05, %v101_v2  ;;  %v185_v2 = vld [vmem:[%s8356_s4 + $0xc8] sm:$0xff] }
 0x12e   :  { %v100_v4 = vpop.xlane.xlu1 %99 }
 0x12f   :  { %6266 = vrsqrt.f32 %v103_v3  ;;  %v102_v5 = vmul.f32 0.003125, %v100_v4  ;;  %v189_v3 = vld [vmem:[%s8356_s4 + $0xe8] sm:$0xff]  ;;  %v218_v4 = vld [vmem:[%s8356_s4 + $0x1d0] sm:$0xff] }
 0x130   :  { %v5181_v11 = vcombine.high %v185_v2, %v189_v3 }
 0x131   :  { %v104_v6 = vadd.f32 1e-05, %v102_v5  ;;  %v222_v5 = vld [vmem:[%s8356_s4 + $0x1f0] sm:$0xff] }
 0x133   :  { %6268 = vrsqrt.f32 %v104_v6  ;;  %v5188_v6 = vcombine.low %v193_v61, %v197_v39 }
 0x13c   :  { %v6267_v13 = vpop.eup %6266 }
 0x13d   :  { %v108_v15 = vmul.f32 %v6267_v13, %v6552_v51  ;;  %v109_v17 = vmul.f32 %v6267_v13, %v6555_v52  ;;  %v107_v19 = vmul.f32 %v6267_v13, %v6549_v50  ;;  %v5215_v13 = vcombine.high %v218_v4, %v222_v5 }
 0x13f   :  { %v130_v26 = vmul.f32 %v121_v16, %v108_v15  ;;  %v131_v27 = vmul.f32 %v125_v18, %v109_v17  ;;  %v129_v52 = vmul.f32 %v117_v20, %v107_v19  ;;  %v181_v15 = vld [vmem:[%s8356_s4 + $0xa8] sm:$0xff]  ;;  %v214_v17 = vld [vmem:[%s8356_s4 + $0x1b0] sm:$0xff]  ;;  %v5214_v19 = vcombine.low %v218_v4, %v222_v5 }
 0x140   :  { %v6269_v21 = vpop.eup %6268  ;;  %v162_v4 = vld [vmem:[%s8356_s4 + $0x10] sm:$0xff] }
 0x141   :  { %v111_v25 = vmul.f32 %v6269_v21, %v6567_v59  ;;  %v112_v51 = vmul.f32 %v6269_v21, %v6570_v60  ;;  %v110_v28 = vmul.f32 %v6269_v21, %v6564_v58  ;;  %v152_v33 = vadd.f32 %v143_v23, %v130_v26  ;;  %v213_v60 = vld [vmem:[%s8356_s4 + $0x1a8] sm:$0xff]  ;;  %v206_v26 = vld [vmem:[%s8356_s4 + $0x170] sm:$0xff] }
 0x142   :  { %v153_v35 = vadd.f32 %v147_v24, %v131_v27  ;;  %v305_v58 = vld [vmem:[%s8356_s4 + $0x488] sm:$0xff]  ;;  %v151_v37 = vadd.f32 %v139_v29, %v129_v52  ;;  %v5205_v45 = vcombine.high %v209_v32, %v213_v60  ;;  %v5204_v54 = vcombine.low %v209_v32, %v213_v60  ;;  %v166_v5 = vld [vmem:[%s8356_s4 + $0x30] sm:$0xff] }
 0x143   :  { %v133_v30 = vmul.f32 %v121_v16, %v111_v25  ;;  %v134_v50 = vmul.f32 %v125_v18, %v112_v51  ;;  %v132_v31 = vmul.f32 %v117_v20, %v110_v28  ;;  %v5301_v46 = vcombine.high %v305_v58, %v309_v36  ;;  %v210_v16 = vld [vmem:[%s8356_s4 + $0x190] sm:$0xff]  ;;  %v285_v60 = vld [vmem:[%s8356_s4 + $0x3e8] sm:$0xff] }
 0x144   :  { %v5300_v55 = vcombine.low %v305_v58, %v309_v36  ;;  %v5180_v18 = vcombine.low %v185_v2, %v189_v3  ;;  %v5173_v20 = vcombine.high %v177_v14, %v181_v15  ;;  %v5207_v21 = vcombine.high %v210_v16, %v214_v17  ;;  %v202_v25 = vld [vmem:[%s8356_s4 + $0x150] sm:$0xff]  ;;  %v257_v2 = vld [vmem:[%s8356_s4 + $0x308] sm:$0xff] }
 0x145   :  { %v155_v34 = vadd.f32 %v143_v23, %v133_v30  ;;  %v156_v59 = vadd.f32 %v147_v24, %v134_v50  ;;  %v154_v38 = vadd.f32 %v139_v29, %v132_v31  ;;  %v169_v23 = vld [vmem:[%s8356_s4 + $0x48] sm:$0xff]  ;;  %v5172_v51 = vcombine.low %v177_v14, %v181_v15  ;;  %v194_v50 = vld [vmem:[%s8356_s4 + $0x110] sm:$0xff] }
 0x146   :  { %v173_v24 = vld [vmem:[%s8356_s4 + $0x68] sm:$0xff]  ;;  %v5206_v27 = vcombine.low %v210_v16, %v214_v17  ;;  %v5199_v52 = vcombine.high %v202_v25, %v206_v26  ;;  %v198_v31 = vld [vmem:[%s8356_s4 + $0x130] sm:$0xff] }
 0x147   :  { %v6716_v41 = vpack.c.bf16 %v155_v34, %v152_v33  ;;  %v6718_v42 = vpack.c.bf16 %v156_v59, %v153_v35  ;;  %v6720_v44 = vpack.c.bf16 %v154_v38, %v151_v37  ;;  %v5165_v28 = vcombine.high %v169_v23, %v173_v24  ;;  %v161_v29 = vld [vmem:[%s8356_s4 + $0x8] sm:$0xff]  ;;  %v186_v58 = vld [vmem:[%s8356_s4 + $0xd0] sm:$0xff] }
 0x148   :  { %v165_v30 = vld [vmem:[%s8356_s4 + $0x28] sm:$0xff]  ;;  %v5164_v32 = vcombine.low %v169_v23, %v173_v24  ;;  %v5198_v33 = vcombine.low %v202_v25, %v206_v26  ;;  %v5191_v35 = vcombine.high %v194_v50, %v198_v31  ;;  %v190_v36 = vld [vmem:[%s8356_s4 + $0xf0] sm:$0xff]  ;;  %v5190_v38 = vcombine.low %v194_v50, %v198_v31 }
 0x149   :  { %1197 = vmatprep.mubr.bf16.mxu0 %v6716_v41  ;;  %5314 = vmatmul.mubr.msk.bf16.vlgmr.msra.gmra.mxu1 %vm66_vm0, %v6718_v42  ;;  %v5157_v34 = vcombine.high %v161_v29, %v165_v30  ;;  %v281_v59 = vld [vmem:[%s8356_s4 + $0x3c8] sm:$0xff]  ;;  %v5156_v37 = vcombine.low %v161_v29, %v165_v30  ;;  %v282_v16 = vld [vmem:[%s8356_s4 + $0x3d0] sm:$0xff] }
 0x14a   :  { %1252 = vmatpush1.bf16.msra.mxu1 %v5212_v43  ;;  %1198 = vmatmul.mubr.bf16.vlgmr.msra.gmra.mxu0 %v6720_v44  ;;  %v293_v43 = vld [vmem:[%s8356_s4 + $0x428] sm:$0xff]  ;;  %v286_v17 = vld [vmem:[%s8356_s4 + $0x3f0] sm:$0xff] }
 0x14b   :  { %1283 = vmatprep.mubr.bf16.mxu1 %v6716_v41  ;;  %1303 = vmatpush1.bf16.msra.mxu0 %v5308_v0  ;;  %v5189_v0 = vcombine.high %v193_v61, %v197_v39  ;;  %v5285_v1 = vcombine.high %v289_v40, %v293_v43  ;;  %v5284_v7 = vcombine.low %v289_v40, %v293_v43  ;;  %v265_v61 = vld [vmem:[%s8356_s4 + $0x348] sm:$0xff]  ;;  %v170_v40 = vld [vmem:[%s8356_s4 + $0x50] sm:$0xff] }
 0x14c   :  { %1253 = vmatprep.subr.bf16.mxu1 %v5205_v45  ;;  %1304 = vmatprep.subr.bf16.mxu0 %v5301_v46  ;;  %v5277_v45 = vcombine.high %v281_v59, %v285_v60  ;;  %v5183_v46 = vcombine.high %v186_v58, %v190_v36  ;;  %v269_v39 = vld [vmem:[%s8356_s4 + $0x368] sm:$0xff]  ;;  %v174_v43 = vld [vmem:[%s8356_s4 + $0x70] sm:$0xff] }
 0x14d   :  { %1326 = vmatprep.mubr.bf16.mxu0 %v6358_v22  ;;  %v261_v3 = vld [vmem:[%s8356_s4 + $0x328] sm:$0xff]  ;;  %v274_v25 = vld [vmem:[%s8356_s4 + $0x390] sm:$0xff] }
 0x14e   :  { %1254 = vmatpush1.bf16.msra.mxu1 %v5204_v54  ;;  %v5276_v54 = vcombine.low %v281_v59, %v285_v60  ;;  %v249_v14 = vld [vmem:[%s8356_s4 + $0x2c8] sm:$0xff]  ;;  %v278_v26 = vld [vmem:[%s8356_s4 + $0x3b0] sm:$0xff] }
 0x14f   :  { %1305 = vmatpush1.bf16.msra.mxu0 %v5300_v55  ;;  %1255 = vmatprep.subr.bf16.mxu1 %v5197_v56  ;;  %v5182_v55 = vcombine.low %v186_v58, %v190_v36  ;;  %v5269_v56 = vcombine.high %v273_v47, %v277_v48  ;;  %v253_v15 = vld [vmem:[%s8356_s4 + $0x2e8] sm:$0xff]  ;;  %v266_v50 = vld [vmem:[%s8356_s4 + $0x350] sm:$0xff] }
 0x150   :  { %1306 = vmatprep.subr.bf16.mxu0 %v5293_v57  ;;  %v5175_v57 = vcombine.high %v178_v49, %v182_v53  ;;  %v241_v23 = vld [vmem:[%s8356_s4 + $0x288] sm:$0xff]  ;;  %v270_v31 = vld [vmem:[%s8356_s4 + $0x370] sm:$0xff] }
 0x151   :  { %v245_v24 = vld [vmem:[%s8356_s4 + $0x2a8] sm:$0xff]  ;;  %v258_v58 = vld [vmem:[%s8356_s4 + $0x310] sm:$0xff] }
 0x152   :  { %1256 = vmatpush1.bf16.msra.mxu1 %v5196_v62  ;;  %v5268_v62 = vcombine.low %v273_v47, %v277_v48  ;;  %v233_v29 = vld [vmem:[%s8356_s4 + $0x248] sm:$0xff]  ;;  %v262_v36 = vld [vmem:[%s8356_s4 + $0x330] sm:$0xff] }
 0x153   :  { %1307 = vmatpush1.bf16.msra.mxu0 %v5292_v63  ;;  %1257 = vmatprep.subr.bf16.mxu1 %v5189_v0  ;;  %v5174_v63 = vcombine.low %v178_v49, %v182_v53  ;;  %v5261_v0 = vcombine.high %v265_v61, %v269_v39  ;;  %v237_v30 = vld [vmem:[%s8356_s4 + $0x268] sm:$0xff]  ;;  %v314_v47 = vld [vmem:[%s8356_s4 + $0x4d0] sm:$0xff] }
 0x154   :  { %1308 = vmatprep.subr.bf16.mxu0 %v5285_v1  ;;  %v5167_v1 = vcombine.high %v170_v40, %v174_v43  ;;  %v225_v59 = vld [vmem:[%s8356_s4 + $0x208] sm:$0xff]  ;;  %v318_v48 = vld [vmem:[%s8356_s4 + $0x4f0] sm:$0xff] }
 0x155   :  { %v229_v60 = vld [vmem:[%s8356_s4 + $0x228] sm:$0xff]  ;;  %v250_v49 = vld [vmem:[%s8356_s4 + $0x2d0] sm:$0xff] }
 0x156   :  { %1258 = vmatpush1.bf16.msra.mxu1 %v5188_v6  ;;  %v5260_v6 = vcombine.low %v265_v61, %v269_v39  ;;  %v254_v53 = vld [vmem:[%s8356_s4 + $0x2f0] sm:$0xff] }
 0x157   :  { %1309 = vmatpush1.bf16.msra.mxu0 %v5284_v7  ;;  %1259 = vmatprep.subr.bf16.mxu1 %v5181_v11  ;;  %v5166_v7 = vcombine.low %v170_v40, %v174_v43  ;;  %v5253_v11 = vcombine.high %v257_v2, %v261_v3  ;;  %v306_v61 = vld [vmem:[%s8356_s4 + $0x490] sm:$0xff] }
 0x158   :  { %1337 = vmatprep.subr.bf16.mxu0 %v5215_v13  ;;  %v5159_v13 = vcombine.high %v162_v4, %v166_v5  ;;  %v310_v39 = vld [vmem:[%s8356_s4 + $0x4b0] sm:$0xff] }
 0x159   :  { %v242_v40 = vld [vmem:[%s8356_s4 + $0x290] sm:$0xff] }
 0x15a   :  { %1260 = vmatpush1.bf16.msra.mxu1 %v5180_v18  ;;  %5315 = vmatmul.mubr.msk.bf16.vlgmr.msra.gmra.mxu0 %vm66_vm0, %v6718_v42  ;;  %v5252_v18 = vcombine.low %v257_v2, %v261_v3  ;;  %v246_v43 = vld [vmem:[%s8356_s4 + $0x2b0] sm:$0xff] }
 0x15b   :  { %1338 = vmatpush1.bf16.msra.mxu0 %v5214_v19  ;;  %1369 = vmatprep.mubr.bf16.mxu0 %v6716_v41  ;;  %v5158_v19 = vcombine.low %v162_v4, %v166_v5  ;;  %v298_v2 = vld [vmem:[%s8356_s4 + $0x450] sm:$0xff] }
 0x15c   :  { %1261 = vmatprep.subr.bf16.mxu1 %v5173_v20  ;;  %1339 = vmatprep.subr.bf16.mxu0 %v5207_v21  ;;  %v5245_v20 = vcombine.high %v249_v14, %v253_v15  ;;  %v5279_v21 = vcombine.high %v282_v16, %v286_v17  ;;  %v302_v3 = vld [vmem:[%s8356_s4 + $0x470] sm:$0xff] }
 0x15d   :  { %v234_v4 = vld [vmem:[%s8356_s4 + $0x250] sm:$0xff] }
 0x15e   :  { %1262 = vmatpush1.bf16.msra.mxu1 %v5172_v51  ;;  %v5244_v51 = vcombine.low %v249_v14, %v253_v15  ;;  %v238_v5 = vld [vmem:[%s8356_s4 + $0x270] sm:$0xff] }
 0x15f   :  { %1340 = vmatpush1.bf16.msra.mxu0 %v5206_v27  ;;  %1263 = vmatprep.subr.bf16.mxu1 %v5165_v28  ;;  %v5278_v27 = vcombine.low %v282_v16, %v286_v17  ;;  %v5237_v28 = vcombine.high %v241_v23, %v245_v24  ;;  %v290_v14 = vld [vmem:[%s8356_s4 + $0x410] sm:$0xff] }
 0x160   :  { %1341 = vmatprep.subr.bf16.mxu0 %v5199_v52  ;;  %v5271_v52 = vcombine.high %v274_v25, %v278_v26  ;;  %v294_v15 = vld [vmem:[%s8356_s4 + $0x430] sm:$0xff] }
 0x161   :  { %v226_v16 = vld [vmem:[%s8356_s4 + $0x210] sm:$0xff] }
 0x162   :  { %1264 = vmatpush1.bf16.msra.mxu1 %v5164_v32  ;;  %v5236_v32 = vcombine.low %v241_v23, %v245_v24  ;;  %v230_v17 = vld [vmem:[%s8356_s4 + $0x230] sm:$0xff]  ;;  %v219_v23 = vld [vmem:[%s8356_s4 + $0x1d8] sm:$0xff] }
 0x163   :  { %1342 = vmatpush1.bf16.msra.mxu0 %v5198_v33  ;;  %1265 = vmatprep.subr.bf16.mxu1 %v5157_v34  ;;  %v5270_v33 = vcombine.low %v274_v25, %v278_v26  ;;  %v5229_v34 = vcombine.high %v233_v29, %v237_v30  ;;  %v223_v24 = vld [vmem:[%s8356_s4 + $0x1f8] sm:$0xff] }
 0x164   :  { %1343 = vmatprep.subr.bf16.mxu0 %v5191_v35  ;;  %v5263_v35 = vcombine.high %v266_v50, %v270_v31  ;;  %v315_v25 = vld [vmem:[%s8356_s4 + $0x4d8] sm:$0xff] }
 0x165   :  { %v319_v26 = vld [vmem:[%s8356_s4 + $0x4f8] sm:$0xff] }
 0x166   :  { %1266 = vmatpush1.bf16.msra.mxu1 %v5156_v37  ;;  %v5228_v37 = vcombine.low %v233_v29, %v237_v30  ;;  %v211_v29 = vld [vmem:[%s8356_s4 + $0x198] sm:$0xff] }
 0x167   :  { %1344 = vmatpush1.bf16.msra.mxu0 %v5190_v38  ;;  %1267 = vmatprep.subr.bf16.mxu1 %v5277_v45  ;;  %v5262_v38 = vcombine.low %v266_v50, %v270_v31  ;;  %v5221_v45 = vcombine.high %v225_v59, %v229_v60  ;;  %v215_v30 = vld [vmem:[%s8356_s4 + $0x1b8] sm:$0xff] }
 0x168   :  { %1345 = vmatprep.subr.bf16.mxu0 %v5183_v46  ;;  %v5255_v46 = vcombine.high %v258_v58, %v262_v36  ;;  %v307_v50 = vld [vmem:[%s8356_s4 + $0x498] sm:$0xff] }
 0x169   :  { %v311_v31 = vld [vmem:[%s8356_s4 + $0x4b8] sm:$0xff] }
 0x16a   :  { %1268 = vmatpush2.bf16.msra.mxu1 %v5276_v54  ;;  %v5220_v54 = vcombine.low %v225_v59, %v229_v60  ;;  %v203_v59 = vld [vmem:[%s8356_s4 + $0x158] sm:$0xff] }
 0x16b   :  { %1346 = vmatpush1.bf16.msra.mxu0 %v5182_v55  ;;  %1269 = vmatprep.subr.bf16.mxu1 %v5269_v56  ;;  %v5254_v55 = vcombine.low %v258_v58, %v262_v36  ;;  %v5311_v56 = vcombine.high %v314_v47, %v318_v48  ;;  %v207_v60 = vld [vmem:[%s8356_s4 + $0x178] sm:$0xff] }
 0x16c   :  { %1347 = vmatprep.subr.bf16.mxu0 %v5175_v57  ;;  %v5247_v57 = vcombine.high %v250_v49, %v254_v53  ;;  %v299_v58 = vld [vmem:[%s8356_s4 + $0x458] sm:$0xff] }
 0x16d   :  { %v303_v36 = vld [vmem:[%s8356_s4 + $0x478] sm:$0xff] }
 0x16e   :  { %1270 = vmatpush2.bf16.msra.mxu1 %v5268_v62  ;;  %v5310_v62 = vcombine.low %v314_v47, %v318_v48  ;;  %v195_v47 = vld [vmem:[%s8356_s4 + $0x118] sm:$0xff] }
 0x16f   :  { %1348 = vmatpush1.bf16.msra.mxu0 %v5174_v63  ;;  %1271 = vmatprep.subr.bf16.mxu1 %v5261_v0  ;;  %v5246_v63 = vcombine.low %v250_v49, %v254_v53  ;;  %v5303_v0 = vcombine.high %v306_v61, %v310_v39  ;;  %v199_v48 = vld [vmem:[%s8356_s4 + $0x138] sm:$0xff]  ;;  %v5200_v53 = vcombine.low %v203_v59, %v207_v60 }
 0x170   :  { %1349 = vmatprep.subr.bf16.mxu0 %v5167_v1  ;;  %v5239_v1 = vcombine.high %v242_v40, %v246_v43  ;;  %v291_v49 = vld [vmem:[%s8356_s4 + $0x418] sm:$0xff] }
 0x172   :  { %1272 = vmatpush2.bf16.msra.mxu1 %v5260_v6  ;;  %v5302_v6 = vcombine.low %v306_v61, %v310_v39  ;;  %v191_v61 = vld [vmem:[%s8356_s4 + $0xf8] sm:$0xff]  ;;  %v5192_v39 = vcombine.low %v195_v47, %v199_v48 }
 0x173   :  { %1350 = vmatpush1.bf16.msra.mxu0 %v5166_v7  ;;  %1273 = vmatprep.subr.bf16.mxu1 %v5253_v11  ;;  %v5238_v7 = vcombine.low %v242_v40, %v246_v43  ;;  %v5295_v11 = vcombine.high %v298_v2, %v302_v3 }
 0x174   :  { %1351 = vmatprep.subr.bf16.mxu0 %v5159_v13  ;;  %v5231_v13 = vcombine.high %v234_v4, %v238_v5 }
 0x176   :  { %1274 = vmatpush2.bf16.msra.mxu1 %v5252_v18  ;;  %v5294_v18 = vcombine.low %v298_v2, %v302_v3  ;;  %v171_v2 = vld [vmem:[%s8356_s4 + $0x58] sm:$0xff] }
 0x177   :  { %1352 = vmatpush1.bf16.msra.mxu0 %v5158_v19  ;;  %1275 = vmatprep.subr.bf16.mxu1 %v5245_v20  ;;  %v5230_v19 = vcombine.low %v234_v4, %v238_v5  ;;  %v5287_v20 = vcombine.high %v290_v14, %v294_v15  ;;  %v175_v3 = vld [vmem:[%s8356_s4 + $0x78] sm:$0xff] }
 0x178   :  { %1353 = vmatprep.subr.bf16.mxu0 %v5279_v21  ;;  %v5223_v21 = vcombine.high %v226_v16, %v230_v17  ;;  %v5169_v5 = vcombine.high %v171_v2, %v175_v3 }
 0x17a   :  { %1276 = vmatpush2.bf16.msra.mxu1 %v5244_v51  ;;  %v5286_v51 = vcombine.low %v290_v14, %v294_v15  ;;  %v283_v14 = vld [vmem:[%s8356_s4 + $0x3d8] sm:$0xff] }
 0x17b   :  { %1354 = vmatpush2.bf16.msra.mxu0 %v5278_v27  ;;  %1277 = vmatprep.subr.bf16.mxu1 %v5237_v28  ;;  %v5222_v27 = vcombine.low %v226_v16, %v230_v17  ;;  %v5217_v28 = vcombine.high %v219_v23, %v223_v24  ;;  %v275_v17 = vld [vmem:[%s8356_s4 + $0x398] sm:$0xff] }
 0x17c   :  { %1355 = vmatprep.subr.bf16.mxu0 %v5271_v52  ;;  %v5313_v52 = vcombine.high %v315_v25, %v319_v26 }
 0x17e   :  { %1278 = vmatpush2.bf16.msra.mxu1 %v5236_v32  ;;  %v5216_v32 = vcombine.low %v219_v23, %v223_v24  ;;  %v271_v23 = vld [vmem:[%s8356_s4 + $0x378] sm:$0xff] }
 0x17f   :  { %1356 = vmatpush2.bf16.msra.mxu0 %v5270_v33  ;;  %1279 = vmatprep.subr.bf16.mxu1 %v5229_v34  ;;  %v5312_v33 = vcombine.low %v315_v25, %v319_v26  ;;  %v5209_v34 = vcombine.high %v211_v29, %v215_v30  ;;  %v259_v26 = vld [vmem:[%s8356_s4 + $0x318] sm:$0xff] }
 0x180   :  { %1357 = vmatprep.subr.bf16.mxu0 %v5263_v35  ;;  %v5305_v35 = vcombine.high %v307_v50, %v311_v31 }
 0x182   :  { %1280 = vmatpush2.bf16.msra.mxu1 %v5228_v37  ;;  %v5208_v37 = vcombine.low %v211_v29, %v215_v30  ;;  %v255_v29 = vld [vmem:[%s8356_s4 + $0x2f8] sm:$0xff] }
 0x183   :  { %1358 = vmatpush2.bf16.msra.mxu0 %v5262_v38  ;;  %1281 = vmatprep.subr.bf16.mxu1 %v5221_v45  ;;  %v5304_v38 = vcombine.low %v307_v50, %v311_v31  ;;  %v5201_v45 = vcombine.high %v203_v59, %v207_v60  ;;  %v243_v31 = vld [vmem:[%s8356_s4 + $0x298] sm:$0xff] }
 0x184   :  { %1359 = vmatprep.subr.bf16.mxu0 %v5255_v46  ;;  %v5297_v46 = vcombine.high %v299_v58, %v303_v36  ;;  %v239_v59 = vld [vmem:[%s8356_s4 + $0x278] sm:$0xff] }
 0x186   :  { %1282 = vmatpush2.bf16.msra.mxu1 %v5220_v54  ;;  %v5296_v54 = vcombine.low %v299_v58, %v303_v36  ;;  %v227_v36 = vld [vmem:[%s8356_s4 + $0x218] sm:$0xff] }
 0x187   :  { %1360 = vmatpush2.bf16.msra.mxu0 %v5254_v55  ;;  %1388 = vmatprep.subr.bf16.mxu1 %v5311_v56  ;;  %v5193_v55 = vcombine.high %v195_v47, %v199_v48 }
 0x188   :  { %1361 = vmatprep.subr.bf16.mxu0 %v5247_v57  ;;  %v187_v57 = vld [vmem:[%s8356_s4 + $0xd8] sm:$0xff] }
 0x189   :  { %1284 = vmatmul.mubr.bf16.vlgmr.msra.gmra.mxu1 %v6720_v44  ;;  %v5185_v43 = vcombine.high %v187_v57, %v191_v61 }
 0x18a   :  { %1389 = vmatpush1.bf16.msra.mxu1 %v5310_v62  ;;  %1412 = vmatprep.mubr.bf16.mxu1 %v6358_v22  ;;  %v179_v62 = vld [vmem:[%s8356_s4 + $0x98] sm:$0xff] }
 0x18b   :  { %1362 = vmatpush2.bf16.msra.mxu0 %v5246_v63  ;;  %1390 = vmatprep.subr.bf16.mxu1 %v5303_v0  ;;  %v183_v63 = vld [vmem:[%s8356_s4 + $0xb8] sm:$0xff]  ;;  %v5184_v0 = vcombine.low %v187_v57, %v191_v61  ;;  %v336_v57 = vsub.s32 3, %v6675_v8  ;;  %v7084_v61 = vld [vmem:[%s8357_s5] sm:$0xff]  ;;  %s6361_s5 = smov 64  }
 0x18c   :  { %1363 = vmatprep.subr.bf16.mxu0 %v5239_v1  ;;  %v5177_v1 = vcombine.high %v179_v62, %v183_v63  ;;  %v5176_v4 = vcombine.low %v179_v62, %v183_v63  ;;  %v329_v63 = vrot.slane %v7084_v61, %v6678_v9 }
 0x18d   :  { %v337_v62 = vrot.slane %v7084_v61, %v336_v57 }
 0x18e   :  { %1391 = vmatpush1.bf16.msra.mxu1 %v5302_v6  ;;  %v163_v6 = vld [vmem:[%s8356_s4 + $0x18] sm:$0xff] }
 0x18f   :  { %1364 = vmatpush2.bf16.msra.mxu0 %v5238_v7  ;;  %1392 = vmatprep.subr.bf16.mxu1 %v5295_v11  ;;  %v167_v7 = vld [vmem:[%s8356_s4 + $0x38] sm:$0xff]  ;;  %v5168_v11 = vcombine.low %v171_v2, %v175_v3 }
 0x190   :  { %1365 = vmatprep.subr.bf16.mxu0 %v5231_v13  ;;  %v5161_v13 = vcombine.high %v163_v6, %v167_v7  ;;  %v5160_v15 = vcombine.low %v163_v6, %v167_v7 }
 0x192   :  { %1393 = vmatpush1.bf16.msra.mxu1 %v5294_v18  ;;  %v279_v18 = vld [vmem:[%s8356_s4 + $0x3b8] sm:$0xff] }
 0x193   :  { %1366 = vmatpush2.bf16.msra.mxu0 %v5230_v19  ;;  %1394 = vmatprep.subr.bf16.mxu1 %v5287_v20  ;;  %v5273_v20 = vcombine.high %v275_v17, %v279_v18  ;;  %v5272_v24 = vcombine.low %v275_v17, %v279_v18 }
 0x194   :  { %1367 = vmatprep.subr.bf16.mxu0 %v5223_v21  ;;  %v267_v21 = vld [vmem:[%s8356_s4 + $0x358] sm:$0xff] }
 0x195   :  { %v5265_v25 = vcombine.high %v267_v21, %v271_v23 }
 0x196   :  { %1395 = vmatpush1.bf16.msra.mxu1 %v5286_v51  ;;  %v263_v51 = vld [vmem:[%s8356_s4 + $0x338] sm:$0xff] }
 0x197   :  { %1368 = vmatpush2.bf16.msra.mxu0 %v5222_v27  ;;  %1423 = vmatprep.subr.bf16.mxu1 %v5217_v28  ;;  %v5264_v27 = vcombine.low %v267_v21, %v271_v23  ;;  %v5257_v28 = vcombine.high %v259_v26, %v263_v51  ;;  %v5256_v30 = vcombine.low %v259_v26, %v263_v51  ;;  %v340_v23 = vsub.s32 4, %v6675_v8 }
 0x198   :  { %1474 = vmatprep.subr.bf16.mxu0 %v5313_v52  ;;  %v251_v52 = vld [vmem:[%s8356_s4 + $0x2d8] sm:$0xff] }
 0x199   :  { %5316 = vmatmul.mubr.msk.bf16.vlgmr.msra.gmra.mxu1 %vm66_vm0, %v6718_v42  ;;  %v5249_v50 = vcombine.high %v251_v52, %v255_v29 }
 0x19a   :  { %1370 = vmatmul.mubr.bf16.vlgmr.msra.gmra.mxu0 %v6720_v44  ;;  %1424 = vmatpush1.bf16.msra.mxu1 %v5216_v32  ;;  %v247_v32 = vld [vmem:[%s8356_s4 + $0x2b8] sm:$0xff] }
 0x19b   :  { %1455 = vmatprep.mubr.bf16.mxu1 %v6716_v41  ;;  %1475 = vmatpush1.bf16.msra.mxu0 %v5312_v33  ;;  %v295_v41 = vld [vmem:[%s8356_s4 + $0x438] sm:$0xff]  ;;  %v5248_v33 = vcombine.low %v251_v52, %v255_v29  ;;  %v5240_v60 = vcombine.low %v243_v31, %v247_v32 }
 0x19c   :  { %1425 = vmatprep.subr.bf16.mxu1 %v5209_v34  ;;  %1476 = vmatprep.subr.bf16.mxu0 %v5305_v35  ;;  %v5289_v56 = vcombine.high %v291_v49, %v295_v41  ;;  %v5288_v40 = vcombine.low %v291_v49, %v295_v41  ;;  %v5241_v34 = vcombine.high %v243_v31, %v247_v32  ;;  %v235_v35 = vld [vmem:[%s8356_s4 + $0x258] sm:$0xff] }
 0x19d   :  { %1498 = vmatprep.mubr.bf16.mxu0 %v6358_v22  ;;  %v5233_v58 = vcombine.high %v235_v35, %v239_v59 }
 0x19e   :  { %1426 = vmatpush1.bf16.msra.mxu1 %v5208_v37  ;;  %v231_v37 = vld [vmem:[%s8356_s4 + $0x238] sm:$0xff] }
 0x19f   :  { %1477 = vmatpush1.bf16.msra.mxu0 %v5304_v38  ;;  %1427 = vmatprep.subr.bf16.mxu1 %v5201_v45  ;;  %v5232_v38 = vcombine.low %v235_v35, %v239_v59  ;;  %v5225_v45 = vcombine.high %v227_v36, %v231_v37 }
 0x1a0   :  { %1478 = vmatprep.subr.bf16.mxu0 %v5297_v46  ;;  %v5224_v46 = vcombine.low %v227_v36, %v231_v37 }
 0x1a2   :  { %1428 = vmatpush1.bf16.msra.mxu1 %v5200_v53 }
 0x1a3   :  { %1479 = vmatpush1.bf16.msra.mxu0 %v5296_v54  ;;  %1429 = vmatprep.subr.bf16.mxu1 %v5193_v55 }
 0x1a4   :  { %1480 = vmatprep.subr.bf16.mxu0 %v5289_v56 }
 0x1a6   :  { %1430 = vmatpush1.bf16.msra.mxu1 %v5192_v39 }
 0x1a7   :  { %1481 = vmatpush1.bf16.msra.mxu0 %v5288_v40  ;;  %1431 = vmatprep.subr.bf16.mxu1 %v5185_v43  ;;  %v333_v40 = vrot.slane %v7084_v61, %v6681_v10 }
 0x1aa   :  { %1432 = vmatpush1.bf16.msra.mxu1 %v5184_v0  ;;  %5317 = vmatmul.mubr.msk.bf16.vlgmr.msra.gmra.mxu0 %vm66_vm0, %v6718_v42  ;;  %v287_v42 = vld [vmem:[%s8356_s4 + $0x3f8] sm:$0xff] }
 0x1ab   :  { %1433 = vmatprep.subr.bf16.mxu1 %v5177_v1  ;;  %v5281_v16 = vcombine.high %v283_v14, %v287_v42  ;;  %v5280_v19 = vcombine.low %v283_v14, %v287_v42  ;;  %v6359_v1 = vmov 0.0  }
 0x1ac   :  { %5749 = vmatprep.subr.bf16.mxu0 %v6359_v1  ;;  %5751 = vmatprep.mubr.msk.bf16.mxu0 %vm6360_vm1, %v6359_v1 }
 0x1ae   :  { %1434 = vmatpush1.bf16.msra.mxu1 %v5176_v4 }
 0x1af   :  { %1435 = vmatprep.subr.bf16.mxu1 %v5169_v5 }
 0x1b2   :  { %1436 = vmatpush1.bf16.msra.mxu1 %v5168_v11 }
 0x1b3   :  { %1437 = vmatprep.subr.bf16.mxu1 %v5161_v13 }
 0x1b6   :  { %1438 = vmatpush1.bf16.msra.mxu1 %v5160_v15 }
 0x1b7   :  { %1439 = vmatprep.subr.bf16.mxu1 %v5281_v16  ;;  %v325_v16 = vrot.slane %v7084_v61, %v6687_v12 }
 0x1ba   :  { %1440 = vmatpush2.bf16.msra.mxu1 %v5280_v19 }
 0x1bb   :  { %1441 = vmatprep.subr.bf16.mxu1 %v5273_v20 }
 0x1be   :  { %1442 = vmatpush2.bf16.msra.mxu1 %v5272_v24 }
 0x1bf   :  { %1443 = vmatprep.subr.bf16.mxu1 %v5265_v25 }
 0x1c2   :  { %1444 = vmatpush2.bf16.msra.mxu1 %v5264_v27 }
 0x1c3   :  { %1445 = vmatprep.subr.bf16.mxu1 %v5257_v28  ;;  %v341_v28 = vrot.slane %v7084_v61, %v340_v23 }
 0x1c6   :  { %1446 = vmatpush2.bf16.msra.mxu1 %v5256_v30 }
 0x1c7   :  { %1447 = vmatprep.subr.bf16.mxu1 %v5249_v50 }
 0x1ca   :  { %1448 = vmatpush2.bf16.msra.mxu1 %v5248_v33 }
 0x1cb   :  { %1449 = vmatprep.subr.bf16.mxu1 %v5241_v34 }
 0x1ce   :  { %1450 = vmatpush2.bf16.msra.mxu1 %v5240_v60 }
 0x1cf   :  { %1451 = vmatprep.subr.bf16.mxu1 %v5233_v58 }
 0x1d2   :  { %1452 = vmatpush2.bf16.msra.mxu1 %v5232_v38  ;;  %v348_v38 = vsub.s32 6, %v6675_v8 }
 0x1d3   :  { %1453 = vmatprep.subr.bf16.mxu1 %v5225_v45  ;;  %v352_v45 = vsub.s32 7, %v6675_v8 }
 0x1d6   :  { %1454 = vmatpush2.bf16.msra.mxu1 %v5224_v46 }
 0x1d7   :  { %5737 = vmatprep.subr.bf16.mxu1 %v6359_v1 }
 0x1d9   :  { %1456 = vmatmul.mubr.bf16.vlgmr.msra.gmra.mxu1 %v6720_v44 }
 0x1da   :  { %5739 = vmatprep.mubr.msk.bf16.mxu1 %vm6360_vm1, %v6359_v1 }
 0x209   :  { %v1242_v48 = vpop.f32.mrf.mxu1 }
 0x20a   :  { %v1199_v47 = vpop.f32.mrf.mxu0 }
 0x20b   :  { %v1244_v41 = vpop.f32.mrf.mxu1  ;;  %v1200_v51 = vadd.f32 %v1199_v47, %v325_v16  ;;  %v349_v47 = vrot.slane %v7084_v61, %v348_v38 }
 0x20c   :  { %v1201_v49 = vpop.f32.mrf.mxu0 }
 0x20d   :  { %v1246_v54 = vpop.f32.mrf.mxu1  ;;  %v1202_v13 = vadd.f32 %v1201_v49, %v329_v63  ;;  %v1243_v30 = vadd.f32 %v1242_v48, %v1200_v51  ;;  %v7151_v51 = vld [vmem:[%s8353_s1] sm:$0xff] }
 0x20e   :  { %v1203_v53 = vpop.f32.mrf.mxu0 }
 0x20f   :  { %v1248_v39 = vpop.f32.mrf.mxu1  ;;  %v1245_v24 = vadd.f32 %v1244_v41, %v1202_v13  ;;  %v1204_v25 = vadd.f32 %v1203_v53, %v325_v16  ;;  %v7123_v41 = vrot.slane %v7084_v61, %v352_v45 }
 0x210   :  { %v1205_v55 = vpop.f32.mrf.mxu0 }
 0x211   :  { %v1206_v3 = vadd.f32 %v1205_v55, %v329_v63  ;;  %v1247_v52 = vadd.f32 %v1246_v54, %v1204_v25 }
 0x213   :  { %v1249_v17 = vadd.f32 %v1248_v39, %v1206_v3  ;;  %v1509_v34 = vpack.c.bf16 %v1247_v52, %v1243_v30  ;;  %v344_v3 = vsub.s32 5, %v6675_v8 }
 0x215   :  { %v7108_v27 = vpack.c.bf16 %v1249_v17, %v1245_v24 }
 0x21a   :  { %v1328_v56 = vpop.f32.mrf.mxu0 }
 0x21c   :  { %v1330_v44 = vpop.f32.mrf.mxu0 }
 0x21e   :  { %v1332_v4 = vpop.f32.mrf.mxu0 }
 0x220   :  { %v1334_v18 = vpop.f32.mrf.mxu0 }
 0x249   :  { %v1285_v43 = vpop.f32.mrf.mxu1 }
 0x24a   :  { %v1286_v2 = vadd.f32 %v1285_v43, %v333_v40 }
 0x24b   :  { %v1287_v0 = vpop.f32.mrf.mxu1 }
 0x24c   :  { %v1288_v6 = vadd.f32 %v1287_v0, %v337_v62  ;;  %v1329_v14 = vadd.f32 %v1328_v56, %v1286_v2 }
 0x24d   :  { %v1289_v5 = vpop.f32.mrf.mxu1 }
 0x24e   :  { %v1290_v7 = vadd.f32 %v1289_v5, %v333_v40  ;;  %v1331_v19 = vadd.f32 %v1330_v44, %v1288_v6 }
 0x24f   :  { %v1291_v11 = vpop.f32.mrf.mxu1 }
 0x250   :  { %v1333_v42 = vadd.f32 %v1332_v4, %v1290_v7  ;;  %v1292_v15 = vadd.f32 %v1291_v11, %v337_v62  ;;  %v345_v4 = vrot.slane %v7084_v61, %v344_v3 }
 0x252   :  { %v1335_v20 = vadd.f32 %v1334_v18, %v1292_v15  ;;  %v7097_v21 = vpack.c.bf16 %v1333_v42, %v1329_v14 }
 0x254   :  { %1514 = vrot.lane.b32.xlu0 %v7097_v21, %s6361_s5  ;;  %v7105_v26 = vpack.c.bf16 %v1335_v20, %v1331_v19 }
 0x256   :  { %1516 = vrot.lane.b32.xlu1 %v7105_v26, %s6361_s5 }
 0x258   :  { %1669 = vrot.lane.b32.xlu0 %v7108_v27, %s6362_s20 }
 0x259   :  { %v1414_v29 = vpop.f32.mrf.mxu1 }
 0x25a   :  { %v1371_v50 = vpop.f32.mrf.mxu0  ;;  %1673 = vrot.lane.b32.xlu1 %v7105_v26, %s6363_s21 }
 0x25b   :  { %v1372_v31 = vadd.f32 %v1371_v50, %v341_v28  ;;  %v1416_v32 = vpop.f32.mrf.mxu1 }
 0x25c   :  { %v1373_v33 = vpop.f32.mrf.mxu0 }
 0x25d   :  { %v1415_v35 = vadd.f32 %v1414_v29, %v1372_v31  ;;  %v1418_v58 = vpop.f32.mrf.mxu1  ;;  %v1374_v14 = vadd.f32 %v1373_v33, %v345_v4 }
 0x25e   :  { %v1375_v59 = vpop.f32.mrf.mxu0  ;;  %1667 = vrot.lane.b32.xlu1 %v1509_v34, %s6362_s20 }
 0x25f   :  { %v1376_v60 = vadd.f32 %v1375_v59, %v341_v28  ;;  %v1420_v48 = vpop.f32.mrf.mxu1  ;;  %v1417_v17 = vadd.f32 %v1416_v32, %v1374_v14  ;;  %v7159_v32 = vld [vmem:[%s8353_s1 + $0x8] sm:$0xff]  ;;  %s6364_s1 = smov 32  }
 0x260   :  { %v1377_v46 = vpop.f32.mrf.mxu0 }
 0x261   :  { %v1419_v36 = vadd.f32 %v1418_v58, %v1376_v60  ;;  %v1378_v7 = vadd.f32 %v1377_v46, %v345_v4 }
 0x263   :  { %v7117_v37 = vpack.c.bf16 %v1419_v36, %v1415_v35  ;;  %v1421_v15 = vadd.f32 %v1420_v48, %v1378_v7 }
 0x265   :  { %v7136_v18 = vpack.c.bf16 %v1421_v15, %v1417_v17  ;;  %v5886_v17 = vld [vmem:[%s8358_s6 + $0xd8] ss:$12 sps:$4 sm:$0xff]  }
 0x26a   :  { %v1500_v49 = vpop.f32.mrf.mxu0 }
 0x26c   :  { %v1502_v55 = vpop.f32.mrf.mxu0 }
 0x26e   :  { %v1504_v63 = vpop.f32.mrf.mxu0 }
 0x270   :  { %v7153_v28 = vpop.f32.mrf.mxu0 }
 0x299   :  { %v1457_v53 = vpop.f32.mrf.mxu1 }
 0x29a   :  { %v1458_v54 = vadd.f32 %v1457_v53, %v349_v47 }
 0x29b   :  { %v1459_v56 = vpop.f32.mrf.mxu1 }
 0x29c   :  { %v1501_v39 = vadd.f32 %v1500_v49, %v1458_v54  ;;  %v1460_v40 = vadd.f32 %v1459_v56, %v7123_v41 }
 0x29d   :  { %v1461_v44 = vpop.f32.mrf.mxu1 }
 0x29e   :  { %v7126_v43 = vadd.f32 %v1502_v55, %v1460_v40  ;;  %v1462_v62 = vadd.f32 %v1461_v44, %v349_v47 }
 0x29f   :  { %v7146_v24 = vpop.f32.mrf.mxu1 }
 0x2a0   :  { %v1505_v0 = vadd.f32 %v1504_v63, %v1462_v62 }
 0x2a2   :  { %v7128_v2 = vpack.c.bf16 %v1505_v0, %v1501_v39 }
 0x2c6   :  { %v1515_v5 = vpop.permute.xlu0 %1514 }
 0x2c8   :  { %v1517_v6 = vpop.permute.xlu1 %1516 }
 0x2c9   :  { %v1519_v11 = vsel %vm66_vm0, %v1515_v5, %v1517_v6 }
 0x2ca   :  { %v1525_v13 = vsel %vm1520_vm2, %v1519_v11, 0  ;;  %v1670_v19 = vpop.permute.xlu0 %1669 }
 0x2cb   :  { %5738 = vmatpush3.bf16.xpose.msra.mxu1 %v1525_v13 }
 0x2cc   :  { %v1674_v42 = vpop.permute.xlu1 %1673  ;;  %5743 = vmatprep.subr.bf16.mxu1 %v6359_v1 }
 0x2cd   :  { %v1679_v16 = vsel %vm1520_vm2, %v1674_v42, 0 }
 0x2ce   :  { %5750 = vmatpush3.bf16.xpose.msra.mxu0 %v1679_v16 }
 0x2d0   :  { %v1668_v61 = vpop.permute.xlu1 %1667 }
 0x2d1   :  { %v1672_v20 = vsel %vm1671_vm3, %v1668_v61, %v1670_v19  ;;  %v5890_v61 = vld [vmem:[%s8358_s6 + $0xc0] ss:$12 sps:$4 sm:$0xff]  }
 0x2d2   :  { %5740 = vmatmul.mubr.msk.bf16.vlgmr.msra.gmra.mxu1 %vm1520_vm2, %v1509_v34 }
 0x2d3   :  { %5744 = vmatpush3.bf16.msra.mxu1 %v7136_v18  ;;  %5745 = vmatprep.mubr.msk.bf16.mxu1 %vm6360_vm1, %v6359_v1 }
 0x2d4   :  { %5755 = vmatprep.subr.bf16.mxu1 %v6359_v1 }
 0x2d5   :  { %5752 = vmatmul.mubr.msk.bf16.vlgmr.msra.gmra.mxu0 %vm1520_vm2, %v1672_v20 }
 0x2d6   :  { %1940 = vmatprep.mubr.bf16.mxu0 %v6358_v22 }
 0x392   :  { %v1561_v25 = vpop.f32.mrf.mxu1 }
 0x393   :  { %v1568_v52 = vmul.f32 0.1118034, %v1561_v25 }
 0x394   :  { %v5741_v29 = vpop.f32.mrf.mxu1 }
 0x395   :  { %v1715_v30 = vpop.f32.mrf.mxu0  ;;  %v1570_v50 = vadd.f32 %v1568_v52, %v7151_v51 }
 0x396   :  { %v1564_v31 = vpop.f32.mrf.mxu1  ;;  %v1722_v33 = vmul.f32 0.1118034, %v1715_v30 }
 0x397   :  { %v1569_v34 = vmul.f32 0.1118034, %v1564_v31  ;;  %v5753_v35 = vpop.f32.mrf.mxu0  ;;  %v1573_v59 = vsel %vm1572_vm4, %v1570_v50, -inf }
 0x398   :  { %1574 = vmax.xlane.f32.xlu1 %v1573_v59  ;;  %v5742_v60 = vpop.f32.mrf.mxu1  ;;  %v1724_v47 = vadd.f32 %v1722_v33, %v7151_v51 }
 0x399   :  { %v1718_v58 = vpop.f32.mrf.mxu0  ;;  %v1571_v36 = vadd.f32 %v1569_v34, %v7159_v32 }
 0x39a   :  { %v1723_v38 = vmul.f32 0.1118034, %v1718_v58  ;;  %v1726_v48 = vsel %vm1572_vm4, %v1724_v47, -inf }
 0x39b   :  { %v5754_v45 = vpop.f32.mrf.mxu0  ;;  %v1576_v46 = vsel %vm1572_vm4, %v1571_v36, -inf }
 0x39c   :  { %1577 = vmax.xlane.f32.xlu0 %v1576_v46  ;;  %v1725_v49 = vadd.f32 %v1723_v38, %v7159_v32 }
 0x39e   :  { %v1729_v53 = vsel %vm1572_vm4, %v1725_v49, -inf }
 0x3a0   :  { %1727 = vmax.xlane.f32.xlu0 %v1726_v48 }
 0x3a4   :  { %1730 = vmax.xlane.f32.xlu0 %v1729_v53 }
 0x421   :  { %v1575_v54 = vpop.xlane.xlu1 %1574 }
 0x422   :  { %v1579_v55 = vsub.f32 %v1570_v50, %v1575_v54  ;;  %v5893_v54 = vld [vmem:[%s8358_s6 + $0xc8] ss:$12 sps:$4 sm:$0xff]  }
 0x424   :  { %v1581_v56 = vmul.f32 1.442695, %v1579_v55  ;;  %v5896_v55 = vld [vmem:[%s8358_s6 + $0xac] ss:$12 sps:$4 sm:$0xff]  }
 0x425   :  { %v1578_v39 = vpop.xlane.xlu0 %1577 }
 0x426   :  { %6270 = vpow2.f32 %v1581_v56  ;;  %v1580_v40 = vsub.f32 %v1571_v36, %v1578_v39  ;;  %v5894_v56 = vld [vmem:[%s8358_s6 + $0xa8] ss:$12 sps:$4 sm:$0xff]   ;;  %v5897_v39 = vld [vmem:[%s8358_s6 + $0xb0] ss:$12 sps:$4 sm:$0xff]  }
 0x428   :  { %v1583_v44 = vmul.f32 1.442695, %v1580_v40  ;;  %v5900_v40 = vld [vmem:[%s8358_s6 + $0x94] ss:$12 sps:$4 sm:$0xff]  }
 0x429   :  { %v1728_v62 = vpop.xlane.xlu0 %1727 }
 0x42a   :  { %6272 = vpow2.f32 %v1583_v44  ;;  %v1732_v63 = vsub.f32 %v1724_v47, %v1728_v62  ;;  %v5898_v44 = vld [vmem:[%s8358_s6 + $0x90] ss:$12 sps:$4 sm:$0xff]   ;;  %v5901_v62 = vld [vmem:[%s8358_s6 + $0x98] ss:$12 sps:$4 sm:$0xff]  }
 0x42c   :  { %v1734_v0 = vmul.f32 1.442695, %v1732_v63  ;;  %v5904_v63 = vld [vmem:[%s8358_s6 + $0x7c] ss:$12 sps:$4 sm:$0xff]  }
 0x42d   :  { %v1731_v3 = vpop.xlane.xlu0 %1730 }
 0x42e   :  { %6274 = vpow2.f32 %v1734_v0  ;;  %v1733_v4 = vsub.f32 %v1725_v49, %v1731_v3  ;;  %v5889_v49 = vld [vmem:[%s8358_s6 + $0xe0] ss:$12 sps:$4 sm:$0xff]   ;;  %v5902_v0 = vld [vmem:[%s8358_s6 + $0x78] ss:$12 sps:$4 sm:$0xff]  }
 0x42f   :  { %v5905_v3 = vld [vmem:[%s8358_s6 + $0x80] ss:$12 sps:$4 sm:$0xff]  }
 0x430   :  { %v1736_v5 = vmul.f32 1.442695, %v1733_v4  ;;  %v5908_v4 = vld [vmem:[%s8358_s6 + $0x64] ss:$12 sps:$4 sm:$0xff]  }
 0x432   :  { %6276 = vpow2.f32 %v1736_v5 }
 0x433   :  { %v6271_v6 = vpop.eup %6270 }
 0x434   :  { %v1585_v7 = vsel %vm1572_vm4, %v6271_v6, 0.0 }
 0x435   :  { %1586 = vadd.xlane.f32.xlu1 %v1585_v7 }
 0x437   :  { %v6273_v11 = vpop.eup %6272 }
 0x438   :  { %v1588_v13 = vsel %vm1572_vm4, %v6273_v11, 0.0 }
 0x439   :  { %1589 = vadd.xlane.f32.xlu0 %v1588_v13 }
 0x43b   :  { %v6275_v14 = vpop.eup %6274 }
 0x43c   :  { %v1738_v42 = vsel %vm1572_vm4, %v6275_v14, 0.0 }
 0x43d   :  { %1739 = vadd.xlane.f32.xlu1 %v1738_v42 }
 0x43f   :  { %v6277_v15 = vpop.eup %6276 }
 0x440   :  { %v1741_v16 = vsel %vm1572_vm4, %v6277_v15, 0.0 }
 0x441   :  { %1742 = vadd.xlane.f32.xlu0 %v1741_v16  ;;  %v5909_v16 = vld [vmem:[%s8358_s6 + $0x68] ss:$12 sps:$4 sm:$0xff]  }
 0x44e   :  { %1754 = vrot.lane.b32.xlu1 %v7136_v18, %s6362_s20  ;;  %v5888_v18 = vld [vmem:[%s8358_s6 + $0xdc] ss:$12 sps:$4 sm:$0xff]  }
 0x44f   :  { %1914 = vmatprep.subr.bf16.mxu0 %v5888_v18  ;;  %v5912_v18 = vld [vmem:[%s8358_s6 + $0x4c] ss:$12 sps:$4 sm:$0xff]  }
 0x450   :  { %1915 = vmatpush1.bf16.msra.mxu0 %v5886_v17 }
 0x452   :  { %2163 = vrot.lane.b32.xlu1 %v7105_v26, %s6364_s1  ;;  %v5892_v26 = vld [vmem:[%s8358_s6 + $0xc4] ss:$12 sps:$4 sm:$0xff]  }
 0x453   :  { %1916 = vmatprep.subr.bf16.mxu0 %v5892_v26 }
 0x454   :  { %1917 = vmatpush1.bf16.msra.mxu0 %v5890_v61  ;;  %v5910_v61 = vld [vmem:[%s8358_s6 + $0x48] ss:$12 sps:$4 sm:$0xff]  }
 0x455   :  { %1918 = vmatprep.subr.bf16.mxu0 %v5896_v55 }
 0x456   :  { %2165 = vrot.lane.b32.xlu1 %v7117_v37, %s6364_s1 }
 0x457   :  { %1756 = vrot.lane.b32.xlu0 %v7128_v2, %s6362_s20 }
 0x458   :  { %1919 = vmatpush1.bf16.msra.mxu0 %v5894_v56 }
 0x459   :  { %1920 = vmatprep.subr.bf16.mxu0 %v5900_v40 }
 0x45a   :  { %2160 = vrot.lane.b32.xlu1 %v7108_v27, %s6365_s27 }
 0x45c   :  { %1921 = vmatpush1.bf16.msra.mxu0 %v5898_v44 }
 0x45d   :  { %1922 = vmatprep.subr.bf16.mxu0 %v5904_v63 }
 0x460   :  { %1923 = vmatpush1.bf16.msra.mxu0 %v5902_v0 }
 0x461   :  { %2081 = vmatprep.subr.bf16.mxu0 %v5908_v4 }
 0x4be   :  { %v1587_v19 = vpop.xlane.xlu1 %1586 }
 0x4bf   :  { %v1591_v20 = vmax.f32 %v1587_v19, 1e-20  ;;  %v5913_v19 = vld [vmem:[%s8358_s6 + $0x50] ss:$12 sps:$4 sm:$0xff]  }
 0x4c1   :  { %6278 = vrcp.f32 %v1591_v20  ;;  %v5916_v20 = vld [vmem:[%s8358_s6 + $0x34] ss:$12 sps:$4 sm:$0xff]  }
 0x4c2   :  { %v1590_v25 = vpop.xlane.xlu0 %1589 }
 0x4c3   :  { %v1592_v52 = vmax.f32 %v1590_v25, 1e-20  ;;  %v5914_v25 = vld [vmem:[%s8358_s6 + $0x30] ss:$12 sps:$4 sm:$0xff]  }
 0x4c5   :  { %6280 = vrcp.f32 %v1592_v52  ;;  %v5917_v52 = vld [vmem:[%s8358_s6 + $0x38] ss:$12 sps:$4 sm:$0xff]  }
 0x4c6   :  { %v1740_v29 = vpop.xlane.xlu1 %1739 }
 0x4c7   :  { %v1744_v30 = vmax.f32 %v1740_v29, 1e-20  ;;  %v5920_v29 = vld [vmem:[%s8358_s6 + $0x1c] ss:$12 sps:$4 sm:$0xff]  }
 0x4c9   :  { %6282 = vrcp.f32 %v1744_v30 }
 0x4ca   :  { %v1743_v50 = vpop.xlane.xlu0 %1742  ;;  %v1755_v36 = vpop.permute.xlu1 %1754 }
 0x4cb   :  { %v1745_v31 = vmax.f32 %v1743_v50, 1e-20  ;;  %v5918_v50 = vld [vmem:[%s8358_s6 + $0x18] ss:$12 sps:$4 sm:$0xff]  }
 0x4cd   :  { %6284 = vrcp.f32 %v1745_v31  ;;  %v5921_v31 = vld [vmem:[%s8358_s6 + $0x20] ss:$12 sps:$4 sm:$0xff]  }
 0x4ce   :  { %v6279_v33 = vpop.eup %6278  ;;  %v1757_v60 = vpop.permute.xlu0 %1756 }
 0x4cf   :  { %v1595_v35 = vmul.f32 %v6279_v33, %v6271_v6  ;;  %v1758_v38 = vsel %vm1671_vm3, %v1755_v36, %v1757_v60  ;;  %v2164_v30 = vpop.permute.xlu1 %2163  ;;  %v5924_v33 = vld [vmem:[%s8358_s6 + $0x4] ss:$12 sps:$4 sm:$0xff]  }
 0x4d2   :  { %v6281_v34 = vpop.eup %6280 }
 0x4d3   :  { %v1596_v59 = vmul.f32 %v6281_v34, %v6273_v11  ;;  %v5922_v34 = vld [vmem:[%s8358_s6] ss:$12 sps:$4 sm:$0xff]  }
 0x4d5   :  { %v1597_v58 = vpack.c.bf16 %v1596_v59, %v1595_v35  ;;  %v5925_v35 = vld [vmem:[%s8358_s6 + $0x8] ss:$12 sps:$4 sm:$0xff]   ;;  %v2166_v59 = vpop.permute.xlu1 %2165 }
 0x4d6   :  { %v6283_v45 = vpop.eup %6282  ;;  %v2168_v60 = vsel %vm2167_vm5, %v2164_v30, %v2166_v59  ;;  %v5932_v59 = vld [vmem:[%s8358_s6 + $0x13c] ss:$12 sps:$4 sm:$0xff]  }
 0x4d7   :  { %5746 = vmatmul.mubr.msk.bf16.vlgmr.msra.gmra.mxu1 %vm1572_vm4, %v1597_v58  ;;  %v1748_v47 = vmul.f32 %v6283_v45, %v6275_v14  ;;  %v2173_v36 = vsel %vm1520_vm2, %v2168_v60, 0  ;;  %v5930_v60 = vld [vmem:[%s8358_s6 + $0x138] ss:$12 sps:$4 sm:$0xff]  }
 0x4d8   :  { %5756 = vmatpush3.bf16.msra.mxu1 %v1758_v38  ;;  %5757 = vmatprep.mubr.msk.bf16.mxu1 %vm6360_vm1, %v6359_v1 }
 0x4d9   :  { %5761 = vmatprep.subr.bf16.mxu1 %v6359_v1  ;;  %v2161_v38 = vpop.permute.xlu1 %2160 }
 0x4da   :  { %v6285_v46 = vpop.eup %6284 }
 0x4db   :  { %v1749_v48 = vmul.f32 %v6285_v46, %v6277_v15  ;;  %v5906_v15 = vld [vmem:[%s8358_s6 + $0x60] ss:$12 sps:$4 sm:$0xff]  }
 0x4dd   :  { %v1750_v53 = vpack.c.bf16 %v1749_v48, %v1748_v47 }
 0x4df   :  { %5758 = vmatmul.mubr.msk.bf16.vlgmr.msra.gmra.mxu1 %vm1572_vm4, %v1750_v53 }
 0x4e0   :  { %5762 = vmatpush3.bf16.msra.mxu1 %v5889_v49  ;;  %5771 = vmatprep.mubr.msk.bf16.mxu1 %vm6360_vm1, %v6359_v1 }
 0x4e1   :  { %5763 = vmatprep.subr.bf16.mxu1 %v6359_v1 }
 0x4e4   :  { %5764 = vmatpush3.bf16.msra.mxu1 %v5893_v54 }
 0x4e5   :  { %5765 = vmatprep.subr.bf16.mxu1 %v6359_v1 }
 0x4e8   :  { %5766 = vmatpush3.bf16.msra.mxu1 %v5897_v39 }
 0x4e9   :  { %5767 = vmatprep.subr.bf16.mxu1 %v6359_v1 }
 0x4ec   :  { %5768 = vmatpush3.bf16.msra.mxu1 %v5901_v62 }
 0x4ed   :  { %5769 = vmatprep.subr.bf16.mxu1 %v6359_v1 }
 0x4f0   :  { %5770 = vmatpush3.bf16.msra.mxu1 %v5905_v3 }
 0x4f1   :  { %5775 = vmatprep.subr.bf16.mxu1 %v6359_v1 }
 0x597   :  { %v1636_v5 = vpop.f32.mrf.mxu1 }
 0x599   :  { %v5747_v6 = vpop.f32.mrf.mxu1 }
 0x59b   :  { %v1639_v7 = vpop.f32.mrf.mxu1 }
 0x59c   :  { %v1663_v58 = vpack.c.bf16 %v1639_v7, %v1636_v5 }
 0x59d   :  { %v5748_v11 = vpop.f32.mrf.mxu1 }
 0x59f   :  { %v1797_v13 = vpop.f32.mrf.mxu1 }
 0x5a1   :  { %v5759_v14 = vpop.f32.mrf.mxu1 }
 0x5a3   :  { %v1800_v42 = vpop.f32.mrf.mxu1 }
 0x5a4   :  { %v1824_v17 = vpack.c.bf16 %v1800_v42, %v1797_v13 }
 0x5a5   :  { %v5760_v26 = vpop.f32.mrf.mxu1 }
 0x5a6   :  { %5337 = vmatmul.mubr.msk.bf16.vlgmr.msra.gmra.mxu0 %vm1520_vm2, %v1824_v17  ;;  %5772 = vmatmul.mubr.msk.bf16.vlgmr.msra.gmra.mxu1 %vm1520_vm2, %v1824_v17 }
 0x5a7   :  { %2082 = vmatpush1.bf16.msra.mxu0 %v5906_v15  ;;  %5776 = vmatpush3.bf16.msra.mxu1 %v5909_v16 }
 0x5a8   :  { %2083 = vmatprep.subr.bf16.mxu0 %v5912_v18  ;;  %5777 = vmatprep.subr.bf16.mxu1 %v6359_v1 }
 0x5a9   :  { %2107 = vmatprep.mubr.bf16.mxu0 %v6358_v22  ;;  %5785 = vmatprep.mubr.msk.bf16.mxu1 %vm6360_vm1, %v6359_v1 }
 0x5ab   :  { %2084 = vmatpush1.bf16.msra.mxu0 %v5910_v61  ;;  %5778 = vmatpush3.bf16.msra.mxu1 %v5913_v19 }
 0x5ac   :  { %2085 = vmatprep.subr.bf16.mxu0 %v5916_v20  ;;  %5779 = vmatprep.subr.bf16.mxu1 %v6359_v1 }
 0x5af   :  { %2086 = vmatpush1.bf16.msra.mxu0 %v5914_v25  ;;  %5780 = vmatpush3.bf16.msra.mxu1 %v5917_v52 }
 0x5b0   :  { %2087 = vmatprep.subr.bf16.mxu0 %v5920_v29  ;;  %5781 = vmatprep.subr.bf16.mxu1 %v6359_v1 }
 0x5b3   :  { %2088 = vmatpush1.bf16.msra.mxu0 %v5918_v50  ;;  %5782 = vmatpush3.bf16.msra.mxu1 %v5921_v31 }
 0x5b4   :  { %2089 = vmatprep.subr.bf16.mxu0 %v5924_v33  ;;  %5783 = vmatprep.subr.bf16.mxu1 %v6359_v1 }
 0x5b7   :  { %2090 = vmatpush1.bf16.msra.mxu0 %v5922_v34  ;;  %5784 = vmatpush3.bf16.msra.mxu1 %v5925_v35 }
 0x5b8   :  { %5789 = vmatprep.subr.bf16.mxu0 %v6359_v1  ;;  %5795 = vmatprep.subr.bf16.mxu1 %v6359_v1 }
 0x5ba   :  { %5354 = vmatmul.mubr.msk.bf16.vlgmr.msra.gmra.mxu0 %vm1520_vm2, %v1663_v58  ;;  %5786 = vmatmul.mubr.msk.bf16.vlgmr.msra.gmra.mxu1 %vm1520_vm2, %v1663_v58  ;;  %v5936_v58 = vld [vmem:[%s8358_s6 + $0x124] ss:$12 sps:$4 sm:$0xff]  }
 0x5bb   :  { %5790 = vmatpush3.bf16.xpose.msra.mxu0 %v2173_v36  ;;  %5791 = vmatprep.mubr.msk.bf16.mxu0 %vm6360_vm1, %v6359_v1  ;;  %v5934_v36 = vld [vmem:[%s8358_s6 + $0x120] ss:$12 sps:$4 sm:$0xff]  }
 0x5bc   :  { %5797 = vmatprep.mubr.msk.bf16.mxu1 %vm6360_vm1, %v6359_v1 }
 0x5c2   :  { %5792 = vmatmul.mubr.msk.bf16.vlgmr.msra.gmra.mxu0 %vm1520_vm2, %v2161_v38  ;;  %v5940_v38 = vld [vmem:[%s8358_s6 + $0x10c] ss:$12 sps:$4 sm:$0xff]  }
 0x5c3   :  { %2428 = vmatprep.mubr.bf16.mxu0 %v6358_v22 }
 0x666   :  { %v1985_v45 = vpop.f32.mrf.mxu1  ;;  %v1942_v48 = vpop.f32.mrf.mxu0 }
 0x668   :  { %v5773_v46 = vpop.f32.mrf.mxu1  ;;  %v1944_v53 = vpop.f32.mrf.mxu0 }
 0x66a   :  { %v1988_v47 = vpop.f32.mrf.mxu1  ;;  %v1946_v54 = vpop.f32.mrf.mxu0 }
 0x66c   :  { %v5774_v49 = vpop.f32.mrf.mxu1  ;;  %v1948_v55 = vpop.f32.mrf.mxu0 }
 0x67a   :  { %v2109_v56 = vpop.f32.mrf.mxu0  ;;  %v2152_v39 = vpop.f32.mrf.mxu1 }
 0x67b   :  { %v7303_v40 = vadd.f32 %v2109_v56, %v1942_v48  ;;  %v7305_v44 = vadd.f32 %v2152_v39, %v1985_v45  ;;  %v5938_v45 = vld [vmem:[%s8358_s6 + $0x108] ss:$12 sps:$4 sm:$0xff]  }
 0x67c   :  { %v2111_v62 = vpop.f32.mrf.mxu0  ;;  %v5787_v63 = vpop.f32.mrf.mxu1 }
 0x67d   :  { %v7307_v0 = vadd.f32 %v2111_v62, %v1944_v53  ;;  %v5929_v62 = vld [vmem:[%s8358_s6 + $0x158] ss:$12 sps:$4 sm:$0xff]  }
 0x67e   :  { %v2113_v3 = vpop.f32.mrf.mxu0  ;;  %v2155_v4 = vpop.f32.mrf.mxu1 }
 0x67f   :  { %v7309_v5 = vadd.f32 %v2113_v3, %v1946_v54  ;;  %v7311_v6 = vadd.f32 %v2155_v4, %v1988_v47  ;;  %v5933_v3 = vld [vmem:[%s8358_s6 + $0x140] ss:$12 sps:$4 sm:$0xff]   ;;  %v5937_v4 = vld [vmem:[%s8358_s6 + $0x128] ss:$12 sps:$4 sm:$0xff]  }
 0x680   :  { %v2115_v7 = vpop.f32.mrf.mxu0  ;;  %v5788_v11 = vpop.f32.mrf.mxu1 }
 0x681   :  { %v7313_v13 = vadd.f32 %v2115_v7, %v1948_v55  ;;  %v5941_v7 = vld [vmem:[%s8358_s6 + $0x110] ss:$12 sps:$4 sm:$0xff]   ;;  %v5944_v11 = vld [vmem:[%s8358_s6 + $0xf4] ss:$12 sps:$4 sm:$0xff]  }
 0x682   :  { %v2209_v14 = vpop.f32.mrf.mxu0 }
 0x683   :  { %v2216_v42 = vmul.f32 0.1118034, %v2209_v14  ;;  %v5942_v14 = vld [vmem:[%s8358_s6 + $0xf0] ss:$12 sps:$4 sm:$0xff]  }
 0x684   :  { %v5793_v15 = vpop.f32.mrf.mxu0 }
 0x685   :  { %v2218_v16 = vadd.f32 %v2216_v42, %v7151_v51  ;;  %v5945_v42 = vld [vmem:[%s8358_s6 + $0xf8] ss:$12 sps:$4 sm:$0xff]  }
 0x686   :  { %v2212_v17 = vpop.f32.mrf.mxu0 }
 0x687   :  { %v2217_v18 = vmul.f32 0.1118034, %v2212_v17  ;;  %v2220_v26 = vsel %vm1572_vm4, %v2218_v16, -inf }
 0x688   :  { %2221 = vmax.xlane.f32.xlu0 %v2220_v26  ;;  %v5794_v61 = vpop.f32.mrf.mxu0 }
 0x689   :  { %v2219_v19 = vadd.f32 %v2217_v18, %v7159_v32 }
 0x68b   :  { %v2223_v20 = vsel %vm1572_vm4, %v2219_v19, -inf }
 0x68c   :  { %2224 = vmax.xlane.f32.xlu1 %v2223_v20 }
 0x69d   :  { %2492 = vrot.lane.b32.xlu1 %v7117_v37, %s6366_s17 }
 0x6a1   :  { %2486 = vrot.lane.b32.xlu1 %v7108_v27, %s6367_s18  ;;  %v5928_v27 = vld [vmem:[%s8358_s6 + $0x154] ss:$12 sps:$4 sm:$0xff]  }
 0x6a2   :  { %2402 = vmatprep.subr.bf16.mxu0 %v5928_v27 }
 0x6a5   :  { %2488 = vrot.lane.b32.xlu1 %v7097_v21, %s6367_s18  ;;  %v5926_v21 = vld [vmem:[%s8358_s6 + $0x150] ss:$12 sps:$4 sm:$0xff]  }
 0x6a6   :  { %2403 = vmatpush1.bf16.msra.mxu0 %v5926_v21 }
 0x6a7   :  { %2404 = vmatprep.subr.bf16.mxu0 %v5932_v59 }
 0x6aa   :  { %2405 = vmatpush1.bf16.msra.mxu0 %v5930_v60 }
 0x6ab   :  { %2406 = vmatprep.subr.bf16.mxu0 %v5936_v58 }
 0x6ae   :  { %2407 = vmatpush1.bf16.msra.mxu0 %v5934_v36 }
 0x6af   :  { %2408 = vmatprep.subr.bf16.mxu0 %v5940_v38 }
 0x6b2   :  { %2409 = vmatpush1.bf16.msra.mxu0 %v5938_v45 }
 0x6b3   :  { %2410 = vmatprep.subr.bf16.mxu0 %v5944_v11  ;;  %v5960_v11 = vld [vmem:[%s8358_s6 + $0x184] ss:$12 sps:$4 sm:$0xff]  }
 0x6b6   :  { %2411 = vmatpush1.bf16.msra.mxu0 %v5942_v14  ;;  %v5958_v14 = vld [vmem:[%s8358_s6 + $0x180] ss:$12 sps:$4 sm:$0xff]  }
 0x6b7   :  { %5815 = vmatprep.subr.bf16.mxu0 %v6359_v1 }
 0x711   :  { %v2222_v25 = vpop.xlane.xlu0 %2221 }
 0x712   :  { %v2226_v52 = vsub.f32 %v2218_v16, %v2222_v25 }
 0x714   :  { %v2228_v29 = vmul.f32 1.442695, %v2226_v52 }
 0x715   :  { %v2225_v30 = vpop.xlane.xlu1 %2224 }
 0x716   :  { %6286 = vpow2.f32 %v2228_v29  ;;  %v2227_v50 = vsub.f32 %v2219_v19, %v2225_v30 }
 0x718   :  { %v2230_v31 = vmul.f32 1.442695, %v2227_v50 }
 0x719   :  { %v2493_v15 = vpop.permute.xlu1 %2492 }
 0x71a   :  { %6288 = vpow2.f32 %v2230_v31  ;;  %v2498_v20 = vsel %vm1520_vm2, %v2493_v15, 0 }
 0x71d   :  { %v2487_v26 = vpop.permute.xlu1 %2486 }
 0x721   :  { %v2489_v25 = vpop.permute.xlu1 %2488 }
 0x722   :  { %v2491_v52 = vsel %vm1572_vm4, %v2487_v26, %v2489_v25 }
 0x723   :  { %v6287_v33 = vpop.eup %6286 }
 0x724   :  { %v2232_v34 = vsel %vm1572_vm4, %v6287_v33, 0.0 }
 0x725   :  { %2233 = vadd.xlane.f32.xlu0 %v2232_v34 }
 0x727   :  { %v6289_v37 = vpop.eup %6288 }
 0x728   :  { %v2235_v35 = vsel %vm1572_vm4, %v6289_v37, 0.0 }
 0x729   :  { %2236 = vadd.xlane.f32.xlu0 %v2235_v35 }
 0x73f   :  { %2245 = vrot.lane.b32.xlu0 %v7128_v2, %s6365_s27 }
 0x7ae   :  { %v2234_v46 = vpop.xlane.xlu0 %2233 }
 0x7af   :  { %v2238_v47 = vmax.f32 %v2234_v46, 1e-20 }
 0x7b1   :  { %6290 = vrcp.f32 %v2238_v47 }
 0x7b2   :  { %v2237_v48 = vpop.xlane.xlu0 %2236 }
 0x7b3   :  { %v2239_v49 = vmax.f32 %v2237_v48, 1e-20 }
 0x7b5   :  { %6292 = vrcp.f32 %v2239_v49 }
 0x7b6   :  { %v2246_v53 = vpop.permute.xlu0 %2245 }
 0x7b7   :  { %5796 = vmatpush3.bf16.msra.mxu1 %v2246_v53 }
 0x7b8   :  { %5801 = vmatprep.subr.bf16.mxu1 %v6359_v1 }
 0x7be   :  { %v6291_v54 = vpop.eup %6290 }
 0x7bf   :  { %v2242_v56 = vmul.f32 %v6291_v54, %v6287_v33 }
 0x7c2   :  { %v6293_v55 = vpop.eup %6292 }
 0x7c3   :  { %v2243_v39 = vmul.f32 %v6293_v55, %v6289_v37 }
 0x7c5   :  { %v2244_v63 = vpack.c.bf16 %v2243_v39, %v2242_v56 }
 0x7c7   :  { %5798 = vmatmul.mubr.msk.bf16.vlgmr.msra.gmra.mxu1 %vm1572_vm4, %v2244_v63 }
 0x7c8   :  { %5802 = vmatpush3.bf16.msra.mxu1 %v5929_v62  ;;  %5811 = vmatprep.mubr.msk.bf16.mxu1 %vm6360_vm1, %v6359_v1 }
 0x7c9   :  { %5803 = vmatprep.subr.bf16.mxu1 %v6359_v1 }
 0x7cc   :  { %5804 = vmatpush3.bf16.msra.mxu1 %v5933_v3 }
 0x7cd   :  { %5805 = vmatprep.subr.bf16.mxu1 %v6359_v1 }
 0x7d0   :  { %5806 = vmatpush3.bf16.msra.mxu1 %v5937_v4  ;;  %v5950_v4 = vld [vmem:[%s8358_s6 + $0x1b0] ss:$12 sps:$4 sm:$0xff]  }
 0x7d1   :  { %5807 = vmatprep.subr.bf16.mxu1 %v6359_v1 }
 0x7d4   :  { %5808 = vmatpush3.bf16.msra.mxu1 %v5941_v7  ;;  %v5954_v7 = vld [vmem:[%s8358_s6 + $0x198] ss:$12 sps:$4 sm:$0xff]  }
 0x7d5   :  { %5809 = vmatprep.subr.bf16.mxu1 %v6359_v1 }
 0x7d8   :  { %5810 = vmatpush3.bf16.msra.mxu1 %v5945_v42 }
 0x7d9   :  { %5821 = vmatprep.subr.bf16.mxu1 %v6359_v1 }
 0x887   :  { %v2285_v16 = vpop.f32.mrf.mxu1 }
 0x889   :  { %v5799_v17 = vpop.f32.mrf.mxu1 }
 0x88b   :  { %v2288_v18 = vpop.f32.mrf.mxu1 }
 0x88c   :  { %v2312_v61 = vpack.c.bf16 %v2288_v18, %v2285_v16 }
 0x88d   :  { %v5800_v19 = vpop.f32.mrf.mxu1 }
 0x88e   :  { %5373 = vmatmul.mubr.msk.bf16.vlgmr.msra.gmra.mxu0 %vm1520_vm2, %v2312_v61  ;;  %5812 = vmatmul.mubr.msk.bf16.vlgmr.msra.gmra.mxu1 %vm1520_vm2, %v2312_v61 }
 0x88f   :  { %5816 = vmatpush3.bf16.xpose.msra.mxu0 %v2498_v20  ;;  %5817 = vmatprep.mubr.msk.bf16.mxu0 %vm6360_vm1, %v6359_v1 }
 0x890   :  { %5823 = vmatprep.mubr.msk.bf16.mxu1 %vm6360_vm1, %v6359_v1 }
 0x896   :  { %5818 = vmatmul.mubr.msk.bf16.vlgmr.msra.gmra.mxu0 %vm1520_vm2, %v2491_v52 }
 0x897   :  { %2758 = vmatprep.mubr.bf16.mxu0 %v6358_v22 }
 0x94e   :  { %v2430_v29 = vpop.f32.mrf.mxu0  ;;  %v2473_v30 = vpop.f32.mrf.mxu1 }
 0x94f   :  { %v7394_v50 = vadd.f32 %v2430_v29, %v7303_v40  ;;  %v7397_v31 = vadd.f32 %v2473_v30, %v7305_v44  ;;  %v5949_v29 = vld [vmem:[%s8358_s6 + $0x1d0] ss:$12 sps:$4 sm:$0xff]  }
 0x950   :  { %v2432_v33 = vpop.f32.mrf.mxu0  ;;  %v5813_v34 = vpop.f32.mrf.mxu1 }
 0x951   :  { %v7400_v37 = vadd.f32 %v2432_v33, %v7307_v0  ;;  %v5953_v33 = vld [vmem:[%s8358_s6 + $0x1b8] ss:$12 sps:$4 sm:$0xff]   ;;  %v5957_v34 = vld [vmem:[%s8358_s6 + $0x1a0] ss:$12 sps:$4 sm:$0xff]  }
 0x952   :  { %v2434_v35 = vpop.f32.mrf.mxu0  ;;  %v2476_v21 = vpop.f32.mrf.mxu1 }
 0x953   :  { %v7403_v27 = vadd.f32 %v2434_v35, %v7309_v5  ;;  %v7406_v59 = vadd.f32 %v2476_v21, %v7311_v6  ;;  %v5961_v35 = vld [vmem:[%s8358_s6 + $0x188] ss:$12 sps:$4 sm:$0xff]  }
 0x954   :  { %v2436_v60 = vpop.f32.mrf.mxu0  ;;  %v5814_v58 = vpop.f32.mrf.mxu1  ;;  %v5962_v21 = vld [vmem:[%s8358_s6 + $0x168] ss:$12 sps:$4 sm:$0xff]  }
 0x955   :  { %v7409_v40 = vadd.f32 %v2436_v60, %v7313_v13  ;;  %v1464_v13 = vadd.f32 %v7146_v24, %v7123_v41  ;;  %v5948_v24 = vld [vmem:[%s8358_s6 + $0x1cc] ss:$12 sps:$4 sm:$0xff]   ;;  %v5965_v58 = vld [vmem:[%s8358_s6 + $0x170] ss:$12 sps:$4 sm:$0xff]  }
 0x956   :  { %v2534_v44 = vpop.f32.mrf.mxu0  ;;  %2732 = vmatprep.subr.bf16.mxu0 %v5948_v24  ;;  %v5964_v60 = vld [vmem:[%s8358_s6 + $0x16c] ss:$12 sps:$4 sm:$0xff]  }
 0x957   :  { %v2541_v36 = vmul.f32 0.1118034, %v2534_v44  ;;  %v1507_v49 = vadd.f32 %v7153_v28, %v1464_v13  ;;  %v5952_v28 = vld [vmem:[%s8358_s6 + $0x1b4] ss:$12 sps:$4 sm:$0xff]  }
 0x958   :  { %v5819_v38 = vpop.f32.mrf.mxu0 }
 0x959   :  { %v2543_v45 = vadd.f32 %v2541_v36, %v7151_v51  ;;  %v2570_v53 = vpack.c.bf16 %v1507_v49, %v7126_v43  ;;  %v5946_v43 = vld [vmem:[%s8358_s6 + $0x1c8] ss:$12 sps:$4 sm:$0xff]  }
 0x95a   :  { %v2537_v0 = vpop.f32.mrf.mxu0  ;;  %2733 = vmatpush1.bf16.msra.mxu0 %v5946_v43 }
 0x95b   :  { %v2542_v46 = vmul.f32 0.1118034, %v2537_v0  ;;  %v2545_v47 = vsel %vm1572_vm4, %v2543_v45, -inf  ;;  %2734 = vmatprep.subr.bf16.mxu0 %v5952_v28 }
 0x95c   :  { %2546 = vmax.xlane.f32.xlu0 %v2545_v47  ;;  %v5820_v5 = vpop.f32.mrf.mxu0 }
 0x95d   :  { %v2544_v48 = vadd.f32 %v2542_v46, %v7159_v32  ;;  %v2822_v46 = vld [vmem:[%s8359_s7] sm:$0x7] }
 0x95e   :  { %2735 = vmatpush1.bf16.msra.mxu0 %v5950_v4  ;;  %v2827_v13 = vrot.slane %v2822_v46, %v6687_v12  ;;  %v2835_v49 = vrot.slane %v2822_v46, %v6681_v10 }
 0x95f   :  { %v2548_v6 = vsel %vm1572_vm4, %v2544_v48, -inf }
 0x960   :  { %2549 = vmax.xlane.f32.xlu1 %v2548_v6 }
 0x971   :  { %2574 = vrot.lane.b32.xlu1 %v2570_v53, %s6367_s18 }
 0x9e5   :  { %v2547_v51 = vpop.xlane.xlu0 %2546 }
 0x9e6   :  { %v2551_v54 = vsub.f32 %v2543_v45, %v2547_v51 }
 0x9e8   :  { %v2553_v55 = vmul.f32 1.442695, %v2551_v54  ;;  %v6330_v54 = vld [vmem:[%s8371_s23] sm:$0xff] }
 0x9e9   :  { %v2550_v56 = vpop.xlane.xlu1 %2549 }
 0x9ea   :  { %6294 = vpow2.f32 %v2553_v55  ;;  %v2552_v39 = vsub.f32 %v2544_v48, %v2550_v56  ;;  %v6331_v56 = vld [vmem:[%s8371_s23 + $0x10] sm:$0xff] }
 0x9ec   :  { %v2555_v62 = vmul.f32 1.442695, %v2552_v39 }
 0x9ed   :  { %v2575_v18 = vpop.permute.xlu1 %2574 }
 0x9ee   :  { %6296 = vpow2.f32 %v2555_v62 }
 0x9f7   :  { %v6295_v32 = vpop.eup %6294 }
 0x9f8   :  { %v2557_v63 = vsel %vm1572_vm4, %v6295_v32, 0.0 }
 0x9f9   :  { %2558 = vadd.xlane.f32.xlu0 %v2557_v63  ;;  %v6332_v63 = vld [vmem:[%s8371_s23 + $0x8] sm:$0xff] }
 0x9fb   :  { %v6297_v3 = vpop.eup %6296 }
 0x9fc   :  { %v2560_v41 = vsel %vm1572_vm4, %v6297_v3, 0.0 }
 0x9fd   :  { %2561 = vadd.xlane.f32.xlu0 %v2560_v41 }
 0xa13   :  { %2572 = vrot.lane.b32.xlu0 %v7128_v2, %s6367_s18  ;;  %v5956_v2 = vld [vmem:[%s8358_s6 + $0x19c] ss:$12 sps:$4 sm:$0xff]  }
 0xa14   :  { %2736 = vmatprep.subr.bf16.mxu0 %v5956_v2 }
 0xa15   :  { %2737 = vmatpush1.bf16.msra.mxu0 %v5954_v7  ;;  %v6333_v7 = vld [vmem:[%s8371_s23 + $0x18] sm:$0xff] }
 0xa16   :  { %2738 = vmatprep.subr.bf16.mxu0 %v5960_v11 }
 0xa19   :  { %2739 = vmatpush1.bf16.msra.mxu0 %v5958_v14 }
 0xa1a   :  { %2740 = vmatprep.subr.bf16.mxu0 %v5964_v60  ;;  %v5975_v60 = vld [vmem:[%s8362_s10 + $0xa0] ss:$20 sps:$4 sm:$0xff]  }
 0xa1d   :  { %2741 = vmatpush1.bf16.msra.mxu0 %v5962_v21  ;;  %v5977_v21 = vld [vmem:[%s8362_s10 + $0xa4] ss:$20 sps:$4 sm:$0xff]  }
 0xa82   :  { %v2559_v42 = vpop.xlane.xlu0 %2558 }
 0xa83   :  { %v2563_v15 = vmax.f32 %v2559_v42, 1e-20 }
 0xa85   :  { %6298 = vrcp.f32 %v2563_v15 }
 0xa86   :  { %v2562_v16 = vpop.xlane.xlu0 %2561 }
 0xa87   :  { %v2564_v17 = vmax.f32 %v2562_v16, 1e-20 }
 0xa89   :  { %6300 = vrcp.f32 %v2564_v17 }
 0xa8a   :  { %v2573_v26 = vpop.permute.xlu0 %2572 }
 0xa8b   :  { %v2576_v61 = vsel %vm1572_vm4, %v2573_v26, %v2575_v18 }
 0xa8c   :  { %5822 = vmatpush3.bf16.msra.mxu1 %v2576_v61 }
 0xa8d   :  { %5827 = vmatprep.subr.bf16.mxu1 %v6359_v1 }
 0xa92   :  { %v6299_v19 = vpop.eup %6298 }
 0xa93   :  { %v2567_v25 = vmul.f32 %v6299_v19, %v6295_v32 }
 0xa96   :  { %v6301_v20 = vpop.eup %6300 }
 0xa97   :  { %v2568_v52 = vmul.f32 %v6301_v20, %v6297_v3 }
 0xa99   :  { %v2569_v30 = vpack.c.bf16 %v2568_v52, %v2567_v25  ;;  %v5966_v52 = vld [vmem:[%s8362_s10 + $0x118] ss:$20 sps:$4 sm:$0xff]  }
 0xa9b   :  { %5824 = vmatmul.mubr.msk.bf16.vlgmr.msra.gmra.mxu1 %vm1572_vm4, %v2569_v30  ;;  %v5971_v30 = vld [vmem:[%s8362_s10 + $0xf4] ss:$20 sps:$4 sm:$0xff]  }
 0xa9c   :  { %5828 = vmatpush3.bf16.msra.mxu1 %v5949_v29  ;;  %5837 = vmatprep.mubr.msk.bf16.mxu1 %vm6360_vm1, %v6359_v1  ;;  %v5968_v29 = vld [vmem:[%s8362_s10 + $0x11c] ss:$20 sps:$4 sm:$0xff]  }
 0xa9d   :  { %5829 = vmatprep.subr.bf16.mxu1 %v6359_v1  ;;  %3610 = vmatprep.subr.bf16.mxu0 %v5968_v29  ;;  %v6008_v29 = vld [vmem:[%s8362_s10 + $0x2d0] ss:$20 sps:$4 sm:$0xff]  }
 0xaa0   :  { %5830 = vmatpush3.bf16.msra.mxu1 %v5953_v33  ;;  %v5969_v33 = vld [vmem:[%s8362_s10 + $0xf0] ss:$20 sps:$4 sm:$0xff]  }
 0xaa1   :  { %5831 = vmatprep.subr.bf16.mxu1 %v6359_v1 }
 0xaa4   :  { %5832 = vmatpush3.bf16.msra.mxu1 %v5957_v34  ;;  %v5974_v34 = vld [vmem:[%s8362_s10 + $0xcc] ss:$20 sps:$4 sm:$0xff]  }
 0xaa5   :  { %5833 = vmatprep.subr.bf16.mxu1 %v6359_v1 }
 0xaa8   :  { %5834 = vmatpush3.bf16.msra.mxu1 %v5961_v35  ;;  %v5972_v35 = vld [vmem:[%s8362_s10 + $0xc8] ss:$20 sps:$4 sm:$0xff]  }
 0xaa9   :  { %5835 = vmatprep.subr.bf16.mxu1 %v6359_v1 }
 0xaac   :  { %5836 = vmatpush3.bf16.msra.mxu1 %v5965_v58  ;;  %v5980_v58 = vld [vmem:[%s8362_s10 + $0x7c] ss:$20 sps:$4 sm:$0xff]  }
 0xb5b   :  { %v2615_v44 = vpop.f32.mrf.mxu1 }
 0xb5d   :  { %v5825_v36 = vpop.f32.mrf.mxu1 }
 0xb5e   :  { %v5983_v36 = vld [vmem:[%s8362_s10 + $0x54] ss:$20 sps:$4 sm:$0xff]  }
 0xb5f   :  { %v2618_v38 = vpop.f32.mrf.mxu1 }
 0xb60   :  { %v2642_v45 = vpack.c.bf16 %v2618_v38, %v2615_v44  ;;  %v5978_v44 = vld [vmem:[%s8362_s10 + $0x78] ss:$20 sps:$4 sm:$0xff]   ;;  %v5981_v38 = vld [vmem:[%s8362_s10 + $0x50] ss:$20 sps:$4 sm:$0xff]  }
 0xb61   :  { %v5826_v0 = vpop.f32.mrf.mxu1 }
 0xb62   :  { %5392 = vmatmul.mubr.msk.bf16.vlgmr.msra.gmra.mxu0 %vm1520_vm2, %v2642_v45  ;;  %5838 = vmatmul.mubr.msk.bf16.vlgmr.msra.gmra.mxu1 %vm1520_vm2, %v2642_v45  ;;  %v5986_v45 = vld [vmem:[%s8362_s10 + $0x2c] ss:$20 sps:$4 sm:$0xff]   ;;  %v5984_v0 = vld [vmem:[%s8362_s10 + $0x28] ss:$20 sps:$4 sm:$0xff]  }
 0xb63   :  { %3685 = vmatprep.mubr.bf16.mxu1 %v6358_v22  ;;  %3611 = vmatpush1.bf16.msra.mxu0 %v5966_v52  ;;  %v6005_v52 = vld [vmem:[%s8362_s10 + $0x1b8] ss:$20 sps:$4 sm:$0xff]  }
 0xb64   :  { %3612 = vmatprep.subr.bf16.mxu0 %v5971_v30  ;;  %v6013_v30 = vld [vmem:[%s8362_s10 + $0x194] ss:$20 sps:$4 sm:$0xff]  }
 0xb67   :  { %3613 = vmatpush1.bf16.msra.mxu0 %v5969_v33  ;;  %v6016_v33 = vld [vmem:[%s8362_s10 + $0x2ac] ss:$20 sps:$4 sm:$0xff]  }
 0xb68   :  { %3614 = vmatprep.subr.bf16.mxu0 %v5974_v34  ;;  %v6011_v34 = vld [vmem:[%s8362_s10 + $0x190] ss:$20 sps:$4 sm:$0xff]  }
 0xb6b   :  { %3615 = vmatpush1.bf16.msra.mxu0 %v5972_v35  ;;  %v6014_v35 = vld [vmem:[%s8362_s10 + $0x2a8] ss:$20 sps:$4 sm:$0xff]  }
 0xb6c   :  { %3616 = vmatprep.subr.bf16.mxu0 %v5977_v21  ;;  %v6019_v21 = vld [vmem:[%s8362_s10 + $0x16c] ss:$20 sps:$4 sm:$0xff]  }
 0xb6f   :  { %3617 = vmatpush1.bf16.msra.mxu0 %v5975_v60  ;;  %v6022_v60 = vld [vmem:[%s8362_s10 + $0x284] ss:$20 sps:$4 sm:$0xff]  }
 0xb70   :  { %3618 = vmatprep.subr.bf16.mxu0 %v5980_v58  ;;  %v6017_v58 = vld [vmem:[%s8362_s10 + $0x168] ss:$20 sps:$4 sm:$0xff]  }
 0xb73   :  { %3619 = vmatpush1.bf16.msra.mxu0 %v5978_v44  ;;  %v6020_v44 = vld [vmem:[%s8362_s10 + $0x280] ss:$20 sps:$4 sm:$0xff]  }
 0xb74   :  { %3620 = vmatprep.subr.bf16.mxu0 %v5983_v36  ;;  %v6025_v36 = vld [vmem:[%s8362_s10 + $0x144] ss:$20 sps:$4 sm:$0xff]  }
 0xb77   :  { %3621 = vmatpush1.bf16.msra.mxu0 %v5981_v38  ;;  %v6028_v38 = vld [vmem:[%s8362_s10 + $0x124] ss:$20 sps:$4 sm:$0xff]  }
 0xb78   :  { %3622 = vmatprep.subr.bf16.mxu0 %v5986_v45  ;;  %v6023_v45 = vld [vmem:[%s8362_s10 + $0x140] ss:$20 sps:$4 sm:$0xff]  }
 0xb7b   :  { %3623 = vmatpush1.bf16.msra.mxu0 %v5984_v0  ;;  %v6031_v0 = vld [vmem:[%s8362_s10 + $0x304] ss:$20 sps:$4 sm:$0xff]  }
 0xc22   :  { %v2760_v47 = vpop.f32.mrf.mxu0  ;;  %v2803_v5 = vpop.f32.mrf.mxu1 }
 0xc23   :  { %v2810_v48 = vadd.f32 %v2760_v47, %v7394_v50  ;;  %v2812_v6 = vadd.f32 %v2803_v5, %v7397_v31  ;;  %v2831_v31 = vrot.slane %v2822_v46, %v6678_v9  ;;  %v5989_v46 = vld [vmem:[%s8362_s10 + $0x4] ss:$20 sps:$4 sm:$0xff]   ;;  %v5987_v47 = vld [vmem:[%s8362_s10] ss:$20 sps:$4 sm:$0xff]   ;;  %v5992_v5 = vld [vmem:[%s8362_s10 + $0x25c] ss:$20 sps:$4 sm:$0xff]  }
 0xc24   :  { %v2762_v53 = vpop.f32.mrf.mxu0  ;;  %v5839_v51 = vpop.f32.mrf.mxu1  ;;  %3624 = vmatprep.subr.bf16.mxu0 %v5989_v46 }
 0xc25   :  { %v2816_v55 = vadd.f32 %v6330_v54, %v2810_v48  ;;  %v2818_v39 = vadd.f32 %v6331_v56, %v2812_v6  ;;  %v2811_v50 = vadd.f32 %v2762_v53, %v7400_v37  ;;  %3625 = vmatpush1.bf16.msra.mxu0 %v5987_v47  ;;  %v5990_v48 = vld [vmem:[%s8362_s10 + $0x258] ss:$20 sps:$4 sm:$0xff]  }
 0xc26   :  { %v2764_v62 = vpop.f32.mrf.mxu0  ;;  %v2806_v32 = vpop.f32.mrf.mxu1  ;;  %3626 = vmatprep.subr.bf16.mxu0 %v5992_v5 }
 0xc27   :  { %v2817_v3 = vadd.f32 %v6332_v63, %v2811_v50  ;;  %v2813_v41 = vadd.f32 %v2764_v62, %v7403_v27  ;;  %v7500_v43 = vadd.f32 %v2835_v49, %v2818_v39  ;;  %v2815_v24 = vadd.f32 %v2806_v32, %v7406_v59  ;;  %v6334_v27 = vld [vmem:[%s8371_s23 + $0x28] sm:$0xff]  ;;  %v6335_v59 = vld [vmem:[%s8371_s23 + $0x20] sm:$0xff] }
 0xc28   :  { %v2766_v28 = vpop.f32.mrf.mxu0  ;;  %v5840_v4 = vpop.f32.mrf.mxu1  ;;  %v7503_v2 = vadd.f32 %v2827_v13, %v2816_v55 }
 0xc29   :  { %v7505_v37 = vadd.f32 %v2831_v31, %v2817_v3  ;;  %v2819_v11 = vadd.f32 %v6333_v7, %v2813_v41  ;;  %v2814_v14 = vadd.f32 %v2766_v28, %v7409_v40  ;;  %v2821_v42 = vadd.f32 %v6334_v27, %v2815_v24  ;;  %3627 = vmatpush2.bf16.msra.mxu0 %v5990_v48  ;;  %v5995_v27 = vld [vmem:[%s8362_s10 + $0x234] ss:$20 sps:$4 sm:$0xff]  }
 0xc2a   :  { %v2848_v18 = vsel %vm66_vm0, %v7500_v43, 0.0  ;;  %3628 = vmatprep.subr.bf16.mxu0 %v5995_v27 }
 0xc2b   :  { %v2820_v15 = vadd.f32 %v6335_v59, %v2814_v14  ;;  %v2847_v16 = vadd.f32 %v7505_v37, %v7503_v2  ;;  %v7519_v17 = vadd.f32 %v2835_v49, %v2821_v42  ;;  %v7523_v26 = vadd.f32 %v2827_v13, %v2819_v11  ;;  %v5993_v42 = vld [vmem:[%s8362_s10 + $0x230] ss:$20 sps:$4 sm:$0xff]   ;;  %v5998_v59 = vld [vmem:[%s8362_s10 + $0x20c] ss:$20 sps:$4 sm:$0xff]  }
 0xc2d   :  { %v7525_v40 = vadd.f32 %v2831_v31, %v2820_v15  ;;  %v2849_v61 = vadd.f32 %v2848_v18, %v2847_v16  ;;  %v2853_v20 = vsel %vm66_vm0, %v7519_v17, 0.0  ;;  %3629 = vmatpush2.bf16.msra.mxu0 %v5993_v42  ;;  %v5996_v15 = vld [vmem:[%s8362_s10 + $0x208] ss:$20 sps:$4 sm:$0xff]   ;;  %v5999_v16 = vld [vmem:[%s8362_s10 + $0x1e0] ss:$20 sps:$4 sm:$0xff]  }
 0xc2e   :  { %3630 = vmatprep.subr.bf16.mxu0 %v5998_v59  ;;  %v6001_v18 = vld [vmem:[%s8362_s10 + $0x1e4] ss:$20 sps:$4 sm:$0xff]  }
 0xc2f   :  { %2850 = vadd.xlane.f32.xlu1 %v2849_v61  ;;  %v2852_v19 = vadd.f32 %v7525_v40, %v7523_v26  ;;  %v6002_v61 = vld [vmem:[%s8362_s10 + $0x2f8] ss:$20 sps:$4 sm:$0xff]  }
 0xc31   :  { %v2854_v25 = vadd.f32 %v2853_v20, %v2852_v19  ;;  %3631 = vmatpush2.bf16.msra.mxu0 %v5996_v15  ;;  %v6004_v19 = vld [vmem:[%s8362_s10 + $0x2fc] ss:$20 sps:$4 sm:$0xff]  }
 0xc32   :  { %v6007_v20 = vld [vmem:[%s8362_s10 + $0x1bc] ss:$20 sps:$4 sm:$0xff]   ;;  %3632 = vmatprep.subr.bf16.mxu0 %v6001_v18  ;;  %3661 = vmatprep.subr.bf16.mxu1 %v6004_v19 }
 0xc33   :  { %2855 = vadd.xlane.f32.xlu0 %v2854_v25  ;;  %v6010_v25 = vld [vmem:[%s8362_s10 + $0x2d4] ss:$20 sps:$4 sm:$0xff]   ;;  %3662 = vmatpush1.bf16.msra.mxu1 %v6002_v61 }
 0xc34   :  { %3663 = vmatprep.subr.bf16.mxu1 %v6010_v25 }
 0xc35   :  { %3633 = vmatpush2.bf16.msra.mxu0 %v5999_v16 }
 0xc36   :  { %3634 = vmatprep.subr.bf16.mxu0 %v6007_v20 }
 0xc37   :  { %3664 = vmatpush1.bf16.msra.mxu1 %v6008_v29 }
 0xc38   :  { %3665 = vmatprep.subr.bf16.mxu1 %v6016_v33  ;;  %v6034_v33 = vld [vmem:[%s8362_s10 + $0xfc] ss:$20 sps:$4 sm:$0xff]  }
 0xc39   :  { %3635 = vmatpush2.bf16.msra.mxu0 %v6005_v52 }
 0xc3a   :  { %3636 = vmatprep.subr.bf16.mxu0 %v6013_v30 }
 0xc3b   :  { %3666 = vmatpush1.bf16.msra.mxu1 %v6014_v35  ;;  %v6032_v35 = vld [vmem:[%s8362_s10 + $0xf8] ss:$20 sps:$4 sm:$0xff]  }
 0xc3c   :  { %3667 = vmatprep.subr.bf16.mxu1 %v6022_v60  ;;  %v6040_v60 = vld [vmem:[%s8362_s10 + $0xd4] ss:$20 sps:$4 sm:$0xff]  }
 0xc3d   :  { %3637 = vmatpush2.bf16.msra.mxu0 %v6011_v34  ;;  %v6037_v34 = vld [vmem:[%s8362_s10 + $0x2dc] ss:$20 sps:$4 sm:$0xff]  }
 0xc3e   :  { %3638 = vmatprep.subr.bf16.mxu0 %v6019_v21  ;;  %v6035_v21 = vld [vmem:[%s8362_s10 + $0x2d8] ss:$20 sps:$4 sm:$0xff]  }
 0xc3f   :  { %3668 = vmatpush1.bf16.msra.mxu1 %v6020_v44  ;;  %v6038_v44 = vld [vmem:[%s8362_s10 + $0xd0] ss:$20 sps:$4 sm:$0xff]  }
 0xc40   :  { %3696 = vmatprep.subr.bf16.mxu1 %v6028_v38  ;;  %v6046_v38 = vld [vmem:[%s8362_s10 + $0xac] ss:$20 sps:$4 sm:$0xff]  }
 0xc41   :  { %3639 = vmatpush2.bf16.msra.mxu0 %v6017_v58  ;;  %v6043_v58 = vld [vmem:[%s8362_s10 + $0x2b4] ss:$20 sps:$4 sm:$0xff]  }
 0xc42   :  { %3640 = vmatprep.subr.bf16.mxu0 %v6025_v36  ;;  %v6041_v36 = vld [vmem:[%s8362_s10 + $0x2b0] ss:$20 sps:$4 sm:$0xff]  }
 0xc45   :  { %3641 = vmatpush2.bf16.msra.mxu0 %v6023_v45  ;;  %v6049_v45 = vld [vmem:[%s8362_s10 + $0x28c] ss:$20 sps:$4 sm:$0xff]  }
 0xc46   :  { %3747 = vmatprep.subr.bf16.mxu0 %v6031_v0  ;;  %v6044_v0 = vld [vmem:[%s8362_s10 + $0xa8] ss:$20 sps:$4 sm:$0xff]  }
 0xcb8   :  { %v2851_v6 = vpop.xlane.xlu1 %2850 }
 0xcb9   :  { %v2857_v13 = vmul.f32 0.003125, %v2851_v6 }
 0xcbb   :  { %v7586_v49 = vsub.f32 %v7503_v2, %v2857_v13  ;;  %v7589_v53 = vsub.f32 %v7505_v37, %v2857_v13  ;;  %v7592_v51 = vsub.f32 %v7500_v43, %v2857_v13 }
 0xcbc   :  { %v2856_v54 = vpop.xlane.xlu0 %2855 }
 0xcbd   :  { %v2858_v55 = vmul.f32 0.003125, %v2856_v54  ;;  %v2865_v56 = vmul.f32 %v7586_v49, %v7586_v49  ;;  %v2866_v39 = vmul.f32 %v7589_v53, %v7589_v53  ;;  %v2867_v50 = vmul.f32 %v7592_v51, %v7592_v51  ;;  %v2845_v54 = vld [vmem:[%s8360_s8] sm:$0x7] }
 0xcbf   :  { %v7601_v31 = vsub.f32 %v7523_v26, %v2858_v55  ;;  %v7604_v62 = vsub.f32 %v7525_v40, %v2858_v55  ;;  %v7607_v32 = vsub.f32 %v7519_v17, %v2858_v55  ;;  %v2871_v63 = vadd.f32 %v2866_v39, %v2865_v56  ;;  %v2846_v56 = vld [vmem:[%s8361_s9] sm:$0x7] }
 0xcc0   :  { %v2872_v3 = vsel %vm66_vm0, %v2867_v50, 0.0  ;;  %v2901_v50 = vrot.slane %v2845_v54, %v6678_v9 }
 0xcc1   :  { %v2873_v41 = vadd.f32 %v2872_v3, %v2871_v63  ;;  %v2868_v24 = vmul.f32 %v7601_v31, %v7601_v31  ;;  %v2869_v28 = vmul.f32 %v7604_v62, %v7604_v62  ;;  %v2870_v4 = vmul.f32 %v7607_v32, %v7607_v32 }
 0xcc2   :  { %v2905_v63 = vrot.slane %v2845_v54, %v6681_v10 }
 0xcc3   :  { %2874 = vadd.xlane.f32.xlu0 %v2873_v41  ;;  %v2876_v7 = vadd.f32 %v2869_v28, %v2868_v24  ;;  %v2877_v11 = vsel %vm66_vm0, %v2870_v4, 0.0  ;;  %v2897_v24 = vrot.slane %v2845_v54, %v6687_v12  ;;  %v2923_v4 = vrot.slane %v2846_v56, %v6678_v9  ;;  %v6058_v54 = vld [vmem:[%s8362_s10 + $0x240] ss:$20 sps:$4 sm:$0xff]  }
 0xcc5   :  { %v2878_v14 = vadd.f32 %v2877_v11, %v2876_v7  ;;  %v2927_v7 = vrot.slane %v2846_v56, %v6681_v10 }
 0xcc7   :  { %2879 = vadd.xlane.f32.xlu1 %v2878_v14 }
 0xd4c   :  { %v2875_v46 = vpop.xlane.xlu0 %2874 }
 0xd4d   :  { %v2881_v47 = vmul.f32 0.003125, %v2875_v46  ;;  %v6047_v46 = vld [vmem:[%s8362_s10 + $0x288] ss:$20 sps:$4 sm:$0xff]  }
 0xd4f   :  { %v2883_v5 = vadd.f32 1e-05, %v2881_v47  ;;  %v6052_v47 = vld [vmem:[%s8362_s10 + $0x84] ss:$20 sps:$4 sm:$0xff]  }
 0xd50   :  { %v2880_v48 = vpop.xlane.xlu1 %2879 }
 0xd51   :  { %6302 = vrsqrt.f32 %v2883_v5  ;;  %v2882_v6 = vmul.f32 0.003125, %v2880_v48  ;;  %v6053_v5 = vld [vmem:[%s8362_s10 + $0x268] ss:$20 sps:$4 sm:$0xff]   ;;  %v6050_v48 = vld [vmem:[%s8362_s10 + $0x80] ss:$20 sps:$4 sm:$0xff]  }
 0xd53   :  { %v2884_v13 = vadd.f32 1e-05, %v2882_v6  ;;  %v6054_v6 = vld [vmem:[%s8362_s10 + $0x128] ss:$20 sps:$4 sm:$0xff]  }
 0xd55   :  { %6304 = vrsqrt.f32 %v2884_v13  ;;  %v6057_v13 = vld [vmem:[%s8362_s10 + $0x5c] ss:$20 sps:$4 sm:$0xff]  }
 0xd5e   :  { %v6303_v55 = vpop.eup %6302 }
 0xd5f   :  { %v2888_v39 = vmul.f32 %v6303_v55, %v7589_v53  ;;  %v2889_v3 = vmul.f32 %v6303_v55, %v7592_v51  ;;  %v2887_v41 = vmul.f32 %v6303_v55, %v7586_v49  ;;  %v2919_v51 = vrot.slane %v2846_v56, %v6687_v12  ;;  %v6055_v55 = vld [vmem:[%s8362_s10 + $0x58] ss:$20 sps:$4 sm:$0xff]   ;;  %v6059_v56 = vld [vmem:[%s8362_s10 + $0x100] ss:$20 sps:$4 sm:$0xff]  }
 0xd61   :  { %v2910_v14 = vmul.f32 %v2901_v50, %v2888_v39  ;;  %v2911_v27 = vmul.f32 %v2905_v63, %v2889_v3  ;;  %v2909_v59 = vmul.f32 %v2897_v24, %v2887_v41  ;;  %v6062_v39 = vld [vmem:[%s8362_s10 + $0x34] ss:$20 sps:$4 sm:$0xff]   ;;  %v6064_v3 = vld [vmem:[%s8362_s10 + $0xd8] ss:$20 sps:$4 sm:$0xff]  }
 0xd62   :  { %v6305_v28 = vpop.eup %6304  ;;  %v6067_v41 = vld [vmem:[%s8362_s10 + $0xc] ss:$20 sps:$4 sm:$0xff]  }
 0xd63   :  { %v2891_v11 = vmul.f32 %v6305_v28, %v7604_v62  ;;  %v2892_v53 = vmul.f32 %v6305_v28, %v7607_v32  ;;  %v2890_v42 = vmul.f32 %v6305_v28, %v7601_v31  ;;  %v2932_v18 = vadd.f32 %v2923_v4, %v2910_v14  ;;  %v6026_v62 = vld [vmem:[%s8362_s10 + $0x120] ss:$20 sps:$4 sm:$0xff]   ;;  %v6065_v28 = vld [vmem:[%s8362_s10 + $0x8] ss:$20 sps:$4 sm:$0xff]  }
 0xd64   :  { %v2933_v19 = vadd.f32 %v2927_v7, %v2911_v27  ;;  %v2931_v25 = vadd.f32 %v2919_v51, %v2909_v59  ;;  %v6029_v31 = vld [vmem:[%s8362_s10 + $0x300] ss:$20 sps:$4 sm:$0xff]   ;;  %v6077_v27 = vld [vmem:[%s8362_s10 + $0x23c] ss:$20 sps:$4 sm:$0xff]   ;;  %v6075_v59 = vld [vmem:[%s8362_s10 + $0x238] ss:$20 sps:$4 sm:$0xff]  }
 0xd65   :  { %v2913_v15 = vmul.f32 %v2901_v50, %v2891_v11  ;;  %v2914_v49 = vmul.f32 %v2905_v63, %v2892_v53  ;;  %v2912_v16 = vmul.f32 %v2897_v24, %v2890_v42  ;;  %v6063_v50 = vld [vmem:[%s8362_s10 + $0x218] ss:$20 sps:$4 sm:$0xff]   ;;  %v6060_v63 = vld [vmem:[%s8362_s10 + $0x30] ss:$20 sps:$4 sm:$0xff]   ;;  %v6073_v11 = vld [vmem:[%s8362_s10 + $0x1c8] ss:$20 sps:$4 sm:$0xff]  }
 0xd66   :  { %v6068_v24 = vld [vmem:[%s8362_s10 + $0x1f0] ss:$20 sps:$4 sm:$0xff]   ;;  %v6070_v14 = vld [vmem:[%s8362_s10 + $0x260] ss:$20 sps:$4 sm:$0xff]   ;;  %v6074_v53 = vld [vmem:[%s8362_s10 + $0x88] ss:$20 sps:$4 sm:$0xff]  }
 0xd67   :  { %v2935_v61 = vadd.f32 %v2923_v4, %v2913_v15  ;;  %v2936_v20 = vadd.f32 %v2927_v7, %v2914_v49  ;;  %v2934_v52 = vadd.f32 %v2919_v51, %v2912_v16  ;;  %v6069_v4 = vld [vmem:[%s8362_s10 + $0xb0] ss:$20 sps:$4 sm:$0xff]   ;;  %v6078_v42 = vld [vmem:[%s8362_s10 + $0x1a0] ss:$20 sps:$4 sm:$0xff]   ;;  %v6083_v49 = vld [vmem:[%s8362_s10 + $0x178] ss:$20 sps:$4 sm:$0xff]  }
 0xd68   :  { %v6072_v7 = vld [vmem:[%s8362_s10 + $0x264] ss:$20 sps:$4 sm:$0xff]   ;;  %v6079_v51 = vld [vmem:[%s8362_s10 + $0x60] ss:$20 sps:$4 sm:$0xff]  }
 0xd69   :  { %v2938_v32 = vpack.c.bf16 %v2935_v61, %v2932_v18  ;;  %v7710_v29 = vpack.c.bf16 %v2936_v20, %v2933_v19  ;;  %v7715_v30 = vpack.c.bf16 %v2934_v52, %v2931_v25  ;;  %v6082_v15 = vld [vmem:[%s8362_s10 + $0x214] ss:$20 sps:$4 sm:$0xff]   ;;  %v6080_v16 = vld [vmem:[%s8362_s10 + $0x210] ss:$20 sps:$4 sm:$0xff]   ;;  %v6084_v18 = vld [vmem:[%s8362_s10 + $0x38] ss:$20 sps:$4 sm:$0xff]  }
 0xd6a   :  { %v6087_v61 = vld [vmem:[%s8362_s10 + $0x1ec] ss:$20 sps:$4 sm:$0xff]   ;;  %v6088_v19 = vld [vmem:[%s8362_s10 + $0x150] ss:$20 sps:$4 sm:$0xff]   ;;  %v6085_v20 = vld [vmem:[%s8362_s10 + $0x1e8] ss:$20 sps:$4 sm:$0xff]  }
 0xd6b   :  { %3642 = vmatprep.mubr.bf16.mxu0 %v2938_v32  ;;  %5494 = vmatmul.mubr.msk.bf16.vlgmr.msra.gmra.mxu1 %vm66_vm0, %v7710_v29  ;;  %v6092_v25 = vld [vmem:[%s8362_s10 + $0x1c4] ss:$20 sps:$4 sm:$0xff]   ;;  %v6090_v52 = vld [vmem:[%s8362_s10 + $0x1c0] ss:$20 sps:$4 sm:$0xff]  }
 0xd6c   :  { %3697 = vmatpush1.bf16.msra.mxu1 %v6026_v62  ;;  %3643 = vmatmul.mubr.bf16.vlgmr.msra.gmra.mxu0 %v7715_v30  ;;  %v6089_v62 = vld [vmem:[%s8362_s10 + $0x10] ss:$20 sps:$4 sm:$0xff]  }
 0xd6d   :  { %3728 = vmatprep.mubr.bf16.mxu1 %v2938_v32  ;;  %3748 = vmatpush1.bf16.msra.mxu0 %v6029_v31  ;;  %v6093_v31 = vld [vmem:[%s8362_s10 + $0x198] ss:$20 sps:$4 sm:$0xff]  }
 0xd6e   :  { %3698 = vmatprep.subr.bf16.mxu1 %v6034_v33  ;;  %3749 = vmatprep.subr.bf16.mxu0 %v6037_v34  ;;  %v6098_v33 = vld [vmem:[%s8362_s10 + $0x174] ss:$20 sps:$4 sm:$0xff]   ;;  %v6096_v34 = vld [vmem:[%s8362_s10 + $0x170] ss:$20 sps:$4 sm:$0xff]  }
 0xd6f   :  { %3771 = vmatprep.mubr.bf16.mxu0 %v6358_v22 }
 0xd70   :  { %3699 = vmatpush1.bf16.msra.mxu1 %v6032_v35  ;;  %v6101_v35 = vld [vmem:[%s8362_s10 + $0x14c] ss:$20 sps:$4 sm:$0xff]  }
 0xd71   :  { %3750 = vmatpush1.bf16.msra.mxu0 %v6035_v21  ;;  %3700 = vmatprep.subr.bf16.mxu1 %v6040_v60  ;;  %v6099_v21 = vld [vmem:[%s8362_s10 + $0x148] ss:$20 sps:$4 sm:$0xff]  }
 0xd72   :  { %3751 = vmatprep.subr.bf16.mxu0 %v6043_v58  ;;  %v6102_v60 = vld [vmem:[%s8362_s10 + $0x308] ss:$20 sps:$4 sm:$0xff]   ;;  %v6103_v58 = vld [vmem:[%s8362_s10 + $0x2e0] ss:$20 sps:$4 sm:$0xff]  }
 0xd74   :  { %3701 = vmatpush1.bf16.msra.mxu1 %v6038_v44  ;;  %v6104_v44 = vld [vmem:[%s8362_s10 + $0x2b8] ss:$20 sps:$4 sm:$0xff]  }
 0xd75   :  { %3752 = vmatpush1.bf16.msra.mxu0 %v6041_v36  ;;  %3702 = vmatprep.subr.bf16.mxu1 %v6046_v38  ;;  %v6108_v36 = vld [vmem:[%s8364_s12 + $0xac] ss:$12 sps:$4 sm:$0xff]   ;;  %v6106_v38 = vld [vmem:[%s8364_s12 + $0xa8] ss:$12 sps:$4 sm:$0xff]  }
 0xd76   :  { %3753 = vmatprep.subr.bf16.mxu0 %v6049_v45  ;;  %v6111_v45 = vld [vmem:[%s8364_s12 + $0x94] ss:$12 sps:$4 sm:$0xff]  }
 0xd78   :  { %3703 = vmatpush1.bf16.msra.mxu1 %v6044_v0  ;;  %v6109_v0 = vld [vmem:[%s8364_s12 + $0x90] ss:$12 sps:$4 sm:$0xff]  }
 0xd79   :  { %3754 = vmatpush1.bf16.msra.mxu0 %v6047_v46  ;;  %3704 = vmatprep.subr.bf16.mxu1 %v6052_v47  ;;  %v6114_v46 = vld [vmem:[%s8364_s12 + $0x7c] ss:$12 sps:$4 sm:$0xff]   ;;  %v6112_v47 = vld [vmem:[%s8364_s12 + $0x78] ss:$12 sps:$4 sm:$0xff]  }
 0xd7a   :  { %5657 = vmatprep.subr.bf16.mxu0 %v6053_v5  ;;  %v6115_v5 = vld [vmem:[%s8364_s12 + $0x60] ss:$12 sps:$4 sm:$0xff]  }
 0xd7c   :  { %3705 = vmatpush1.bf16.msra.mxu1 %v6050_v48  ;;  %5495 = vmatmul.mubr.msk.bf16.vlgmr.msra.gmra.mxu0 %vm66_vm0, %v7710_v29  ;;  %v6120_v48 = vld [vmem:[%s8364_s12 + $0x4c] ss:$12 sps:$4 sm:$0xff]  }
 0xd7d   :  { %5658 = vmatpush3.bf16.msra.mxu0 %v6054_v6  ;;  %3814 = vmatprep.mubr.bf16.mxu0 %v2938_v32  ;;  %v6095_v32 = vld [vmem:[%s8362_s10 + $0x19c] ss:$20 sps:$4 sm:$0xff]   ;;  %v6154_v6 = vld [vmem:[%s8364_s12 + $0x228] ss:$12 sps:$4 sm:$0xff]  }
 0xd7e   :  { %3706 = vmatprep.subr.bf16.mxu1 %v6057_v13  ;;  %5659 = vmatprep.subr.bf16.mxu0 %v6058_v54  ;;  %v6156_v13 = vld [vmem:[%s8364_s12 + $0x22c] ss:$12 sps:$4 sm:$0xff]   ;;  %v6118_v54 = vld [vmem:[%s8364_s12 + $0x48] ss:$12 sps:$4 sm:$0xff]  }
 0xd80   :  { %3707 = vmatpush1.bf16.msra.mxu1 %v6055_v55  ;;  %v6123_v55 = vld [vmem:[%s8364_s12 + $0x34] ss:$12 sps:$4 sm:$0xff]  }
 0xd81   :  { %5660 = vmatpush3.bf16.msra.mxu0 %v6059_v56  ;;  %3708 = vmatprep.subr.bf16.mxu1 %v6062_v39  ;;  %v6121_v56 = vld [vmem:[%s8364_s12 + $0x30] ss:$12 sps:$4 sm:$0xff]  }
 0xd82   :  { %5661 = vmatprep.subr.bf16.mxu0 %v6063_v50  ;;  %v6126_v39 = vld [vmem:[%s8364_s12 + $0x1c] ss:$12 sps:$4 sm:$0xff]   ;;  %v6124_v50 = vld [vmem:[%s8364_s12 + $0x18] ss:$12 sps:$4 sm:$0xff]  }
 0xd84   :  { %3709 = vmatpush1.bf16.msra.mxu1 %v6060_v63  ;;  %v6129_v63 = vld [vmem:[%s8364_s12 + $0x4] ss:$12 sps:$4 sm:$0xff]  }
 0xd85   :  { %5662 = vmatpush3.bf16.msra.mxu0 %v6064_v3  ;;  %3710 = vmatprep.subr.bf16.mxu1 %v6067_v41  ;;  %v6127_v3 = vld [vmem:[%s8364_s12] ss:$12 sps:$4 sm:$0xff]  }
 0xd86   :  { %5663 = vmatprep.subr.bf16.mxu0 %v6068_v24  ;;  %v6132_v41 = vld [vmem:[%s8364_s12 + $0x16c] ss:$12 sps:$4 sm:$0xff]   ;;  %v6157_v24 = vld [vmem:[%s8364_s12 + $0x210] ss:$12 sps:$4 sm:$0xff]  }
 0xd88   :  { %3711 = vmatpush1.bf16.msra.mxu1 %v6065_v28  ;;  %v6159_v28 = vld [vmem:[%s8364_s12 + $0x214] ss:$12 sps:$4 sm:$0xff]  }
 0xd89   :  { %5664 = vmatpush3.bf16.msra.mxu0 %v6069_v4  ;;  %3712 = vmatprep.subr.bf16.mxu1 %v6072_v7  ;;  %v6130_v4 = vld [vmem:[%s8364_s12 + $0x168] ss:$12 sps:$4 sm:$0xff]  }
 0xd8a   :  { %5665 = vmatprep.subr.bf16.mxu0 %v6073_v11  ;;  %v6135_v7 = vld [vmem:[%s8364_s12 + $0x154] ss:$12 sps:$4 sm:$0xff]   ;;  %v6162_v11 = vld [vmem:[%s8364_s12 + $0x1fc] ss:$12 sps:$4 sm:$0xff]  }
 0xd8c   :  { %3713 = vmatpush2.bf16.msra.mxu1 %v6070_v14  ;;  %v6160_v14 = vld [vmem:[%s8364_s12 + $0x1f8] ss:$12 sps:$4 sm:$0xff]  }
 0xd8d   :  { %5666 = vmatpush3.bf16.msra.mxu0 %v6074_v53  ;;  %3714 = vmatprep.subr.bf16.mxu1 %v6077_v27  ;;  %v6133_v53 = vld [vmem:[%s8364_s12 + $0x150] ss:$12 sps:$4 sm:$0xff]  }
 0xd8e   :  { %5667 = vmatprep.subr.bf16.mxu0 %v6078_v42  ;;  %v6138_v27 = vld [vmem:[%s8364_s12 + $0x13c] ss:$12 sps:$4 sm:$0xff]   ;;  %v6165_v42 = vld [vmem:[%s8364_s12 + $0x1e4] ss:$12 sps:$4 sm:$0xff]  }
 0xd90   :  { %3715 = vmatpush2.bf16.msra.mxu1 %v6075_v59  ;;  %v6163_v59 = vld [vmem:[%s8364_s12 + $0x1e0] ss:$12 sps:$4 sm:$0xff]  }
 0xd91   :  { %5668 = vmatpush3.bf16.msra.mxu0 %v6079_v51  ;;  %3716 = vmatprep.subr.bf16.mxu1 %v6082_v15  ;;  %v6136_v51 = vld [vmem:[%s8364_s12 + $0x138] ss:$12 sps:$4 sm:$0xff]  }
 0xd92   :  { %5669 = vmatprep.subr.bf16.mxu0 %v6083_v49  ;;  %v6141_v15 = vld [vmem:[%s8364_s12 + $0x124] ss:$12 sps:$4 sm:$0xff]   ;;  %v6168_v49 = vld [vmem:[%s8364_s12 + $0x1cc] ss:$12 sps:$4 sm:$0xff]  }
 0xd94   :  { %3717 = vmatpush2.bf16.msra.mxu1 %v6080_v16  ;;  %v6166_v16 = vld [vmem:[%s8364_s12 + $0x1c8] ss:$12 sps:$4 sm:$0xff]  }
 0xd95   :  { %5670 = vmatpush3.bf16.msra.mxu0 %v6084_v18  ;;  %3718 = vmatprep.subr.bf16.mxu1 %v6087_v61  ;;  %v6171_v18 = vld [vmem:[%s8364_s12 + $0x1b4] ss:$12 sps:$4 sm:$0xff]  }
 0xd96   :  { %5671 = vmatprep.subr.bf16.mxu0 %v6088_v19  ;;  %v6139_v61 = vld [vmem:[%s8364_s12 + $0x120] ss:$12 sps:$4 sm:$0xff]  }
 0xd97   :  { %v6144_v19 = vld [vmem:[%s8364_s12 + $0x10c] ss:$12 sps:$4 sm:$0xff]  }
 0xd98   :  { %3719 = vmatpush2.bf16.msra.mxu1 %v6085_v20  ;;  %v6169_v20 = vld [vmem:[%s8364_s12 + $0x1b0] ss:$12 sps:$4 sm:$0xff]  }
 0xd99   :  { %5672 = vmatpush3.bf16.msra.mxu0 %v6089_v62  ;;  %3720 = vmatprep.subr.bf16.mxu1 %v6092_v25  ;;  %v6142_v62 = vld [vmem:[%s8364_s12 + $0x108] ss:$12 sps:$4 sm:$0xff]  }
 0xd9a   :  { %4802 = vmatprep.subr.bf16.mxu0 %v6156_v13  ;;  %v6147_v25 = vld [vmem:[%s8364_s12 + $0xf4] ss:$12 sps:$4 sm:$0xff]   ;;  %v6202_v13 = vld [vmem:[%s8364_s12 + $0x270] ss:$12 sps:$4 sm:$0xff]  }
 0xd9c   :  { %3721 = vmatpush2.bf16.msra.mxu1 %v6090_v52  ;;  %3815 = vmatmul.mubr.bf16.vlgmr.msra.gmra.mxu0 %v7715_v30  ;;  %v6174_v52 = vld [vmem:[%s8364_s12 + $0x19c] ss:$12 sps:$4 sm:$0xff]  }
 0xd9d   :  { %3722 = vmatprep.subr.bf16.mxu1 %v6095_v32  ;;  %4803 = vmatpush1.bf16.msra.mxu0 %v6154_v6  ;;  %v6172_v32 = vld [vmem:[%s8364_s12 + $0x198] ss:$12 sps:$4 sm:$0xff]   ;;  %v6204_v6 = vld [vmem:[%s8364_s12 + $0x274] ss:$12 sps:$4 sm:$0xff]  }
 0xd9e   :  { %4804 = vmatprep.subr.bf16.mxu0 %v6159_v28 }
 0xda0   :  { %3723 = vmatpush2.bf16.msra.mxu1 %v6093_v31  ;;  %v6145_v31 = vld [vmem:[%s8364_s12 + $0xf0] ss:$12 sps:$4 sm:$0xff]  }
 0xda1   :  { %3724 = vmatprep.subr.bf16.mxu1 %v6098_v33  ;;  %4805 = vmatpush1.bf16.msra.mxu0 %v6157_v24  ;;  %v6150_v33 = vld [vmem:[%s8364_s12 + $0xdc] ss:$12 sps:$4 sm:$0xff]  }
 0xda2   :  { %4806 = vmatprep.subr.bf16.mxu0 %v6162_v11 }
 0xda4   :  { %3725 = vmatpush2.bf16.msra.mxu1 %v6096_v34  ;;  %v6177_v34 = vld [vmem:[%s8364_s12 + $0x184] ss:$12 sps:$4 sm:$0xff]  }
 0xda5   :  { %3726 = vmatprep.subr.bf16.mxu1 %v6101_v35  ;;  %4807 = vmatpush1.bf16.msra.mxu0 %v6160_v14  ;;  %v6175_v35 = vld [vmem:[%s8364_s12 + $0x180] ss:$12 sps:$4 sm:$0xff]  }
 0xda6   :  { %4808 = vmatprep.subr.bf16.mxu0 %v6165_v42 }
 0xda8   :  { %3727 = vmatpush2.bf16.msra.mxu1 %v6099_v21  ;;  %v6148_v21 = vld [vmem:[%s8364_s12 + $0xd8] ss:$12 sps:$4 sm:$0xff]  }
 0xda9   :  { %5841 = vmatprep.subr.bf16.mxu1 %v6359_v1  ;;  %4809 = vmatpush1.bf16.msra.mxu0 %v6163_v59 }
 0xdaa   :  { %4810 = vmatprep.subr.bf16.mxu0 %v6168_v49 }
 0xdab   :  { %3729 = vmatmul.mubr.bf16.vlgmr.msra.gmra.mxu1 %v7715_v30  ;;  %v6105_v30 = vld [vmem:[%s8362_s10 + $0x290] ss:$20 sps:$4 sm:$0xff]  }
 0xdac   :  { %5842 = vmatpush3.bf16.msra.mxu1 %v6102_v60  ;;  %5849 = vmatprep.mubr.msk.bf16.mxu1 %vm6360_vm1, %v6359_v1  ;;  %v6153_v60 = vld [vmem:[%s8364_s12 + $0xc4] ss:$12 sps:$4 sm:$0xff]  }
 0xdad   :  { %5843 = vmatprep.subr.bf16.mxu1 %v6359_v1  ;;  %4811 = vmatpush1.bf16.msra.mxu0 %v6166_v16 }
 0xdae   :  { %4812 = vmatprep.subr.bf16.mxu0 %v6171_v18 }
 0xdb0   :  { %5844 = vmatpush3.bf16.msra.mxu1 %v6103_v58  ;;  %v6180_v58 = vld [vmem:[%s8364_s12 + $0x2ec] ss:$12 sps:$4 sm:$0xff]  }
 0xdb1   :  { %5845 = vmatprep.subr.bf16.mxu1 %v6359_v1  ;;  %4813 = vmatpush1.bf16.msra.mxu0 %v6169_v20 }
 0xdb2   :  { %4814 = vmatprep.subr.bf16.mxu0 %v6174_v52 }
 0xdb4   :  { %5846 = vmatpush3.bf16.msra.mxu1 %v6104_v44  ;;  %v6178_v44 = vld [vmem:[%s8364_s12 + $0x2e8] ss:$12 sps:$4 sm:$0xff]  }
 0xdb5   :  { %5847 = vmatprep.subr.bf16.mxu1 %v6359_v1  ;;  %4815 = vmatpush1.bf16.msra.mxu0 %v6172_v32 }
 0xdb6   :  { %4816 = vmatprep.subr.bf16.mxu0 %v6177_v34 }
 0xdb8   :  { %5848 = vmatpush3.bf16.msra.mxu1 %v6105_v30  ;;  %v6151_v30 = vld [vmem:[%s8364_s12 + $0xc0] ss:$12 sps:$4 sm:$0xff]  }
 0xdb9   :  { %4759 = vmatprep.subr.bf16.mxu1 %v6108_v36  ;;  %4817 = vmatpush1.bf16.msra.mxu0 %v6175_v35  ;;  %v6183_v36 = vld [vmem:[%s8364_s12 + $0x2d4] ss:$12 sps:$4 sm:$0xff]  }
 0xdba   :  { %4818 = vmatprep.subr.bf16.mxu0 %v6180_v58 }
 0xdbb   :  { %5850 = vmatmul.mubr.msk.bf16.vlgmr.msra.gmra.mxu1 %vm66_vm0, %v7710_v29  ;;  %v6117_v29 = vld [vmem:[%s8364_s12 + $0x64] ss:$12 sps:$4 sm:$0xff]  }
 0xdbc   :  { %4760 = vmatpush1.bf16.msra.mxu1 %v6106_v38  ;;  %v6181_v38 = vld [vmem:[%s8364_s12 + $0x2d0] ss:$12 sps:$4 sm:$0xff]  }
 0xdbd   :  { %4761 = vmatprep.subr.bf16.mxu1 %v6111_v45  ;;  %4819 = vmatpush2.bf16.msra.mxu0 %v6178_v44  ;;  %v6186_v45 = vld [vmem:[%s8364_s12 + $0x2bc] ss:$12 sps:$4 sm:$0xff]  }
 0xdbe   :  { %4820 = vmatprep.subr.bf16.mxu0 %v6183_v36 }
 0xdc0   :  { %4762 = vmatpush1.bf16.msra.mxu1 %v6109_v0  ;;  %v6184_v0 = vld [vmem:[%s8364_s12 + $0x2b8] ss:$12 sps:$4 sm:$0xff]  }
 0xdc1   :  { %4763 = vmatprep.subr.bf16.mxu1 %v6114_v46  ;;  %4821 = vmatpush2.bf16.msra.mxu0 %v6181_v38  ;;  %v6189_v46 = vld [vmem:[%s8364_s12 + $0x3ac] ss:$12 sps:$4 sm:$0xff]  }
 0xdc2   :  { %4822 = vmatprep.subr.bf16.mxu0 %v6186_v45 }
 0xdc4   :  { %4764 = vmatpush1.bf16.msra.mxu1 %v6112_v47  ;;  %v6192_v47 = vld [vmem:[%s8364_s12 + $0x2a4] ss:$12 sps:$4 sm:$0xff]  }
 0xdc5   :  { %4765 = vmatprep.subr.bf16.mxu1 %v6117_v29  ;;  %4823 = vmatpush2.bf16.msra.mxu0 %v6184_v0  ;;  %v6190_v29 = vld [vmem:[%s8364_s12 + $0x2a0] ss:$12 sps:$4 sm:$0xff]  }
 0xdc6   :  { %4824 = vmatprep.subr.bf16.mxu0 %v6192_v47 }
 0xdc8   :  { %4766 = vmatpush1.bf16.msra.mxu1 %v6115_v5  ;;  %v6198_v5 = vld [vmem:[%s8364_s12 + $0x28c] ss:$12 sps:$4 sm:$0xff]  }
 0xdc9   :  { %4767 = vmatprep.subr.bf16.mxu1 %v6120_v48  ;;  %4825 = vmatpush2.bf16.msra.mxu0 %v6190_v29  ;;  %v6196_v48 = vld [vmem:[%s8364_s12 + $0x288] ss:$12 sps:$4 sm:$0xff]  }
 0xdca   :  { %4826 = vmatprep.subr.bf16.mxu0 %v6198_v5 }
 0xdcc   :  { %4768 = vmatpush1.bf16.msra.mxu1 %v6118_v54  ;;  %v6210_v54 = vld [vmem:[%s8364_s12 + $0x25c] ss:$12 sps:$4 sm:$0xff]  }
 0xdcd   :  { %4769 = vmatprep.subr.bf16.mxu1 %v6123_v55  ;;  %4827 = vmatpush2.bf16.msra.mxu0 %v6196_v48  ;;  %v6208_v55 = vld [vmem:[%s8364_s12 + $0x258] ss:$12 sps:$4 sm:$0xff]  }
 0xdce   :  { %4828 = vmatprep.subr.bf16.mxu0 %v6204_v6 }
 0xdd0   :  { %4770 = vmatpush1.bf16.msra.mxu1 %v6121_v56  ;;  %v6214_v56 = vld [vmem:[%s8364_s12 + $0x240] ss:$12 sps:$4 sm:$0xff]  }
 0xdd1   :  { %4771 = vmatprep.subr.bf16.mxu1 %v6126_v39  ;;  %4829 = vmatpush2.bf16.msra.mxu0 %v6202_v13  ;;  %v6216_v39 = vld [vmem:[%s8364_s12 + $0x244] ss:$12 sps:$4 sm:$0xff]  }
 0xdd2   :  { %4830 = vmatprep.subr.bf16.mxu0 %v6210_v54 }
 0xdd4   :  { %4772 = vmatpush1.bf16.msra.mxu1 %v6124_v50  ;;  %v6220_v50 = vld [vmem:[%s8364_s12 + $0x170] ss:$12 sps:$4 sm:$0xff]  }
 0xdd5   :  { %4773 = vmatprep.subr.bf16.mxu1 %v6129_v63  ;;  %4831 = vmatpush2.bf16.msra.mxu0 %v6208_v55  ;;  %v8102_v63 = vld [vmem:[%s8363_s11] sm:$0x1f] }
 0xdd6   :  { %4832 = vmatprep.subr.bf16.mxu0 %v6216_v39  ;;  %v3069_v24 = vrot.slane %v8102_v63, %v6678_v9 }
 0xdd8   :  { %4774 = vmatpush1.bf16.msra.mxu1 %v6127_v3  ;;  %v3065_v3 = vrot.slane %v8102_v63, %v6687_v12 }
 0xdd9   :  { %4775 = vmatprep.subr.bf16.mxu1 %v6132_v41  ;;  %4833 = vmatpush2.bf16.msra.mxu0 %v6214_v56 }
 0xdda   :  { %5684 = vmatprep.subr.bf16.mxu0 %v6220_v50 }
 0xddc   :  { %4776 = vmatpush2.bf16.msra.mxu1 %v6130_v4 }
 0xddd   :  { %4777 = vmatprep.subr.bf16.mxu1 %v6135_v7 }
 0xde0   :  { %4778 = vmatpush2.bf16.msra.mxu1 %v6133_v53 }
 0xde1   :  { %4779 = vmatprep.subr.bf16.mxu1 %v6138_v27 }
 0xde4   :  { %4780 = vmatpush2.bf16.msra.mxu1 %v6136_v51 }
 0xde5   :  { %4781 = vmatprep.subr.bf16.mxu1 %v6141_v15 }
 0xde8   :  { %4782 = vmatpush2.bf16.msra.mxu1 %v6139_v61 }
 0xde9   :  { %4783 = vmatprep.subr.bf16.mxu1 %v6144_v19 }
 0xdec   :  { %4784 = vmatpush2.bf16.msra.mxu1 %v6142_v62 }
 0xded   :  { %4785 = vmatprep.subr.bf16.mxu1 %v6147_v25 }
 0xdf0   :  { %4786 = vmatpush2.bf16.msra.mxu1 %v6145_v31 }
 0xdf1   :  { %4787 = vmatprep.subr.bf16.mxu1 %v6150_v33 }
 0xdf4   :  { %4788 = vmatpush2.bf16.msra.mxu1 %v6148_v21 }
 0xdf5   :  { %4789 = vmatprep.subr.bf16.mxu1 %v6153_v60 }
 0xdf8   :  { %4790 = vmatpush2.bf16.msra.mxu1 %v6151_v30 }
 0xdf9   :  { %4845 = vmatprep.subr.bf16.mxu1 %v6189_v46 }
 0xe2b   :  { %v3687_v41 = vpop.f32.mrf.mxu1 }
 0xe2c   :  { %v3644_v28 = vpop.f32.mrf.mxu0 }
 0xe2d   :  { %v3645_v4 = vadd.f32 %v3644_v28, %v3065_v3  ;;  %v3689_v7 = vpop.f32.mrf.mxu1 }
 0xe2e   :  { %v3646_v11 = vpop.f32.mrf.mxu0 }
 0xe2f   :  { %v3688_v14 = vadd.f32 %v3687_v41, %v3645_v4  ;;  %v3647_v53 = vadd.f32 %v3646_v11, %v3069_v24  ;;  %v3691_v27 = vpop.f32.mrf.mxu1  ;;  %v6187_v11 = vld [vmem:[%s8364_s12 + $0x3a8] ss:$12 sps:$4 sm:$0xff]  }
 0xe30   :  { %v3648_v42 = vpop.f32.mrf.mxu0 }
 0xe31   :  { %v3874_v59 = vmul.f32 0.044715, %v3688_v14  ;;  %v3690_v51 = vadd.f32 %v3689_v7, %v3647_v53  ;;  %v3649_v15 = vadd.f32 %v3648_v42, %v3065_v3  ;;  %v3693_v20 = vpop.f32.mrf.mxu1  ;;  %v3864_v3 = vmul.f32 0.5, %v3688_v14  ;;  %v6201_v42 = vld [vmem:[%s8364_s12 + $0x37c] ss:$12 sps:$4 sm:$0xff]  }
 0xe32   :  { %v3650_v49 = vpop.f32.mrf.mxu0 }
 0xe33   :  { %v3884_v16 = vmul.f32 %v3874_v59, %v3688_v14  ;;  %v3875_v18 = vmul.f32 0.044715, %v3690_v51  ;;  %v3692_v61 = vadd.f32 %v3691_v27, %v3649_v15  ;;  %v3651_v19 = vadd.f32 %v3650_v49, %v3069_v24  ;;  %v6195_v27 = vld [vmem:[%s8364_s12 + $0x394] ss:$12 sps:$4 sm:$0xff]   ;;  %v6199_v59 = vld [vmem:[%s8364_s12 + $0x378] ss:$12 sps:$4 sm:$0xff]  }
 0xe34   :  { %v3865_v56 = vmul.f32 0.5, %v3690_v51  ;;  %v6213_v49 = vld [vmem:[%s8364_s12 + $0x34c] ss:$12 sps:$4 sm:$0xff]  }
 0xe35   :  { %v3894_v62 = vmul.f32 %v3884_v16, %v3688_v14  ;;  %v3885_v25 = vmul.f32 %v3875_v18, %v3690_v51  ;;  %v3879_v52 = vmul.f32 0.044715, %v3692_v61  ;;  %v3694_v32 = vadd.f32 %v3693_v20, %v3651_v19  ;;  %v6211_v18 = vld [vmem:[%s8364_s12 + $0x348] ss:$12 sps:$4 sm:$0xff]   ;;  %v6217_v20 = vld [vmem:[%s8364_s12 + $0x330] ss:$12 sps:$4 sm:$0xff]  }
 0xe36   :  { %v3869_v54 = vmul.f32 0.5, %v3692_v61 }
 0xe37   :  { %v3904_v31 = vadd.f32 %v3894_v62, %v3688_v14  ;;  %v3889_v33 = vmul.f32 %v3879_v52, %v3692_v61  ;;  %v3880_v34 = vmul.f32 0.044715, %v3694_v32  ;;  %v3895_v35 = vmul.f32 %v3885_v25, %v3690_v51  ;;  %v6193_v14 = vld [vmem:[%s8364_s12 + $0x390] ss:$12 sps:$4 sm:$0xff]  }
 0xe38   :  { %v3870_v39 = vmul.f32 0.5, %v3694_v32  ;;  %v3073_v62 = vrot.slane %v8102_v63, %v6681_v10  ;;  %v6224_v25 = vld [vmem:[%s8364_s12 + $0x31c] ss:$12 sps:$4 sm:$0xff]  }
 0xe39   :  { %v3899_v21 = vmul.f32 %v3889_v33, %v3692_v61  ;;  %v3890_v60 = vmul.f32 %v3880_v34, %v3694_v32  ;;  %v3914_v58 = vmul.f32 0.7978846, %v3904_v31  ;;  %v3905_v44 = vadd.f32 %v3895_v35, %v3690_v51  ;;  %v6207_v51 = vld [vmem:[%s8364_s12 + $0x364] ss:$12 sps:$4 sm:$0xff]  }
 0xe3a   :  { %v6222_v34 = vld [vmem:[%s8364_s12 + $0x318] ss:$12 sps:$4 sm:$0xff]  }
 0xe3b   :  { %v3909_v30 = vadd.f32 %v3899_v21, %v3692_v61  ;;  %v3900_v36 = vmul.f32 %v3890_v60, %v3694_v32  ;;  %v3915_v38 = vmul.f32 0.7978846, %v3905_v44  ;;  %6306 = vtanh.f32 %v3914_v58  ;;  %v6219_v61 = vld [vmem:[%s8364_s12 + $0x334] ss:$12 sps:$4 sm:$0xff]   ;;  %v6229_v21 = vld [vmem:[%s8364_s12 + $0x304] ss:$12 sps:$4 sm:$0xff]  }
 0xe3c   :  { %v3773_v15 = vpop.f32.mrf.mxu0 }
 0xe3d   :  { %v3910_v45 = vadd.f32 %v3900_v36, %v3694_v32  ;;  %v3919_v0 = vmul.f32 0.7978846, %v3909_v30  ;;  %6308 = vtanh.f32 %v3915_v38  ;;  %v3077_v32 = vrot.slane %v8102_v63, %v336_v57  ;;  %v6227_v57 = vld [vmem:[%s8364_s12 + $0x300] ss:$12 sps:$4 sm:$0xff]  }
 0xe3e   :  { %v3775_v16 = vpop.f32.mrf.mxu0 }
 0xe3f   :  { %v3920_v46 = vmul.f32 0.7978846, %v3910_v45  ;;  %6310 = vtanh.f32 %v3919_v0 }
 0xe40   :  { %v3777_v19 = vpop.f32.mrf.mxu0 }
 0xe41   :  { %6312 = vtanh.f32 %v3920_v46  ;;  %v6232_v46 = vld [vmem:[%s8364_s12 + $0x2f0] ss:$12 sps:$4 sm:$0xff]  }
 0xe42   :  { %v3779_v52 = vpop.f32.mrf.mxu0 }
 0xe48   :  { %v6307_v47 = vpop.eup %6306 }
 0xe49   :  { %v3934_v55 = vadd.f32 1.0, %v6307_v47 }
 0xe4a   :  { %v6309_v29 = vpop.eup %6308 }
 0xe4b   :  { %v3935_v48 = vadd.f32 1.0, %v6309_v29  ;;  %v3944_v4 = vmul.f32 %v3934_v55, %v3864_v3 }
 0xe4c   :  { %v6311_v5 = vpop.eup %6310 }
 0xe4d   :  { %v3939_v6 = vadd.f32 1.0, %v6311_v5  ;;  %v3945_v24 = vmul.f32 %v3935_v48, %v3865_v56 }
 0xe4e   :  { %v6313_v13 = vpop.eup %6312 }
 0xe4f   :  { %v3940_v50 = vadd.f32 1.0, %v6313_v13  ;;  %v3949_v41 = vmul.f32 %v3939_v6, %v3869_v54 }
 0xe51   :  { %v3950_v28 = vmul.f32 %v3940_v50, %v3870_v39  ;;  %v8113_v53 = vpack.c.bf16 %v3949_v41, %v3944_v4  ;;  %v3081_v50 = vrot.slane %v8102_v63, %v340_v23 }
 0xe53   :  { %v8108_v7 = vpack.c.bf16 %v3950_v28, %v3945_v24 }
 0xe55   :  { %4791 = vmatprep.mubr.bf16.mxu1 %v8108_v7 }
 0xe56   :  { %4792 = vmatmul.mubr.bf16.vlgmr.msra.gmra.mxu1 %v8113_v53 }
 0xe57   :  { %4846 = vmatpush1.bf16.msra.mxu1 %v6187_v11  ;;  %4877 = vmatprep.mubr.bf16.mxu1 %v6358_v22  ;;  %v6205_v22 = vld [vmem:[%s8364_s12 + $0x360] ss:$12 sps:$4 sm:$0xff]  }
 0xe58   :  { %4847 = vmatprep.subr.bf16.mxu1 %v6195_v27 }
 0xe5b   :  { %4848 = vmatpush1.bf16.msra.mxu1 %v6193_v14 }
 0xe5c   :  { %4849 = vmatprep.subr.bf16.mxu1 %v6201_v42  ;;  %v5673_v31 = vpop.f32.mrf.mxu0 }
 0xe5e   :  { %v5674_v30 = vpop.f32.mrf.mxu0 }
 0xe5f   :  { %4850 = vmatpush1.bf16.msra.mxu1 %v6199_v59  ;;  %v5675_v3 = vadd.f32 %v5674_v30, %v5673_v31 }
 0xe60   :  { %4851 = vmatprep.subr.bf16.mxu1 %v6207_v51  ;;  %v5676_v13 = vpop.f32.mrf.mxu0 }
 0xe62   :  { %v5677_v4 = vpop.f32.mrf.mxu0 }
 0xe63   :  { %4852 = vmatpush1.bf16.msra.mxu1 %v6205_v22  ;;  %v5678_v51 = vadd.f32 %v5677_v4, %v5676_v13  ;;  %v3817_v22 = vadd.f32 %v5675_v3, %v3081_v50  ;;  %v6221_v4 = vld [vmem:[%s8364_s12 + $0xb0] ss:$12 sps:$4 sm:$0xff]  }
 0xe64   :  { %4853 = vmatprep.subr.bf16.mxu1 %v6213_v49 }
 0xe67   :  { %4854 = vmatpush1.bf16.msra.mxu1 %v6211_v18 }
 0xe68   :  { %4855 = vmatprep.subr.bf16.mxu1 %v6219_v61 }
 0xe6b   :  { %v3730_v33 = vpop.f32.mrf.mxu1  ;;  %4856 = vmatpush1.bf16.msra.mxu1 %v6217_v20  ;;  %v3820_v20 = vadd.f32 %v5678_v51, %v3081_v50 }
 0xe6c   :  { %v3731_v35 = vadd.f32 %v3730_v33, %v3073_v62  ;;  %4857 = vmatprep.subr.bf16.mxu1 %v6224_v25 }
 0xe6d   :  { %v3732_v60 = vpop.f32.mrf.mxu1 }
 0xe6e   :  { %v8162_v58 = vadd.f32 %v3773_v15, %v3731_v35  ;;  %v3733_v44 = vadd.f32 %v3732_v60, %v3077_v32 }
 0xe6f   :  { %v3734_v36 = vpop.f32.mrf.mxu1  ;;  %4858 = vmatpush1.bf16.msra.mxu1 %v6222_v34 }
 0xe70   :  { %v3876_v38 = vmul.f32 0.044715, %v8162_v58  ;;  %v8168_v45 = vadd.f32 %v3775_v16, %v3733_v44  ;;  %v3735_v0 = vadd.f32 %v3734_v36, %v3073_v62  ;;  %4859 = vmatprep.subr.bf16.mxu1 %v6229_v21 }
 0xe71   :  { %v3736_v47 = vpop.f32.mrf.mxu1 }
 0xe72   :  { %v3886_v29 = vmul.f32 %v3876_v38, %v8162_v58  ;;  %v3877_v5 = vmul.f32 0.044715, %v8168_v45  ;;  %v3778_v48 = vadd.f32 %v3777_v19, %v3735_v0  ;;  %v3737_v6 = vadd.f32 %v3736_v47, %v3077_v32 }
 0xe73   :  { %4860 = vmatpush1.bf16.msra.mxu1 %v6227_v57  ;;  %v3867_v13 = vmul.f32 0.5, %v8168_v45 }
 0xe74   :  { %v3896_v54 = vmul.f32 %v3886_v29, %v8162_v58  ;;  %v3887_v55 = vmul.f32 %v3877_v5, %v8168_v45  ;;  %v3881_v56 = vmul.f32 0.044715, %v3778_v48  ;;  %v3780_v39 = vadd.f32 %v3779_v52, %v3737_v6  ;;  %5706 = vmatprep.subr.bf16.mxu1 %v6232_v46 }
 0xe75   :  { %v3871_v5 = vmul.f32 0.5, %v3778_v48 }
 0xe76   :  { %v3906_v41 = vadd.f32 %v3896_v54, %v8162_v58  ;;  %v3891_v24 = vmul.f32 %v3881_v56, %v3778_v48  ;;  %v3882_v28 = vmul.f32 0.044715, %v3780_v39  ;;  %v3897_v11 = vmul.f32 %v3887_v55, %v8168_v45 }
 0xe77   :  { %v3872_v54 = vmul.f32 0.5, %v3780_v39  ;;  %v3866_v56 = vmul.f32 0.5, %v8162_v58  ;;  %v6226_v58 = vld [vmem:[%s8364_s12 + $0x98] ss:$12 sps:$4 sm:$0xff]  }
 0xe78   :  { %v3901_v27 = vmul.f32 %v3891_v24, %v3778_v48  ;;  %v3892_v14 = vmul.f32 %v3882_v28, %v3780_v39  ;;  %v3916_v42 = vmul.f32 0.7978846, %v3906_v41  ;;  %v3907_v59 = vadd.f32 %v3897_v11, %v8168_v45 }
 0xe7a   :  { %v3911_v15 = vadd.f32 %v3901_v27, %v3778_v48  ;;  %v3902_v49 = vmul.f32 %v3892_v14, %v3780_v39  ;;  %v3917_v16 = vmul.f32 0.7978846, %v3907_v59  ;;  %6314 = vtanh.f32 %v3916_v42  ;;  %v6225_v48 = vld [vmem:[%s8364_s12 + $0x158] ss:$12 sps:$4 sm:$0xff]   ;;  %v6231_v42 = vld [vmem:[%s8364_s12 + $0x80] ss:$12 sps:$4 sm:$0xff]  }
 0xe7b   :  { %v3857_v8 = vpop.f32.mrf.mxu1 }
 0xe7c   :  { %v3858_v23 = vadd.f32 %v3857_v8, %v3817_v22  ;;  %v3912_v63 = vadd.f32 %v3902_v49, %v3780_v39  ;;  %v3921_v18 = vmul.f32 0.7978846, %v3911_v15  ;;  %6316 = vtanh.f32 %v3917_v16  ;;  %v6230_v39 = vld [vmem:[%s8364_s12 + $0x140] ss:$12 sps:$4 sm:$0xff]   ;;  %v6234_v8 = vld [vmem:[%s8364_s12 + $0x230] ss:$12 sps:$4 sm:$0xff]  }
 0xe7d   :  { %v5851_v61 = vpop.f32.mrf.mxu1 }
 0xe7e   :  { %v3878_v19 = vmul.f32 0.044715, %v3858_v23  ;;  %v3922_v62 = vmul.f32 0.7978846, %v3912_v63  ;;  %6318 = vtanh.f32 %v3921_v18  ;;  %v3868_v59 = vmul.f32 0.5, %v3858_v23 }
 0xe7f   :  { %v3860_v25 = vpop.f32.mrf.mxu1  ;;  %v6236_v63 = vld [vmem:[%s8364_s12 + $0x2d8] ss:$12 sps:$4 sm:$0xff]   ;;  %v6237_v18 = vld [vmem:[%s8364_s12 + $0x110] ss:$12 sps:$4 sm:$0xff]  }
 0xe80   :  { %v3888_v52 = vmul.f32 %v3878_v19, %v3858_v23  ;;  %v3861_v32 = vadd.f32 %v3860_v25, %v3820_v20  ;;  %6320 = vtanh.f32 %v3922_v62  ;;  %v6238_v61 = vld [vmem:[%s8364_s12 + $0x218] ss:$12 sps:$4 sm:$0xff]   ;;  %v6239_v19 = vld [vmem:[%s8364_s12 + $0x50] ss:$12 sps:$4 sm:$0xff]   ;;  %v6240_v20 = vld [vmem:[%s8364_s12 + $0x2c0] ss:$12 sps:$4 sm:$0xff]  }
 0xe81   :  { %v5852_v31 = vpop.f32.mrf.mxu1  ;;  %v6241_v62 = vld [vmem:[%s8364_s12 + $0xf8] ss:$12 sps:$4 sm:$0xff]   ;;  %v6242_v25 = vld [vmem:[%s8364_s12 + $0x200] ss:$12 sps:$4 sm:$0xff]  }
 0xe82   :  { %v3898_v33 = vmul.f32 %v3888_v52, %v3858_v23  ;;  %v3883_v34 = vmul.f32 0.044715, %v3861_v32  ;;  %v3873_v51 = vmul.f32 0.5, %v3861_v32  ;;  %v6243_v52 = vld [vmem:[%s8364_s12 + $0x38] ss:$12 sps:$4 sm:$0xff]  }
 0xe83   :  { %v6245_v31 = vld [vmem:[%s8364_s12 + $0xe0] ss:$12 sps:$4 sm:$0xff]  }
 0xe84   :  { %v3908_v35 = vadd.f32 %v3898_v33, %v3858_v23  ;;  %v3893_v21 = vmul.f32 %v3883_v34, %v3861_v32  ;;  %v6235_v23 = vld [vmem:[%s8364_s12 + $0x68] ss:$12 sps:$4 sm:$0xff]   ;;  %v6247_v34 = vld [vmem:[%s8364_s12 + $0x20] ss:$12 sps:$4 sm:$0xff]  }
 0xe85   :  { %v6246_v33 = vld [vmem:[%s8364_s12 + $0x1e8] ss:$12 sps:$4 sm:$0xff]  }
 0xe86   :  { %v3918_v60 = vmul.f32 0.7978846, %v3908_v35  ;;  %v3903_v44 = vmul.f32 %v3893_v21, %v3861_v32  ;;  %v6248_v35 = vld [vmem:[%s8364_s12 + $0x290] ss:$12 sps:$4 sm:$0xff]   ;;  %v6249_v21 = vld [vmem:[%s8364_s12 + $0xc8] ss:$12 sps:$4 sm:$0xff]  }
 0xe87   :  { %v6315_v36 = vpop.eup %6314 }
 0xe88   :  { %6322 = vtanh.f32 %v3918_v60  ;;  %v3913_v30 = vadd.f32 %v3903_v44, %v3861_v32  ;;  %v3936_v6 = vadd.f32 1.0, %v6315_v36  ;;  %v6244_v32 = vld [vmem:[%s8364_s12 + $0x2a8] ss:$12 sps:$4 sm:$0xff]   ;;  %v6250_v60 = vld [vmem:[%s8364_s12 + $0x1d0] ss:$12 sps:$4 sm:$0xff]  }
 0xe89   :  { %v6317_v57 = vpop.eup %6316  ;;  %v6251_v44 = vld [vmem:[%s8364_s12 + $0x8] ss:$12 sps:$4 sm:$0xff]   ;;  %v6253_v36 = vld [vmem:[%s8364_s12 + $0x1b8] ss:$12 sps:$4 sm:$0xff]  }
 0xe8a   :  { %v3923_v38 = vmul.f32 0.7978846, %v3913_v30  ;;  %v3937_v46 = vadd.f32 1.0, %v6317_v57  ;;  %v3946_v24 = vmul.f32 %v3936_v6, %v3866_v56  ;;  %v6252_v30 = vld [vmem:[%s8364_s12 + $0x278] ss:$12 sps:$4 sm:$0xff]  }
 0xe8b   :  { %v6319_v0 = vpop.eup %6318  ;;  %v6254_v57 = vld [vmem:[%s8364_s12 + $0x3b0] ss:$12 sps:$4 sm:$0xff]  }
 0xe8c   :  { %6324 = vtanh.f32 %v3923_v38  ;;  %v3941_v47 = vadd.f32 1.0, %v6319_v0  ;;  %v3947_v3 = vmul.f32 %v3937_v46, %v3867_v13  ;;  %v6255_v38 = vld [vmem:[%s8364_s12 + $0x260] ss:$12 sps:$4 sm:$0xff]   ;;  %v6257_v46 = vld [vmem:[%s8364_s12 + $0x398] ss:$12 sps:$4 sm:$0xff]  }
 0xe8d   :  { %v6321_v29 = vpop.eup %6320  ;;  %v6256_v0 = vld [vmem:[%s8364_s12 + $0x1a0] ss:$12 sps:$4 sm:$0xff]   ;;  %v6262_v6 = vld [vmem:[%s8364_s12 + $0x350] ss:$12 sps:$4 sm:$0xff]   ;;  %v6263_v13 = vld [vmem:[%s8364_s12 + $0x338] ss:$12 sps:$4 sm:$0xff]  }
 0xe8e   :  { %v3942_v55 = vadd.f32 1.0, %v6321_v29  ;;  %v3951_v50 = vmul.f32 %v3941_v47, %v3871_v5  ;;  %v6258_v47 = vld [vmem:[%s8364_s12 + $0x248] ss:$12 sps:$4 sm:$0xff]   ;;  %v6260_v29 = vld [vmem:[%s8364_s12 + $0x380] ss:$12 sps:$4 sm:$0xff]  }
 0xe8f   :  { %v6261_v5 = vld [vmem:[%s8364_s12 + $0x368] ss:$12 sps:$4 sm:$0xff]  }
 0xe90   :  { %v3952_v41 = vmul.f32 %v3942_v55, %v3872_v54  ;;  %v8188_v11 = vpack.c.bf16 %v3951_v50, %v3946_v24  ;;  %v6264_v54 = vld [vmem:[%s8364_s12 + $0x320] ss:$12 sps:$4 sm:$0xff]   ;;  %v6265_v55 = vld [vmem:[%s8364_s12 + $0x308] ss:$12 sps:$4 sm:$0xff]  }
 0xe92   :  { %v3957_v28 = vpack.c.bf16 %v3952_v41, %v3947_v3 }
 0xe94   :  { %4834 = vmatprep.mubr.bf16.mxu0 %v3957_v28 }
 0xe95   :  { %v6323_v45 = vpop.eup %6322  ;;  %4835 = vmatmul.mubr.bf16.vlgmr.msra.gmra.mxu0 %v8188_v11 }
 0xe96   :  { %5685 = vmatpush3.bf16.msra.mxu0 %v6221_v4  ;;  %4920 = vmatprep.mubr.bf16.mxu0 %v8108_v7  ;;  %v3938_v27 = vadd.f32 1.0, %v6323_v45  ;;  %v6233_v7 = vld [vmem:[%s8364_s12 + $0x128] ss:$12 sps:$4 sm:$0xff]  }
 0xe97   :  { %5686 = vmatprep.subr.bf16.mxu0 %v6225_v48 }
 0xe98   :  { %v3948_v22 = vmul.f32 %v3938_v27, %v3868_v59 }
 0xe99   :  { %v6325_v14 = vpop.eup %6324 }
 0xe9a   :  { %5687 = vmatpush3.bf16.msra.mxu0 %v6226_v58  ;;  %v3943_v15 = vadd.f32 1.0, %v6325_v14 }
 0xe9b   :  { %5688 = vmatprep.subr.bf16.mxu0 %v6230_v39 }
 0xe9c   :  { %v3953_v49 = vmul.f32 %v3943_v15, %v3873_v51 }
 0xe9e   :  { %5689 = vmatpush3.bf16.msra.mxu0 %v6231_v42  ;;  %v8210_v16 = vpack.c.bf16 %v3953_v49, %v3948_v22 }
 0xe9f   :  { %5690 = vmatprep.subr.bf16.mxu0 %v6233_v7 }
 0xea0   :  { %4878 = vmatmul.mubr.bf16.vlgmr.msra.gmra.mxu1 %v8210_v16 }
 0xea1   :  { %5707 = vmatpush3.bf16.msra.mxu1 %v6234_v8  ;;  %4961 = vmatprep.mubr.bf16.mxu1 %v3957_v28 }
 0xea2   :  { %5691 = vmatpush3.bf16.msra.mxu0 %v6235_v23  ;;  %5708 = vmatprep.subr.bf16.mxu1 %v6236_v63  ;;  %v5017_v63 = vld [vmem:[%s8365_s13] sm:$0x7] }
 0xea3   :  { %5692 = vmatprep.subr.bf16.mxu0 %v6237_v18 }
 0xea5   :  { %5709 = vmatpush3.bf16.msra.mxu1 %v6238_v61 }
 0xea6   :  { %5693 = vmatpush3.bf16.msra.mxu0 %v6239_v19  ;;  %5710 = vmatprep.subr.bf16.mxu1 %v6240_v20  ;;  %v5026_v20 = vrot.slane %v5017_v63, %v6678_v9 }
 0xea7   :  { %5694 = vmatprep.subr.bf16.mxu0 %v6241_v62 }
 0xea9   :  { %5711 = vmatpush3.bf16.msra.mxu1 %v6242_v25 }
 0xeaa   :  { %5695 = vmatpush3.bf16.msra.mxu0 %v6243_v52  ;;  %5712 = vmatprep.subr.bf16.mxu1 %v6244_v32 }
 0xeab   :  { %5696 = vmatprep.subr.bf16.mxu0 %v6245_v31 }
 0xead   :  { %5713 = vmatpush3.bf16.msra.mxu1 %v6246_v33  ;;  %v5022_v33 = vrot.slane %v5017_v63, %v6687_v12 }
 0xeae   :  { %5697 = vmatpush3.bf16.msra.mxu0 %v6247_v34  ;;  %5714 = vmatprep.subr.bf16.mxu1 %v6248_v35 }
 0xeaf   :  { %5698 = vmatprep.subr.bf16.mxu0 %v6249_v21 }
 0xeb1   :  { %5715 = vmatpush3.bf16.msra.mxu1 %v6250_v60 }
 0xeb2   :  { %5699 = vmatpush3.bf16.msra.mxu0 %v6251_v44  ;;  %5716 = vmatprep.subr.bf16.mxu1 %v6252_v30  ;;  %v5030_v44 = vrot.slane %v5017_v63, %v6681_v10 }
 0xeb3   :  { %5853 = vmatprep.subr.bf16.mxu0 %v6359_v1 }
 0xeb5   :  { %4921 = vmatmul.mubr.bf16.vlgmr.msra.gmra.mxu0 %v8113_v53  ;;  %5717 = vmatpush3.bf16.msra.mxu1 %v6253_v36  ;;  %v6259_v53 = vld [vmem:[%s8364_s12 + $0x188] ss:$12 sps:$4 sm:$0xff]  }
 0xeb6   :  { %5854 = vmatpush3.bf16.msra.mxu0 %v6254_v57  ;;  %5718 = vmatprep.subr.bf16.mxu1 %v6255_v38 }
 0xeb7   :  { %5855 = vmatprep.subr.bf16.mxu0 %v6359_v1  ;;  %5869 = vmatprep.mubr.msk.bf16.mxu0 %vm6360_vm1, %v6359_v1 }
 0xeb9   :  { %5719 = vmatpush3.bf16.msra.mxu1 %v6256_v0 }
 0xeba   :  { %5856 = vmatpush3.bf16.msra.mxu0 %v6257_v46  ;;  %5720 = vmatprep.subr.bf16.mxu1 %v6258_v47 }
 0xebb   :  { %5857 = vmatprep.subr.bf16.mxu0 %v6359_v1 }
 0xebd   :  { %5721 = vmatpush3.bf16.msra.mxu1 %v6259_v53 }
 0xebe   :  { %5858 = vmatpush3.bf16.msra.mxu0 %v6260_v29 }
 0xebf   :  { %5859 = vmatprep.subr.bf16.mxu0 %v6359_v1 }
 0xec0   :  { %4962 = vmatmul.mubr.bf16.vlgmr.msra.gmra.mxu1 %v8188_v11 }
 0xec2   :  { %5860 = vmatpush3.bf16.msra.mxu0 %v6261_v5 }
 0xec3   :  { %5861 = vmatprep.subr.bf16.mxu0 %v6359_v1 }
 0xec6   :  { %5862 = vmatpush3.bf16.msra.mxu0 %v6262_v6 }
 0xec7   :  { %5863 = vmatprep.subr.bf16.mxu0 %v6359_v1 }
 0xeca   :  { %5864 = vmatpush3.bf16.msra.mxu0 %v6263_v13 }
 0xecb   :  { %5865 = vmatprep.subr.bf16.mxu0 %v6359_v1 }
 0xece   :  { %5866 = vmatpush3.bf16.msra.mxu0 %v6264_v54 }
 0xecf   :  { %5867 = vmatprep.subr.bf16.mxu0 %v6359_v1 }
 0xed2   :  { %5868 = vmatpush3.bf16.msra.mxu0 %v6265_v55 }
 0xed5   :  { %5870 = vmatmul.mubr.bf16.vlgmr.msra.gmra.mxu0 %v8210_v16 }
 0xf16   :  { %v4793_v56 = vpop.f32.mrf.mxu1 }
 0xf18   :  { %v4795_v50 = vpop.f32.mrf.mxu1 }
 0xf1a   :  { %v4797_v3 = vpop.f32.mrf.mxu1 }
 0xf1c   :  { %v4799_v41 = vpop.f32.mrf.mxu1 }
 0xf55   :  { %v4836_v28 = vpop.f32.mrf.mxu0 }
 0xf56   :  { %v4837_v15 = vadd.f32 %v4836_v28, %v4793_v56 }
 0xf57   :  { %v4838_v11 = vpop.f32.mrf.mxu0 }
 0xf58   :  { %v4839_v1 = vadd.f32 %v4838_v11, %v4795_v50 }
 0xf59   :  { %v4840_v45 = vpop.f32.mrf.mxu0 }
 0xf5a   :  { %v4841_v61 = vadd.f32 %v4840_v45, %v4797_v3 }
 0xf5b   :  { %v4842_v39 = vpop.f32.mrf.mxu0 }
 0xf5c   :  { %v4843_v8 = vadd.f32 %v4842_v39, %v4799_v41 }
 0xf60   :  { %v4879_v24 = vpop.f32.mrf.mxu1 }
 0xf61   :  { %v4880_v16 = vadd.f32 %v4879_v24, %v4837_v15 }
 0xf62   :  { %v4881_v4 = vpop.f32.mrf.mxu1 }
 0xf63   :  { %v4882_v7 = vadd.f32 %v4881_v4, %v4839_v1  ;;  %v5011_v31 = vadd.f32 %v4880_v16, %v7503_v2 }
 0xf64   :  { %v4883_v48 = vpop.f32.mrf.mxu1 }
 0xf65   :  { %v5012_v19 = vadd.f32 %v4882_v7, %v7505_v37  ;;  %v4884_v34 = vadd.f32 %v4883_v48, %v4841_v61  ;;  %v5034_v0 = vadd.f32 %v5022_v33, %v5011_v31 }
 0xf66   :  { %v4885_v58 = vpop.f32.mrf.mxu1 }
 0xf67   :  { %v4886_v62 = vadd.f32 %v4885_v58, %v4843_v8  ;;  %v5035_v30 = vadd.f32 %v5026_v20, %v5012_v19  ;;  %v5014_v46 = vadd.f32 %v4884_v34, %v7523_v26 }
 0xf69   :  { %v5015_v36 = vadd.f32 %v4886_v62, %v7525_v40  ;;  %v5042_v6 = vadd.f32 %v5035_v30, %v5034_v0  ;;  %v5037_v55 = vadd.f32 %v5022_v33, %v5014_v46  ;;  %v5041_v62 = vld [vmem:[%s8367_s15] sm:$0x7] }
 0xf6b   :  { %v5038_v29 = vadd.f32 %v5026_v20, %v5015_v36  ;;  %v5040_v20 = vld [vmem:[%s8366_s14] sm:$0x7]  ;;  %s6368_s14 = smov [#allocation2]  }
 0xf6c   :  { %s5143_s15 = sshll.u32 %s6368_s14, 4  ;;  %s5144_s15 = int_to_ptr.vmem [resolvable:$true] %s5143_s15 }
 0xf6d   :  { %v5047_v50 = vadd.f32 %v5038_v29, %v5037_v55  ;;  %s6336_s22 = scalar_lea.vmem %s5144_s15, 768  ;;  %p6341_p1 = scmp.lt.s32.totalorder %s5144_s15, %s5144_s15 }
 0xf6e   :  { %p6337_p0 = scmp.ne.s32.totalorder %s5144_s15, %s6336_s22  ;;  %p6342_p2 = scmp.lt.s32.totalorder %s6336_s22, %s6336_s22 }
 0xf70   :  { %p6343_p3 = por %p6342_p2, %p6341_p1 }
 0xf72   :  { %p6344_p4 = pnand %p6343_p3, %p6337_p0 }
 0xf75   :  { %v5700_v14 = vpop.f32.mrf.mxu0 }
 0xf77   :  { %v5701_v59 = vpop.f32.mrf.mxu0 }
 0xf78   :  { %v5702_v18 = vadd.f32 %v5701_v59, %v5700_v14 }
 0xf79   :  { %v5703_v22 = vpop.f32.mrf.mxu0 }
 0xf7b   :  { %v5704_v25 = vpop.f32.mrf.mxu0 }
 0xf7c   :  { %v5705_v21 = vadd.f32 %v5704_v25, %v5703_v22  ;;  %v5092_v25 = vrot.slane %v5040_v20, %v6687_v12 }
 0xf80   :  { %v5722_v27 = vpop.f32.mrf.mxu1 }
 0xf82   :  { %v5723_v42 = vpop.f32.mrf.mxu1 }
 0xf83   :  { %v5724_v49 = vadd.f32 %v5723_v42, %v5722_v27 }
 0xf84   :  { %v5725_v51 = vpop.f32.mrf.mxu1 }
 0xf85   :  { %v4964_v32 = vadd.f32 %v5724_v49, %v5702_v18 }
 0xf86   :  { %v5726_v23 = vpop.f32.mrf.mxu1 }
 0xf87   :  { %v5727_v52 = vadd.f32 %v5726_v23, %v5725_v51 }
 0xf89   :  { %v4967_v38 = vadd.f32 %v5727_v52, %v5705_v21  ;;  %v5096_v52 = vrot.slane %v5040_v20, %v6678_v9  ;;  %v5114_v21 = vrot.slane %v5041_v62, %v6687_v12 }
 0xf95   :  { %v5004_v35 = vpop.f32.mrf.mxu0 }
 0xf96   :  { %v5005_v60 = vadd.f32 %v5004_v35, %v4964_v32  ;;  %v5100_v32 = vrot.slane %v5040_v20, %v6681_v10 }
 0xf97   :  { %v5871_v37 = vpop.f32.mrf.mxu0 }
 0xf98   :  { %v5013_v57 = vadd.f32 %v5005_v60, %v7500_v43  ;;  %v5118_v60 = vrot.slane %v5041_v62, %v6678_v9 }
 0xf99   :  { %v5007_v47 = vpop.f32.mrf.mxu0 }
 0xf9a   :  { %v5008_v2 = vadd.f32 %v5007_v47, %v4967_v38  ;;  %v5036_v53 = vadd.f32 %v5030_v44, %v5013_v57 }
 0xf9b   :  { %v5872_v5 = vpop.f32.mrf.mxu0 }
 0xf9c   :  { %v5016_v13 = vadd.f32 %v5008_v2, %v7519_v17  ;;  %v5043_v54 = vsel %vm66_vm0, %v5036_v53, 0.0 }
 0xf9d   :  { %v5044_v56 = vadd.f32 %v5043_v54, %v5042_v6 }
 0xf9e   :  { %v5039_v40 = vadd.f32 %v5030_v44, %v5016_v13  ;;  %v5122_v44 = vrot.slane %v5041_v62, %v6681_v10 }
 0xf9f   :  { %5045 = vadd.xlane.f32.xlu0 %v5044_v56 }
 0xfa0   :  { %v5048_v43 = vsel %vm66_vm0, %v5039_v40, 0.0 }
 0xfa1   :  { %v5049_v3 = vadd.f32 %v5048_v43, %v5047_v50 }
 0xfa3   :  { %5050 = vadd.xlane.f32.xlu1 %v5049_v3 }
0x1028   :  { %v5046_v26 = vpop.xlane.xlu0 %5045 }
0x1029   :  { %v5052_v41 = vmul.f32 0.003125, %v5046_v26 }
0x102b   :  { %v5054_v24 = vsub.f32 %v5034_v0, %v5052_v41  ;;  %v5055_v28 = vsub.f32 %v5035_v30, %v5052_v41  ;;  %v5056_v4 = vsub.f32 %v5036_v53, %v5052_v41 }
0x102c   :  { %v5051_v11 = vpop.xlane.xlu1 %5050 }
0x102d   :  { %v5053_v48 = vmul.f32 0.003125, %v5051_v11  ;;  %v5060_v45 = vmul.f32 %v5054_v24, %v5054_v24  ;;  %v5061_v17 = vmul.f32 %v5055_v28, %v5055_v28  ;;  %v5062_v58 = vmul.f32 %v5056_v4, %v5056_v4 }
0x102f   :  { %v5057_v39 = vsub.f32 %v5037_v55, %v5053_v48  ;;  %v5058_v27 = vsub.f32 %v5038_v29, %v5053_v48  ;;  %v5059_v14 = vsub.f32 %v5039_v40, %v5053_v48  ;;  %v5066_v42 = vadd.f32 %v5061_v17, %v5060_v45 }
0x1030   :  { %v5067_v59 = vsel %vm66_vm0, %v5062_v58, 0.0 }
0x1031   :  { %v5068_v1 = vadd.f32 %v5067_v59, %v5066_v42  ;;  %v5063_v51 = vmul.f32 %v5057_v39, %v5057_v39  ;;  %v5064_v15 = vmul.f32 %v5058_v27, %v5058_v27  ;;  %v5065_v7 = vmul.f32 %v5059_v14, %v5059_v14 }
0x1033   :  { %5069 = vadd.xlane.f32.xlu0 %v5068_v1  ;;  %v5071_v22 = vadd.f32 %v5064_v15, %v5063_v51  ;;  %v5072_v49 = vsel %vm66_vm0, %v5065_v7, 0.0 }
0x1035   :  { %v5073_v8 = vadd.f32 %v5072_v49, %v5071_v22 }
0x1037   :  { %5074 = vadd.xlane.f32.xlu1 %v5073_v8 }
0x10bc   :  { %v5070_v16 = vpop.xlane.xlu0 %5069 }
0x10bd   :  { %v5076_v23 = vmul.f32 0.003125, %v5070_v16 }
0x10bf   :  { %v5078_v63 = vadd.f32 1e-05, %v5076_v23 }
0x10c0   :  { %v5075_v18 = vpop.xlane.xlu1 %5074 }
0x10c1   :  { %6326 = vrsqrt.f32 %v5078_v63  ;;  %v5077_v61 = vmul.f32 0.003125, %v5075_v18 }
0x10c3   :  { %v5079_v19 = vadd.f32 1e-05, %v5077_v61 }
0x10c5   :  { %6328 = vrsqrt.f32 %v5079_v19 }
0x10ce   :  { %v6327_v31 = vpop.eup %6326 }
0x10cf   :  { %v5082_v33 = vmul.f32 %v6327_v31, %v5054_v24  ;;  %v5083_v34 = vmul.f32 %v6327_v31, %v5055_v28  ;;  %v5084_v35 = vmul.f32 %v6327_v31, %v5056_v4 }
0x10d1   :  { %v5104_v30 = vmul.f32 %v5092_v25, %v5082_v33  ;;  %v5105_v36 = vmul.f32 %v5096_v52, %v5083_v34  ;;  %v5106_v37 = vmul.f32 %v5100_v32, %v5084_v35 }
0x10d2   :  { %v6329_v57 = vpop.eup %6328 }
0x10d3   :  { %v5085_v38 = vmul.f32 %v6329_v57, %v5057_v39  ;;  %v5086_v0 = vmul.f32 %v6329_v57, %v5058_v27  ;;  %v5087_v46 = vmul.f32 %v6329_v57, %v5059_v14  ;;  %v5126_v47 = vadd.f32 %v5114_v21, %v5104_v30 }
0x10d4   :  { %v5127_v2 = vadd.f32 %v5118_v60, %v5105_v36  ;;  %v5128_v53 = vadd.f32 %v5122_v44, %v5106_v37 }
0x10d5   :  { %v5107_v29 = vmul.f32 %v5092_v25, %v5085_v38  ;;  %v5108_v5 = vmul.f32 %v5096_v52, %v5086_v0  ;;  %v5109_v6 = vmul.f32 %v5100_v32, %v5087_v46  ;;  %5132 = vst [vmem:[#allocation2] sm:$0xff] %v5126_v47 }
0x10d6   :  { %5133 = vst [vmem:[#allocation2 + $0x8] sm:$0xff] %v5127_v2  ;;  %5134 = vst.msk [vmem:[#allocation2 + $0x10] sm:$0xff] %vm66_vm0, %v5128_v53 }
0x10d7   :  { %v5129_v9 = vadd.f32 %v5114_v21, %v5107_v29  ;;  %v5130_v10 = vadd.f32 %v5118_v60, %v5108_v5  ;;  %v5131_v12 = vadd.f32 %v5122_v44, %v5109_v6 }
0x10d9   :  { %5135 = vst [vmem:[#allocation2 + $0x18] sm:$0xff] %v5129_v9  ;;  %5136 = vst [vmem:[#allocation2 + $0x20] sm:$0xff] %v5130_v10 }
0x10da   :  { %5137 = vst.msk [vmem:[#allocation2 + $0x28] sm:$0xff] %vm66_vm0, %v5131_v12 }
0x10db   :  { %6347 = shalt.err (!%p6344_p4)
}
0x10dc   :  { %s6369_s6 = smov 384   ;;  %s6370_s24 = smov 24  }
0x10dd   :  { %5149 = dma.vmem_to_hbm [thread:$0]  %s5144_s15, 768, %s8368_s16, [#allocation3], %s6369_s6, %s6369_s6, %s6370_s24  }
0x10de   :  { %6356 = dma.done.wait [#allocation3], 768  }
0x10df   :  { %6357 = vsyncadd [#allocation3], 4294966528 }
0x10e0   :  { %5153 = vsyncpa [#allocation3], 1 }

</bundles_post_ra>
